<compile_context>
chip_gen: v7x
topology: tpu7x:2x2x1
jax: 0.10.0
libtpu: 0.0.40
codegen_flags: <defaults>
</compile_context>

<pallas_src>
import jax
import jax.numpy as jnp
from jax import lax
from jax.experimental import pallas as pl
from jax.experimental.pallas import tpu as pltpu

RK4_SUBSTEPS = 4          # fixed RK4 substeps per time interval
UNROLL_TIME_STEPS = 16    # fully unroll the time loop up to this many time points


def decoder_kernel(dtc_ref, z0_ref,
                   w1_ref, b1_ref, w2_ref, b2_ref,
                   wd1_ref, bd1_ref, wd2_ref, bd2_ref,
                   out_ref, traj_ref):
    """RK4 ODE integration + batched decipher MLP, all in one kernel.

    dtc_ref  : (3*(S-1),) SMEM f32, [dt, dt/2, dt/6] per time interval
               (dt already divided by RK4_SUBSTEPS in the wrapper)
    z0_ref   : (N, D) VMEM
    w*/b*    : MLP params in VMEM (biases shaped (1, H); wd2/bd2 pre-padded to
               C_pad = multiple of 128 output columns)
    out_ref  : (N, S*C_pad) VMEM, batch-major lane-dense output slab
    traj_ref : (S*N, D) VMEM scratch, time-major trajectory slab
    """
    N, D = z0_ref.shape
    H = w1_ref.shape[1]
    SN = traj_ref.shape[0]
    S = SN // N
    C_pad = out_ref.shape[1] // S

    # Hoist all invariant loads / broadcasts out of every loop
    # (JAX does not CSE broadcast_in_dim).
    w1 = w1_ref[...]
    w2 = w2_ref[...]
    b1 = jnp.broadcast_to(b1_ref[...], (N, H))
    b2 = jnp.broadcast_to(b2_ref[...], (N, D))

    def ode_f(z):
        h = jnp.tanh(jnp.dot(z, w1, preferred_element_type=jnp.float32) + b1)
        return jnp.dot(h, w2, preferred_element_type=jnp.float32) + b2

    def rk4_interval(z, dt, half_dt, dt_over_6):
        # RK4 substep loop is always statically unrolled (small, fixed count).
        for _ in range(RK4_SUBSTEPS):
            k1 = ode_f(z)
            k2 = ode_f(z + half_dt * k1)
            k3 = ode_f(z + half_dt * k2)
            k4 = ode_f(z + dt * k3)
            z = z + dt_over_6 * (k1 + 2.0 * (k2 + k3) + k4)
        return z

    z = z0_ref[...].astype(jnp.float32)
    traj_ref[0:N, :] = z  # trajectory at t[0] is z0 itself (odeint convention)

    if S <= UNROLL_TIME_STEPS:
        # Fully unrolled serial chain: scheduler sees the whole dependence chain.
        for s in range(1, S):
            i = 3 * (s - 1)
            z = rk4_interval(z, dtc_ref[i], dtc_ref[i + 1], dtc_ref[i + 2])
            traj_ref[s * N:(s + 1) * N, :] = z
    else:
        # Large S: bounded instruction memory; per-step VMEM store hides under
        # the serial MXU latency of the chain.
        def step(s, z):
            i = 3 * (s - 1)
            z = rk4_interval(z, dtc_ref[i], dtc_ref[i + 1], dtc_ref[i + 2])
            traj_ref[pl.ds(pl.multiple_of(s * N, N), N), :] = z
            return z
        z = lax.fori_loop(1, S, step, z)

    # Single batched decipher over the whole trajectory (2 matmuls total,
    # off the serial RK4 critical path).
    zt = traj_ref[...]                                   # (S*N, D), time-major
    h = jnp.maximum(
        jnp.dot(zt, wd1_ref[...], preferred_element_type=jnp.float32) + bd1_ref[...],
        0.0,
    )
    out_all = (
        jnp.dot(h, wd2_ref[...], preferred_element_type=jnp.float32) + bd2_ref[...]
    )                                                    # (S*N, C_pad)

    # Batch-major, lane-dense stores: one unmasked (N, 128)-tile per time step.
    for s in range(S):
        out_ref[:, s * C_pad:(s + 1) * C_pad] = out_all[s * N:(s + 1) * N, :]


def decoder_forward(z0, t, params):
    """z0: (N, D) float32, t: (S,) float32. Returns (N, S, C) float32."""
    N, D = z0.shape
    S = t.shape[0]
    H2, C = params["wd2"].shape
    C_pad = max(128, -(-C // 128) * 128)  # lane-dense output width

    # Precompute per-interval RK4 step constants (removes scalar sub/div from
    # the in-kernel serial chain).  Layout: [dt_0, dt_0/2, dt_0/6, dt_1, ...]
    if S > 1:
        dts = (t[1:] - t[:-1]).astype(jnp.float32) / jnp.float32(RK4_SUBSTEPS)
    else:
        dts = jnp.zeros((1,), jnp.float32)
    dtc = jnp.stack([dts, 0.5 * dts, dts / 6.0], axis=1).reshape(-1)

    # Zero-pad the final decipher layer so the kernel writes unmasked 128-lane
    # tiles instead of lane-sparse (N, C) partial stores.
    wd2_p = jnp.zeros((H2, C_pad), jnp.float32).at[:, :C].set(params["wd2"])
    bd2_p = jnp.zeros((1, C_pad), jnp.float32).at[:, :C].set(params["bd2"])

    vmem = pl.BlockSpec(memory_space=pltpu.MemorySpace.VMEM)
    smem = pl.BlockSpec(memory_space=pltpu.MemorySpace.SMEM)

    out_flat = pl.pallas_call(
        decoder_kernel,
        out_shape=jax.ShapeDtypeStruct((N, S * C_pad), jnp.float32),
        in_specs=[smem] + [vmem] * 9,
        out_specs=vmem,
        scratch_shapes=[pltpu.VMEM((S * N, D), jnp.float32)],
    )(
        dtc, z0,
        params["w1"], params["b1"], params["w2"], params["b2"],
        params["wd1"], params["bd1"], wd2_p, bd2_p,
    )
    # (N, S*C_pad) -> (N, S, C): reshape + slice only, no transpose needed.
    return out_flat.reshape(N, S, C_pad)[:, :, :C]


def reference_forward(z0, t, params):
    """Pure-JAX reference with the identical fixed-step RK4 integrator."""
    def ode_f(z):
        h = jnp.tanh(z @ params["w1"] + params["b1"])
        return h @ params["w2"] + params["b2"]

    S = t.shape[0]
    z = z0
    traj = [z]
    for s in range(1, S):
        dt = (t[s] - t[s - 1]) / RK4_SUBSTEPS
        for _ in range(RK4_SUBSTEPS):
            k1 = ode_f(z)
            k2 = ode_f(z + 0.5 * dt * k1)
            k3 = ode_f(z + 0.5 * dt * k2)
            k4 = ode_f(z + dt * k3)
            z = z + dt / 6.0 * (k1 + 2.0 * (k2 + k3) + k4)
        traj.append(z)
    zt = jnp.transpose(jnp.stack(traj, axis=0), (1, 0, 2))   # (N, S, D)
    h = jnp.maximum(zt @ params["wd1"] + params["bd1"], 0.0)
    return h @ params["wd2"] + params["bd2"]


def init_params(key, D, H, H2, C):
    ks = jax.random.split(key, 4)
    scale = 0.1
    return {
        # ode_function: D -> H -> D
        "w1": scale * jax.random.normal(ks[0], (D, H), jnp.float32),
        "b1": jnp.zeros((1, H), jnp.float32),
        "w2": scale * jax.random.normal(ks[1], (H, D), jnp.float32),
        "b2": jnp.zeros((1, D), jnp.float32),
        # deciphernet: D -> H2 -> C
        "wd1": scale * jax.random.normal(ks[2], (D, H2), jnp.float32),
        "bd1": jnp.zeros((1, H2), jnp.float32),
        "wd2": scale * jax.random.normal(ks[3], (H2, C), jnp.float32),
        "bd2": jnp.zeros((1, C), jnp.float32),
    }


if __name__ == "__main__":
    key = jax.random.PRNGKey(0)
    k_z, k_p = jax.random.split(key)

    N, D, H, H2, C, S = 8, 32, 64, 64, 4, 8

    z0 = jax.random.normal(k_z, (N, D), jnp.float32)
    t = jnp.linspace(0.0, 1.0, S, dtype=jnp.float32)
    params = init_params(k_p, D, H, H2, C)

    out = decoder_forward(z0, t, params)
    out = jax.block_until_ready(out)

    assert out.shape == (N, S, C), out.shape
    assert jnp.all(jnp.isfinite(out))

    ref = jax.block_until_ready(reference_forward(z0, t, params))
    assert jnp.allclose(out, ref, atol=1e-3, rtol=1e-3), float(
        jnp.max(jnp.abs(out - ref)))

    print("KERNEL_OK")
</pallas_src>

<mosaic_0001>
module attributes {stable_mosaic.version = 11 : i64} {
  func.func @decoder_kernel(%arg0: memref<21xf32, #tpu.memory_space<smem>>, %arg1: memref<8x32xf32, #tpu.memory_space<vmem>>, %arg2: memref<32x64xf32, #tpu.memory_space<vmem>>, %arg3: memref<1x64xf32, #tpu.memory_space<vmem>>, %arg4: memref<64x32xf32, #tpu.memory_space<vmem>>, %arg5: memref<1x32xf32, #tpu.memory_space<vmem>>, %arg6: memref<32x64xf32, #tpu.memory_space<vmem>>, %arg7: memref<1x64xf32, #tpu.memory_space<vmem>>, %arg8: memref<64x128xf32, #tpu.memory_space<vmem>>, %arg9: memref<1x128xf32, #tpu.memory_space<vmem>>, %arg10: memref<8x1024xf32, #tpu.memory_space<vmem>>, %arg11: memref<64x32xf32, #tpu.memory_space<vmem>>) attributes {dimension_semantics = [], scalar_prefetch = 0 : i64, scratch_operands = 1 : i64, tpu.core_type = #tpu.core_type<tc>} {
    %c0 = arith.constant 0 : index
    %c0_0 = arith.constant 0 : index
    %0 = vector.load %arg2[%c0, %c0_0] : memref<32x64xf32, #tpu.memory_space<vmem>>, vector<32x64xf32>
    %c0_1 = arith.constant 0 : index
    %c0_2 = arith.constant 0 : index
    %1 = vector.load %arg4[%c0_1, %c0_2] : memref<64x32xf32, #tpu.memory_space<vmem>>, vector<64x32xf32>
    %c0_3 = arith.constant 0 : index
    %c0_4 = arith.constant 0 : index
    %2 = vector.load %arg3[%c0_3, %c0_4] : memref<1x64xf32, #tpu.memory_space<vmem>>, vector<1x64xf32>
    %3 = vector.shape_cast %2 : vector<1x64xf32> to vector<1x64xf32>
    %4 = vector.broadcast %3 : vector<1x64xf32> to vector<8x64xf32>
    %c0_5 = arith.constant 0 : index
    %c0_6 = arith.constant 0 : index
    %5 = vector.load %arg5[%c0_5, %c0_6] : memref<1x32xf32, #tpu.memory_space<vmem>>, vector<1x32xf32>
    %6 = vector.shape_cast %5 : vector<1x32xf32> to vector<1x32xf32>
    %7 = vector.broadcast %6 : vector<1x32xf32> to vector<8x32xf32>
    %c0_7 = arith.constant 0 : index
    %c0_8 = arith.constant 0 : index
    %8 = vector.load %arg1[%c0_7, %c0_8] : memref<8x32xf32, #tpu.memory_space<vmem>>, vector<8x32xf32>
    %c0_9 = arith.constant 0 : index
    %c0_10 = arith.constant 0 : index
    %9 = vector.load %arg11[%c0_9, %c0_10] : memref<64x32xf32, #tpu.memory_space<vmem>>, vector<8x32xf32>
    tpu.vector_store %arg11[%c0_9, %c0_10], %8 {strides = array<i32>} : memref<64x32xf32, #tpu.memory_space<vmem>>, vector<8x32xf32>,
    %c0_11 = arith.constant 0 : index
    %10 = memref.load %arg0[%c0_11] : memref<21xf32, #tpu.memory_space<smem>>
    %c1 = arith.constant 1 : index
    %11 = memref.load %arg0[%c1] : memref<21xf32, #tpu.memory_space<smem>>
    %c2 = arith.constant 2 : index
    %12 = memref.load %arg0[%c2] : memref<21xf32, #tpu.memory_space<smem>>
    %cst = arith.constant dense<0.000000e+00> : vector<8x64xf32>
    %13 = tpu.matmul %8, %0, %cst {dimension_numbers = #tpu.dot_dimension_numbers<[1], [0], [0], [1], [0, 0, 1, 1], [], []>} : vector<8x32xf32>, vector<32x64xf32>, vector<8x64xf32> -> vector<8x64xf32>
    %14 = arith.addf %13, %4 : vector<8x64xf32>
    %15 = math.tanh %14 : vector<8x64xf32>
    %cst_12 = arith.constant dense<0.000000e+00> : vector<8x32xf32>
    %16 = tpu.matmul %15, %1, %cst_12 {dimension_numbers = #tpu.dot_dimension_numbers<[1], [0], [0], [1], [0, 0, 1, 1], [], []>} : vector<8x64xf32>, vector<64x32xf32>, vector<8x32xf32> -> vector<8x32xf32>
    %17 = arith.addf %16, %7 : vector<8x32xf32>
    %18 = vector.broadcast %11 : f32 to vector<8x32xf32>
    %19 = arith.mulf %18, %17 : vector<8x32xf32>
    %20 = arith.addf %8, %19 : vector<8x32xf32>
    %cst_13 = arith.constant dense<0.000000e+00> : vector<8x64xf32>
    %21 = tpu.matmul %20, %0, %cst_13 {dimension_numbers = #tpu.dot_dimension_numbers<[1], [0], [0], [1], [0, 0, 1, 1], [], []>} : vector<8x32xf32>, vector<32x64xf32>, vector<8x64xf32> -> vector<8x64xf32>
    %22 = arith.addf %21, %4 : vector<8x64xf32>
    %23 = math.tanh %22 : vector<8x64xf32>
    %cst_14 = arith.constant dense<0.000000e+00> : vector<8x32xf32>
    %24 = tpu.matmul %23, %1, %cst_14 {dimension_numbers = #tpu.dot_dimension_numbers<[1], [0], [0], [1], [0, 0, 1, 1], [], []>} : vector<8x64xf32>, vector<64x32xf32>, vector<8x32xf32> -> vector<8x32xf32>
    %25 = arith.addf %24, %7 : vector<8x32xf32>
    %26 = vector.broadcast %11 : f32 to vector<8x32xf32>
    %27 = arith.mulf %26, %25 : vector<8x32xf32>
    %28 = arith.addf %8, %27 : vector<8x32xf32>
    %cst_15 = arith.constant dense<0.000000e+00> : vector<8x64xf32>
    %29 = tpu.matmul %28, %0, %cst_15 {dimension_numbers = #tpu.dot_dimension_numbers<[1], [0], [0], [1], [0, 0, 1, 1], [], []>} : vector<8x32xf32>, vector<32x64xf32>, vector<8x64xf32> -> vector<8x64xf32>
    %30 = arith.addf %29, %4 : vector<8x64xf32>
    %31 = math.tanh %30 : vector<8x64xf32>
    %cst_16 = arith.constant dense<0.000000e+00> : vector<8x32xf32>
    %32 = tpu.matmul %31, %1, %cst_16 {dimension_numbers = #tpu.dot_dimension_numbers<[1], [0], [0], [1], [0, 0, 1, 1], [], []>} : vector<8x64xf32>, vector<64x32xf32>, vector<8x32xf32> -> vector<8x32xf32>
    %33 = arith.addf %32, %7 : vector<8x32xf32>
    %34 = vector.broadcast %10 : f32 to vector<8x32xf32>
    %35 = arith.mulf %34, %33 : vector<8x32xf32>
    %36 = arith.addf %8, %35 : vector<8x32xf32>
    %cst_17 = arith.constant dense<0.000000e+00> : vector<8x64xf32>
    %37 = tpu.matmul %36, %0, %cst_17 {dimension_numbers = #tpu.dot_dimension_numbers<[1], [0], [0], [1], [0, 0, 1, 1], [], []>} : vector<8x32xf32>, vector<32x64xf32>, vector<8x64xf32> -> vector<8x64xf32>
    %38 = arith.addf %37, %4 : vector<8x64xf32>
    %39 = math.tanh %38 : vector<8x64xf32>
    %cst_18 = arith.constant dense<0.000000e+00> : vector<8x32xf32>
    %40 = tpu.matmul %39, %1, %cst_18 {dimension_numbers = #tpu.dot_dimension_numbers<[1], [0], [0], [1], [0, 0, 1, 1], [], []>} : vector<8x64xf32>, vector<64x32xf32>, vector<8x32xf32> -> vector<8x32xf32>
    %41 = arith.addf %40, %7 : vector<8x32xf32>
    %42 = arith.addf %25, %33 : vector<8x32xf32>
    %cst_19 = arith.constant 2.000000e+00 : f32
    %43 = vector.broadcast %cst_19 : f32 to vector<8x32xf32>
    %44 = arith.mulf %43, %42 : vector<8x32xf32>
    %45 = arith.addf %17, %44 : vector<8x32xf32>
    %46 = arith.addf %45, %41 : vector<8x32xf32>
    %47 = vector.broadcast %12 : f32 to vector<8x32xf32>
    %48 = arith.mulf %47, %46 : vector<8x32xf32>
    %49 = arith.addf %8, %48 : vector<8x32xf32>
    %cst_20 = arith.constant dense<0.000000e+00> : vector<8x64xf32>
    %50 = tpu.matmul %49, %0, %cst_20 {dimension_numbers = #tpu.dot_dimension_numbers<[1], [0], [0], [1], [0, 0, 1, 1], [], []>} : vector<8x32xf32>, vector<32x64xf32>, vector<8x64xf32> -> vector<8x64xf32>
    %51 = arith.addf %50, %4 : vector<8x64xf32>
    %52 = math.tanh %51 : vector<8x64xf32>
    %cst_21 = arith.constant dense<0.000000e+00> : vector<8x32xf32>
    %53 = tpu.matmul %52, %1, %cst_21 {dimension_numbers = #tpu.dot_dimension_numbers<[1], [0], [0], [1], [0, 0, 1, 1], [], []>} : vector<8x64xf32>, vector<64x32xf32>, vector<8x32xf32> -> vector<8x32xf32>
    %54 = arith.addf %53, %7 : vector<8x32xf32>
    %55 = vector.broadcast %11 : f32 to vector<8x32xf32>
    %56 = arith.mulf %55, %54 : vector<8x32xf32>
    %57 = arith.addf %49, %56 : vector<8x32xf32>
    %cst_22 = arith.constant dense<0.000000e+00> : vector<8x64xf32>
    %58 = tpu.matmul %57, %0, %cst_22 {dimension_numbers = #tpu.dot_dimension_numbers<[1], [0], [0], [1], [0, 0, 1, 1], [], []>} : vector<8x32xf32>, vector<32x64xf32>, vector<8x64xf32> -> vector<8x64xf32>
    %59 = arith.addf %58, %4 : vector<8x64xf32>
    %60 = math.tanh %59 : vector<8x64xf32>
    %cst_23 = arith.constant dense<0.000000e+00> : vector<8x32xf32>
    %61 = tpu.matmul %60, %1, %cst_23 {dimension_numbers = #tpu.dot_dimension_numbers<[1], [0], [0], [1], [0, 0, 1, 1], [], []>} : vector<8x64xf32>, vector<64x32xf32>, vector<8x32xf32> -> vector<8x32xf32>
    %62 = arith.addf %61, %7 : vector<8x32xf32>
    %63 = vector.broadcast %11 : f32 to vector<8x32xf32>
    %64 = arith.mulf %63, %62 : vector<8x32xf32>
    %65 = arith.addf %49, %64 : vector<8x32xf32>
    %cst_24 = arith.constant dense<0.000000e+00> : vector<8x64xf32>
    %66 = tpu.matmul %65, %0, %cst_24 {dimension_numbers = #tpu.dot_dimension_numbers<[1], [0], [0], [1], [0, 0, 1, 1], [], []>} : vector<8x32xf32>, vector<32x64xf32>, vector<8x64xf32> -> vector<8x64xf32>
    %67 = arith.addf %66, %4 : vector<8x64xf32>
    %68 = math.tanh %67 : vector<8x64xf32>
    %cst_25 = arith.constant dense<0.000000e+00> : vector<8x32xf32>
    %69 = tpu.matmul %68, %1, %cst_25 {dimension_numbers = #tpu.dot_dimension_numbers<[1], [0], [0], [1], [0, 0, 1, 1], [], []>} : vector<8x64xf32>, vector<64x32xf32>, vector<8x32xf32> -> vector<8x32xf32>
    %70 = arith.addf %69, %7 : vector<8x32xf32>
    %71 = vector.broadcast %10 : f32 to vector<8x32xf32>
    %72 = arith.mulf %71, %70 : vector<8x32xf32>
    %73 = arith.addf %49, %72 : vector<8x32xf32>
    %cst_26 = arith.constant dense<0.000000e+00> : vector<8x64xf32>
    %74 = tpu.matmul %73, %0, %cst_26 {dimension_numbers = #tpu.dot_dimension_numbers<[1], [0], [0], [1], [0, 0, 1, 1], [], []>} : vector<8x32xf32>, vector<32x64xf32>, vector<8x64xf32> -> vector<8x64xf32>
    %75 = arith.addf %74, %4 : vector<8x64xf32>
    %76 = math.tanh %75 : vector<8x64xf32>
    %cst_27 = arith.constant dense<0.000000e+00> : vector<8x32xf32>
    %77 = tpu.matmul %76, %1, %cst_27 {dimension_numbers = #tpu.dot_dimension_numbers<[1], [0], [0], [1], [0, 0, 1, 1], [], []>} : vector<8x64xf32>, vector<64x32xf32>, vector<8x32xf32> -> vector<8x32xf32>
    %78 = arith.addf %77, %7 : vector<8x32xf32>
    %79 = arith.addf %62, %70 : vector<8x32xf32>
    %cst_28 = arith.constant 2.000000e+00 : f32
    %80 = vector.broadcast %cst_28 : f32 to vector<8x32xf32>
    %81 = arith.mulf %80, %79 : vector<8x32xf32>
    %82 = arith.addf %54, %81 : vector<8x32xf32>
    %83 = arith.addf %82, %78 : vector<8x32xf32>
    %84 = vector.broadcast %12 : f32 to vector<8x32xf32>
    %85 = arith.mulf %84, %83 : vector<8x32xf32>
    %86 = arith.addf %49, %85 : vector<8x32xf32>
    %cst_29 = arith.constant dense<0.000000e+00> : vector<8x64xf32>
    %87 = tpu.matmul %86, %0, %cst_29 {dimension_numbers = #tpu.dot_dimension_numbers<[1], [0], [0], [1], [0, 0, 1, 1], [], []>} : vector<8x32xf32>, vector<32x64xf32>, vector<8x64xf32> -> vector<8x64xf32>
    %88 = arith.addf %87, %4 : vector<8x64xf32>
    %89 = math.tanh %88 : vector<8x64xf32>
    %cst_30 = arith.constant dense<0.000000e+00> : vector<8x32xf32>
    %90 = tpu.matmul %89, %1, %cst_30 {dimension_numbers = #tpu.dot_dimension_numbers<[1], [0], [0], [1], [0, 0, 1, 1], [], []>} : vector<8x64xf32>, vector<64x32xf32>, vector<8x32xf32> -> vector<8x32xf32>
    %91 = arith.addf %90, %7 : vector<8x32xf32>
    %92 = vector.broadcast %11 : f32 to vector<8x32xf32>
    %93 = arith.mulf %92, %91 : vector<8x32xf32>
    %94 = arith.addf %86, %93 : vector<8x32xf32>
    %cst_31 = arith.constant dense<0.000000e+00> : vector<8x64xf32>
    %95 = tpu.matmul %94, %0, %cst_31 {dimension_numbers = #tpu.dot_dimension_numbers<[1], [0], [0], [1], [0, 0, 1, 1], [], []>} : vector<8x32xf32>, vector<32x64xf32>, vector<8x64xf32> -> vector<8x64xf32>
    %96 = arith.addf %95, %4 : vector<8x64xf32>
    %97 = math.tanh %96 : vector<8x64xf32>
    %cst_32 = arith.constant dense<0.000000e+00> : vector<8x32xf32>
    %98 = tpu.matmul %97, %1, %cst_32 {dimension_numbers = #tpu.dot_dimension_numbers<[1], [0], [0], [1], [0, 0, 1, 1], [], []>} : vector<8x64xf32>, vector<64x32xf32>, vector<8x32xf32> -> vector<8x32xf32>
    %99 = arith.addf %98, %7 : vector<8x32xf32>
    %100 = vector.broadcast %11 : f32 to vector<8x32xf32>
    %101 = arith.mulf %100, %99 : vector<8x32xf32>
    %102 = arith.addf %86, %101 : vector<8x32xf32>
    %cst_33 = arith.constant dense<0.000000e+00> : vector<8x64xf32>
    %103 = tpu.matmul %102, %0, %cst_33 {dimension_numbers = #tpu.dot_dimension_numbers<[1], [0], [0], [1], [0, 0, 1, 1], [], []>} : vector<8x32xf32>, vector<32x64xf32>, vector<8x64xf32> -> vector<8x64xf32>
    %104 = arith.addf %103, %4 : vector<8x64xf32>
    %105 = math.tanh %104 : vector<8x64xf32>
    %cst_34 = arith.constant dense<0.000000e+00> : vector<8x32xf32>
    %106 = tpu.matmul %105, %1, %cst_34 {dimension_numbers = #tpu.dot_dimension_numbers<[1], [0], [0], [1], [0, 0, 1, 1], [], []>} : vector<8x64xf32>, vector<64x32xf32>, vector<8x32xf32> -> vector<8x32xf32>
    %107 = arith.addf %106, %7 : vector<8x32xf32>
    %108 = vector.broadcast %10 : f32 to vector<8x32xf32>
    %109 = arith.mulf %108, %107 : vector<8x32xf32>
    %110 = arith.addf %86, %109 : vector<8x32xf32>
    %cst_35 = arith.constant dense<0.000000e+00> : vector<8x64xf32>
    %111 = tpu.matmul %110, %0, %cst_35 {dimension_numbers = #tpu.dot_dimension_numbers<[1], [0], [0], [1], [0, 0, 1, 1], [], []>} : vector<8x32xf32>, vector<32x64xf32>, vector<8x64xf32> -> vector<8x64xf32>
    %112 = arith.addf %111, %4 : vector<8x64xf32>
    %113 = math.tanh %112 : vector<8x64xf32>
    %cst_36 = arith.constant dense<0.000000e+00> : vector<8x32xf32>
    %114 = tpu.matmul %113, %1, %cst_36 {dimension_numbers = #tpu.dot_dimension_numbers<[1], [0], [0], [1], [0, 0, 1, 1], [], []>} : vector<8x64xf32>, vector<64x32xf32>, vector<8x32xf32> -> vector<8x32xf32>
    %115 = arith.addf %114, %7 : vector<8x32xf32>
    %116 = arith.addf %99, %107 : vector<8x32xf32>
    %cst_37 = arith.constant 2.000000e+00 : f32
    %117 = vector.broadcast %cst_37 : f32 to vector<8x32xf32>
    %118 = arith.mulf %117, %116 : vector<8x32xf32>
    %119 = arith.addf %91, %118 : vector<8x32xf32>
    %120 = arith.addf %119, %115 : vector<8x32xf32>
    %121 = vector.broadcast %12 : f32 to vector<8x32xf32>
    %122 = arith.mulf %121, %120 : vector<8x32xf32>
    %123 = arith.addf %86, %122 : vector<8x32xf32>
    %cst_38 = arith.constant dense<0.000000e+00> : vector<8x64xf32>
    %124 = tpu.matmul %123, %0, %cst_38 {dimension_numbers = #tpu.dot_dimension_numbers<[1], [0], [0], [1], [0, 0, 1, 1], [], []>} : vector<8x32xf32>, vector<32x64xf32>, vector<8x64xf32> -> vector<8x64xf32>
    %125 = arith.addf %124, %4 : vector<8x64xf32>
    %126 = math.tanh %125 : vector<8x64xf32>
    %cst_39 = arith.constant dense<0.000000e+00> : vector<8x32xf32>
    %127 = tpu.matmul %126, %1, %cst_39 {dimension_numbers = #tpu.dot_dimension_numbers<[1], [0], [0], [1], [0, 0, 1, 1], [], []>} : vector<8x64xf32>, vector<64x32xf32>, vector<8x32xf32> -> vector<8x32xf32>
    %128 = arith.addf %127, %7 : vector<8x32xf32>
    %129 = vector.broadcast %11 : f32 to vector<8x32xf32>
    %130 = arith.mulf %129, %128 : vector<8x32xf32>
    %131 = arith.addf %123, %130 : vector<8x32xf32>
    %cst_40 = arith.constant dense<0.000000e+00> : vector<8x64xf32>
    %132 = tpu.matmul %131, %0, %cst_40 {dimension_numbers = #tpu.dot_dimension_numbers<[1], [0], [0], [1], [0, 0, 1, 1], [], []>} : vector<8x32xf32>, vector<32x64xf32>, vector<8x64xf32> -> vector<8x64xf32>
    %133 = arith.addf %132, %4 : vector<8x64xf32>
    %134 = math.tanh %133 : vector<8x64xf32>
    %cst_41 = arith.constant dense<0.000000e+00> : vector<8x32xf32>
    %135 = tpu.matmul %134, %1, %cst_41 {dimension_numbers = #tpu.dot_dimension_numbers<[1], [0], [0], [1], [0, 0, 1, 1], [], []>} : vector<8x64xf32>, vector<64x32xf32>, vector<8x32xf32> -> vector<8x32xf32>
    %136 = arith.addf %135, %7 : vector<8x32xf32>
    %137 = vector.broadcast %11 : f32 to vector<8x32xf32>
    %138 = arith.mulf %137, %136 : vector<8x32xf32>
    %139 = arith.addf %123, %138 : vector<8x32xf32>
    %cst_42 = arith.constant dense<0.000000e+00> : vector<8x64xf32>
    %140 = tpu.matmul %139, %0, %cst_42 {dimension_numbers = #tpu.dot_dimension_numbers<[1], [0], [0], [1], [0, 0, 1, 1], [], []>} : vector<8x32xf32>, vector<32x64xf32>, vector<8x64xf32> -> vector<8x64xf32>
    %141 = arith.addf %140, %4 : vector<8x64xf32>
    %142 = math.tanh %141 : vector<8x64xf32>
    %cst_43 = arith.constant dense<0.000000e+00> : vector<8x32xf32>
    %143 = tpu.matmul %142, %1, %cst_43 {dimension_numbers = #tpu.dot_dimension_numbers<[1], [0], [0], [1], [0, 0, 1, 1], [], []>} : vector<8x64xf32>, vector<64x32xf32>, vector<8x32xf32> -> vector<8x32xf32>
    %144 = arith.addf %143, %7 : vector<8x32xf32>
    %145 = vector.broadcast %10 : f32 to vector<8x32xf32>
    %146 = arith.mulf %145, %144 : vector<8x32xf32>
    %147 = arith.addf %123, %146 : vector<8x32xf32>
    %cst_44 = arith.constant dense<0.000000e+00> : vector<8x64xf32>
    %148 = tpu.matmul %147, %0, %cst_44 {dimension_numbers = #tpu.dot_dimension_numbers<[1], [0], [0], [1], [0, 0, 1, 1], [], []>} : vector<8x32xf32>, vector<32x64xf32>, vector<8x64xf32> -> vector<8x64xf32>
    %149 = arith.addf %148, %4 : vector<8x64xf32>
    %150 = math.tanh %149 : vector<8x64xf32>
    %cst_45 = arith.constant dense<0.000000e+00> : vector<8x32xf32>
    %151 = tpu.matmul %150, %1, %cst_45 {dimension_numbers = #tpu.dot_dimension_numbers<[1], [0], [0], [1], [0, 0, 1, 1], [], []>} : vector<8x64xf32>, vector<64x32xf32>, vector<8x32xf32> -> vector<8x32xf32>
    %152 = arith.addf %151, %7 : vector<8x32xf32>
    %153 = arith.addf %136, %144 : vector<8x32xf32>
    %cst_46 = arith.constant 2.000000e+00 : f32
    %154 = vector.broadcast %cst_46 : f32 to vector<8x32xf32>
    %155 = arith.mulf %154, %153 : vector<8x32xf32>
    %156 = arith.addf %128, %155 : vector<8x32xf32>
    %157 = arith.addf %156, %152 : vector<8x32xf32>
    %158 = vector.broadcast %12 : f32 to vector<8x32xf32>
    %159 = arith.mulf %158, %157 : vector<8x32xf32>
    %160 = arith.addf %123, %159 : vector<8x32xf32>
    %c8 = arith.constant 8 : index
    %c0_47 = arith.constant 0 : index
    %161 = vector.load %arg11[%c8, %c0_47] : memref<64x32xf32, #tpu.memory_space<vmem>>, vector<8x32xf32>
    tpu.vector_store %arg11[%c8, %c0_47], %160 {strides = array<i32>} : memref<64x32xf32, #tpu.memory_space<vmem>>, vector<8x32xf32>,
    %c3 = arith.constant 3 : index
    %162 = memref.load %arg0[%c3] : memref<21xf32, #tpu.memory_space<smem>>
    %c4 = arith.constant 4 : index
    %163 = memref.load %arg0[%c4] : memref<21xf32, #tpu.memory_space<smem>>
    %c5 = arith.constant 5 : index
    %164 = memref.load %arg0[%c5] : memref<21xf32, #tpu.memory_space<smem>>
    %cst_48 = arith.constant dense<0.000000e+00> : vector<8x64xf32>
    %165 = tpu.matmul %160, %0, %cst_48 {dimension_numbers = #tpu.dot_dimension_numbers<[1], [0], [0], [1], [0, 0, 1, 1], [], []>} : vector<8x32xf32>, vector<32x64xf32>, vector<8x64xf32> -> vector<8x64xf32>
    %166 = arith.addf %165, %4 : vector<8x64xf32>
    %167 = math.tanh %166 : vector<8x64xf32>
    %cst_49 = arith.constant dense<0.000000e+00> : vector<8x32xf32>
    %168 = tpu.matmul %167, %1, %cst_49 {dimension_numbers = #tpu.dot_dimension_numbers<[1], [0], [0], [1], [0, 0, 1, 1], [], []>} : vector<8x64xf32>, vector<64x32xf32>, vector<8x32xf32> -> vector<8x32xf32>
    %169 = arith.addf %168, %7 : vector<8x32xf32>
    %170 = vector.broadcast %163 : f32 to vector<8x32xf32>
    %171 = arith.mulf %170, %169 : vector<8x32xf32>
    %172 = arith.addf %160, %171 : vector<8x32xf32>
    %cst_50 = arith.constant dense<0.000000e+00> : vector<8x64xf32>
    %173 = tpu.matmul %172, %0, %cst_50 {dimension_numbers = #tpu.dot_dimension_numbers<[1], [0], [0], [1], [0, 0, 1, 1], [], []>} : vector<8x32xf32>, vector<32x64xf32>, vector<8x64xf32> -> vector<8x64xf32>
    %174 = arith.addf %173, %4 : vector<8x64xf32>
    %175 = math.tanh %174 : vector<8x64xf32>
    %cst_51 = arith.constant dense<0.000000e+00> : vector<8x32xf32>
    %176 = tpu.matmul %175, %1, %cst_51 {dimension_numbers = #tpu.dot_dimension_numbers<[1], [0], [0], [1], [0, 0, 1, 1], [], []>} : vector<8x64xf32>, vector<64x32xf32>, vector<8x32xf32> -> vector<8x32xf32>
    %177 = arith.addf %176, %7 : vector<8x32xf32>
    %178 = vector.broadcast %163 : f32 to vector<8x32xf32>
    %179 = arith.mulf %178, %177 : vector<8x32xf32>
    %180 = arith.addf %160, %179 : vector<8x32xf32>
    %cst_52 = arith.constant dense<0.000000e+00> : vector<8x64xf32>
    %181 = tpu.matmul %180, %0, %cst_52 {dimension_numbers = #tpu.dot_dimension_numbers<[1], [0], [0], [1], [0, 0, 1, 1], [], []>} : vector<8x32xf32>, vector<32x64xf32>, vector<8x64xf32> -> vector<8x64xf32>
    %182 = arith.addf %181, %4 : vector<8x64xf32>
    %183 = math.tanh %182 : vector<8x64xf32>
    %cst_53 = arith.constant dense<0.000000e+00> : vector<8x32xf32>
    %184 = tpu.matmul %183, %1, %cst_53 {dimension_numbers = #tpu.dot_dimension_numbers<[1], [0], [0], [1], [0, 0, 1, 1], [], []>} : vector<8x64xf32>, vector<64x32xf32>, vector<8x32xf32> -> vector<8x32xf32>
    %185 = arith.addf %184, %7 : vector<8x32xf32>
    %186 = vector.broadcast %162 : f32 to vector<8x32xf32>
    %187 = arith.mulf %186, %185 : vector<8x32xf32>
    %188 = arith.addf %160, %187 : vector<8x32xf32>
    %cst_54 = arith.constant dense<0.000000e+00> : vector<8x64xf32>
    %189 = tpu.matmul %188, %0, %cst_54 {dimension_numbers = #tpu.dot_dimension_numbers<[1], [0], [0], [1], [0, 0, 1, 1], [], []>} : vector<8x32xf32>, vector<32x64xf32>, vector<8x64xf32> -> vector<8x64xf32>
    %190 = arith.addf %189, %4 : vector<8x64xf32>
    %191 = math.tanh %190 : vector<8x64xf32>
    %cst_55 = arith.constant dense<0.000000e+00> : vector<8x32xf32>
    %192 = tpu.matmul %191, %1, %cst_55 {dimension_numbers = #tpu.dot_dimension_numbers<[1], [0], [0], [1], [0, 0, 1, 1], [], []>} : vector<8x64xf32>, vector<64x32xf32>, vector<8x32xf32> -> vector<8x32xf32>
    %193 = arith.addf %192, %7 : vector<8x32xf32>
    %194 = arith.addf %177, %185 : vector<8x32xf32>
    %cst_56 = arith.constant 2.000000e+00 : f32
    %195 = vector.broadcast %cst_56 : f32 to vector<8x32xf32>
    %196 = arith.mulf %195, %194 : vector<8x32xf32>
    %197 = arith.addf %169, %196 : vector<8x32xf32>
    %198 = arith.addf %197, %193 : vector<8x32xf32>
    %199 = vector.broadcast %164 : f32 to vector<8x32xf32>
    %200 = arith.mulf %199, %198 : vector<8x32xf32>
    %201 = arith.addf %160, %200 : vector<8x32xf32>
    %cst_57 = arith.constant dense<0.000000e+00> : vector<8x64xf32>
    %202 = tpu.matmul %201, %0, %cst_57 {dimension_numbers = #tpu.dot_dimension_numbers<[1], [0], [0], [1], [0, 0, 1, 1], [], []>} : vector<8x32xf32>, vector<32x64xf32>, vector<8x64xf32> -> vector<8x64xf32>
    %203 = arith.addf %202, %4 : vector<8x64xf32>
    %204 = math.tanh %203 : vector<8x64xf32>
    %cst_58 = arith.constant dense<0.000000e+00> : vector<8x32xf32>
    %205 = tpu.matmul %204, %1, %cst_58 {dimension_numbers = #tpu.dot_dimension_numbers<[1], [0], [0], [1], [0, 0, 1, 1], [], []>} : vector<8x64xf32>, vector<64x32xf32>, vector<8x32xf32> -> vector<8x32xf32>
    %206 = arith.addf %205, %7 : vector<8x32xf32>
    %207 = vector.broadcast %163 : f32 to vector<8x32xf32>
    %208 = arith.mulf %207, %206 : vector<8x32xf32>
    %209 = arith.addf %201, %208 : vector<8x32xf32>
    %cst_59 = arith.constant dense<0.000000e+00> : vector<8x64xf32>
    %210 = tpu.matmul %209, %0, %cst_59 {dimension_numbers = #tpu.dot_dimension_numbers<[1], [0], [0], [1], [0, 0, 1, 1], [], []>} : vector<8x32xf32>, vector<32x64xf32>, vector<8x64xf32> -> vector<8x64xf32>
    %211 = arith.addf %210, %4 : vector<8x64xf32>
    %212 = math.tanh %211 : vector<8x64xf32>
    %cst_60 = arith.constant dense<0.000000e+00> : vector<8x32xf32>
    %213 = tpu.matmul %212, %1, %cst_60 {dimension_numbers = #tpu.dot_dimension_numbers<[1], [0], [0], [1], [0, 0, 1, 1], [], []>} : vector<8x64xf32>, vector<64x32xf32>, vector<8x32xf32> -> vector<8x32xf32>
    %214 = arith.addf %213, %7 : vector<8x32xf32>
    %215 = vector.broadcast %163 : f32 to vector<8x32xf32>
    %216 = arith.mulf %215, %214 : vector<8x32xf32>
    %217 = arith.addf %201, %216 : vector<8x32xf32>
    %cst_61 = arith.constant dense<0.000000e+00> : vector<8x64xf32>
    %218 = tpu.matmul %217, %0, %cst_61 {dimension_numbers = #tpu.dot_dimension_numbers<[1], [0], [0], [1], [0, 0, 1, 1], [], []>} : vector<8x32xf32>, vector<32x64xf32>, vector<8x64xf32> -> vector<8x64xf32>
    %219 = arith.addf %218, %4 : vector<8x64xf32>
    %220 = math.tanh %219 : vector<8x64xf32>
    %cst_62 = arith.constant dense<0.000000e+00> : vector<8x32xf32>
    %221 = tpu.matmul %220, %1, %cst_62 {dimension_numbers = #tpu.dot_dimension_numbers<[1], [0], [0], [1], [0, 0, 1, 1], [], []>} : vector<8x64xf32>, vector<64x32xf32>, vector<8x32xf32> -> vector<8x32xf32>
    %222 = arith.addf %221, %7 : vector<8x32xf32>
    %223 = vector.broadcast %162 : f32 to vector<8x32xf32>
    %224 = arith.mulf %223, %222 : vector<8x32xf32>
    %225 = arith.addf %201, %224 : vector<8x32xf32>
    %cst_63 = arith.constant dense<0.000000e+00> : vector<8x64xf32>
    %226 = tpu.matmul %225, %0, %cst_63 {dimension_numbers = #tpu.dot_dimension_numbers<[1], [0], [0], [1], [0, 0, 1, 1], [], []>} : vector<8x32xf32>, vector<32x64xf32>, vector<8x64xf32> -> vector<8x64xf32>
    %227 = arith.addf %226, %4 : vector<8x64xf32>
    %228 = math.tanh %227 : vector<8x64xf32>
    %cst_64 = arith.constant dense<0.000000e+00> : vector<8x32xf32>
    %229 = tpu.matmul %228, %1, %cst_64 {dimension_numbers = #tpu.dot_dimension_numbers<[1], [0], [0], [1], [0, 0, 1, 1], [], []>} : vector<8x64xf32>, vector<64x32xf32>, vector<8x32xf32> -> vector<8x32xf32>
    %230 = arith.addf %229, %7 : vector<8x32xf32>
    %231 = arith.addf %214, %222 : vector<8x32xf32>
    %cst_65 = arith.constant 2.000000e+00 : f32
    %232 = vector.broadcast %cst_65 : f32 to vector<8x32xf32>
    %233 = arith.mulf %232, %231 : vector<8x32xf32>
    %234 = arith.addf %206, %233 : vector<8x32xf32>
    %235 = arith.addf %234, %230 : vector<8x32xf32>
    %236 = vector.broadcast %164 : f32 to vector<8x32xf32>
    %237 = arith.mulf %236, %235 : vector<8x32xf32>
    %238 = arith.addf %201, %237 : vector<8x32xf32>
    %cst_66 = arith.constant dense<0.000000e+00> : vector<8x64xf32>
    %239 = tpu.matmul %238, %0, %cst_66 {dimension_numbers = #tpu.dot_dimension_numbers<[1], [0], [0], [1], [0, 0, 1, 1], [], []>} : vector<8x32xf32>, vector<32x64xf32>, vector<8x64xf32> -> vector<8x64xf32>
    %240 = arith.addf %239, %4 : vector<8x64xf32>
    %241 = math.tanh %240 : vector<8x64xf32>
    %cst_67 = arith.constant dense<0.000000e+00> : vector<8x32xf32>
    %242 = tpu.matmul %241, %1, %cst_67 {dimension_numbers = #tpu.dot_dimension_numbers<[1], [0], [0], [1], [0, 0, 1, 1], [], []>} : vector<8x64xf32>, vector<64x32xf32>, vector<8x32xf32> -> vector<8x32xf32>
    %243 = arith.addf %242, %7 : vector<8x32xf32>
    %244 = vector.broadcast %163 : f32 to vector<8x32xf32>
    %245 = arith.mulf %244, %243 : vector<8x32xf32>
    %246 = arith.addf %238, %245 : vector<8x32xf32>
    %cst_68 = arith.constant dense<0.000000e+00> : vector<8x64xf32>
    %247 = tpu.matmul %246, %0, %cst_68 {dimension_numbers = #tpu.dot_dimension_numbers<[1], [0], [0], [1], [0, 0, 1, 1], [], []>} : vector<8x32xf32>, vector<32x64xf32>, vector<8x64xf32> -> vector<8x64xf32>
    %248 = arith.addf %247, %4 : vector<8x64xf32>
    %249 = math.tanh %248 : vector<8x64xf32>
    %cst_69 = arith.constant dense<0.000000e+00> : vector<8x32xf32>
    %250 = tpu.matmul %249, %1, %cst_69 {dimension_numbers = #tpu.dot_dimension_numbers<[1], [0], [0], [1], [0, 0, 1, 1], [], []>} : vector<8x64xf32>, vector<64x32xf32>, vector<8x32xf32> -> vector<8x32xf32>
    %251 = arith.addf %250, %7 : vector<8x32xf32>
    %252 = vector.broadcast %163 : f32 to vector<8x32xf32>
    %253 = arith.mulf %252, %251 : vector<8x32xf32>
    %254 = arith.addf %238, %253 : vector<8x32xf32>
    %cst_70 = arith.constant dense<0.000000e+00> : vector<8x64xf32>
    %255 = tpu.matmul %254, %0, %cst_70 {dimension_numbers = #tpu.dot_dimension_numbers<[1], [0], [0], [1], [0, 0, 1, 1], [], []>} : vector<8x32xf32>, vector<32x64xf32>, vector<8x64xf32> -> vector<8x64xf32>
    %256 = arith.addf %255, %4 : vector<8x64xf32>
    %257 = math.tanh %256 : vector<8x64xf32>
    %cst_71 = arith.constant dense<0.000000e+00> : vector<8x32xf32>
    %258 = tpu.matmul %257, %1, %cst_71 {dimension_numbers = #tpu.dot_dimension_numbers<[1], [0], [0], [1], [0, 0, 1, 1], [], []>} : vector<8x64xf32>, vector<64x32xf32>, vector<8x32xf32> -> vector<8x32xf32>
    %259 = arith.addf %258, %7 : vector<8x32xf32>
    %260 = vector.broadcast %162 : f32 to vector<8x32xf32>
    %261 = arith.mulf %260, %259 : vector<8x32xf32>
    %262 = arith.addf %238, %261 : vector<8x32xf32>
    %cst_72 = arith.constant dense<0.000000e+00> : vector<8x64xf32>
    %263 = tpu.matmul %262, %0, %cst_72 {dimension_numbers = #tpu.dot_dimension_numbers<[1], [0], [0], [1], [0, 0, 1, 1], [], []>} : vector<8x32xf32>, vector<32x64xf32>, vector<8x64xf32> -> vector<8x64xf32>
    %264 = arith.addf %263, %4 : vector<8x64xf32>
    %265 = math.tanh %264 : vector<8x64xf32>
    %cst_73 = arith.constant dense<0.000000e+00> : vector<8x32xf32>
    %266 = tpu.matmul %265, %1, %cst_73 {dimension_numbers = #tpu.dot_dimension_numbers<[1], [0], [0], [1], [0, 0, 1, 1], [], []>} : vector<8x64xf32>, vector<64x32xf32>, vector<8x32xf32> -> vector<8x32xf32>
    %267 = arith.addf %266, %7 : vector<8x32xf32>
    %268 = arith.addf %251, %259 : vector<8x32xf32>
    %cst_74 = arith.constant 2.000000e+00 : f32
    %269 = vector.broadcast %cst_74 : f32 to vector<8x32xf32>
    %270 = arith.mulf %269, %268 : vector<8x32xf32>
    %271 = arith.addf %243, %270 : vector<8x32xf32>
    %272 = arith.addf %271, %267 : vector<8x32xf32>
    %273 = vector.broadcast %164 : f32 to vector<8x32xf32>
    %274 = arith.mulf %273, %272 : vector<8x32xf32>
    %275 = arith.addf %238, %274 : vector<8x32xf32>
    %cst_75 = arith.constant dense<0.000000e+00> : vector<8x64xf32>
    %276 = tpu.matmul %275, %0, %cst_75 {dimension_numbers = #tpu.dot_dimension_numbers<[1], [0], [0], [1], [0, 0, 1, 1], [], []>} : vector<8x32xf32>, vector<32x64xf32>, vector<8x64xf32> -> vector<8x64xf32>
    %277 = arith.addf %276, %4 : vector<8x64xf32>
    %278 = math.tanh %277 : vector<8x64xf32>
    %cst_76 = arith.constant dense<0.000000e+00> : vector<8x32xf32>
    %279 = tpu.matmul %278, %1, %cst_76 {dimension_numbers = #tpu.dot_dimension_numbers<[1], [0], [0], [1], [0, 0, 1, 1], [], []>} : vector<8x64xf32>, vector<64x32xf32>, vector<8x32xf32> -> vector<8x32xf32>
    %280 = arith.addf %279, %7 : vector<8x32xf32>
    %281 = vector.broadcast %163 : f32 to vector<8x32xf32>
    %282 = arith.mulf %281, %280 : vector<8x32xf32>
    %283 = arith.addf %275, %282 : vector<8x32xf32>
    %cst_77 = arith.constant dense<0.000000e+00> : vector<8x64xf32>
    %284 = tpu.matmul %283, %0, %cst_77 {dimension_numbers = #tpu.dot_dimension_numbers<[1], [0], [0], [1], [0, 0, 1, 1], [], []>} : vector<8x32xf32>, vector<32x64xf32>, vector<8x64xf32> -> vector<8x64xf32>
    %285 = arith.addf %284, %4 : vector<8x64xf32>
    %286 = math.tanh %285 : vector<8x64xf32>
    %cst_78 = arith.constant dense<0.000000e+00> : vector<8x32xf32>
    %287 = tpu.matmul %286, %1, %cst_78 {dimension_numbers = #tpu.dot_dimension_numbers<[1], [0], [0], [1], [0, 0, 1, 1], [], []>} : vector<8x64xf32>, vector<64x32xf32>, vector<8x32xf32> -> vector<8x32xf32>
    %288 = arith.addf %287, %7 : vector<8x32xf32>
    %289 = vector.broadcast %163 : f32 to vector<8x32xf32>
    %290 = arith.mulf %289, %288 : vector<8x32xf32>
    %291 = arith.addf %275, %290 : vector<8x32xf32>
    %cst_79 = arith.constant dense<0.000000e+00> : vector<8x64xf32>
    %292 = tpu.matmul %291, %0, %cst_79 {dimension_numbers = #tpu.dot_dimension_numbers<[1], [0], [0], [1], [0, 0, 1, 1], [], []>} : vector<8x32xf32>, vector<32x64xf32>, vector<8x64xf32> -> vector<8x64xf32>
    %293 = arith.addf %292, %4 : vector<8x64xf32>
    %294 = math.tanh %293 : vector<8x64xf32>
    %cst_80 = arith.constant dense<0.000000e+00> : vector<8x32xf32>
    %295 = tpu.matmul %294, %1, %cst_80 {dimension_numbers = #tpu.dot_dimension_numbers<[1], [0], [0], [1], [0, 0, 1, 1], [], []>} : vector<8x64xf32>, vector<64x32xf32>, vector<8x32xf32> -> vector<8x32xf32>
    %296 = arith.addf %295, %7 : vector<8x32xf32>
    %297 = vector.broadcast %162 : f32 to vector<8x32xf32>
    %298 = arith.mulf %297, %296 : vector<8x32xf32>
    %299 = arith.addf %275, %298 : vector<8x32xf32>
    %cst_81 = arith.constant dense<0.000000e+00> : vector<8x64xf32>
    %300 = tpu.matmul %299, %0, %cst_81 {dimension_numbers = #tpu.dot_dimension_numbers<[1], [0], [0], [1], [0, 0, 1, 1], [], []>} : vector<8x32xf32>, vector<32x64xf32>, vector<8x64xf32> -> vector<8x64xf32>
    %301 = arith.addf %300, %4 : vector<8x64xf32>
    %302 = math.tanh %301 : vector<8x64xf32>
    %cst_82 = arith.constant dense<0.000000e+00> : vector<8x32xf32>
    %303 = tpu.matmul %302, %1, %cst_82 {dimension_numbers = #tpu.dot_dimension_numbers<[1], [0], [0], [1], [0, 0, 1, 1], [], []>} : vector<8x64xf32>, vector<64x32xf32>, vector<8x32xf32> -> vector<8x32xf32>
    %304 = arith.addf %303, %7 : vector<8x32xf32>
    %305 = arith.addf %288, %296 : vector<8x32xf32>
    %cst_83 = arith.constant 2.000000e+00 : f32
    %306 = vector.broadcast %cst_83 : f32 to vector<8x32xf32>
    %307 = arith.mulf %306, %305 : vector<8x32xf32>
    %308 = arith.addf %280, %307 : vector<8x32xf32>
    %309 = arith.addf %308, %304 : vector<8x32xf32>
    %310 = vector.broadcast %164 : f32 to vector<8x32xf32>
    %311 = arith.mulf %310, %309 : vector<8x32xf32>
    %312 = arith.addf %275, %311 : vector<8x32xf32>
    %c16 = arith.constant 16 : index
    %c0_84 = arith.constant 0 : index
    %313 = vector.load %arg11[%c16, %c0_84] : memref<64x32xf32, #tpu.memory_space<vmem>>, vector<8x32xf32>
    tpu.vector_store %arg11[%c16, %c0_84], %312 {strides = array<i32>} : memref<64x32xf32, #tpu.memory_space<vmem>>, vector<8x32xf32>,
    %c6 = arith.constant 6 : index
    %314 = memref.load %arg0[%c6] : memref<21xf32, #tpu.memory_space<smem>>
    %c7 = arith.constant 7 : index
    %315 = memref.load %arg0[%c7] : memref<21xf32, #tpu.memory_space<smem>>
    %c8_85 = arith.constant 8 : index
    %316 = memref.load %arg0[%c8_85] : memref<21xf32, #tpu.memory_space<smem>>
    %cst_86 = arith.constant dense<0.000000e+00> : vector<8x64xf32>
    %317 = tpu.matmul %312, %0, %cst_86 {dimension_numbers = #tpu.dot_dimension_numbers<[1], [0], [0], [1], [0, 0, 1, 1], [], []>} : vector<8x32xf32>, vector<32x64xf32>, vector<8x64xf32> -> vector<8x64xf32>
    %318 = arith.addf %317, %4 : vector<8x64xf32>
    %319 = math.tanh %318 : vector<8x64xf32>
    %cst_87 = arith.constant dense<0.000000e+00> : vector<8x32xf32>
    %320 = tpu.matmul %319, %1, %cst_87 {dimension_numbers = #tpu.dot_dimension_numbers<[1], [0], [0], [1], [0, 0, 1, 1], [], []>} : vector<8x64xf32>, vector<64x32xf32>, vector<8x32xf32> -> vector<8x32xf32>
    %321 = arith.addf %320, %7 : vector<8x32xf32>
    %322 = vector.broadcast %315 : f32 to vector<8x32xf32>
    %323 = arith.mulf %322, %321 : vector<8x32xf32>
    %324 = arith.addf %312, %323 : vector<8x32xf32>
    %cst_88 = arith.constant dense<0.000000e+00> : vector<8x64xf32>
    %325 = tpu.matmul %324, %0, %cst_88 {dimension_numbers = #tpu.dot_dimension_numbers<[1], [0], [0], [1], [0, 0, 1, 1], [], []>} : vector<8x32xf32>, vector<32x64xf32>, vector<8x64xf32> -> vector<8x64xf32>
    %326 = arith.addf %325, %4 : vector<8x64xf32>
    %327 = math.tanh %326 : vector<8x64xf32>
    %cst_89 = arith.constant dense<0.000000e+00> : vector<8x32xf32>
    %328 = tpu.matmul %327, %1, %cst_89 {dimension_numbers = #tpu.dot_dimension_numbers<[1], [0], [0], [1], [0, 0, 1, 1], [], []>} : vector<8x64xf32>, vector<64x32xf32>, vector<8x32xf32> -> vector<8x32xf32>
    %329 = arith.addf %328, %7 : vector<8x32xf32>
    %330 = vector.broadcast %315 : f32 to vector<8x32xf32>
    %331 = arith.mulf %330, %329 : vector<8x32xf32>
    %332 = arith.addf %312, %331 : vector<8x32xf32>
    %cst_90 = arith.constant dense<0.000000e+00> : vector<8x64xf32>
    %333 = tpu.matmul %332, %0, %cst_90 {dimension_numbers = #tpu.dot_dimension_numbers<[1], [0], [0], [1], [0, 0, 1, 1], [], []>} : vector<8x32xf32>, vector<32x64xf32>, vector<8x64xf32> -> vector<8x64xf32>
    %334 = arith.addf %333, %4 : vector<8x64xf32>
    %335 = math.tanh %334 : vector<8x64xf32>
    %cst_91 = arith.constant dense<0.000000e+00> : vector<8x32xf32>
    %336 = tpu.matmul %335, %1, %cst_91 {dimension_numbers = #tpu.dot_dimension_numbers<[1], [0], [0], [1], [0, 0, 1, 1], [], []>} : vector<8x64xf32>, vector<64x32xf32>, vector<8x32xf32> -> vector<8x32xf32>
    %337 = arith.addf %336, %7 : vector<8x32xf32>
    %338 = vector.broadcast %314 : f32 to vector<8x32xf32>
    %339 = arith.mulf %338, %337 : vector<8x32xf32>
    %340 = arith.addf %312, %339 : vector<8x32xf32>
    %cst_92 = arith.constant dense<0.000000e+00> : vector<8x64xf32>
    %341 = tpu.matmul %340, %0, %cst_92 {dimension_numbers = #tpu.dot_dimension_numbers<[1], [0], [0], [1], [0, 0, 1, 1], [], []>} : vector<8x32xf32>, vector<32x64xf32>, vector<8x64xf32> -> vector<8x64xf32>
    %342 = arith.addf %341, %4 : vector<8x64xf32>
    %343 = math.tanh %342 : vector<8x64xf32>
    %cst_93 = arith.constant dense<0.000000e+00> : vector<8x32xf32>
    %344 = tpu.matmul %343, %1, %cst_93 {dimension_numbers = #tpu.dot_dimension_numbers<[1], [0], [0], [1], [0, 0, 1, 1], [], []>} : vector<8x64xf32>, vector<64x32xf32>, vector<8x32xf32> -> vector<8x32xf32>
    %345 = arith.addf %344, %7 : vector<8x32xf32>
    %346 = arith.addf %329, %337 : vector<8x32xf32>
    %cst_94 = arith.constant 2.000000e+00 : f32
    %347 = vector.broadcast %cst_94 : f32 to vector<8x32xf32>
    %348 = arith.mulf %347, %346 : vector<8x32xf32>
    %349 = arith.addf %321, %348 : vector<8x32xf32>
    %350 = arith.addf %349, %345 : vector<8x32xf32>
    %351 = vector.broadcast %316 : f32 to vector<8x32xf32>
    %352 = arith.mulf %351, %350 : vector<8x32xf32>
    %353 = arith.addf %312, %352 : vector<8x32xf32>
    %cst_95 = arith.constant dense<0.000000e+00> : vector<8x64xf32>
    %354 = tpu.matmul %353, %0, %cst_95 {dimension_numbers = #tpu.dot_dimension_numbers<[1], [0], [0], [1], [0, 0, 1, 1], [], []>} : vector<8x32xf32>, vector<32x64xf32>, vector<8x64xf32> -> vector<8x64xf32>
    %355 = arith.addf %354, %4 : vector<8x64xf32>
    %356 = math.tanh %355 : vector<8x64xf32>
    %cst_96 = arith.constant dense<0.000000e+00> : vector<8x32xf32>
    %357 = tpu.matmul %356, %1, %cst_96 {dimension_numbers = #tpu.dot_dimension_numbers<[1], [0], [0], [1], [0, 0, 1, 1], [], []>} : vector<8x64xf32>, vector<64x32xf32>, vector<8x32xf32> -> vector<8x32xf32>
    %358 = arith.addf %357, %7 : vector<8x32xf32>
    %359 = vector.broadcast %315 : f32 to vector<8x32xf32>
    %360 = arith.mulf %359, %358 : vector<8x32xf32>
    %361 = arith.addf %353, %360 : vector<8x32xf32>
    %cst_97 = arith.constant dense<0.000000e+00> : vector<8x64xf32>
    %362 = tpu.matmul %361, %0, %cst_97 {dimension_numbers = #tpu.dot_dimension_numbers<[1], [0], [0], [1], [0, 0, 1, 1], [], []>} : vector<8x32xf32>, vector<32x64xf32>, vector<8x64xf32> -> vector<8x64xf32>
    %363 = arith.addf %362, %4 : vector<8x64xf32>
    %364 = math.tanh %363 : vector<8x64xf32>
    %cst_98 = arith.constant dense<0.000000e+00> : vector<8x32xf32>
    %365 = tpu.matmul %364, %1, %cst_98 {dimension_numbers = #tpu.dot_dimension_numbers<[1], [0], [0], [1], [0, 0, 1, 1], [], []>} : vector<8x64xf32>, vector<64x32xf32>, vector<8x32xf32> -> vector<8x32xf32>
    %366 = arith.addf %365, %7 : vector<8x32xf32>
    %367 = vector.broadcast %315 : f32 to vector<8x32xf32>
    %368 = arith.mulf %367, %366 : vector<8x32xf32>
    %369 = arith.addf %353, %368 : vector<8x32xf32>
    %cst_99 = arith.constant dense<0.000000e+00> : vector<8x64xf32>
    %370 = tpu.matmul %369, %0, %cst_99 {dimension_numbers = #tpu.dot_dimension_numbers<[1], [0], [0], [1], [0, 0, 1, 1], [], []>} : vector<8x32xf32>, vector<32x64xf32>, vector<8x64xf32> -> vector<8x64xf32>
    %371 = arith.addf %370, %4 : vector<8x64xf32>
    %372 = math.tanh %371 : vector<8x64xf32>
    %cst_100 = arith.constant dense<0.000000e+00> : vector<8x32xf32>
    %373 = tpu.matmul %372, %1, %cst_100 {dimension_numbers = #tpu.dot_dimension_numbers<[1], [0], [0], [1], [0, 0, 1, 1], [], []>} : vector<8x64xf32>, vector<64x32xf32>, vector<8x32xf32> -> vector<8x32xf32>
    %374 = arith.addf %373, %7 : vector<8x32xf32>
    %375 = vector.broadcast %314 : f32 to vector<8x32xf32>
    %376 = arith.mulf %375, %374 : vector<8x32xf32>
    %377 = arith.addf %353, %376 : vector<8x32xf32>
    %cst_101 = arith.constant dense<0.000000e+00> : vector<8x64xf32>
    %378 = tpu.matmul %377, %0, %cst_101 {dimension_numbers = #tpu.dot_dimension_numbers<[1], [0], [0], [1], [0, 0, 1, 1], [], []>} : vector<8x32xf32>, vector<32x64xf32>, vector<8x64xf32> -> vector<8x64xf32>
    %379 = arith.addf %378, %4 : vector<8x64xf32>
    %380 = math.tanh %379 : vector<8x64xf32>
    %cst_102 = arith.constant dense<0.000000e+00> : vector<8x32xf32>
    %381 = tpu.matmul %380, %1, %cst_102 {dimension_numbers = #tpu.dot_dimension_numbers<[1], [0], [0], [1], [0, 0, 1, 1], [], []>} : vector<8x64xf32>, vector<64x32xf32>, vector<8x32xf32> -> vector<8x32xf32>
    %382 = arith.addf %381, %7 : vector<8x32xf32>
    %383 = arith.addf %366, %374 : vector<8x32xf32>
    %cst_103 = arith.constant 2.000000e+00 : f32
    %384 = vector.broadcast %cst_103 : f32 to vector<8x32xf32>
    %385 = arith.mulf %384, %383 : vector<8x32xf32>
    %386 = arith.addf %358, %385 : vector<8x32xf32>
    %387 = arith.addf %386, %382 : vector<8x32xf32>
    %388 = vector.broadcast %316 : f32 to vector<8x32xf32>
    %389 = arith.mulf %388, %387 : vector<8x32xf32>
    %390 = arith.addf %353, %389 : vector<8x32xf32>
    %cst_104 = arith.constant dense<0.000000e+00> : vector<8x64xf32>
    %391 = tpu.matmul %390, %0, %cst_104 {dimension_numbers = #tpu.dot_dimension_numbers<[1], [0], [0], [1], [0, 0, 1, 1], [], []>} : vector<8x32xf32>, vector<32x64xf32>, vector<8x64xf32> -> vector<8x64xf32>
    %392 = arith.addf %391, %4 : vector<8x64xf32>
    %393 = math.tanh %392 : vector<8x64xf32>
    %cst_105 = arith.constant dense<0.000000e+00> : vector<8x32xf32>
    %394 = tpu.matmul %393, %1, %cst_105 {dimension_numbers = #tpu.dot_dimension_numbers<[1], [0], [0], [1], [0, 0, 1, 1], [], []>} : vector<8x64xf32>, vector<64x32xf32>, vector<8x32xf32> -> vector<8x32xf32>
    %395 = arith.addf %394, %7 : vector<8x32xf32>
    %396 = vector.broadcast %315 : f32 to vector<8x32xf32>
    %397 = arith.mulf %396, %395 : vector<8x32xf32>
    %398 = arith.addf %390, %397 : vector<8x32xf32>
    %cst_106 = arith.constant dense<0.000000e+00> : vector<8x64xf32>
    %399 = tpu.matmul %398, %0, %cst_106 {dimension_numbers = #tpu.dot_dimension_numbers<[1], [0], [0], [1], [0, 0, 1, 1], [], []>} : vector<8x32xf32>, vector<32x64xf32>, vector<8x64xf32> -> vector<8x64xf32>
    %400 = arith.addf %399, %4 : vector<8x64xf32>
    %401 = math.tanh %400 : vector<8x64xf32>
    %cst_107 = arith.constant dense<0.000000e+00> : vector<8x32xf32>
    %402 = tpu.matmul %401, %1, %cst_107 {dimension_numbers = #tpu.dot_dimension_numbers<[1], [0], [0], [1], [0, 0, 1, 1], [], []>} : vector<8x64xf32>, vector<64x32xf32>, vector<8x32xf32> -> vector<8x32xf32>
    %403 = arith.addf %402, %7 : vector<8x32xf32>
    %404 = vector.broadcast %315 : f32 to vector<8x32xf32>
    %405 = arith.mulf %404, %403 : vector<8x32xf32>
    %406 = arith.addf %390, %405 : vector<8x32xf32>
    %cst_108 = arith.constant dense<0.000000e+00> : vector<8x64xf32>
    %407 = tpu.matmul %406, %0, %cst_108 {dimension_numbers = #tpu.dot_dimension_numbers<[1], [0], [0], [1], [0, 0, 1, 1], [], []>} : vector<8x32xf32>, vector<32x64xf32>, vector<8x64xf32> -> vector<8x64xf32>
    %408 = arith.addf %407, %4 : vector<8x64xf32>
    %409 = math.tanh %408 : vector<8x64xf32>
    %cst_109 = arith.constant dense<0.000000e+00> : vector<8x32xf32>
    %410 = tpu.matmul %409, %1, %cst_109 {dimension_numbers = #tpu.dot_dimension_numbers<[1], [0], [0], [1], [0, 0, 1, 1], [], []>} : vector<8x64xf32>, vector<64x32xf32>, vector<8x32xf32> -> vector<8x32xf32>
    %411 = arith.addf %410, %7 : vector<8x32xf32>
    %412 = vector.broadcast %314 : f32 to vector<8x32xf32>
    %413 = arith.mulf %412, %411 : vector<8x32xf32>
    %414 = arith.addf %390, %413 : vector<8x32xf32>
    %cst_110 = arith.constant dense<0.000000e+00> : vector<8x64xf32>
    %415 = tpu.matmul %414, %0, %cst_110 {dimension_numbers = #tpu.dot_dimension_numbers<[1], [0], [0], [1], [0, 0, 1, 1], [], []>} : vector<8x32xf32>, vector<32x64xf32>, vector<8x64xf32> -> vector<8x64xf32>
    %416 = arith.addf %415, %4 : vector<8x64xf32>
    %417 = math.tanh %416 : vector<8x64xf32>
    %cst_111 = arith.constant dense<0.000000e+00> : vector<8x32xf32>
    %418 = tpu.matmul %417, %1, %cst_111 {dimension_numbers = #tpu.dot_dimension_numbers<[1], [0], [0], [1], [0, 0, 1, 1], [], []>} : vector<8x64xf32>, vector<64x32xf32>, vector<8x32xf32> -> vector<8x32xf32>
    %419 = arith.addf %418, %7 : vector<8x32xf32>
    %420 = arith.addf %403, %411 : vector<8x32xf32>
    %cst_112 = arith.constant 2.000000e+00 : f32
    %421 = vector.broadcast %cst_112 : f32 to vector<8x32xf32>
    %422 = arith.mulf %421, %420 : vector<8x32xf32>
    %423 = arith.addf %395, %422 : vector<8x32xf32>
    %424 = arith.addf %423, %419 : vector<8x32xf32>
    %425 = vector.broadcast %316 : f32 to vector<8x32xf32>
    %426 = arith.mulf %425, %424 : vector<8x32xf32>
    %427 = arith.addf %390, %426 : vector<8x32xf32>
    %cst_113 = arith.constant dense<0.000000e+00> : vector<8x64xf32>
    %428 = tpu.matmul %427, %0, %cst_113 {dimension_numbers = #tpu.dot_dimension_numbers<[1], [0], [0], [1], [0, 0, 1, 1], [], []>} : vector<8x32xf32>, vector<32x64xf32>, vector<8x64xf32> -> vector<8x64xf32>
    %429 = arith.addf %428, %4 : vector<8x64xf32>
    %430 = math.tanh %429 : vector<8x64xf32>
    %cst_114 = arith.constant dense<0.000000e+00> : vector<8x32xf32>
    %431 = tpu.matmul %430, %1, %cst_114 {dimension_numbers = #tpu.dot_dimension_numbers<[1], [0], [0], [1], [0, 0, 1, 1], [], []>} : vector<8x64xf32>, vector<64x32xf32>, vector<8x32xf32> -> vector<8x32xf32>
    %432 = arith.addf %431, %7 : vector<8x32xf32>
    %433 = vector.broadcast %315 : f32 to vector<8x32xf32>
    %434 = arith.mulf %433, %432 : vector<8x32xf32>
    %435 = arith.addf %427, %434 : vector<8x32xf32>
    %cst_115 = arith.constant dense<0.000000e+00> : vector<8x64xf32>
    %436 = tpu.matmul %435, %0, %cst_115 {dimension_numbers = #tpu.dot_dimension_numbers<[1], [0], [0], [1], [0, 0, 1, 1], [], []>} : vector<8x32xf32>, vector<32x64xf32>, vector<8x64xf32> -> vector<8x64xf32>
    %437 = arith.addf %436, %4 : vector<8x64xf32>
    %438 = math.tanh %437 : vector<8x64xf32>
    %cst_116 = arith.constant dense<0.000000e+00> : vector<8x32xf32>
    %439 = tpu.matmul %438, %1, %cst_116 {dimension_numbers = #tpu.dot_dimension_numbers<[1], [0], [0], [1], [0, 0, 1, 1], [], []>} : vector<8x64xf32>, vector<64x32xf32>, vector<8x32xf32> -> vector<8x32xf32>
    %440 = arith.addf %439, %7 : vector<8x32xf32>
    %441 = vector.broadcast %315 : f32 to vector<8x32xf32>
    %442 = arith.mulf %441, %440 : vector<8x32xf32>
    %443 = arith.addf %427, %442 : vector<8x32xf32>
    %cst_117 = arith.constant dense<0.000000e+00> : vector<8x64xf32>
    %444 = tpu.matmul %443, %0, %cst_117 {dimension_numbers = #tpu.dot_dimension_numbers<[1], [0], [0], [1], [0, 0, 1, 1], [], []>} : vector<8x32xf32>, vector<32x64xf32>, vector<8x64xf32> -> vector<8x64xf32>
    %445 = arith.addf %444, %4 : vector<8x64xf32>
    %446 = math.tanh %445 : vector<8x64xf32>
    %cst_118 = arith.constant dense<0.000000e+00> : vector<8x32xf32>
    %447 = tpu.matmul %446, %1, %cst_118 {dimension_numbers = #tpu.dot_dimension_numbers<[1], [0], [0], [1], [0, 0, 1, 1], [], []>} : vector<8x64xf32>, vector<64x32xf32>, vector<8x32xf32> -> vector<8x32xf32>
    %448 = arith.addf %447, %7 : vector<8x32xf32>
    %449 = vector.broadcast %314 : f32 to vector<8x32xf32>
    %450 = arith.mulf %449, %448 : vector<8x32xf32>
    %451 = arith.addf %427, %450 : vector<8x32xf32>
    %cst_119 = arith.constant dense<0.000000e+00> : vector<8x64xf32>
    %452 = tpu.matmul %451, %0, %cst_119 {dimension_numbers = #tpu.dot_dimension_numbers<[1], [0], [0], [1], [0, 0, 1, 1], [], []>} : vector<8x32xf32>, vector<32x64xf32>, vector<8x64xf32> -> vector<8x64xf32>
    %453 = arith.addf %452, %4 : vector<8x64xf32>
    %454 = math.tanh %453 : vector<8x64xf32>
    %cst_120 = arith.constant dense<0.000000e+00> : vector<8x32xf32>
    %455 = tpu.matmul %454, %1, %cst_120 {dimension_numbers = #tpu.dot_dimension_numbers<[1], [0], [0], [1], [0, 0, 1, 1], [], []>} : vector<8x64xf32>, vector<64x32xf32>, vector<8x32xf32> -> vector<8x32xf32>
    %456 = arith.addf %455, %7 : vector<8x32xf32>
    %457 = arith.addf %440, %448 : vector<8x32xf32>
    %cst_121 = arith.constant 2.000000e+00 : f32
    %458 = vector.broadcast %cst_121 : f32 to vector<8x32xf32>
    %459 = arith.mulf %458, %457 : vector<8x32xf32>
    %460 = arith.addf %432, %459 : vector<8x32xf32>
    %461 = arith.addf %460, %456 : vector<8x32xf32>
    %462 = vector.broadcast %316 : f32 to vector<8x32xf32>
    %463 = arith.mulf %462, %461 : vector<8x32xf32>
    %464 = arith.addf %427, %463 : vector<8x32xf32>
    %c24 = arith.constant 24 : index
    %c0_122 = arith.constant 0 : index
    %465 = vector.load %arg11[%c24, %c0_122] : memref<64x32xf32, #tpu.memory_space<vmem>>, vector<8x32xf32>
    tpu.vector_store %arg11[%c24, %c0_122], %464 {strides = array<i32>} : memref<64x32xf32, #tpu.memory_space<vmem>>, vector<8x32xf32>,
    %c9 = arith.constant 9 : index
    %466 = memref.load %arg0[%c9] : memref<21xf32, #tpu.memory_space<smem>>
    %c10 = arith.constant 10 : index
    %467 = memref.load %arg0[%c10] : memref<21xf32, #tpu.memory_space<smem>>
    %c11 = arith.constant 11 : index
    %468 = memref.load %arg0[%c11] : memref<21xf32, #tpu.memory_space<smem>>
    %cst_123 = arith.constant dense<0.000000e+00> : vector<8x64xf32>
    %469 = tpu.matmul %464, %0, %cst_123 {dimension_numbers = #tpu.dot_dimension_numbers<[1], [0], [0], [1], [0, 0, 1, 1], [], []>} : vector<8x32xf32>, vector<32x64xf32>, vector<8x64xf32> -> vector<8x64xf32>
    %470 = arith.addf %469, %4 : vector<8x64xf32>
    %471 = math.tanh %470 : vector<8x64xf32>
    %cst_124 = arith.constant dense<0.000000e+00> : vector<8x32xf32>
    %472 = tpu.matmul %471, %1, %cst_124 {dimension_numbers = #tpu.dot_dimension_numbers<[1], [0], [0], [1], [0, 0, 1, 1], [], []>} : vector<8x64xf32>, vector<64x32xf32>, vector<8x32xf32> -> vector<8x32xf32>
    %473 = arith.addf %472, %7 : vector<8x32xf32>
    %474 = vector.broadcast %467 : f32 to vector<8x32xf32>
    %475 = arith.mulf %474, %473 : vector<8x32xf32>
    %476 = arith.addf %464, %475 : vector<8x32xf32>
    %cst_125 = arith.constant dense<0.000000e+00> : vector<8x64xf32>
    %477 = tpu.matmul %476, %0, %cst_125 {dimension_numbers = #tpu.dot_dimension_numbers<[1], [0], [0], [1], [0, 0, 1, 1], [], []>} : vector<8x32xf32>, vector<32x64xf32>, vector<8x64xf32> -> vector<8x64xf32>
    %478 = arith.addf %477, %4 : vector<8x64xf32>
    %479 = math.tanh %478 : vector<8x64xf32>
    %cst_126 = arith.constant dense<0.000000e+00> : vector<8x32xf32>
    %480 = tpu.matmul %479, %1, %cst_126 {dimension_numbers = #tpu.dot_dimension_numbers<[1], [0], [0], [1], [0, 0, 1, 1], [], []>} : vector<8x64xf32>, vector<64x32xf32>, vector<8x32xf32> -> vector<8x32xf32>
    %481 = arith.addf %480, %7 : vector<8x32xf32>
    %482 = vector.broadcast %467 : f32 to vector<8x32xf32>
    %483 = arith.mulf %482, %481 : vector<8x32xf32>
    %484 = arith.addf %464, %483 : vector<8x32xf32>
    %cst_127 = arith.constant dense<0.000000e+00> : vector<8x64xf32>
    %485 = tpu.matmul %484, %0, %cst_127 {dimension_numbers = #tpu.dot_dimension_numbers<[1], [0], [0], [1], [0, 0, 1, 1], [], []>} : vector<8x32xf32>, vector<32x64xf32>, vector<8x64xf32> -> vector<8x64xf32>
    %486 = arith.addf %485, %4 : vector<8x64xf32>
    %487 = math.tanh %486 : vector<8x64xf32>
    %cst_128 = arith.constant dense<0.000000e+00> : vector<8x32xf32>
    %488 = tpu.matmul %487, %1, %cst_128 {dimension_numbers = #tpu.dot_dimension_numbers<[1], [0], [0], [1], [0, 0, 1, 1], [], []>} : vector<8x64xf32>, vector<64x32xf32>, vector<8x32xf32> -> vector<8x32xf32>
    %489 = arith.addf %488, %7 : vector<8x32xf32>
    %490 = vector.broadcast %466 : f32 to vector<8x32xf32>
    %491 = arith.mulf %490, %489 : vector<8x32xf32>
    %492 = arith.addf %464, %491 : vector<8x32xf32>
    %cst_129 = arith.constant dense<0.000000e+00> : vector<8x64xf32>
    %493 = tpu.matmul %492, %0, %cst_129 {dimension_numbers = #tpu.dot_dimension_numbers<[1], [0], [0], [1], [0, 0, 1, 1], [], []>} : vector<8x32xf32>, vector<32x64xf32>, vector<8x64xf32> -> vector<8x64xf32>
    %494 = arith.addf %493, %4 : vector<8x64xf32>
    %495 = math.tanh %494 : vector<8x64xf32>
    %cst_130 = arith.constant dense<0.000000e+00> : vector<8x32xf32>
    %496 = tpu.matmul %495, %1, %cst_130 {dimension_numbers = #tpu.dot_dimension_numbers<[1], [0], [0], [1], [0, 0, 1, 1], [], []>} : vector<8x64xf32>, vector<64x32xf32>, vector<8x32xf32> -> vector<8x32xf32>
    %497 = arith.addf %496, %7 : vector<8x32xf32>
    %498 = arith.addf %481, %489 : vector<8x32xf32>
    %cst_131 = arith.constant 2.000000e+00 : f32
    %499 = vector.broadcast %cst_131 : f32 to vector<8x32xf32>
    %500 = arith.mulf %499, %498 : vector<8x32xf32>
    %501 = arith.addf %473, %500 : vector<8x32xf32>
    %502 = arith.addf %501, %497 : vector<8x32xf32>
    %503 = vector.broadcast %468 : f32 to vector<8x32xf32>
    %504 = arith.mulf %503, %502 : vector<8x32xf32>
    %505 = arith.addf %464, %504 : vector<8x32xf32>
    %cst_132 = arith.constant dense<0.000000e+00> : vector<8x64xf32>
    %506 = tpu.matmul %505, %0, %cst_132 {dimension_numbers = #tpu.dot_dimension_numbers<[1], [0], [0], [1], [0, 0, 1, 1], [], []>} : vector<8x32xf32>, vector<32x64xf32>, vector<8x64xf32> -> vector<8x64xf32>
    %507 = arith.addf %506, %4 : vector<8x64xf32>
    %508 = math.tanh %507 : vector<8x64xf32>
    %cst_133 = arith.constant dense<0.000000e+00> : vector<8x32xf32>
    %509 = tpu.matmul %508, %1, %cst_133 {dimension_numbers = #tpu.dot_dimension_numbers<[1], [0], [0], [1], [0, 0, 1, 1], [], []>} : vector<8x64xf32>, vector<64x32xf32>, vector<8x32xf32> -> vector<8x32xf32>
    %510 = arith.addf %509, %7 : vector<8x32xf32>
    %511 = vector.broadcast %467 : f32 to vector<8x32xf32>
    %512 = arith.mulf %511, %510 : vector<8x32xf32>
    %513 = arith.addf %505, %512 : vector<8x32xf32>
    %cst_134 = arith.constant dense<0.000000e+00> : vector<8x64xf32>
    %514 = tpu.matmul %513, %0, %cst_134 {dimension_numbers = #tpu.dot_dimension_numbers<[1], [0], [0], [1], [0, 0, 1, 1], [], []>} : vector<8x32xf32>, vector<32x64xf32>, vector<8x64xf32> -> vector<8x64xf32>
    %515 = arith.addf %514, %4 : vector<8x64xf32>
    %516 = math.tanh %515 : vector<8x64xf32>
    %cst_135 = arith.constant dense<0.000000e+00> : vector<8x32xf32>
    %517 = tpu.matmul %516, %1, %cst_135 {dimension_numbers = #tpu.dot_dimension_numbers<[1], [0], [0], [1], [0, 0, 1, 1], [], []>} : vector<8x64xf32>, vector<64x32xf32>, vector<8x32xf32> -> vector<8x32xf32>
    %518 = arith.addf %517, %7 : vector<8x32xf32>
    %519 = vector.broadcast %467 : f32 to vector<8x32xf32>
    %520 = arith.mulf %519, %518 : vector<8x32xf32>
    %521 = arith.addf %505, %520 : vector<8x32xf32>
    %cst_136 = arith.constant dense<0.000000e+00> : vector<8x64xf32>
    %522 = tpu.matmul %521, %0, %cst_136 {dimension_numbers = #tpu.dot_dimension_numbers<[1], [0], [0], [1], [0, 0, 1, 1], [], []>} : vector<8x32xf32>, vector<32x64xf32>, vector<8x64xf32> -> vector<8x64xf32>
    %523 = arith.addf %522, %4 : vector<8x64xf32>
    %524 = math.tanh %523 : vector<8x64xf32>
    %cst_137 = arith.constant dense<0.000000e+00> : vector<8x32xf32>
    %525 = tpu.matmul %524, %1, %cst_137 {dimension_numbers = #tpu.dot_dimension_numbers<[1], [0], [0], [1], [0, 0, 1, 1], [], []>} : vector<8x64xf32>, vector<64x32xf32>, vector<8x32xf32> -> vector<8x32xf32>
    %526 = arith.addf %525, %7 : vector<8x32xf32>
    %527 = vector.broadcast %466 : f32 to vector<8x32xf32>
    %528 = arith.mulf %527, %526 : vector<8x32xf32>
    %529 = arith.addf %505, %528 : vector<8x32xf32>
    %cst_138 = arith.constant dense<0.000000e+00> : vector<8x64xf32>
    %530 = tpu.matmul %529, %0, %cst_138 {dimension_numbers = #tpu.dot_dimension_numbers<[1], [0], [0], [1], [0, 0, 1, 1], [], []>} : vector<8x32xf32>, vector<32x64xf32>, vector<8x64xf32> -> vector<8x64xf32>
    %531 = arith.addf %530, %4 : vector<8x64xf32>
    %532 = math.tanh %531 : vector<8x64xf32>
    %cst_139 = arith.constant dense<0.000000e+00> : vector<8x32xf32>
    %533 = tpu.matmul %532, %1, %cst_139 {dimension_numbers = #tpu.dot_dimension_numbers<[1], [0], [0], [1], [0, 0, 1, 1], [], []>} : vector<8x64xf32>, vector<64x32xf32>, vector<8x32xf32> -> vector<8x32xf32>
    %534 = arith.addf %533, %7 : vector<8x32xf32>
    %535 = arith.addf %518, %526 : vector<8x32xf32>
    %cst_140 = arith.constant 2.000000e+00 : f32
    %536 = vector.broadcast %cst_140 : f32 to vector<8x32xf32>
    %537 = arith.mulf %536, %535 : vector<8x32xf32>
    %538 = arith.addf %510, %537 : vector<8x32xf32>
    %539 = arith.addf %538, %534 : vector<8x32xf32>
    %540 = vector.broadcast %468 : f32 to vector<8x32xf32>
    %541 = arith.mulf %540, %539 : vector<8x32xf32>
    %542 = arith.addf %505, %541 : vector<8x32xf32>
    %cst_141 = arith.constant dense<0.000000e+00> : vector<8x64xf32>
    %543 = tpu.matmul %542, %0, %cst_141 {dimension_numbers = #tpu.dot_dimension_numbers<[1], [0], [0], [1], [0, 0, 1, 1], [], []>} : vector<8x32xf32>, vector<32x64xf32>, vector<8x64xf32> -> vector<8x64xf32>
    %544 = arith.addf %543, %4 : vector<8x64xf32>
    %545 = math.tanh %544 : vector<8x64xf32>
    %cst_142 = arith.constant dense<0.000000e+00> : vector<8x32xf32>
    %546 = tpu.matmul %545, %1, %cst_142 {dimension_numbers = #tpu.dot_dimension_numbers<[1], [0], [0], [1], [0, 0, 1, 1], [], []>} : vector<8x64xf32>, vector<64x32xf32>, vector<8x32xf32> -> vector<8x32xf32>
    %547 = arith.addf %546, %7 : vector<8x32xf32>
    %548 = vector.broadcast %467 : f32 to vector<8x32xf32>
    %549 = arith.mulf %548, %547 : vector<8x32xf32>
    %550 = arith.addf %542, %549 : vector<8x32xf32>
    %cst_143 = arith.constant dense<0.000000e+00> : vector<8x64xf32>
    %551 = tpu.matmul %550, %0, %cst_143 {dimension_numbers = #tpu.dot_dimension_numbers<[1], [0], [0], [1], [0, 0, 1, 1], [], []>} : vector<8x32xf32>, vector<32x64xf32>, vector<8x64xf32> -> vector<8x64xf32>
    %552 = arith.addf %551, %4 : vector<8x64xf32>
    %553 = math.tanh %552 : vector<8x64xf32>
    %cst_144 = arith.constant dense<0.000000e+00> : vector<8x32xf32>
    %554 = tpu.matmul %553, %1, %cst_144 {dimension_numbers = #tpu.dot_dimension_numbers<[1], [0], [0], [1], [0, 0, 1, 1], [], []>} : vector<8x64xf32>, vector<64x32xf32>, vector<8x32xf32> -> vector<8x32xf32>
    %555 = arith.addf %554, %7 : vector<8x32xf32>
    %556 = vector.broadcast %467 : f32 to vector<8x32xf32>
    %557 = arith.mulf %556, %555 : vector<8x32xf32>
    %558 = arith.addf %542, %557 : vector<8x32xf32>
    %cst_145 = arith.constant dense<0.000000e+00> : vector<8x64xf32>
    %559 = tpu.matmul %558, %0, %cst_145 {dimension_numbers = #tpu.dot_dimension_numbers<[1], [0], [0], [1], [0, 0, 1, 1], [], []>} : vector<8x32xf32>, vector<32x64xf32>, vector<8x64xf32> -> vector<8x64xf32>
    %560 = arith.addf %559, %4 : vector<8x64xf32>
    %561 = math.tanh %560 : vector<8x64xf32>
    %cst_146 = arith.constant dense<0.000000e+00> : vector<8x32xf32>
    %562 = tpu.matmul %561, %1, %cst_146 {dimension_numbers = #tpu.dot_dimension_numbers<[1], [0], [0], [1], [0, 0, 1, 1], [], []>} : vector<8x64xf32>, vector<64x32xf32>, vector<8x32xf32> -> vector<8x32xf32>
    %563 = arith.addf %562, %7 : vector<8x32xf32>
    %564 = vector.broadcast %466 : f32 to vector<8x32xf32>
    %565 = arith.mulf %564, %563 : vector<8x32xf32>
    %566 = arith.addf %542, %565 : vector<8x32xf32>
    %cst_147 = arith.constant dense<0.000000e+00> : vector<8x64xf32>
    %567 = tpu.matmul %566, %0, %cst_147 {dimension_numbers = #tpu.dot_dimension_numbers<[1], [0], [0], [1], [0, 0, 1, 1], [], []>} : vector<8x32xf32>, vector<32x64xf32>, vector<8x64xf32> -> vector<8x64xf32>
    %568 = arith.addf %567, %4 : vector<8x64xf32>
    %569 = math.tanh %568 : vector<8x64xf32>
    %cst_148 = arith.constant dense<0.000000e+00> : vector<8x32xf32>
    %570 = tpu.matmul %569, %1, %cst_148 {dimension_numbers = #tpu.dot_dimension_numbers<[1], [0], [0], [1], [0, 0, 1, 1], [], []>} : vector<8x64xf32>, vector<64x32xf32>, vector<8x32xf32> -> vector<8x32xf32>
    %571 = arith.addf %570, %7 : vector<8x32xf32>
    %572 = arith.addf %555, %563 : vector<8x32xf32>
    %cst_149 = arith.constant 2.000000e+00 : f32
    %573 = vector.broadcast %cst_149 : f32 to vector<8x32xf32>
    %574 = arith.mulf %573, %572 : vector<8x32xf32>
    %575 = arith.addf %547, %574 : vector<8x32xf32>
    %576 = arith.addf %575, %571 : vector<8x32xf32>
    %577 = vector.broadcast %468 : f32 to vector<8x32xf32>
    %578 = arith.mulf %577, %576 : vector<8x32xf32>
    %579 = arith.addf %542, %578 : vector<8x32xf32>
    %cst_150 = arith.constant dense<0.000000e+00> : vector<8x64xf32>
    %580 = tpu.matmul %579, %0, %cst_150 {dimension_numbers = #tpu.dot_dimension_numbers<[1], [0], [0], [1], [0, 0, 1, 1], [], []>} : vector<8x32xf32>, vector<32x64xf32>, vector<8x64xf32> -> vector<8x64xf32>
    %581 = arith.addf %580, %4 : vector<8x64xf32>
    %582 = math.tanh %581 : vector<8x64xf32>
    %cst_151 = arith.constant dense<0.000000e+00> : vector<8x32xf32>
    %583 = tpu.matmul %582, %1, %cst_151 {dimension_numbers = #tpu.dot_dimension_numbers<[1], [0], [0], [1], [0, 0, 1, 1], [], []>} : vector<8x64xf32>, vector<64x32xf32>, vector<8x32xf32> -> vector<8x32xf32>
    %584 = arith.addf %583, %7 : vector<8x32xf32>
    %585 = vector.broadcast %467 : f32 to vector<8x32xf32>
    %586 = arith.mulf %585, %584 : vector<8x32xf32>
    %587 = arith.addf %579, %586 : vector<8x32xf32>
    %cst_152 = arith.constant dense<0.000000e+00> : vector<8x64xf32>
    %588 = tpu.matmul %587, %0, %cst_152 {dimension_numbers = #tpu.dot_dimension_numbers<[1], [0], [0], [1], [0, 0, 1, 1], [], []>} : vector<8x32xf32>, vector<32x64xf32>, vector<8x64xf32> -> vector<8x64xf32>
    %589 = arith.addf %588, %4 : vector<8x64xf32>
    %590 = math.tanh %589 : vector<8x64xf32>
    %cst_153 = arith.constant dense<0.000000e+00> : vector<8x32xf32>
    %591 = tpu.matmul %590, %1, %cst_153 {dimension_numbers = #tpu.dot_dimension_numbers<[1], [0], [0], [1], [0, 0, 1, 1], [], []>} : vector<8x64xf32>, vector<64x32xf32>, vector<8x32xf32> -> vector<8x32xf32>
    %592 = arith.addf %591, %7 : vector<8x32xf32>
    %593 = vector.broadcast %467 : f32 to vector<8x32xf32>
    %594 = arith.mulf %593, %592 : vector<8x32xf32>
    %595 = arith.addf %579, %594 : vector<8x32xf32>
    %cst_154 = arith.constant dense<0.000000e+00> : vector<8x64xf32>
    %596 = tpu.matmul %595, %0, %cst_154 {dimension_numbers = #tpu.dot_dimension_numbers<[1], [0], [0], [1], [0, 0, 1, 1], [], []>} : vector<8x32xf32>, vector<32x64xf32>, vector<8x64xf32> -> vector<8x64xf32>
    %597 = arith.addf %596, %4 : vector<8x64xf32>
    %598 = math.tanh %597 : vector<8x64xf32>
    %cst_155 = arith.constant dense<0.000000e+00> : vector<8x32xf32>
    %599 = tpu.matmul %598, %1, %cst_155 {dimension_numbers = #tpu.dot_dimension_numbers<[1], [0], [0], [1], [0, 0, 1, 1], [], []>} : vector<8x64xf32>, vector<64x32xf32>, vector<8x32xf32> -> vector<8x32xf32>
    %600 = arith.addf %599, %7 : vector<8x32xf32>
    %601 = vector.broadcast %466 : f32 to vector<8x32xf32>
    %602 = arith.mulf %601, %600 : vector<8x32xf32>
    %603 = arith.addf %579, %602 : vector<8x32xf32>
    %cst_156 = arith.constant dense<0.000000e+00> : vector<8x64xf32>
    %604 = tpu.matmul %603, %0, %cst_156 {dimension_numbers = #tpu.dot_dimension_numbers<[1], [0], [0], [1], [0, 0, 1, 1], [], []>} : vector<8x32xf32>, vector<32x64xf32>, vector<8x64xf32> -> vector<8x64xf32>
    %605 = arith.addf %604, %4 : vector<8x64xf32>
    %606 = math.tanh %605 : vector<8x64xf32>
    %cst_157 = arith.constant dense<0.000000e+00> : vector<8x32xf32>
    %607 = tpu.matmul %606, %1, %cst_157 {dimension_numbers = #tpu.dot_dimension_numbers<[1], [0], [0], [1], [0, 0, 1, 1], [], []>} : vector<8x64xf32>, vector<64x32xf32>, vector<8x32xf32> -> vector<8x32xf32>
    %608 = arith.addf %607, %7 : vector<8x32xf32>
    %609 = arith.addf %592, %600 : vector<8x32xf32>
    %cst_158 = arith.constant 2.000000e+00 : f32
    %610 = vector.broadcast %cst_158 : f32 to vector<8x32xf32>
    %611 = arith.mulf %610, %609 : vector<8x32xf32>
    %612 = arith.addf %584, %611 : vector<8x32xf32>
    %613 = arith.addf %612, %608 : vector<8x32xf32>
    %614 = vector.broadcast %468 : f32 to vector<8x32xf32>
    %615 = arith.mulf %614, %613 : vector<8x32xf32>
    %616 = arith.addf %579, %615 : vector<8x32xf32>
    %c32 = arith.constant 32 : index
    %c0_159 = arith.constant 0 : index
    %617 = vector.load %arg11[%c32, %c0_159] : memref<64x32xf32, #tpu.memory_space<vmem>>, vector<8x32xf32>
    tpu.vector_store %arg11[%c32, %c0_159], %616 {strides = array<i32>} : memref<64x32xf32, #tpu.memory_space<vmem>>, vector<8x32xf32>,
    %c12 = arith.constant 12 : index
    %618 = memref.load %arg0[%c12] : memref<21xf32, #tpu.memory_space<smem>>
    %c13 = arith.constant 13 : index
    %619 = memref.load %arg0[%c13] : memref<21xf32, #tpu.memory_space<smem>>
    %c14 = arith.constant 14 : index
    %620 = memref.load %arg0[%c14] : memref<21xf32, #tpu.memory_space<smem>>
    %cst_160 = arith.constant dense<0.000000e+00> : vector<8x64xf32>
    %621 = tpu.matmul %616, %0, %cst_160 {dimension_numbers = #tpu.dot_dimension_numbers<[1], [0], [0], [1], [0, 0, 1, 1], [], []>} : vector<8x32xf32>, vector<32x64xf32>, vector<8x64xf32> -> vector<8x64xf32>
    %622 = arith.addf %621, %4 : vector<8x64xf32>
    %623 = math.tanh %622 : vector<8x64xf32>
    %cst_161 = arith.constant dense<0.000000e+00> : vector<8x32xf32>
    %624 = tpu.matmul %623, %1, %cst_161 {dimension_numbers = #tpu.dot_dimension_numbers<[1], [0], [0], [1], [0, 0, 1, 1], [], []>} : vector<8x64xf32>, vector<64x32xf32>, vector<8x32xf32> -> vector<8x32xf32>
    %625 = arith.addf %624, %7 : vector<8x32xf32>
    %626 = vector.broadcast %619 : f32 to vector<8x32xf32>
    %627 = arith.mulf %626, %625 : vector<8x32xf32>
    %628 = arith.addf %616, %627 : vector<8x32xf32>
    %cst_162 = arith.constant dense<0.000000e+00> : vector<8x64xf32>
    %629 = tpu.matmul %628, %0, %cst_162 {dimension_numbers = #tpu.dot_dimension_numbers<[1], [0], [0], [1], [0, 0, 1, 1], [], []>} : vector<8x32xf32>, vector<32x64xf32>, vector<8x64xf32> -> vector<8x64xf32>
    %630 = arith.addf %629, %4 : vector<8x64xf32>
    %631 = math.tanh %630 : vector<8x64xf32>
    %cst_163 = arith.constant dense<0.000000e+00> : vector<8x32xf32>
    %632 = tpu.matmul %631, %1, %cst_163 {dimension_numbers = #tpu.dot_dimension_numbers<[1], [0], [0], [1], [0, 0, 1, 1], [], []>} : vector<8x64xf32>, vector<64x32xf32>, vector<8x32xf32> -> vector<8x32xf32>
    %633 = arith.addf %632, %7 : vector<8x32xf32>
    %634 = vector.broadcast %619 : f32 to vector<8x32xf32>
    %635 = arith.mulf %634, %633 : vector<8x32xf32>
    %636 = arith.addf %616, %635 : vector<8x32xf32>
    %cst_164 = arith.constant dense<0.000000e+00> : vector<8x64xf32>
    %637 = tpu.matmul %636, %0, %cst_164 {dimension_numbers = #tpu.dot_dimension_numbers<[1], [0], [0], [1], [0, 0, 1, 1], [], []>} : vector<8x32xf32>, vector<32x64xf32>, vector<8x64xf32> -> vector<8x64xf32>
    %638 = arith.addf %637, %4 : vector<8x64xf32>
    %639 = math.tanh %638 : vector<8x64xf32>
    %cst_165 = arith.constant dense<0.000000e+00> : vector<8x32xf32>
    %640 = tpu.matmul %639, %1, %cst_165 {dimension_numbers = #tpu.dot_dimension_numbers<[1], [0], [0], [1], [0, 0, 1, 1], [], []>} : vector<8x64xf32>, vector<64x32xf32>, vector<8x32xf32> -> vector<8x32xf32>
    %641 = arith.addf %640, %7 : vector<8x32xf32>
    %642 = vector.broadcast %618 : f32 to vector<8x32xf32>
    %643 = arith.mulf %642, %641 : vector<8x32xf32>
    %644 = arith.addf %616, %643 : vector<8x32xf32>
    %cst_166 = arith.constant dense<0.000000e+00> : vector<8x64xf32>
    %645 = tpu.matmul %644, %0, %cst_166 {dimension_numbers = #tpu.dot_dimension_numbers<[1], [0], [0], [1], [0, 0, 1, 1], [], []>} : vector<8x32xf32>, vector<32x64xf32>, vector<8x64xf32> -> vector<8x64xf32>
    %646 = arith.addf %645, %4 : vector<8x64xf32>
    %647 = math.tanh %646 : vector<8x64xf32>
    %cst_167 = arith.constant dense<0.000000e+00> : vector<8x32xf32>
    %648 = tpu.matmul %647, %1, %cst_167 {dimension_numbers = #tpu.dot_dimension_numbers<[1], [0], [0], [1], [0, 0, 1, 1], [], []>} : vector<8x64xf32>, vector<64x32xf32>, vector<8x32xf32> -> vector<8x32xf32>
    %649 = arith.addf %648, %7 : vector<8x32xf32>
    %650 = arith.addf %633, %641 : vector<8x32xf32>
    %cst_168 = arith.constant 2.000000e+00 : f32
    %651 = vector.broadcast %cst_168 : f32 to vector<8x32xf32>
    %652 = arith.mulf %651, %650 : vector<8x32xf32>
    %653 = arith.addf %625, %652 : vector<8x32xf32>
    %654 = arith.addf %653, %649 : vector<8x32xf32>
    %655 = vector.broadcast %620 : f32 to vector<8x32xf32>
    %656 = arith.mulf %655, %654 : vector<8x32xf32>
    %657 = arith.addf %616, %656 : vector<8x32xf32>
    %cst_169 = arith.constant dense<0.000000e+00> : vector<8x64xf32>
    %658 = tpu.matmul %657, %0, %cst_169 {dimension_numbers = #tpu.dot_dimension_numbers<[1], [0], [0], [1], [0, 0, 1, 1], [], []>} : vector<8x32xf32>, vector<32x64xf32>, vector<8x64xf32> -> vector<8x64xf32>
    %659 = arith.addf %658, %4 : vector<8x64xf32>
    %660 = math.tanh %659 : vector<8x64xf32>
    %cst_170 = arith.constant dense<0.000000e+00> : vector<8x32xf32>
    %661 = tpu.matmul %660, %1, %cst_170 {dimension_numbers = #tpu.dot_dimension_numbers<[1], [0], [0], [1], [0, 0, 1, 1], [], []>} : vector<8x64xf32>, vector<64x32xf32>, vector<8x32xf32> -> vector<8x32xf32>
    %662 = arith.addf %661, %7 : vector<8x32xf32>
    %663 = vector.broadcast %619 : f32 to vector<8x32xf32>
    %664 = arith.mulf %663, %662 : vector<8x32xf32>
    %665 = arith.addf %657, %664 : vector<8x32xf32>
    %cst_171 = arith.constant dense<0.000000e+00> : vector<8x64xf32>
    %666 = tpu.matmul %665, %0, %cst_171 {dimension_numbers = #tpu.dot_dimension_numbers<[1], [0], [0], [1], [0, 0, 1, 1], [], []>} : vector<8x32xf32>, vector<32x64xf32>, vector<8x64xf32> -> vector<8x64xf32>
    %667 = arith.addf %666, %4 : vector<8x64xf32>
    %668 = math.tanh %667 : vector<8x64xf32>
    %cst_172 = arith.constant dense<0.000000e+00> : vector<8x32xf32>
    %669 = tpu.matmul %668, %1, %cst_172 {dimension_numbers = #tpu.dot_dimension_numbers<[1], [0], [0], [1], [0, 0, 1, 1], [], []>} : vector<8x64xf32>, vector<64x32xf32>, vector<8x32xf32> -> vector<8x32xf32>
    %670 = arith.addf %669, %7 : vector<8x32xf32>
    %671 = vector.broadcast %619 : f32 to vector<8x32xf32>
    %672 = arith.mulf %671, %670 : vector<8x32xf32>
    %673 = arith.addf %657, %672 : vector<8x32xf32>
    %cst_173 = arith.constant dense<0.000000e+00> : vector<8x64xf32>
    %674 = tpu.matmul %673, %0, %cst_173 {dimension_numbers = #tpu.dot_dimension_numbers<[1], [0], [0], [1], [0, 0, 1, 1], [], []>} : vector<8x32xf32>, vector<32x64xf32>, vector<8x64xf32> -> vector<8x64xf32>
    %675 = arith.addf %674, %4 : vector<8x64xf32>
    %676 = math.tanh %675 : vector<8x64xf32>
    %cst_174 = arith.constant dense<0.000000e+00> : vector<8x32xf32>
    %677 = tpu.matmul %676, %1, %cst_174 {dimension_numbers = #tpu.dot_dimension_numbers<[1], [0], [0], [1], [0, 0, 1, 1], [], []>} : vector<8x64xf32>, vector<64x32xf32>, vector<8x32xf32> -> vector<8x32xf32>
    %678 = arith.addf %677, %7 : vector<8x32xf32>
    %679 = vector.broadcast %618 : f32 to vector<8x32xf32>
    %680 = arith.mulf %679, %678 : vector<8x32xf32>
    %681 = arith.addf %657, %680 : vector<8x32xf32>
    %cst_175 = arith.constant dense<0.000000e+00> : vector<8x64xf32>
    %682 = tpu.matmul %681, %0, %cst_175 {dimension_numbers = #tpu.dot_dimension_numbers<[1], [0], [0], [1], [0, 0, 1, 1], [], []>} : vector<8x32xf32>, vector<32x64xf32>, vector<8x64xf32> -> vector<8x64xf32>
    %683 = arith.addf %682, %4 : vector<8x64xf32>
    %684 = math.tanh %683 : vector<8x64xf32>
    %cst_176 = arith.constant dense<0.000000e+00> : vector<8x32xf32>
    %685 = tpu.matmul %684, %1, %cst_176 {dimension_numbers = #tpu.dot_dimension_numbers<[1], [0], [0], [1], [0, 0, 1, 1], [], []>} : vector<8x64xf32>, vector<64x32xf32>, vector<8x32xf32> -> vector<8x32xf32>
    %686 = arith.addf %685, %7 : vector<8x32xf32>
    %687 = arith.addf %670, %678 : vector<8x32xf32>
    %cst_177 = arith.constant 2.000000e+00 : f32
    %688 = vector.broadcast %cst_177 : f32 to vector<8x32xf32>
    %689 = arith.mulf %688, %687 : vector<8x32xf32>
    %690 = arith.addf %662, %689 : vector<8x32xf32>
    %691 = arith.addf %690, %686 : vector<8x32xf32>
    %692 = vector.broadcast %620 : f32 to vector<8x32xf32>
    %693 = arith.mulf %692, %691 : vector<8x32xf32>
    %694 = arith.addf %657, %693 : vector<8x32xf32>
    %cst_178 = arith.constant dense<0.000000e+00> : vector<8x64xf32>
    %695 = tpu.matmul %694, %0, %cst_178 {dimension_numbers = #tpu.dot_dimension_numbers<[1], [0], [0], [1], [0, 0, 1, 1], [], []>} : vector<8x32xf32>, vector<32x64xf32>, vector<8x64xf32> -> vector<8x64xf32>
    %696 = arith.addf %695, %4 : vector<8x64xf32>
    %697 = math.tanh %696 : vector<8x64xf32>
    %cst_179 = arith.constant dense<0.000000e+00> : vector<8x32xf32>
    %698 = tpu.matmul %697, %1, %cst_179 {dimension_numbers = #tpu.dot_dimension_numbers<[1], [0], [0], [1], [0, 0, 1, 1], [], []>} : vector<8x64xf32>, vector<64x32xf32>, vector<8x32xf32> -> vector<8x32xf32>
    %699 = arith.addf %698, %7 : vector<8x32xf32>
    %700 = vector.broadcast %619 : f32 to vector<8x32xf32>
    %701 = arith.mulf %700, %699 : vector<8x32xf32>
    %702 = arith.addf %694, %701 : vector<8x32xf32>
    %cst_180 = arith.constant dense<0.000000e+00> : vector<8x64xf32>
    %703 = tpu.matmul %702, %0, %cst_180 {dimension_numbers = #tpu.dot_dimension_numbers<[1], [0], [0], [1], [0, 0, 1, 1], [], []>} : vector<8x32xf32>, vector<32x64xf32>, vector<8x64xf32> -> vector<8x64xf32>
    %704 = arith.addf %703, %4 : vector<8x64xf32>
    %705 = math.tanh %704 : vector<8x64xf32>
    %cst_181 = arith.constant dense<0.000000e+00> : vector<8x32xf32>
    %706 = tpu.matmul %705, %1, %cst_181 {dimension_numbers = #tpu.dot_dimension_numbers<[1], [0], [0], [1], [0, 0, 1, 1], [], []>} : vector<8x64xf32>, vector<64x32xf32>, vector<8x32xf32> -> vector<8x32xf32>
    %707 = arith.addf %706, %7 : vector<8x32xf32>
    %708 = vector.broadcast %619 : f32 to vector<8x32xf32>
    %709 = arith.mulf %708, %707 : vector<8x32xf32>
    %710 = arith.addf %694, %709 : vector<8x32xf32>
    %cst_182 = arith.constant dense<0.000000e+00> : vector<8x64xf32>
    %711 = tpu.matmul %710, %0, %cst_182 {dimension_numbers = #tpu.dot_dimension_numbers<[1], [0], [0], [1], [0, 0, 1, 1], [], []>} : vector<8x32xf32>, vector<32x64xf32>, vector<8x64xf32> -> vector<8x64xf32>
    %712 = arith.addf %711, %4 : vector<8x64xf32>
    %713 = math.tanh %712 : vector<8x64xf32>
    %cst_183 = arith.constant dense<0.000000e+00> : vector<8x32xf32>
    %714 = tpu.matmul %713, %1, %cst_183 {dimension_numbers = #tpu.dot_dimension_numbers<[1], [0], [0], [1], [0, 0, 1, 1], [], []>} : vector<8x64xf32>, vector<64x32xf32>, vector<8x32xf32> -> vector<8x32xf32>
    %715 = arith.addf %714, %7 : vector<8x32xf32>
    %716 = vector.broadcast %618 : f32 to vector<8x32xf32>
    %717 = arith.mulf %716, %715 : vector<8x32xf32>
    %718 = arith.addf %694, %717 : vector<8x32xf32>
    %cst_184 = arith.constant dense<0.000000e+00> : vector<8x64xf32>
    %719 = tpu.matmul %718, %0, %cst_184 {dimension_numbers = #tpu.dot_dimension_numbers<[1], [0], [0], [1], [0, 0, 1, 1], [], []>} : vector<8x32xf32>, vector<32x64xf32>, vector<8x64xf32> -> vector<8x64xf32>
    %720 = arith.addf %719, %4 : vector<8x64xf32>
    %721 = math.tanh %720 : vector<8x64xf32>
    %cst_185 = arith.constant dense<0.000000e+00> : vector<8x32xf32>
    %722 = tpu.matmul %721, %1, %cst_185 {dimension_numbers = #tpu.dot_dimension_numbers<[1], [0], [0], [1], [0, 0, 1, 1], [], []>} : vector<8x64xf32>, vector<64x32xf32>, vector<8x32xf32> -> vector<8x32xf32>
    %723 = arith.addf %722, %7 : vector<8x32xf32>
    %724 = arith.addf %707, %715 : vector<8x32xf32>
    %cst_186 = arith.constant 2.000000e+00 : f32
    %725 = vector.broadcast %cst_186 : f32 to vector<8x32xf32>
    %726 = arith.mulf %725, %724 : vector<8x32xf32>
    %727 = arith.addf %699, %726 : vector<8x32xf32>
    %728 = arith.addf %727, %723 : vector<8x32xf32>
    %729 = vector.broadcast %620 : f32 to vector<8x32xf32>
    %730 = arith.mulf %729, %728 : vector<8x32xf32>
    %731 = arith.addf %694, %730 : vector<8x32xf32>
    %cst_187 = arith.constant dense<0.000000e+00> : vector<8x64xf32>
    %732 = tpu.matmul %731, %0, %cst_187 {dimension_numbers = #tpu.dot_dimension_numbers<[1], [0], [0], [1], [0, 0, 1, 1], [], []>} : vector<8x32xf32>, vector<32x64xf32>, vector<8x64xf32> -> vector<8x64xf32>
    %733 = arith.addf %732, %4 : vector<8x64xf32>
    %734 = math.tanh %733 : vector<8x64xf32>
    %cst_188 = arith.constant dense<0.000000e+00> : vector<8x32xf32>
    %735 = tpu.matmul %734, %1, %cst_188 {dimension_numbers = #tpu.dot_dimension_numbers<[1], [0], [0], [1], [0, 0, 1, 1], [], []>} : vector<8x64xf32>, vector<64x32xf32>, vector<8x32xf32> -> vector<8x32xf32>
    %736 = arith.addf %735, %7 : vector<8x32xf32>
    %737 = vector.broadcast %619 : f32 to vector<8x32xf32>
    %738 = arith.mulf %737, %736 : vector<8x32xf32>
    %739 = arith.addf %731, %738 : vector<8x32xf32>
    %cst_189 = arith.constant dense<0.000000e+00> : vector<8x64xf32>
    %740 = tpu.matmul %739, %0, %cst_189 {dimension_numbers = #tpu.dot_dimension_numbers<[1], [0], [0], [1], [0, 0, 1, 1], [], []>} : vector<8x32xf32>, vector<32x64xf32>, vector<8x64xf32> -> vector<8x64xf32>
    %741 = arith.addf %740, %4 : vector<8x64xf32>
    %742 = math.tanh %741 : vector<8x64xf32>
    %cst_190 = arith.constant dense<0.000000e+00> : vector<8x32xf32>
    %743 = tpu.matmul %742, %1, %cst_190 {dimension_numbers = #tpu.dot_dimension_numbers<[1], [0], [0], [1], [0, 0, 1, 1], [], []>} : vector<8x64xf32>, vector<64x32xf32>, vector<8x32xf32> -> vector<8x32xf32>
    %744 = arith.addf %743, %7 : vector<8x32xf32>
    %745 = vector.broadcast %619 : f32 to vector<8x32xf32>
    %746 = arith.mulf %745, %744 : vector<8x32xf32>
    %747 = arith.addf %731, %746 : vector<8x32xf32>
    %cst_191 = arith.constant dense<0.000000e+00> : vector<8x64xf32>
    %748 = tpu.matmul %747, %0, %cst_191 {dimension_numbers = #tpu.dot_dimension_numbers<[1], [0], [0], [1], [0, 0, 1, 1], [], []>} : vector<8x32xf32>, vector<32x64xf32>, vector<8x64xf32> -> vector<8x64xf32>
    %749 = arith.addf %748, %4 : vector<8x64xf32>
    %750 = math.tanh %749 : vector<8x64xf32>
    %cst_192 = arith.constant dense<0.000000e+00> : vector<8x32xf32>
    %751 = tpu.matmul %750, %1, %cst_192 {dimension_numbers = #tpu.dot_dimension_numbers<[1], [0], [0], [1], [0, 0, 1, 1], [], []>} : vector<8x64xf32>, vector<64x32xf32>, vector<8x32xf32> -> vector<8x32xf32>
    %752 = arith.addf %751, %7 : vector<8x32xf32>
    %753 = vector.broadcast %618 : f32 to vector<8x32xf32>
    %754 = arith.mulf %753, %752 : vector<8x32xf32>
    %755 = arith.addf %731, %754 : vector<8x32xf32>
    %cst_193 = arith.constant dense<0.000000e+00> : vector<8x64xf32>
    %756 = tpu.matmul %755, %0, %cst_193 {dimension_numbers = #tpu.dot_dimension_numbers<[1], [0], [0], [1], [0, 0, 1, 1], [], []>} : vector<8x32xf32>, vector<32x64xf32>, vector<8x64xf32> -> vector<8x64xf32>
    %757 = arith.addf %756, %4 : vector<8x64xf32>
    %758 = math.tanh %757 : vector<8x64xf32>
    %cst_194 = arith.constant dense<0.000000e+00> : vector<8x32xf32>
    %759 = tpu.matmul %758, %1, %cst_194 {dimension_numbers = #tpu.dot_dimension_numbers<[1], [0], [0], [1], [0, 0, 1, 1], [], []>} : vector<8x64xf32>, vector<64x32xf32>, vector<8x32xf32> -> vector<8x32xf32>
    %760 = arith.addf %759, %7 : vector<8x32xf32>
    %761 = arith.addf %744, %752 : vector<8x32xf32>
    %cst_195 = arith.constant 2.000000e+00 : f32
    %762 = vector.broadcast %cst_195 : f32 to vector<8x32xf32>
    %763 = arith.mulf %762, %761 : vector<8x32xf32>
    %764 = arith.addf %736, %763 : vector<8x32xf32>
    %765 = arith.addf %764, %760 : vector<8x32xf32>
    %766 = vector.broadcast %620 : f32 to vector<8x32xf32>
    %767 = arith.mulf %766, %765 : vector<8x32xf32>
    %768 = arith.addf %731, %767 : vector<8x32xf32>
    %c40 = arith.constant 40 : index
    %c0_196 = arith.constant 0 : index
    %769 = vector.load %arg11[%c40, %c0_196] : memref<64x32xf32, #tpu.memory_space<vmem>>, vector<8x32xf32>
    tpu.vector_store %arg11[%c40, %c0_196], %768 {strides = array<i32>} : memref<64x32xf32, #tpu.memory_space<vmem>>, vector<8x32xf32>,
    %c15 = arith.constant 15 : index
    %770 = memref.load %arg0[%c15] : memref<21xf32, #tpu.memory_space<smem>>
    %c16_197 = arith.constant 16 : index
    %771 = memref.load %arg0[%c16_197] : memref<21xf32, #tpu.memory_space<smem>>
    %c17 = arith.constant 17 : index
    %772 = memref.load %arg0[%c17] : memref<21xf32, #tpu.memory_space<smem>>
    %cst_198 = arith.constant dense<0.000000e+00> : vector<8x64xf32>
    %773 = tpu.matmul %768, %0, %cst_198 {dimension_numbers = #tpu.dot_dimension_numbers<[1], [0], [0], [1], [0, 0, 1, 1], [], []>} : vector<8x32xf32>, vector<32x64xf32>, vector<8x64xf32> -> vector<8x64xf32>
    %774 = arith.addf %773, %4 : vector<8x64xf32>
    %775 = math.tanh %774 : vector<8x64xf32>
    %cst_199 = arith.constant dense<0.000000e+00> : vector<8x32xf32>
    %776 = tpu.matmul %775, %1, %cst_199 {dimension_numbers = #tpu.dot_dimension_numbers<[1], [0], [0], [1], [0, 0, 1, 1], [], []>} : vector<8x64xf32>, vector<64x32xf32>, vector<8x32xf32> -> vector<8x32xf32>
    %777 = arith.addf %776, %7 : vector<8x32xf32>
    %778 = vector.broadcast %771 : f32 to vector<8x32xf32>
    %779 = arith.mulf %778, %777 : vector<8x32xf32>
    %780 = arith.addf %768, %779 : vector<8x32xf32>
    %cst_200 = arith.constant dense<0.000000e+00> : vector<8x64xf32>
    %781 = tpu.matmul %780, %0, %cst_200 {dimension_numbers = #tpu.dot_dimension_numbers<[1], [0], [0], [1], [0, 0, 1, 1], [], []>} : vector<8x32xf32>, vector<32x64xf32>, vector<8x64xf32> -> vector<8x64xf32>
    %782 = arith.addf %781, %4 : vector<8x64xf32>
    %783 = math.tanh %782 : vector<8x64xf32>
    %cst_201 = arith.constant dense<0.000000e+00> : vector<8x32xf32>
    %784 = tpu.matmul %783, %1, %cst_201 {dimension_numbers = #tpu.dot_dimension_numbers<[1], [0], [0], [1], [0, 0, 1, 1], [], []>} : vector<8x64xf32>, vector<64x32xf32>, vector<8x32xf32> -> vector<8x32xf32>
    %785 = arith.addf %784, %7 : vector<8x32xf32>
    %786 = vector.broadcast %771 : f32 to vector<8x32xf32>
    %787 = arith.mulf %786, %785 : vector<8x32xf32>
    %788 = arith.addf %768, %787 : vector<8x32xf32>
    %cst_202 = arith.constant dense<0.000000e+00> : vector<8x64xf32>
    %789 = tpu.matmul %788, %0, %cst_202 {dimension_numbers = #tpu.dot_dimension_numbers<[1], [0], [0], [1], [0, 0, 1, 1], [], []>} : vector<8x32xf32>, vector<32x64xf32>, vector<8x64xf32> -> vector<8x64xf32>
    %790 = arith.addf %789, %4 : vector<8x64xf32>
    %791 = math.tanh %790 : vector<8x64xf32>
    %cst_203 = arith.constant dense<0.000000e+00> : vector<8x32xf32>
    %792 = tpu.matmul %791, %1, %cst_203 {dimension_numbers = #tpu.dot_dimension_numbers<[1], [0], [0], [1], [0, 0, 1, 1], [], []>} : vector<8x64xf32>, vector<64x32xf32>, vector<8x32xf32> -> vector<8x32xf32>
    %793 = arith.addf %792, %7 : vector<8x32xf32>
    %794 = vector.broadcast %770 : f32 to vector<8x32xf32>
    %795 = arith.mulf %794, %793 : vector<8x32xf32>
    %796 = arith.addf %768, %795 : vector<8x32xf32>
    %cst_204 = arith.constant dense<0.000000e+00> : vector<8x64xf32>
    %797 = tpu.matmul %796, %0, %cst_204 {dimension_numbers = #tpu.dot_dimension_numbers<[1], [0], [0], [1], [0, 0, 1, 1], [], []>} : vector<8x32xf32>, vector<32x64xf32>, vector<8x64xf32> -> vector<8x64xf32>
    %798 = arith.addf %797, %4 : vector<8x64xf32>
    %799 = math.tanh %798 : vector<8x64xf32>
    %cst_205 = arith.constant dense<0.000000e+00> : vector<8x32xf32>
    %800 = tpu.matmul %799, %1, %cst_205 {dimension_numbers = #tpu.dot_dimension_numbers<[1], [0], [0], [1], [0, 0, 1, 1], [], []>} : vector<8x64xf32>, vector<64x32xf32>, vector<8x32xf32> -> vector<8x32xf32>
    %801 = arith.addf %800, %7 : vector<8x32xf32>
    %802 = arith.addf %785, %793 : vector<8x32xf32>
    %cst_206 = arith.constant 2.000000e+00 : f32
    %803 = vector.broadcast %cst_206 : f32 to vector<8x32xf32>
    %804 = arith.mulf %803, %802 : vector<8x32xf32>
    %805 = arith.addf %777, %804 : vector<8x32xf32>
    %806 = arith.addf %805, %801 : vector<8x32xf32>
    %807 = vector.broadcast %772 : f32 to vector<8x32xf32>
    %808 = arith.mulf %807, %806 : vector<8x32xf32>
    %809 = arith.addf %768, %808 : vector<8x32xf32>
    %cst_207 = arith.constant dense<0.000000e+00> : vector<8x64xf32>
    %810 = tpu.matmul %809, %0, %cst_207 {dimension_numbers = #tpu.dot_dimension_numbers<[1], [0], [0], [1], [0, 0, 1, 1], [], []>} : vector<8x32xf32>, vector<32x64xf32>, vector<8x64xf32> -> vector<8x64xf32>
    %811 = arith.addf %810, %4 : vector<8x64xf32>
    %812 = math.tanh %811 : vector<8x64xf32>
    %cst_208 = arith.constant dense<0.000000e+00> : vector<8x32xf32>
    %813 = tpu.matmul %812, %1, %cst_208 {dimension_numbers = #tpu.dot_dimension_numbers<[1], [0], [0], [1], [0, 0, 1, 1], [], []>} : vector<8x64xf32>, vector<64x32xf32>, vector<8x32xf32> -> vector<8x32xf32>
    %814 = arith.addf %813, %7 : vector<8x32xf32>
    %815 = vector.broadcast %771 : f32 to vector<8x32xf32>
    %816 = arith.mulf %815, %814 : vector<8x32xf32>
    %817 = arith.addf %809, %816 : vector<8x32xf32>
    %cst_209 = arith.constant dense<0.000000e+00> : vector<8x64xf32>
    %818 = tpu.matmul %817, %0, %cst_209 {dimension_numbers = #tpu.dot_dimension_numbers<[1], [0], [0], [1], [0, 0, 1, 1], [], []>} : vector<8x32xf32>, vector<32x64xf32>, vector<8x64xf32> -> vector<8x64xf32>
    %819 = arith.addf %818, %4 : vector<8x64xf32>
    %820 = math.tanh %819 : vector<8x64xf32>
    %cst_210 = arith.constant dense<0.000000e+00> : vector<8x32xf32>
    %821 = tpu.matmul %820, %1, %cst_210 {dimension_numbers = #tpu.dot_dimension_numbers<[1], [0], [0], [1], [0, 0, 1, 1], [], []>} : vector<8x64xf32>, vector<64x32xf32>, vector<8x32xf32> -> vector<8x32xf32>
    %822 = arith.addf %821, %7 : vector<8x32xf32>
    %823 = vector.broadcast %771 : f32 to vector<8x32xf32>
    %824 = arith.mulf %823, %822 : vector<8x32xf32>
    %825 = arith.addf %809, %824 : vector<8x32xf32>
    %cst_211 = arith.constant dense<0.000000e+00> : vector<8x64xf32>
    %826 = tpu.matmul %825, %0, %cst_211 {dimension_numbers = #tpu.dot_dimension_numbers<[1], [0], [0], [1], [0, 0, 1, 1], [], []>} : vector<8x32xf32>, vector<32x64xf32>, vector<8x64xf32> -> vector<8x64xf32>
    %827 = arith.addf %826, %4 : vector<8x64xf32>
    %828 = math.tanh %827 : vector<8x64xf32>
    %cst_212 = arith.constant dense<0.000000e+00> : vector<8x32xf32>
    %829 = tpu.matmul %828, %1, %cst_212 {dimension_numbers = #tpu.dot_dimension_numbers<[1], [0], [0], [1], [0, 0, 1, 1], [], []>} : vector<8x64xf32>, vector<64x32xf32>, vector<8x32xf32> -> vector<8x32xf32>
    %830 = arith.addf %829, %7 : vector<8x32xf32>
    %831 = vector.broadcast %770 : f32 to vector<8x32xf32>
    %832 = arith.mulf %831, %830 : vector<8x32xf32>
    %833 = arith.addf %809, %832 : vector<8x32xf32>
    %cst_213 = arith.constant dense<0.000000e+00> : vector<8x64xf32>
    %834 = tpu.matmul %833, %0, %cst_213 {dimension_numbers = #tpu.dot_dimension_numbers<[1], [0], [0], [1], [0, 0, 1, 1], [], []>} : vector<8x32xf32>, vector<32x64xf32>, vector<8x64xf32> -> vector<8x64xf32>
    %835 = arith.addf %834, %4 : vector<8x64xf32>
    %836 = math.tanh %835 : vector<8x64xf32>
    %cst_214 = arith.constant dense<0.000000e+00> : vector<8x32xf32>
    %837 = tpu.matmul %836, %1, %cst_214 {dimension_numbers = #tpu.dot_dimension_numbers<[1], [0], [0], [1], [0, 0, 1, 1], [], []>} : vector<8x64xf32>, vector<64x32xf32>, vector<8x32xf32> -> vector<8x32xf32>
    %838 = arith.addf %837, %7 : vector<8x32xf32>
    %839 = arith.addf %822, %830 : vector<8x32xf32>
    %cst_215 = arith.constant 2.000000e+00 : f32
    %840 = vector.broadcast %cst_215 : f32 to vector<8x32xf32>
    %841 = arith.mulf %840, %839 : vector<8x32xf32>
    %842 = arith.addf %814, %841 : vector<8x32xf32>
    %843 = arith.addf %842, %838 : vector<8x32xf32>
    %844 = vector.broadcast %772 : f32 to vector<8x32xf32>
    %845 = arith.mulf %844, %843 : vector<8x32xf32>
    %846 = arith.addf %809, %845 : vector<8x32xf32>
    %cst_216 = arith.constant dense<0.000000e+00> : vector<8x64xf32>
    %847 = tpu.matmul %846, %0, %cst_216 {dimension_numbers = #tpu.dot_dimension_numbers<[1], [0], [0], [1], [0, 0, 1, 1], [], []>} : vector<8x32xf32>, vector<32x64xf32>, vector<8x64xf32> -> vector<8x64xf32>
    %848 = arith.addf %847, %4 : vector<8x64xf32>
    %849 = math.tanh %848 : vector<8x64xf32>
    %cst_217 = arith.constant dense<0.000000e+00> : vector<8x32xf32>
    %850 = tpu.matmul %849, %1, %cst_217 {dimension_numbers = #tpu.dot_dimension_numbers<[1], [0], [0], [1], [0, 0, 1, 1], [], []>} : vector<8x64xf32>, vector<64x32xf32>, vector<8x32xf32> -> vector<8x32xf32>
    %851 = arith.addf %850, %7 : vector<8x32xf32>
    %852 = vector.broadcast %771 : f32 to vector<8x32xf32>
    %853 = arith.mulf %852, %851 : vector<8x32xf32>
    %854 = arith.addf %846, %853 : vector<8x32xf32>
    %cst_218 = arith.constant dense<0.000000e+00> : vector<8x64xf32>
    %855 = tpu.matmul %854, %0, %cst_218 {dimension_numbers = #tpu.dot_dimension_numbers<[1], [0], [0], [1], [0, 0, 1, 1], [], []>} : vector<8x32xf32>, vector<32x64xf32>, vector<8x64xf32> -> vector<8x64xf32>
    %856 = arith.addf %855, %4 : vector<8x64xf32>
    %857 = math.tanh %856 : vector<8x64xf32>
    %cst_219 = arith.constant dense<0.000000e+00> : vector<8x32xf32>
    %858 = tpu.matmul %857, %1, %cst_219 {dimension_numbers = #tpu.dot_dimension_numbers<[1], [0], [0], [1], [0, 0, 1, 1], [], []>} : vector<8x64xf32>, vector<64x32xf32>, vector<8x32xf32> -> vector<8x32xf32>
    %859 = arith.addf %858, %7 : vector<8x32xf32>
    %860 = vector.broadcast %771 : f32 to vector<8x32xf32>
    %861 = arith.mulf %860, %859 : vector<8x32xf32>
    %862 = arith.addf %846, %861 : vector<8x32xf32>
    %cst_220 = arith.constant dense<0.000000e+00> : vector<8x64xf32>
    %863 = tpu.matmul %862, %0, %cst_220 {dimension_numbers = #tpu.dot_dimension_numbers<[1], [0], [0], [1], [0, 0, 1, 1], [], []>} : vector<8x32xf32>, vector<32x64xf32>, vector<8x64xf32> -> vector<8x64xf32>
    %864 = arith.addf %863, %4 : vector<8x64xf32>
    %865 = math.tanh %864 : vector<8x64xf32>
    %cst_221 = arith.constant dense<0.000000e+00> : vector<8x32xf32>
    %866 = tpu.matmul %865, %1, %cst_221 {dimension_numbers = #tpu.dot_dimension_numbers<[1], [0], [0], [1], [0, 0, 1, 1], [], []>} : vector<8x64xf32>, vector<64x32xf32>, vector<8x32xf32> -> vector<8x32xf32>
    %867 = arith.addf %866, %7 : vector<8x32xf32>
    %868 = vector.broadcast %770 : f32 to vector<8x32xf32>
    %869 = arith.mulf %868, %867 : vector<8x32xf32>
    %870 = arith.addf %846, %869 : vector<8x32xf32>
    %cst_222 = arith.constant dense<0.000000e+00> : vector<8x64xf32>
    %871 = tpu.matmul %870, %0, %cst_222 {dimension_numbers = #tpu.dot_dimension_numbers<[1], [0], [0], [1], [0, 0, 1, 1], [], []>} : vector<8x32xf32>, vector<32x64xf32>, vector<8x64xf32> -> vector<8x64xf32>
    %872 = arith.addf %871, %4 : vector<8x64xf32>
    %873 = math.tanh %872 : vector<8x64xf32>
    %cst_223 = arith.constant dense<0.000000e+00> : vector<8x32xf32>
    %874 = tpu.matmul %873, %1, %cst_223 {dimension_numbers = #tpu.dot_dimension_numbers<[1], [0], [0], [1], [0, 0, 1, 1], [], []>} : vector<8x64xf32>, vector<64x32xf32>, vector<8x32xf32> -> vector<8x32xf32>
    %875 = arith.addf %874, %7 : vector<8x32xf32>
    %876 = arith.addf %859, %867 : vector<8x32xf32>
    %cst_224 = arith.constant 2.000000e+00 : f32
    %877 = vector.broadcast %cst_224 : f32 to vector<8x32xf32>
    %878 = arith.mulf %877, %876 : vector<8x32xf32>
    %879 = arith.addf %851, %878 : vector<8x32xf32>
    %880 = arith.addf %879, %875 : vector<8x32xf32>
    %881 = vector.broadcast %772 : f32 to vector<8x32xf32>
    %882 = arith.mulf %881, %880 : vector<8x32xf32>
    %883 = arith.addf %846, %882 : vector<8x32xf32>
    %cst_225 = arith.constant dense<0.000000e+00> : vector<8x64xf32>
    %884 = tpu.matmul %883, %0, %cst_225 {dimension_numbers = #tpu.dot_dimension_numbers<[1], [0], [0], [1], [0, 0, 1, 1], [], []>} : vector<8x32xf32>, vector<32x64xf32>, vector<8x64xf32> -> vector<8x64xf32>
    %885 = arith.addf %884, %4 : vector<8x64xf32>
    %886 = math.tanh %885 : vector<8x64xf32>
    %cst_226 = arith.constant dense<0.000000e+00> : vector<8x32xf32>
    %887 = tpu.matmul %886, %1, %cst_226 {dimension_numbers = #tpu.dot_dimension_numbers<[1], [0], [0], [1], [0, 0, 1, 1], [], []>} : vector<8x64xf32>, vector<64x32xf32>, vector<8x32xf32> -> vector<8x32xf32>
    %888 = arith.addf %887, %7 : vector<8x32xf32>
    %889 = vector.broadcast %771 : f32 to vector<8x32xf32>
    %890 = arith.mulf %889, %888 : vector<8x32xf32>
    %891 = arith.addf %883, %890 : vector<8x32xf32>
    %cst_227 = arith.constant dense<0.000000e+00> : vector<8x64xf32>
    %892 = tpu.matmul %891, %0, %cst_227 {dimension_numbers = #tpu.dot_dimension_numbers<[1], [0], [0], [1], [0, 0, 1, 1], [], []>} : vector<8x32xf32>, vector<32x64xf32>, vector<8x64xf32> -> vector<8x64xf32>
    %893 = arith.addf %892, %4 : vector<8x64xf32>
    %894 = math.tanh %893 : vector<8x64xf32>
    %cst_228 = arith.constant dense<0.000000e+00> : vector<8x32xf32>
    %895 = tpu.matmul %894, %1, %cst_228 {dimension_numbers = #tpu.dot_dimension_numbers<[1], [0], [0], [1], [0, 0, 1, 1], [], []>} : vector<8x64xf32>, vector<64x32xf32>, vector<8x32xf32> -> vector<8x32xf32>
    %896 = arith.addf %895, %7 : vector<8x32xf32>
    %897 = vector.broadcast %771 : f32 to vector<8x32xf32>
    %898 = arith.mulf %897, %896 : vector<8x32xf32>
    %899 = arith.addf %883, %898 : vector<8x32xf32>
    %cst_229 = arith.constant dense<0.000000e+00> : vector<8x64xf32>
    %900 = tpu.matmul %899, %0, %cst_229 {dimension_numbers = #tpu.dot_dimension_numbers<[1], [0], [0], [1], [0, 0, 1, 1], [], []>} : vector<8x32xf32>, vector<32x64xf32>, vector<8x64xf32> -> vector<8x64xf32>
    %901 = arith.addf %900, %4 : vector<8x64xf32>
    %902 = math.tanh %901 : vector<8x64xf32>
    %cst_230 = arith.constant dense<0.000000e+00> : vector<8x32xf32>
    %903 = tpu.matmul %902, %1, %cst_230 {dimension_numbers = #tpu.dot_dimension_numbers<[1], [0], [0], [1], [0, 0, 1, 1], [], []>} : vector<8x64xf32>, vector<64x32xf32>, vector<8x32xf32> -> vector<8x32xf32>
    %904 = arith.addf %903, %7 : vector<8x32xf32>
    %905 = vector.broadcast %770 : f32 to vector<8x32xf32>
    %906 = arith.mulf %905, %904 : vector<8x32xf32>
    %907 = arith.addf %883, %906 : vector<8x32xf32>
    %cst_231 = arith.constant dense<0.000000e+00> : vector<8x64xf32>
    %908 = tpu.matmul %907, %0, %cst_231 {dimension_numbers = #tpu.dot_dimension_numbers<[1], [0], [0], [1], [0, 0, 1, 1], [], []>} : vector<8x32xf32>, vector<32x64xf32>, vector<8x64xf32> -> vector<8x64xf32>
    %909 = arith.addf %908, %4 : vector<8x64xf32>
    %910 = math.tanh %909 : vector<8x64xf32>
    %cst_232 = arith.constant dense<0.000000e+00> : vector<8x32xf32>
    %911 = tpu.matmul %910, %1, %cst_232 {dimension_numbers = #tpu.dot_dimension_numbers<[1], [0], [0], [1], [0, 0, 1, 1], [], []>} : vector<8x64xf32>, vector<64x32xf32>, vector<8x32xf32> -> vector<8x32xf32>
    %912 = arith.addf %911, %7 : vector<8x32xf32>
    %913 = arith.addf %896, %904 : vector<8x32xf32>
    %cst_233 = arith.constant 2.000000e+00 : f32
    %914 = vector.broadcast %cst_233 : f32 to vector<8x32xf32>
    %915 = arith.mulf %914, %913 : vector<8x32xf32>
    %916 = arith.addf %888, %915 : vector<8x32xf32>
    %917 = arith.addf %916, %912 : vector<8x32xf32>
    %918 = vector.broadcast %772 : f32 to vector<8x32xf32>
    %919 = arith.mulf %918, %917 : vector<8x32xf32>
    %920 = arith.addf %883, %919 : vector<8x32xf32>
    %c48 = arith.constant 48 : index
    %c0_234 = arith.constant 0 : index
    %921 = vector.load %arg11[%c48, %c0_234] : memref<64x32xf32, #tpu.memory_space<vmem>>, vector<8x32xf32>
    tpu.vector_store %arg11[%c48, %c0_234], %920 {strides = array<i32>} : memref<64x32xf32, #tpu.memory_space<vmem>>, vector<8x32xf32>,
    %c18 = arith.constant 18 : index
    %922 = memref.load %arg0[%c18] : memref<21xf32, #tpu.memory_space<smem>>
    %c19 = arith.constant 19 : index
    %923 = memref.load %arg0[%c19] : memref<21xf32, #tpu.memory_space<smem>>
    %c20 = arith.constant 20 : index
    %924 = memref.load %arg0[%c20] : memref<21xf32, #tpu.memory_space<smem>>
    %cst_235 = arith.constant dense<0.000000e+00> : vector<8x64xf32>
    %925 = tpu.matmul %920, %0, %cst_235 {dimension_numbers = #tpu.dot_dimension_numbers<[1], [0], [0], [1], [0, 0, 1, 1], [], []>} : vector<8x32xf32>, vector<32x64xf32>, vector<8x64xf32> -> vector<8x64xf32>
    %926 = arith.addf %925, %4 : vector<8x64xf32>
    %927 = math.tanh %926 : vector<8x64xf32>
    %cst_236 = arith.constant dense<0.000000e+00> : vector<8x32xf32>
    %928 = tpu.matmul %927, %1, %cst_236 {dimension_numbers = #tpu.dot_dimension_numbers<[1], [0], [0], [1], [0, 0, 1, 1], [], []>} : vector<8x64xf32>, vector<64x32xf32>, vector<8x32xf32> -> vector<8x32xf32>
    %929 = arith.addf %928, %7 : vector<8x32xf32>
    %930 = vector.broadcast %923 : f32 to vector<8x32xf32>
    %931 = arith.mulf %930, %929 : vector<8x32xf32>
    %932 = arith.addf %920, %931 : vector<8x32xf32>
    %cst_237 = arith.constant dense<0.000000e+00> : vector<8x64xf32>
    %933 = tpu.matmul %932, %0, %cst_237 {dimension_numbers = #tpu.dot_dimension_numbers<[1], [0], [0], [1], [0, 0, 1, 1], [], []>} : vector<8x32xf32>, vector<32x64xf32>, vector<8x64xf32> -> vector<8x64xf32>
    %934 = arith.addf %933, %4 : vector<8x64xf32>
    %935 = math.tanh %934 : vector<8x64xf32>
    %cst_238 = arith.constant dense<0.000000e+00> : vector<8x32xf32>
    %936 = tpu.matmul %935, %1, %cst_238 {dimension_numbers = #tpu.dot_dimension_numbers<[1], [0], [0], [1], [0, 0, 1, 1], [], []>} : vector<8x64xf32>, vector<64x32xf32>, vector<8x32xf32> -> vector<8x32xf32>
    %937 = arith.addf %936, %7 : vector<8x32xf32>
    %938 = vector.broadcast %923 : f32 to vector<8x32xf32>
    %939 = arith.mulf %938, %937 : vector<8x32xf32>
    %940 = arith.addf %920, %939 : vector<8x32xf32>
    %cst_239 = arith.constant dense<0.000000e+00> : vector<8x64xf32>
    %941 = tpu.matmul %940, %0, %cst_239 {dimension_numbers = #tpu.dot_dimension_numbers<[1], [0], [0], [1], [0, 0, 1, 1], [], []>} : vector<8x32xf32>, vector<32x64xf32>, vector<8x64xf32> -> vector<8x64xf32>
    %942 = arith.addf %941, %4 : vector<8x64xf32>
    %943 = math.tanh %942 : vector<8x64xf32>
    %cst_240 = arith.constant dense<0.000000e+00> : vector<8x32xf32>
    %944 = tpu.matmul %943, %1, %cst_240 {dimension_numbers = #tpu.dot_dimension_numbers<[1], [0], [0], [1], [0, 0, 1, 1], [], []>} : vector<8x64xf32>, vector<64x32xf32>, vector<8x32xf32> -> vector<8x32xf32>
    %945 = arith.addf %944, %7 : vector<8x32xf32>
    %946 = vector.broadcast %922 : f32 to vector<8x32xf32>
    %947 = arith.mulf %946, %945 : vector<8x32xf32>
    %948 = arith.addf %920, %947 : vector<8x32xf32>
    %cst_241 = arith.constant dense<0.000000e+00> : vector<8x64xf32>
    %949 = tpu.matmul %948, %0, %cst_241 {dimension_numbers = #tpu.dot_dimension_numbers<[1], [0], [0], [1], [0, 0, 1, 1], [], []>} : vector<8x32xf32>, vector<32x64xf32>, vector<8x64xf32> -> vector<8x64xf32>
    %950 = arith.addf %949, %4 : vector<8x64xf32>
    %951 = math.tanh %950 : vector<8x64xf32>
    %cst_242 = arith.constant dense<0.000000e+00> : vector<8x32xf32>
    %952 = tpu.matmul %951, %1, %cst_242 {dimension_numbers = #tpu.dot_dimension_numbers<[1], [0], [0], [1], [0, 0, 1, 1], [], []>} : vector<8x64xf32>, vector<64x32xf32>, vector<8x32xf32> -> vector<8x32xf32>
    %953 = arith.addf %952, %7 : vector<8x32xf32>
    %954 = arith.addf %937, %945 : vector<8x32xf32>
    %cst_243 = arith.constant 2.000000e+00 : f32
    %955 = vector.broadcast %cst_243 : f32 to vector<8x32xf32>
    %956 = arith.mulf %955, %954 : vector<8x32xf32>
    %957 = arith.addf %929, %956 : vector<8x32xf32>
    %958 = arith.addf %957, %953 : vector<8x32xf32>
    %959 = vector.broadcast %924 : f32 to vector<8x32xf32>
    %960 = arith.mulf %959, %958 : vector<8x32xf32>
    %961 = arith.addf %920, %960 : vector<8x32xf32>
    %cst_244 = arith.constant dense<0.000000e+00> : vector<8x64xf32>
    %962 = tpu.matmul %961, %0, %cst_244 {dimension_numbers = #tpu.dot_dimension_numbers<[1], [0], [0], [1], [0, 0, 1, 1], [], []>} : vector<8x32xf32>, vector<32x64xf32>, vector<8x64xf32> -> vector<8x64xf32>
    %963 = arith.addf %962, %4 : vector<8x64xf32>
    %964 = math.tanh %963 : vector<8x64xf32>
    %cst_245 = arith.constant dense<0.000000e+00> : vector<8x32xf32>
    %965 = tpu.matmul %964, %1, %cst_245 {dimension_numbers = #tpu.dot_dimension_numbers<[1], [0], [0], [1], [0, 0, 1, 1], [], []>} : vector<8x64xf32>, vector<64x32xf32>, vector<8x32xf32> -> vector<8x32xf32>
    %966 = arith.addf %965, %7 : vector<8x32xf32>
    %967 = vector.broadcast %923 : f32 to vector<8x32xf32>
    %968 = arith.mulf %967, %966 : vector<8x32xf32>
    %969 = arith.addf %961, %968 : vector<8x32xf32>
    %cst_246 = arith.constant dense<0.000000e+00> : vector<8x64xf32>
    %970 = tpu.matmul %969, %0, %cst_246 {dimension_numbers = #tpu.dot_dimension_numbers<[1], [0], [0], [1], [0, 0, 1, 1], [], []>} : vector<8x32xf32>, vector<32x64xf32>, vector<8x64xf32> -> vector<8x64xf32>
    %971 = arith.addf %970, %4 : vector<8x64xf32>
    %972 = math.tanh %971 : vector<8x64xf32>
    %cst_247 = arith.constant dense<0.000000e+00> : vector<8x32xf32>
    %973 = tpu.matmul %972, %1, %cst_247 {dimension_numbers = #tpu.dot_dimension_numbers<[1], [0], [0], [1], [0, 0, 1, 1], [], []>} : vector<8x64xf32>, vector<64x32xf32>, vector<8x32xf32> -> vector<8x32xf32>
    %974 = arith.addf %973, %7 : vector<8x32xf32>
    %975 = vector.broadcast %923 : f32 to vector<8x32xf32>
    %976 = arith.mulf %975, %974 : vector<8x32xf32>
    %977 = arith.addf %961, %976 : vector<8x32xf32>
    %cst_248 = arith.constant dense<0.000000e+00> : vector<8x64xf32>
    %978 = tpu.matmul %977, %0, %cst_248 {dimension_numbers = #tpu.dot_dimension_numbers<[1], [0], [0], [1], [0, 0, 1, 1], [], []>} : vector<8x32xf32>, vector<32x64xf32>, vector<8x64xf32> -> vector<8x64xf32>
    %979 = arith.addf %978, %4 : vector<8x64xf32>
    %980 = math.tanh %979 : vector<8x64xf32>
    %cst_249 = arith.constant dense<0.000000e+00> : vector<8x32xf32>
    %981 = tpu.matmul %980, %1, %cst_249 {dimension_numbers = #tpu.dot_dimension_numbers<[1], [0], [0], [1], [0, 0, 1, 1], [], []>} : vector<8x64xf32>, vector<64x32xf32>, vector<8x32xf32> -> vector<8x32xf32>
    %982 = arith.addf %981, %7 : vector<8x32xf32>
    %983 = vector.broadcast %922 : f32 to vector<8x32xf32>
    %984 = arith.mulf %983, %982 : vector<8x32xf32>
    %985 = arith.addf %961, %984 : vector<8x32xf32>
    %cst_250 = arith.constant dense<0.000000e+00> : vector<8x64xf32>
    %986 = tpu.matmul %985, %0, %cst_250 {dimension_numbers = #tpu.dot_dimension_numbers<[1], [0], [0], [1], [0, 0, 1, 1], [], []>} : vector<8x32xf32>, vector<32x64xf32>, vector<8x64xf32> -> vector<8x64xf32>
    %987 = arith.addf %986, %4 : vector<8x64xf32>
    %988 = math.tanh %987 : vector<8x64xf32>
    %cst_251 = arith.constant dense<0.000000e+00> : vector<8x32xf32>
    %989 = tpu.matmul %988, %1, %cst_251 {dimension_numbers = #tpu.dot_dimension_numbers<[1], [0], [0], [1], [0, 0, 1, 1], [], []>} : vector<8x64xf32>, vector<64x32xf32>, vector<8x32xf32> -> vector<8x32xf32>
    %990 = arith.addf %989, %7 : vector<8x32xf32>
    %991 = arith.addf %974, %982 : vector<8x32xf32>
    %cst_252 = arith.constant 2.000000e+00 : f32
    %992 = vector.broadcast %cst_252 : f32 to vector<8x32xf32>
    %993 = arith.mulf %992, %991 : vector<8x32xf32>
    %994 = arith.addf %966, %993 : vector<8x32xf32>
    %995 = arith.addf %994, %990 : vector<8x32xf32>
    %996 = vector.broadcast %924 : f32 to vector<8x32xf32>
    %997 = arith.mulf %996, %995 : vector<8x32xf32>
    %998 = arith.addf %961, %997 : vector<8x32xf32>
    %cst_253 = arith.constant dense<0.000000e+00> : vector<8x64xf32>
    %999 = tpu.matmul %998, %0, %cst_253 {dimension_numbers = #tpu.dot_dimension_numbers<[1], [0], [0], [1], [0, 0, 1, 1], [], []>} : vector<8x32xf32>, vector<32x64xf32>, vector<8x64xf32> -> vector<8x64xf32>
    %1000 = arith.addf %999, %4 : vector<8x64xf32>
    %1001 = math.tanh %1000 : vector<8x64xf32>
    %cst_254 = arith.constant dense<0.000000e+00> : vector<8x32xf32>
    %1002 = tpu.matmul %1001, %1, %cst_254 {dimension_numbers = #tpu.dot_dimension_numbers<[1], [0], [0], [1], [0, 0, 1, 1], [], []>} : vector<8x64xf32>, vector<64x32xf32>, vector<8x32xf32> -> vector<8x32xf32>
    %1003 = arith.addf %1002, %7 : vector<8x32xf32>
    %1004 = vector.broadcast %923 : f32 to vector<8x32xf32>
    %1005 = arith.mulf %1004, %1003 : vector<8x32xf32>
    %1006 = arith.addf %998, %1005 : vector<8x32xf32>
    %cst_255 = arith.constant dense<0.000000e+00> : vector<8x64xf32>
    %1007 = tpu.matmul %1006, %0, %cst_255 {dimension_numbers = #tpu.dot_dimension_numbers<[1], [0], [0], [1], [0, 0, 1, 1], [], []>} : vector<8x32xf32>, vector<32x64xf32>, vector<8x64xf32> -> vector<8x64xf32>
    %1008 = arith.addf %1007, %4 : vector<8x64xf32>
    %1009 = math.tanh %1008 : vector<8x64xf32>
    %cst_256 = arith.constant dense<0.000000e+00> : vector<8x32xf32>
    %1010 = tpu.matmul %1009, %1, %cst_256 {dimension_numbers = #tpu.dot_dimension_numbers<[1], [0], [0], [1], [0, 0, 1, 1], [], []>} : vector<8x64xf32>, vector<64x32xf32>, vector<8x32xf32> -> vector<8x32xf32>
    %1011 = arith.addf %1010, %7 : vector<8x32xf32>
    %1012 = vector.broadcast %923 : f32 to vector<8x32xf32>
    %1013 = arith.mulf %1012, %1011 : vector<8x32xf32>
    %1014 = arith.addf %998, %1013 : vector<8x32xf32>
    %cst_257 = arith.constant dense<0.000000e+00> : vector<8x64xf32>
    %1015 = tpu.matmul %1014, %0, %cst_257 {dimension_numbers = #tpu.dot_dimension_numbers<[1], [0], [0], [1], [0, 0, 1, 1], [], []>} : vector<8x32xf32>, vector<32x64xf32>, vector<8x64xf32> -> vector<8x64xf32>
    %1016 = arith.addf %1015, %4 : vector<8x64xf32>
    %1017 = math.tanh %1016 : vector<8x64xf32>
    %cst_258 = arith.constant dense<0.000000e+00> : vector<8x32xf32>
    %1018 = tpu.matmul %1017, %1, %cst_258 {dimension_numbers = #tpu.dot_dimension_numbers<[1], [0], [0], [1], [0, 0, 1, 1], [], []>} : vector<8x64xf32>, vector<64x32xf32>, vector<8x32xf32> -> vector<8x32xf32>
    %1019 = arith.addf %1018, %7 : vector<8x32xf32>
    %1020 = vector.broadcast %922 : f32 to vector<8x32xf32>
    %1021 = arith.mulf %1020, %1019 : vector<8x32xf32>
    %1022 = arith.addf %998, %1021 : vector<8x32xf32>
    %cst_259 = arith.constant dense<0.000000e+00> : vector<8x64xf32>
    %1023 = tpu.matmul %1022, %0, %cst_259 {dimension_numbers = #tpu.dot_dimension_numbers<[1], [0], [0], [1], [0, 0, 1, 1], [], []>} : vector<8x32xf32>, vector<32x64xf32>, vector<8x64xf32> -> vector<8x64xf32>
    %1024 = arith.addf %1023, %4 : vector<8x64xf32>
    %1025 = math.tanh %1024 : vector<8x64xf32>
    %cst_260 = arith.constant dense<0.000000e+00> : vector<8x32xf32>
    %1026 = tpu.matmul %1025, %1, %cst_260 {dimension_numbers = #tpu.dot_dimension_numbers<[1], [0], [0], [1], [0, 0, 1, 1], [], []>} : vector<8x64xf32>, vector<64x32xf32>, vector<8x32xf32> -> vector<8x32xf32>
    %1027 = arith.addf %1026, %7 : vector<8x32xf32>
    %1028 = arith.addf %1011, %1019 : vector<8x32xf32>
    %cst_261 = arith.constant 2.000000e+00 : f32
    %1029 = vector.broadcast %cst_261 : f32 to vector<8x32xf32>
    %1030 = arith.mulf %1029, %1028 : vector<8x32xf32>
    %1031 = arith.addf %1003, %1030 : vector<8x32xf32>
    %1032 = arith.addf %1031, %1027 : vector<8x32xf32>
    %1033 = vector.broadcast %924 : f32 to vector<8x32xf32>
    %1034 = arith.mulf %1033, %1032 : vector<8x32xf32>
    %1035 = arith.addf %998, %1034 : vector<8x32xf32>
    %cst_262 = arith.constant dense<0.000000e+00> : vector<8x64xf32>
    %1036 = tpu.matmul %1035, %0, %cst_262 {dimension_numbers = #tpu.dot_dimension_numbers<[1], [0], [0], [1], [0, 0, 1, 1], [], []>} : vector<8x32xf32>, vector<32x64xf32>, vector<8x64xf32> -> vector<8x64xf32>
    %1037 = arith.addf %1036, %4 : vector<8x64xf32>
    %1038 = math.tanh %1037 : vector<8x64xf32>
    %cst_263 = arith.constant dense<0.000000e+00> : vector<8x32xf32>
    %1039 = tpu.matmul %1038, %1, %cst_263 {dimension_numbers = #tpu.dot_dimension_numbers<[1], [0], [0], [1], [0, 0, 1, 1], [], []>} : vector<8x64xf32>, vector<64x32xf32>, vector<8x32xf32> -> vector<8x32xf32>
    %1040 = arith.addf %1039, %7 : vector<8x32xf32>
    %1041 = vector.broadcast %923 : f32 to vector<8x32xf32>
    %1042 = arith.mulf %1041, %1040 : vector<8x32xf32>
    %1043 = arith.addf %1035, %1042 : vector<8x32xf32>
    %cst_264 = arith.constant dense<0.000000e+00> : vector<8x64xf32>
    %1044 = tpu.matmul %1043, %0, %cst_264 {dimension_numbers = #tpu.dot_dimension_numbers<[1], [0], [0], [1], [0, 0, 1, 1], [], []>} : vector<8x32xf32>, vector<32x64xf32>, vector<8x64xf32> -> vector<8x64xf32>
    %1045 = arith.addf %1044, %4 : vector<8x64xf32>
    %1046 = math.tanh %1045 : vector<8x64xf32>
    %cst_265 = arith.constant dense<0.000000e+00> : vector<8x32xf32>
    %1047 = tpu.matmul %1046, %1, %cst_265 {dimension_numbers = #tpu.dot_dimension_numbers<[1], [0], [0], [1], [0, 0, 1, 1], [], []>} : vector<8x64xf32>, vector<64x32xf32>, vector<8x32xf32> -> vector<8x32xf32>
    %1048 = arith.addf %1047, %7 : vector<8x32xf32>
    %1049 = vector.broadcast %923 : f32 to vector<8x32xf32>
    %1050 = arith.mulf %1049, %1048 : vector<8x32xf32>
    %1051 = arith.addf %1035, %1050 : vector<8x32xf32>
    %cst_266 = arith.constant dense<0.000000e+00> : vector<8x64xf32>
    %1052 = tpu.matmul %1051, %0, %cst_266 {dimension_numbers = #tpu.dot_dimension_numbers<[1], [0], [0], [1], [0, 0, 1, 1], [], []>} : vector<8x32xf32>, vector<32x64xf32>, vector<8x64xf32> -> vector<8x64xf32>
    %1053 = arith.addf %1052, %4 : vector<8x64xf32>
    %1054 = math.tanh %1053 : vector<8x64xf32>
    %cst_267 = arith.constant dense<0.000000e+00> : vector<8x32xf32>
    %1055 = tpu.matmul %1054, %1, %cst_267 {dimension_numbers = #tpu.dot_dimension_numbers<[1], [0], [0], [1], [0, 0, 1, 1], [], []>} : vector<8x64xf32>, vector<64x32xf32>, vector<8x32xf32> -> vector<8x32xf32>
    %1056 = arith.addf %1055, %7 : vector<8x32xf32>
    %1057 = vector.broadcast %922 : f32 to vector<8x32xf32>
    %1058 = arith.mulf %1057, %1056 : vector<8x32xf32>
    %1059 = arith.addf %1035, %1058 : vector<8x32xf32>
    %cst_268 = arith.constant dense<0.000000e+00> : vector<8x64xf32>
    %1060 = tpu.matmul %1059, %0, %cst_268 {dimension_numbers = #tpu.dot_dimension_numbers<[1], [0], [0], [1], [0, 0, 1, 1], [], []>} : vector<8x32xf32>, vector<32x64xf32>, vector<8x64xf32> -> vector<8x64xf32>
    %1061 = arith.addf %1060, %4 : vector<8x64xf32>
    %1062 = math.tanh %1061 : vector<8x64xf32>
    %cst_269 = arith.constant dense<0.000000e+00> : vector<8x32xf32>
    %1063 = tpu.matmul %1062, %1, %cst_269 {dimension_numbers = #tpu.dot_dimension_numbers<[1], [0], [0], [1], [0, 0, 1, 1], [], []>} : vector<8x64xf32>, vector<64x32xf32>, vector<8x32xf32> -> vector<8x32xf32>
    %1064 = arith.addf %1063, %7 : vector<8x32xf32>
    %1065 = arith.addf %1048, %1056 : vector<8x32xf32>
    %cst_270 = arith.constant 2.000000e+00 : f32
    %1066 = vector.broadcast %cst_270 : f32 to vector<8x32xf32>
    %1067 = arith.mulf %1066, %1065 : vector<8x32xf32>
    %1068 = arith.addf %1040, %1067 : vector<8x32xf32>
    %1069 = arith.addf %1068, %1064 : vector<8x32xf32>
    %1070 = vector.broadcast %924 : f32 to vector<8x32xf32>
    %1071 = arith.mulf %1070, %1069 : vector<8x32xf32>
    %1072 = arith.addf %1035, %1071 : vector<8x32xf32>
    %c56 = arith.constant 56 : index
    %c0_271 = arith.constant 0 : index
    %1073 = vector.load %arg11[%c56, %c0_271] : memref<64x32xf32, #tpu.memory_space<vmem>>, vector<8x32xf32>
    tpu.vector_store %arg11[%c56, %c0_271], %1072 {strides = array<i32>} : memref<64x32xf32, #tpu.memory_space<vmem>>, vector<8x32xf32>,
    %c0_272 = arith.constant 0 : index
    %c0_273 = arith.constant 0 : index
    %1074 = vector.load %arg11[%c0_272, %c0_273] : memref<64x32xf32, #tpu.memory_space<vmem>>, vector<64x32xf32>
    %c0_274 = arith.constant 0 : index
    %c0_275 = arith.constant 0 : index
    %1075 = vector.load %arg6[%c0_274, %c0_275] : memref<32x64xf32, #tpu.memory_space<vmem>>, vector<32x64xf32>
    %cst_276 = arith.constant dense<0.000000e+00> : vector<64x64xf32>
    %1076 = tpu.matmul %1074, %1075, %cst_276 {dimension_numbers = #tpu.dot_dimension_numbers<[1], [0], [0], [1], [0, 0, 1, 1], [], []>} : vector<64x32xf32>, vector<32x64xf32>, vector<64x64xf32> -> vector<64x64xf32>
    %c0_277 = arith.constant 0 : index
    %c0_278 = arith.constant 0 : index
    %1077 = vector.load %arg7[%c0_277, %c0_278] : memref<1x64xf32, #tpu.memory_space<vmem>>, vector<1x64xf32>
    %1078 = vector.broadcast %1077 : vector<1x64xf32> to vector<64x64xf32>
    %1079 = arith.addf %1076, %1078 : vector<64x64xf32>
    %cst_279 = arith.constant 0.000000e+00 : f32
    %1080 = vector.broadcast %cst_279 : f32 to vector<64x64xf32>
    %1081 = arith.maximumf %1079, %1080 : vector<64x64xf32>
    %c0_280 = arith.constant 0 : index
    %c0_281 = arith.constant 0 : index
    %1082 = vector.load %arg8[%c0_280, %c0_281] : memref<64x128xf32, #tpu.memory_space<vmem>>, vector<64x128xf32>
    %cst_282 = arith.constant dense<0.000000e+00> : vector<64x128xf32>
    %1083 = tpu.matmul %1081, %1082, %cst_282 {dimension_numbers = #tpu.dot_dimension_numbers<[1], [0], [0], [1], [0, 0, 1, 1], [], []>} : vector<64x64xf32>, vector<64x128xf32>, vector<64x128xf32> -> vector<64x128xf32>
    %c0_283 = arith.constant 0 : index
    %c0_284 = arith.constant 0 : index
    %1084 = vector.load %arg9[%c0_283, %c0_284] : memref<1x128xf32, #tpu.memory_space<vmem>>, vector<1x128xf32>
    %1085 = vector.broadcast %1084 : vector<1x128xf32> to vector<64x128xf32>
    %1086 = arith.addf %1083, %1085 : vector<64x128xf32>
    %1087 = vector.extract_strided_slice %1086 {offsets = [0, 0], sizes = [8, 128], strides = [1, 1]} : vector<64x128xf32> to vector<8x128xf32>
    %c0_285 = arith.constant 0 : index
    %c0_286 = arith.constant 0 : index
    %1088 = vector.load %arg10[%c0_285, %c0_286] : memref<8x1024xf32, #tpu.memory_space<vmem>>, vector<8x128xf32>
    tpu.vector_store %arg10[%c0_285, %c0_286], %1087 {strides = array<i32>} : memref<8x1024xf32, #tpu.memory_space<vmem>>, vector<8x128xf32>,
    %1089 = vector.extract_strided_slice %1086 {offsets = [8, 0], sizes = [8, 128], strides = [1, 1]} : vector<64x128xf32> to vector<8x128xf32>
    %c0_287 = arith.constant 0 : index
    %c128 = arith.constant 128 : index
    %1090 = vector.load %arg10[%c0_287, %c128] : memref<8x1024xf32, #tpu.memory_space<vmem>>, vector<8x128xf32>
    tpu.vector_store %arg10[%c0_287, %c128], %1089 {strides = array<i32>} : memref<8x1024xf32, #tpu.memory_space<vmem>>, vector<8x128xf32>,
    %1091 = vector.extract_strided_slice %1086 {offsets = [16, 0], sizes = [8, 128], strides = [1, 1]} : vector<64x128xf32> to vector<8x128xf32>
    %c0_288 = arith.constant 0 : index
    %c256 = arith.constant 256 : index
    %1092 = vector.load %arg10[%c0_288, %c256] : memref<8x1024xf32, #tpu.memory_space<vmem>>, vector<8x128xf32>
    tpu.vector_store %arg10[%c0_288, %c256], %1091 {strides = array<i32>} : memref<8x1024xf32, #tpu.memory_space<vmem>>, vector<8x128xf32>,
    %1093 = vector.extract_strided_slice %1086 {offsets = [24, 0], sizes = [8, 128], strides = [1, 1]} : vector<64x128xf32> to vector<8x128xf32>
    %c0_289 = arith.constant 0 : index
    %c384 = arith.constant 384 : index
    %1094 = vector.load %arg10[%c0_289, %c384] : memref<8x1024xf32, #tpu.memory_space<vmem>>, vector<8x128xf32>
    tpu.vector_store %arg10[%c0_289, %c384], %1093 {strides = array<i32>} : memref<8x1024xf32, #tpu.memory_space<vmem>>, vector<8x128xf32>,
    %1095 = vector.extract_strided_slice %1086 {offsets = [32, 0], sizes = [8, 128], strides = [1, 1]} : vector<64x128xf32> to vector<8x128xf32>
    %c0_290 = arith.constant 0 : index
    %c512 = arith.constant 512 : index
    %1096 = vector.load %arg10[%c0_290, %c512] : memref<8x1024xf32, #tpu.memory_space<vmem>>, vector<8x128xf32>
    tpu.vector_store %arg10[%c0_290, %c512], %1095 {strides = array<i32>} : memref<8x1024xf32, #tpu.memory_space<vmem>>, vector<8x128xf32>,
    %1097 = vector.extract_strided_slice %1086 {offsets = [40, 0], sizes = [8, 128], strides = [1, 1]} : vector<64x128xf32> to vector<8x128xf32>
    %c0_291 = arith.constant 0 : index
    %c640 = arith.constant 640 : index
    %1098 = vector.load %arg10[%c0_291, %c640] : memref<8x1024xf32, #tpu.memory_space<vmem>>, vector<8x128xf32>
    tpu.vector_store %arg10[%c0_291, %c640], %1097 {strides = array<i32>} : memref<8x1024xf32, #tpu.memory_space<vmem>>, vector<8x128xf32>,
    %1099 = vector.extract_strided_slice %1086 {offsets = [48, 0], sizes = [8, 128], strides = [1, 1]} : vector<64x128xf32> to vector<8x128xf32>
    %c0_292 = arith.constant 0 : index
    %c768 = arith.constant 768 : index
    %1100 = vector.load %arg10[%c0_292, %c768] : memref<8x1024xf32, #tpu.memory_space<vmem>>, vector<8x128xf32>
    tpu.vector_store %arg10[%c0_292, %c768], %1099 {strides = array<i32>} : memref<8x1024xf32, #tpu.memory_space<vmem>>, vector<8x128xf32>,
    %1101 = vector.extract_strided_slice %1086 {offsets = [56, 0], sizes = [8, 128], strides = [1, 1]} : vector<64x128xf32> to vector<8x128xf32>
    %c0_293 = arith.constant 0 : index
    %c896 = arith.constant 896 : index
    %1102 = vector.load %arg10[%c0_293, %c896] : memref<8x1024xf32, #tpu.memory_space<vmem>>, vector<8x128xf32>
    tpu.vector_store %arg10[%c0_293, %c896], %1101 {strides = array<i32>} : memref<8x1024xf32, #tpu.memory_space<vmem>>, vector<8x128xf32>,
    return
  }
}

</mosaic_0001>

<bundles_post_ra>
// kernel: tpu_custom_call.1
= control target key start
LH: loop header
LB: loop body
LE: loop exit
PB: predicated region body
PF: predicated region fallthrough
CT: control target
= control target key end

     0   :  { %15 = vsyncpa [#allocation6], 0  ;;  %s27846_s0 = inlined_call_operand.vmem [shape: f32[21], index: 0, kind: input, shape index: {}]   ;;  %s27847_s1 = inlined_call_operand.vmem [shape: f32[8,32], index: 1, kind: input, shape index: {}]   ;;  %s27848_s2 = inlined_call_operand.vmem [shape: f32[32,64], index: 2, kind: input, shape index: {}]   ;;  %s27849_s3 = inlined_call_operand.vmem [shape: f32[1,64], index: 3, kind: input, shape index: {}]   ;;  %s27850_s4 = inlined_call_operand.vmem [shape: f32[64,32], index: 4, kind: input, shape index: {}]   ;;  %s27851_s5 = inlined_call_operand.vmem [shape: f32[1,32], index: 5, kind: input, shape index: {}]   ;;  %s27852_s6 = inlined_call_operand.hbm [shape: f32[32,64], index: 6, kind: input, shape index: {}]   ;;  %s27853_s7 = inlined_call_operand.vmem [shape: f32[1,64], index: 7, kind: input, shape index: {}]   ;;  %s27854_s8 = inlined_call_operand.vmem [shape: f32[64,128], index: 8, kind: input, shape index: {}]   ;;  %s27855_s9 = inlined_call_operand.vmem [shape: f32[1,128], index: 9, kind: input, shape index: {}]   ;;  %s27856_s10 = inlined_call_operand.hbm [shape: f32[8,1024], index: 10, kind: output, shape index: {}]  }
   0x1   :  { %16 = vsyncpa [#allocation4], 0 }
   0x2   :  { %17 = vsyncpa [#allocation5], 0  ;;  %s24_s15 = sshll.u32 %s27846_s0, 4  ;;  %s25_s15 = int_to_ptr.vmem [resolvable:$true] %s24_s15 }
   0x3   :  { %s24816_s16 = scalar_lea.vmem %s25_s15, 16  ;;  %p24821_p1 = scmp.lt.s32.totalorder %s25_s15, %s25_s15 }
   0x4   :  { %p24817_p0 = scmp.ne.s32.totalorder %s25_s15, %s24816_s16  ;;  %p24822_p2 = scmp.lt.s32.totalorder %s24816_s16, %s24816_s16 }
   0x6   :  { %p24823_p3 = por %p24822_p2, %p24821_p1 }
   0x8   :  { %p24824_p4 = pnand %p24823_p3, %p24817_p0 }
   0xa   :  { %24827 = shalt.err (!%p24824_p4)
}
   0xb   :  { %s24878_s17 = smov [#allocation3]   ;;  %s24879_s18 = smov [#allocation7]  }
   0xc   :  { %27 = dma.vmem_to_smem %s25_s15, 16, %s24878_s17, [#allocation6]  }
   0xd   :  { %s43_s19 = sshll.u32 %s24879_s18, 4  ;;  %s24828_s22 = scalar_lea.hbm %s27852_s6, 512  ;;  %s44_s19 = int_to_ptr.vmem [resolvable:$true] %s43_s19 }
   0xe   :  { %p24829_p5 = scmp.ne.s32.totalorder %s27852_s6, %s24828_s22  ;;  %p24832_p6 = scmp.lt.u32.totalorder %s24828_s22, %s27852_s6 }
  0x10   :  { %p24834_p7 = pnand %p24832_p6, %p24829_p5 }
  0x12   :  { %24837 = shalt.err (!%p24834_p7)
}
  0x13   :  { %s24838_s26 = scalar_lea.vmem %s44_s19, 512  ;;  %p24843_p9 = scmp.lt.s32.totalorder %s44_s19, %s44_s19 }
  0x14   :  { %p24839_p8 = scmp.ne.s32.totalorder %s44_s19, %s24838_s26  ;;  %p24844_p10 = scmp.lt.s32.totalorder %s24838_s26, %s24838_s26 }
  0x16   :  { %p24845_p11 = por %p24844_p10, %p24843_p9 }
  0x18   :  { %p24846_p12 = pnand %p24845_p11, %p24839_p8 }
  0x1a   :  { %24849 = shalt.err (!%p24846_p12)
}
  0x1b   :  { %s24880_s27 = smov 128   ;;  %s24881_s28 = smov 8  }
  0x1c   :  { %49 = dma.hbm_to_vmem [thread:$0]  %s27852_s6, 512, %s44_s19, [#allocation4], %s24880_s27, %s24880_s27, %s24881_s28  }
  0x1d   :  { %24872 = dma.done.wait [#allocation6], 16  }
  0x1e   :  { %24873 = vsyncadd [#allocation6], 4294967280 }
  0x1f   :  { %24874 = dma.done.wait [#allocation4], 512  }
  0x20   :  { %24875 = vsyncadd [#allocation4], 4294966784 }
  0x21   :  { %62 = sfence }
  0x22   :  { %v63_v0 = vld [vmem:[%s27848_s2] sm:$0xff]  ;;  %v64_v1 = vld [vmem:[%s27848_s2 + $0x8] sm:$0xff]  ;;  %v65_v2 = vld [vmem:[%s27848_s2 + $0x10] sm:$0xff]  ;;  %v24882_v3 = vmov 0.0|0.0   ;;  %vm24883_vm0 = vmmov 0   ;;  %v24884_v6 = vmov 0.0  }
  0x23   :  { %22534 = vmatprep.subr.bf16.mxu0 %v24882_v3  ;;  %v24966_v4 = vpack.c.bf16 %v64_v1, %v63_v0  ;;  %v66_v5 = vld [vmem:[%s27848_s2 + $0x18] sm:$0xff]  ;;  %19134 = vmatprep.mubr.msk.f32.mxu0 %vm24883_vm0, %v24884_v6  ;;  %v24976_v7 = vld [vmem:[%s27847_s1] sm:$0xff]  ;;  %vm90_vm1 = vcmask 261120   ;;  %v68_v9 = vld [vmem:[%s27850_s4 + $0x8] sm:$0xff]  ;;  %vm169_vm2 = vcmask 523264   ;;  %s92_s6 = sld [smem:[#allocation3]] }
  0x24   :  { %v67_v8 = vld [vmem:[%s27850_s4] sm:$0xff]  ;;  %91 = vst.msk [vmem:[#allocation2] sm:$0xff] %vm90_vm1, %v24976_v7  ;;  %22540 = vmatprep.subr.bf16.mxu1 %v24882_v3  ;;  %19153 = vmatprep.mubr.msk.f32.mxu1 %vm24883_vm0, %v24884_v6  ;;  %v24990_v10 = vpack.c.bf16 %v66_v5, %v65_v2  ;;  %v69_v12 = vld [vmem:[%s27850_s4 + $0x10] sm:$0xff]  ;;  %v70_v13 = vld [vmem:[%s27850_s4 + $0x18] sm:$0xff]  ;;  %s17269_s17 = sld [smem:[#allocation3 + $0x2]]  ;;  %s17303_s18 = sld [smem:[#allocation3 + $0x4]] }
  0x25   :  { %22536 = vmatpush3.bf16.msra.mxu0 %v24966_v4  ;;  %v24992_v11 = vpack.c.bf16 %v68_v9, %v67_v8  ;;  %v25013_v14 = vpack.c.bf16 %v70_v13, %v69_v12  ;;  %v71_v15 = vld [vmem:[%s27850_s4 + $0x20] sm:$0xff]  ;;  %v72_v16 = vld [vmem:[%s27850_s4 + $0x28] sm:$0xff]  ;;  %v73_v18 = vld [vmem:[%s27850_s4 + $0x30] sm:$0xff]  ;;  %s17302_s19 = sld [smem:[#allocation3 + $0x3]]  ;;  %s17304_s2 = sld [smem:[#allocation3 + $0x5]] }
  0x26   :  { %22537 = vmatprep.subr.bf16.mxu0 %v24882_v3  ;;  %v25023_v17 = vpack.c.bf16 %v72_v16, %v71_v15  ;;  %v74_v19 = vld [vmem:[%s27850_s4 + $0x38] sm:$0xff]  ;;  %v25040_v21 = vld [vmem:[%s27849_s3] ss:$0 sm:$0xff]  ;;  %s17268_s4 = sld [smem:[#allocation3 + $0x1]]  ;;  %s17338_s23 = sld [smem:[#allocation3 + $0x7]] }
  0x27   :  { %22542 = vmatpush3.bf16.msra.mxu1 %v24992_v11  ;;  %v25032_v20 = vpack.c.bf16 %v74_v19, %v73_v18  ;;  %v25057_v26 = vld [vmem:[%s27851_s5] ss:$0 sm:$0xff]  ;;  %s17337_s24 = sld [smem:[#allocation3 + $0x6]]  ;;  %s17339_s0 = sld [smem:[#allocation3 + $0x8]] }
  0x28   :  { %22543 = vmatprep.subr.bf16.mxu1 %v24882_v3  ;;  %s17373_s29 = sld [smem:[#allocation3 + $0xa]]  ;;  %s17372_s30 = sld [smem:[#allocation3 + $0x9]] }
  0x29   :  { %22539 = vmatpush3.bf16.msra.mxu0 %v24990_v10  ;;  %v25104_v47 = vstv %s92_s6  ;;  %s17374_s11 = sld [smem:[#allocation3 + $0xb]]  ;;  %s17408_s15 = sld [smem:[#allocation3 + $0xd]] }
  0x2a   :  { %22552 = vmatprep.subr.bf16.mxu0 %v24882_v3  ;;  %v25130_v62 = vstv %s17269_s17  ;;  %s17407_s16 = sld [smem:[#allocation3 + $0xc]]  ;;  %s17409_s6 = sld [smem:[#allocation3 + $0xe]] }
  0x2b   :  { %22545 = vmatpush3.bf16.msra.mxu1 %v25013_v14  ;;  %s17443_s21 = sld [smem:[#allocation3 + $0x10]]  ;;  %s17444_s22 = sld [smem:[#allocation3 + $0x11]] }
  0x2c   :  { %19135 = vmatmul.mubr.msk.f32.vlgmr.msra.gmra.mrb[0].mxu0 %vm90_vm1, %v24976_v7  ;;  %22546 = vmatprep.subr.bf16.mxu1 %v24882_v3  ;;  %v25059_v28 = vstv %s17268_s4  ;;  %s17479_s25 = sld [smem:[#allocation3 + $0x14]] }
  0x2d   :  { %22554 = vmatpush3.bf16.msra.mxu0 %v24966_v4  ;;  %19164 = vmatprep.mubr.msk.f32.mxu0 %vm24883_vm0, %v24884_v6 }
  0x2e   :  { %22555 = vmatprep.subr.bf16.mxu0 %v24882_v3 }
  0x2f   :  { %22548 = vmatpush3.bf16.msra.mxu1 %v25023_v17 }
  0x30   :  { %22549 = vmatprep.subr.bf16.mxu1 %v24882_v3 }
  0x31   :  { %22557 = vmatpush3.bf16.msra.mxu0 %v24990_v10 }
  0x32   :  { %22558 = vmatprep.subr.bf16.mxu0 %v24882_v3 }
  0x33   :  { %22551 = vmatpush3.bf16.msra.mxu1 %v25032_v20 }
  0x34   :  { %22576 = vmatprep.subr.bf16.mxu1 %v24882_v3 }
  0xff   :  { %v164_v22 = vpop.f32.mrb[0].mxu0 }
 0x100   :  { %v165_v23 = vadd.f32 %v25040_v21, %v164_v22  ;;  %v19136_v24 = vpop.f32.mrb[1].mxu0 }
 0x102   :  { %24582 = vtanh.f32 %v165_v23 }
 0x10c   :  { %v24583_v25 = vpop.eup %24582 }
 0x10d   :  { %19154 = vmatmul.mubr.msk.f32.vlgmr.msra.gmra.mrb[0].mxu1 %vm169_vm2, %v24583_v25 }
 0x10e   :  { %22578 = vmatpush3.bf16.msra.mxu1 %v24992_v11  ;;  %19213 = vmatprep.mubr.msk.f32.mxu1 %vm24883_vm0, %v24884_v6 }
 0x10f   :  { %22579 = vmatprep.subr.bf16.mxu1 %v24882_v3 }
 0x112   :  { %22581 = vmatpush3.bf16.msra.mxu1 %v25013_v14 }
 0x113   :  { %22582 = vmatprep.subr.bf16.mxu1 %v24882_v3 }
 0x116   :  { %22584 = vmatpush3.bf16.msra.mxu1 %v25023_v17 }
 0x117   :  { %22585 = vmatprep.subr.bf16.mxu1 %v24882_v3 }
 0x11a   :  { %22587 = vmatpush3.bf16.msra.mxu1 %v25032_v20 }
 0x11b   :  { %22606 = vmatprep.subr.bf16.mxu1 %v24882_v3 }
 0x1e0   :  { %v239_v27 = vpop.f32.mrb[0].mxu1 }
 0x1e1   :  { %v25062_v29 = vadd.f32 %v25057_v26, %v239_v27  ;;  %v19155_v30 = vpop.f32.mrb[1].mxu1 }
 0x1e3   :  { %v244_v31 = vmul.f32 %v25059_v28, %v25062_v29 }
 0x1e5   :  { %v245_v32 = vadd.f32 %v244_v31, %v24976_v7 }
 0x1e7   :  { %19165 = vmatmul.mubr.msk.f32.vlgmr.msra.gmra.mrb[2].mxu0 %vm90_vm1, %v245_v32 }
 0x1e8   :  { %22560 = vmatpush3.bf16.msra.mxu0 %v24992_v11  ;;  %19183 = vmatprep.mubr.msk.f32.mxu0 %vm24883_vm0, %v24884_v6 }
 0x1e9   :  { %22561 = vmatprep.subr.bf16.mxu0 %v24882_v3 }
 0x1ec   :  { %22563 = vmatpush3.bf16.msra.mxu0 %v25013_v14 }
 0x1ed   :  { %22564 = vmatprep.subr.bf16.mxu0 %v24882_v3 }
 0x1f0   :  { %22566 = vmatpush3.bf16.msra.mxu0 %v25023_v17 }
 0x1f1   :  { %22567 = vmatprep.subr.bf16.mxu0 %v24882_v3 }
 0x1f4   :  { %22569 = vmatpush3.bf16.msra.mxu0 %v25032_v20 }
 0x1f5   :  { %22570 = vmatprep.subr.bf16.mxu0 %v24882_v3 }
 0x2ba   :  { %v315_v33 = vpop.f32.mrb[2].mxu0 }
 0x2bb   :  { %v316_v34 = vadd.f32 %v25040_v21, %v315_v33  ;;  %v19166_v35 = vpop.f32.mrb[3].mxu0 }
 0x2bd   :  { %24584 = vtanh.f32 %v316_v34 }
 0x2c7   :  { %v24585_v36 = vpop.eup %24584 }
 0x2c8   :  { %19184 = vmatmul.mubr.msk.f32.vlgmr.msra.gmra.mrb[4].mxu0 %vm169_vm2, %v24585_v36 }
 0x2c9   :  { %22572 = vmatpush3.bf16.msra.mxu0 %v24966_v4  ;;  %19194 = vmatprep.mubr.msk.f32.mxu0 %vm24883_vm0, %v24884_v6 }
 0x2ca   :  { %22573 = vmatprep.subr.bf16.mxu0 %v24882_v3 }
 0x2cd   :  { %22575 = vmatpush3.bf16.msra.mxu0 %v24990_v10 }
 0x2ce   :  { %22588 = vmatprep.subr.bf16.mxu0 %v24882_v3 }
 0x39b   :  { %v389_v37 = vpop.f32.mrb[4].mxu0 }
 0x39c   :  { %v390_v38 = vadd.f32 %v25057_v26, %v389_v37  ;;  %v19185_v39 = vpop.f32.mrb[5].mxu0 }
 0x39e   :  { %v393_v40 = vmul.f32 %v390_v38, %v25059_v28 }
 0x3a0   :  { %v394_v41 = vadd.f32 %v393_v40, %v24976_v7 }
 0x3a2   :  { %19195 = vmatmul.mubr.msk.f32.vlgmr.msra.gmra.mrb[6].mxu0 %vm90_vm1, %v394_v41 }
 0x3a3   :  { %22590 = vmatpush3.bf16.msra.mxu0 %v24966_v4  ;;  %19224 = vmatprep.mubr.msk.f32.mxu0 %vm24883_vm0, %v24884_v6 }
 0x3a4   :  { %22591 = vmatprep.subr.bf16.mxu0 %v24882_v3 }
 0x3a7   :  { %22593 = vmatpush3.bf16.msra.mxu0 %v24990_v10 }
 0x3a8   :  { %22594 = vmatprep.subr.bf16.mxu0 %v24882_v3 }
 0x475   :  { %v464_v42 = vpop.f32.mrb[6].mxu0 }
 0x476   :  { %v465_v43 = vadd.f32 %v25040_v21, %v464_v42  ;;  %v19196_v44 = vpop.f32.mrb[7].mxu0 }
 0x478   :  { %24586 = vtanh.f32 %v465_v43 }
 0x482   :  { %v24587_v45 = vpop.eup %24586 }
 0x483   :  { %19214 = vmatmul.mubr.msk.f32.vlgmr.msra.gmra.mrb[2].mxu1 %vm169_vm2, %v24587_v45 }
 0x484   :  { %22608 = vmatpush3.bf16.msra.mxu1 %v24966_v4  ;;  %19254 = vmatprep.mubr.msk.f32.mxu1 %vm24883_vm0, %v24884_v6 }
 0x485   :  { %22609 = vmatprep.subr.bf16.mxu1 %v24882_v3 }
 0x488   :  { %22611 = vmatpush3.bf16.msra.mxu1 %v24990_v10 }
 0x489   :  { %22612 = vmatprep.subr.bf16.mxu1 %v24882_v3 }
 0x556   :  { %v538_v46 = vpop.f32.mrb[2].mxu1 }
 0x557   :  { %v539_v48 = vadd.f32 %v25057_v26, %v538_v46  ;;  %v19215_v49 = vpop.f32.mrb[3].mxu1 }
 0x559   :  { %v543_v50 = vmul.f32 %v25104_v47, %v539_v48  ;;  %v692_v56 = vadd.f32 %v539_v48, %v390_v38 }
 0x55b   :  { %v544_v51 = vadd.f32 %v543_v50, %v24976_v7  ;;  %v693_v57 = vmul.f32 2.0, %v692_v56 }
 0x55d   :  { %19225 = vmatmul.mubr.msk.f32.vlgmr.msra.gmra.mrb[8].mxu0 %vm90_vm1, %v544_v51  ;;  %v694_v60 = vadd.f32 %v693_v57, %v25062_v29 }
 0x55e   :  { %22596 = vmatpush3.bf16.msra.mxu0 %v24992_v11  ;;  %19243 = vmatprep.mubr.msk.f32.mxu0 %vm24883_vm0, %v24884_v6 }
 0x55f   :  { %22597 = vmatprep.subr.bf16.mxu0 %v24882_v3 }
 0x562   :  { %22599 = vmatpush3.bf16.msra.mxu0 %v25013_v14 }
 0x563   :  { %22600 = vmatprep.subr.bf16.mxu0 %v24882_v3 }
 0x566   :  { %22602 = vmatpush3.bf16.msra.mxu0 %v25023_v17 }
 0x567   :  { %22603 = vmatprep.subr.bf16.mxu0 %v24882_v3 }
 0x56a   :  { %22605 = vmatpush3.bf16.msra.mxu0 %v25032_v20 }
 0x56b   :  { %22624 = vmatprep.subr.bf16.mxu0 %v24882_v3 }
 0x630   :  { %v614_v52 = vpop.f32.mrb[8].mxu0 }
 0x631   :  { %v615_v53 = vadd.f32 %v25040_v21, %v614_v52  ;;  %v19226_v54 = vpop.f32.mrb[9].mxu0 }
 0x633   :  { %24588 = vtanh.f32 %v615_v53 }
 0x63d   :  { %v24589_v55 = vpop.eup %24588 }
 0x63e   :  { %19244 = vmatmul.mubr.msk.f32.vlgmr.msra.gmra.mrb[10].mxu0 %vm169_vm2, %v24589_v55 }
 0x63f   :  { %22626 = vmatpush3.bf16.msra.mxu0 %v24966_v4  ;;  %19284 = vmatprep.mubr.msk.f32.mxu0 %vm24883_vm0, %v24884_v6 }
 0x640   :  { %22627 = vmatprep.subr.bf16.mxu0 %v24882_v3 }
 0x643   :  { %22629 = vmatpush3.bf16.msra.mxu0 %v24990_v10 }
 0x644   :  { %22630 = vmatprep.subr.bf16.mxu0 %v24882_v3 }
 0x711   :  { %v688_v58 = vpop.f32.mrb[10].mxu0 }
 0x712   :  { %v689_v59 = vadd.f32 %v25057_v26, %v688_v58  ;;  %v19245_v61 = vpop.f32.mrb[11].mxu0 }
 0x714   :  { %v695_v63 = vadd.f32 %v694_v60, %v689_v59 }
 0x716   :  { %v697_v0 = vmul.f32 %v25130_v62, %v695_v63 }
 0x718   :  { %v25134_v1 = vadd.f32 %v697_v0, %v24976_v7 }
 0x71a   :  { %19255 = vmatmul.mubr.msk.f32.vlgmr.msra.gmra.mrb[4].mxu1 %vm90_vm1, %v25134_v1 }
 0x71b   :  { %22614 = vmatpush3.bf16.msra.mxu1 %v24992_v11  ;;  %19273 = vmatprep.mubr.msk.f32.mxu1 %vm24883_vm0, %v24884_v6 }
 0x71c   :  { %22615 = vmatprep.subr.bf16.mxu1 %v24882_v3 }
 0x71f   :  { %22617 = vmatpush3.bf16.msra.mxu1 %v25013_v14 }
 0x720   :  { %22618 = vmatprep.subr.bf16.mxu1 %v24882_v3 }
 0x723   :  { %22620 = vmatpush3.bf16.msra.mxu1 %v25023_v17 }
 0x724   :  { %22621 = vmatprep.subr.bf16.mxu1 %v24882_v3 }
 0x727   :  { %22623 = vmatpush3.bf16.msra.mxu1 %v25032_v20 }
 0x728   :  { %22642 = vmatprep.subr.bf16.mxu1 %v24882_v3 }
 0x7ed   :  { %v768_v2 = vpop.f32.mrb[4].mxu1 }
 0x7ee   :  { %v769_v5 = vadd.f32 %v25040_v21, %v768_v2  ;;  %v19256_v7 = vpop.f32.mrb[5].mxu1 }
 0x7f0   :  { %24590 = vtanh.f32 %v769_v5 }
 0x7fa   :  { %v24591_v8 = vpop.eup %24590 }
 0x7fb   :  { %19274 = vmatmul.mubr.msk.f32.vlgmr.msra.gmra.mrb[6].mxu1 %vm169_vm2, %v24591_v8 }
 0x7fc   :  { %22644 = vmatpush3.bf16.msra.mxu1 %v24966_v4  ;;  %19314 = vmatprep.mubr.msk.f32.mxu1 %vm24883_vm0, %v24884_v6 }
 0x7fd   :  { %22645 = vmatprep.subr.bf16.mxu1 %v24882_v3 }
 0x800   :  { %22647 = vmatpush3.bf16.msra.mxu1 %v24990_v10 }
 0x801   :  { %22648 = vmatprep.subr.bf16.mxu1 %v24882_v3 }
 0x8ce   :  { %v842_v9 = vpop.f32.mrb[6].mxu1 }
 0x8cf   :  { %v25157_v12 = vadd.f32 %v25057_v26, %v842_v9  ;;  %v19275_v13 = vpop.f32.mrb[7].mxu1 }
 0x8d1   :  { %v846_v15 = vmul.f32 %v25157_v12, %v25059_v28 }
 0x8d3   :  { %v847_v16 = vadd.f32 %v846_v15, %v25134_v1 }
 0x8d5   :  { %19285 = vmatmul.mubr.msk.f32.vlgmr.msra.gmra.mrb[12].mxu0 %vm90_vm1, %v847_v16 }
 0x8d6   :  { %22632 = vmatpush3.bf16.msra.mxu0 %v24992_v11  ;;  %19303 = vmatprep.mubr.msk.f32.mxu0 %vm24883_vm0, %v24884_v6 }
 0x8d7   :  { %22633 = vmatprep.subr.bf16.mxu0 %v24882_v3 }
 0x8da   :  { %22635 = vmatpush3.bf16.msra.mxu0 %v25013_v14 }
 0x8db   :  { %22636 = vmatprep.subr.bf16.mxu0 %v24882_v3 }
 0x8de   :  { %22638 = vmatpush3.bf16.msra.mxu0 %v25023_v17 }
 0x8df   :  { %22639 = vmatprep.subr.bf16.mxu0 %v24882_v3 }
 0x8e2   :  { %22641 = vmatpush3.bf16.msra.mxu0 %v25032_v20 }
 0x8e3   :  { %22660 = vmatprep.subr.bf16.mxu0 %v24882_v3 }
 0x9a8   :  { %v917_v18 = vpop.f32.mrb[12].mxu0 }
 0x9a9   :  { %v918_v19 = vadd.f32 %v25040_v21, %v917_v18  ;;  %v19286_v22 = vpop.f32.mrb[13].mxu0 }
 0x9ab   :  { %24592 = vtanh.f32 %v918_v19 }
 0x9b5   :  { %v24593_v23 = vpop.eup %24592 }
 0x9b6   :  { %19304 = vmatmul.mubr.msk.f32.vlgmr.msra.gmra.mrb[14].mxu0 %vm169_vm2, %v24593_v23 }
 0x9b7   :  { %22662 = vmatpush3.bf16.msra.mxu0 %v24966_v4  ;;  %19344 = vmatprep.mubr.msk.f32.mxu0 %vm24883_vm0, %v24884_v6 }
 0x9b8   :  { %22663 = vmatprep.subr.bf16.mxu0 %v24882_v3 }
 0x9bb   :  { %22665 = vmatpush3.bf16.msra.mxu0 %v24990_v10 }
 0x9bc   :  { %22666 = vmatprep.subr.bf16.mxu0 %v24882_v3 }
 0xa89   :  { %v991_v24 = vpop.f32.mrb[14].mxu0 }
 0xa8a   :  { %v992_v25 = vadd.f32 %v25057_v26, %v991_v24  ;;  %v19305_v27 = vpop.f32.mrb[15].mxu0 }
 0xa8c   :  { %v995_v29 = vmul.f32 %v992_v25, %v25059_v28 }
 0xa8e   :  { %v996_v30 = vadd.f32 %v995_v29, %v25134_v1 }
 0xa90   :  { %19315 = vmatmul.mubr.msk.f32.vlgmr.msra.gmra.mrb[8].mxu1 %vm90_vm1, %v996_v30 }
 0xa91   :  { %22650 = vmatpush3.bf16.msra.mxu1 %v24992_v11  ;;  %19333 = vmatprep.mubr.msk.f32.mxu1 %vm24883_vm0, %v24884_v6 }
 0xa92   :  { %22651 = vmatprep.subr.bf16.mxu1 %v24882_v3 }
 0xa95   :  { %22653 = vmatpush3.bf16.msra.mxu1 %v25013_v14 }
 0xa96   :  { %22654 = vmatprep.subr.bf16.mxu1 %v24882_v3 }
 0xa99   :  { %22656 = vmatpush3.bf16.msra.mxu1 %v25023_v17 }
 0xa9a   :  { %22657 = vmatprep.subr.bf16.mxu1 %v24882_v3 }
 0xa9d   :  { %22659 = vmatpush3.bf16.msra.mxu1 %v25032_v20 }
 0xa9e   :  { %22678 = vmatprep.subr.bf16.mxu1 %v24882_v3 }
 0xb63   :  { %v1066_v31 = vpop.f32.mrb[8].mxu1 }
 0xb64   :  { %v1067_v32 = vadd.f32 %v25040_v21, %v1066_v31  ;;  %v19316_v33 = vpop.f32.mrb[9].mxu1 }
 0xb66   :  { %24594 = vtanh.f32 %v1067_v32 }
 0xb70   :  { %v24595_v34 = vpop.eup %24594 }
 0xb71   :  { %19334 = vmatmul.mubr.msk.f32.vlgmr.msra.gmra.mrb[10].mxu1 %vm169_vm2, %v24595_v34 }
 0xb72   :  { %22680 = vmatpush3.bf16.msra.mxu1 %v24966_v4  ;;  %19374 = vmatprep.mubr.msk.f32.mxu1 %vm24883_vm0, %v24884_v6 }
 0xb73   :  { %22681 = vmatprep.subr.bf16.mxu1 %v24882_v3 }
 0xb76   :  { %22683 = vmatpush3.bf16.msra.mxu1 %v24990_v10 }
 0xb77   :  { %22684 = vmatprep.subr.bf16.mxu1 %v24882_v3 }
 0xc44   :  { %v1140_v35 = vpop.f32.mrb[10].mxu1 }
 0xc45   :  { %v1141_v36 = vadd.f32 %v25057_v26, %v1140_v35  ;;  %v19335_v37 = vpop.f32.mrb[11].mxu1 }
 0xc47   :  { %v1144_v38 = vmul.f32 %v1141_v36, %v25104_v47  ;;  %v1293_v44 = vadd.f32 %v1141_v36, %v992_v25 }
 0xc49   :  { %v1145_v39 = vadd.f32 %v1144_v38, %v25134_v1  ;;  %v1294_v45 = vmul.f32 2.0, %v1293_v44 }
 0xc4b   :  { %19345 = vmatmul.mubr.msk.f32.vlgmr.msra.gmra.mrb[16].mxu0 %vm90_vm1, %v1145_v39  ;;  %v1295_v49 = vadd.f32 %v1294_v45, %v25157_v12 }
 0xc4c   :  { %22668 = vmatpush3.bf16.msra.mxu0 %v24992_v11  ;;  %19363 = vmatprep.mubr.msk.f32.mxu0 %vm24883_vm0, %v24884_v6 }
 0xc4d   :  { %22669 = vmatprep.subr.bf16.mxu0 %v24882_v3 }
 0xc50   :  { %22671 = vmatpush3.bf16.msra.mxu0 %v25013_v14 }
 0xc51   :  { %22672 = vmatprep.subr.bf16.mxu0 %v24882_v3 }
 0xc54   :  { %22674 = vmatpush3.bf16.msra.mxu0 %v25023_v17 }
 0xc55   :  { %22675 = vmatprep.subr.bf16.mxu0 %v24882_v3 }
 0xc58   :  { %22677 = vmatpush3.bf16.msra.mxu0 %v25032_v20 }
 0xc59   :  { %22696 = vmatprep.subr.bf16.mxu0 %v24882_v3 }
 0xd1e   :  { %v1215_v40 = vpop.f32.mrb[16].mxu0 }
 0xd1f   :  { %v1216_v41 = vadd.f32 %v25040_v21, %v1215_v40  ;;  %v19346_v42 = vpop.f32.mrb[17].mxu0 }
 0xd21   :  { %24596 = vtanh.f32 %v1216_v41 }
 0xd2b   :  { %v24597_v43 = vpop.eup %24596 }
 0xd2c   :  { %19364 = vmatmul.mubr.msk.f32.vlgmr.msra.gmra.mrb[18].mxu0 %vm169_vm2, %v24597_v43 }
 0xd2d   :  { %22698 = vmatpush3.bf16.msra.mxu0 %v24966_v4  ;;  %19404 = vmatprep.mubr.msk.f32.mxu0 %vm24883_vm0, %v24884_v6 }
 0xd2e   :  { %22699 = vmatprep.subr.bf16.mxu0 %v24882_v3 }
 0xd31   :  { %22701 = vmatpush3.bf16.msra.mxu0 %v24990_v10 }
 0xd32   :  { %22702 = vmatprep.subr.bf16.mxu0 %v24882_v3 }
 0xdff   :  { %v1289_v46 = vpop.f32.mrb[18].mxu0 }
 0xe00   :  { %v1290_v48 = vadd.f32 %v25057_v26, %v1289_v46  ;;  %v19365_v50 = vpop.f32.mrb[19].mxu0 }
 0xe02   :  { %v1296_v51 = vadd.f32 %v1295_v49, %v1290_v48 }
 0xe04   :  { %v1297_v52 = vmul.f32 %v1296_v51, %v25130_v62 }
 0xe06   :  { %v25229_v53 = vadd.f32 %v1297_v52, %v25134_v1 }
 0xe08   :  { %19375 = vmatmul.mubr.msk.f32.vlgmr.msra.gmra.mrb[12].mxu1 %vm90_vm1, %v25229_v53 }
 0xe09   :  { %22686 = vmatpush3.bf16.msra.mxu1 %v24992_v11  ;;  %19393 = vmatprep.mubr.msk.f32.mxu1 %vm24883_vm0, %v24884_v6 }
 0xe0a   :  { %22687 = vmatprep.subr.bf16.mxu1 %v24882_v3 }
 0xe0d   :  { %22689 = vmatpush3.bf16.msra.mxu1 %v25013_v14 }
 0xe0e   :  { %22690 = vmatprep.subr.bf16.mxu1 %v24882_v3 }
 0xe11   :  { %22692 = vmatpush3.bf16.msra.mxu1 %v25023_v17 }
 0xe12   :  { %22693 = vmatprep.subr.bf16.mxu1 %v24882_v3 }
 0xe15   :  { %22695 = vmatpush3.bf16.msra.mxu1 %v25032_v20 }
 0xe16   :  { %22714 = vmatprep.subr.bf16.mxu1 %v24882_v3 }
 0xedb   :  { %v1368_v54 = vpop.f32.mrb[12].mxu1 }
 0xedc   :  { %v1369_v55 = vadd.f32 %v25040_v21, %v1368_v54  ;;  %v19376_v56 = vpop.f32.mrb[13].mxu1 }
 0xede   :  { %24598 = vtanh.f32 %v1369_v55 }
 0xee8   :  { %v24599_v57 = vpop.eup %24598 }
 0xee9   :  { %19394 = vmatmul.mubr.msk.f32.vlgmr.msra.gmra.mrb[14].mxu1 %vm169_vm2, %v24599_v57 }
 0xeea   :  { %22716 = vmatpush3.bf16.msra.mxu1 %v24966_v4  ;;  %19434 = vmatprep.mubr.msk.f32.mxu1 %vm24883_vm0, %v24884_v6 }
 0xeeb   :  { %22717 = vmatprep.subr.bf16.mxu1 %v24882_v3 }
 0xeee   :  { %22719 = vmatpush3.bf16.msra.mxu1 %v24990_v10 }
 0xeef   :  { %22720 = vmatprep.subr.bf16.mxu1 %v24882_v3 }
 0xfbc   :  { %v1442_v58 = vpop.f32.mrb[14].mxu1 }
 0xfbd   :  { %v25252_v59 = vadd.f32 %v25057_v26, %v1442_v58  ;;  %v19395_v60 = vpop.f32.mrb[15].mxu1 }
 0xfbf   :  { %v1446_v61 = vmul.f32 %v25252_v59, %v25059_v28 }
 0xfc1   :  { %v1447_v63 = vadd.f32 %v1446_v61, %v25229_v53 }
 0xfc3   :  { %19405 = vmatmul.mubr.msk.f32.vlgmr.msra.gmra.mrb[20].mxu0 %vm90_vm1, %v1447_v63 }
 0xfc4   :  { %22704 = vmatpush3.bf16.msra.mxu0 %v24992_v11  ;;  %19423 = vmatprep.mubr.msk.f32.mxu0 %vm24883_vm0, %v24884_v6 }
 0xfc5   :  { %22705 = vmatprep.subr.bf16.mxu0 %v24882_v3 }
 0xfc8   :  { %22707 = vmatpush3.bf16.msra.mxu0 %v25013_v14 }
 0xfc9   :  { %22708 = vmatprep.subr.bf16.mxu0 %v24882_v3 }
 0xfcc   :  { %22710 = vmatpush3.bf16.msra.mxu0 %v25023_v17 }
 0xfcd   :  { %22711 = vmatprep.subr.bf16.mxu0 %v24882_v3 }
 0xfd0   :  { %22713 = vmatpush3.bf16.msra.mxu0 %v25032_v20 }
 0xfd1   :  { %22732 = vmatprep.subr.bf16.mxu0 %v24882_v3 }
0x1096   :  { %v1517_v0 = vpop.f32.mrb[20].mxu0 }
0x1097   :  { %v1518_v1 = vadd.f32 %v25040_v21, %v1517_v0  ;;  %v19406_v2 = vpop.f32.mrb[21].mxu0 }
0x1099   :  { %24600 = vtanh.f32 %v1518_v1 }
0x10a3   :  { %v24601_v5 = vpop.eup %24600 }
0x10a4   :  { %19424 = vmatmul.mubr.msk.f32.vlgmr.msra.gmra.mrb[22].mxu0 %vm169_vm2, %v24601_v5 }
0x10a5   :  { %22734 = vmatpush3.bf16.msra.mxu0 %v24966_v4  ;;  %19464 = vmatprep.mubr.msk.f32.mxu0 %vm24883_vm0, %v24884_v6 }
0x10a6   :  { %22735 = vmatprep.subr.bf16.mxu0 %v24882_v3 }
0x10a9   :  { %22737 = vmatpush3.bf16.msra.mxu0 %v24990_v10 }
0x10aa   :  { %22738 = vmatprep.subr.bf16.mxu0 %v24882_v3 }
0x1177   :  { %v1591_v7 = vpop.f32.mrb[22].mxu0 }
0x1178   :  { %v1592_v8 = vadd.f32 %v25057_v26, %v1591_v7  ;;  %v19425_v9 = vpop.f32.mrb[23].mxu0 }
0x117a   :  { %v1595_v12 = vmul.f32 %v1592_v8, %v25059_v28 }
0x117c   :  { %v1596_v13 = vadd.f32 %v1595_v12, %v25229_v53 }
0x117e   :  { %19435 = vmatmul.mubr.msk.f32.vlgmr.msra.gmra.mrb[16].mxu1 %vm90_vm1, %v1596_v13 }
0x117f   :  { %22722 = vmatpush3.bf16.msra.mxu1 %v24992_v11  ;;  %19453 = vmatprep.mubr.msk.f32.mxu1 %vm24883_vm0, %v24884_v6 }
0x1180   :  { %22723 = vmatprep.subr.bf16.mxu1 %v24882_v3 }
0x1183   :  { %22725 = vmatpush3.bf16.msra.mxu1 %v25013_v14 }
0x1184   :  { %22726 = vmatprep.subr.bf16.mxu1 %v24882_v3 }
0x1187   :  { %22728 = vmatpush3.bf16.msra.mxu1 %v25023_v17 }
0x1188   :  { %22729 = vmatprep.subr.bf16.mxu1 %v24882_v3 }
0x118b   :  { %22731 = vmatpush3.bf16.msra.mxu1 %v25032_v20 }
0x118c   :  { %22750 = vmatprep.subr.bf16.mxu1 %v24882_v3 }
0x1251   :  { %v1666_v15 = vpop.f32.mrb[16].mxu1 }
0x1252   :  { %v1667_v16 = vadd.f32 %v25040_v21, %v1666_v15  ;;  %v19436_v18 = vpop.f32.mrb[17].mxu1 }
0x1254   :  { %24602 = vtanh.f32 %v1667_v16 }
0x125e   :  { %v24603_v19 = vpop.eup %24602 }
0x125f   :  { %19454 = vmatmul.mubr.msk.f32.vlgmr.msra.gmra.mrb[18].mxu1 %vm169_vm2, %v24603_v19 }
0x1260   :  { %22752 = vmatpush3.bf16.msra.mxu1 %v24966_v4  ;;  %19494 = vmatprep.mubr.msk.f32.mxu1 %vm24883_vm0, %v24884_v6 }
0x1261   :  { %22753 = vmatprep.subr.bf16.mxu1 %v24882_v3 }
0x1264   :  { %22755 = vmatpush3.bf16.msra.mxu1 %v24990_v10 }
0x1265   :  { %22756 = vmatprep.subr.bf16.mxu1 %v24882_v3 }
0x1332   :  { %v1740_v22 = vpop.f32.mrb[18].mxu1 }
0x1333   :  { %v1741_v23 = vadd.f32 %v25057_v26, %v1740_v22  ;;  %v19455_v24 = vpop.f32.mrb[19].mxu1 }
0x1335   :  { %v1744_v25 = vmul.f32 %v1741_v23, %v25104_v47  ;;  %v1893_v33 = vadd.f32 %v1741_v23, %v1592_v8 }
0x1337   :  { %v1745_v27 = vadd.f32 %v1744_v25, %v25229_v53  ;;  %v1894_v34 = vmul.f32 2.0, %v1893_v33  ;;  %v25443_v33 = vstv %s17303_s18 }
0x1339   :  { %19465 = vmatmul.mubr.msk.f32.vlgmr.msra.gmra.mrb[24].mxu0 %vm90_vm1, %v1745_v27  ;;  %v1895_v37 = vadd.f32 %v1894_v34, %v25252_v59 }
0x133a   :  { %22740 = vmatpush3.bf16.msra.mxu0 %v24992_v11  ;;  %19483 = vmatprep.mubr.msk.f32.mxu0 %vm24883_vm0, %v24884_v6 }
0x133b   :  { %22741 = vmatprep.subr.bf16.mxu0 %v24882_v3 }
0x133e   :  { %22743 = vmatpush3.bf16.msra.mxu0 %v25013_v14 }
0x133f   :  { %22744 = vmatprep.subr.bf16.mxu0 %v24882_v3 }
0x1342   :  { %22746 = vmatpush3.bf16.msra.mxu0 %v25023_v17 }
0x1343   :  { %22747 = vmatprep.subr.bf16.mxu0 %v24882_v3 }
0x1346   :  { %22749 = vmatpush3.bf16.msra.mxu0 %v25032_v20 }
0x1347   :  { %22768 = vmatprep.subr.bf16.mxu0 %v24882_v3 }
0x140c   :  { %v1815_v29 = vpop.f32.mrb[24].mxu0 }
0x140d   :  { %v1816_v30 = vadd.f32 %v25040_v21, %v1815_v29  ;;  %v19466_v31 = vpop.f32.mrb[25].mxu0 }
0x140f   :  { %24604 = vtanh.f32 %v1816_v30 }
0x1419   :  { %v24605_v32 = vpop.eup %24604 }
0x141a   :  { %19484 = vmatmul.mubr.msk.f32.vlgmr.msra.gmra.mrb[26].mxu0 %vm169_vm2, %v24605_v32 }
0x141b   :  { %22770 = vmatpush3.bf16.msra.mxu0 %v24966_v4  ;;  %19524 = vmatprep.mubr.msk.f32.mxu0 %vm24883_vm0, %v24884_v6 }
0x141c   :  { %22771 = vmatprep.subr.bf16.mxu0 %v24882_v3 }
0x141f   :  { %22773 = vmatpush3.bf16.msra.mxu0 %v24990_v10 }
0x1420   :  { %22774 = vmatprep.subr.bf16.mxu0 %v24882_v3 }
0x14ed   :  { %v1889_v35 = vpop.f32.mrb[26].mxu0 }
0x14ee   :  { %v1890_v36 = vadd.f32 %v25057_v26, %v1889_v35  ;;  %v19485_v38 = vpop.f32.mrb[27].mxu0 }
0x14f0   :  { %v1896_v39 = vadd.f32 %v1895_v37, %v1890_v36 }
0x14f2   :  { %v1897_v40 = vmul.f32 %v1896_v39, %v25130_v62 }
0x14f4   :  { %v25324_v41 = vadd.f32 %v1897_v40, %v25229_v53 }
0x14f6   :  { %19495 = vmatmul.mubr.msk.f32.vlgmr.msra.gmra.mrb[20].mxu1 %vm90_vm1, %v25324_v41 }
0x14f7   :  { %22758 = vmatpush3.bf16.msra.mxu1 %v24992_v11  ;;  %19513 = vmatprep.mubr.msk.f32.mxu1 %vm24883_vm0, %v24884_v6 }
0x14f8   :  { %22759 = vmatprep.subr.bf16.mxu1 %v24882_v3 }
0x14fb   :  { %22761 = vmatpush3.bf16.msra.mxu1 %v25013_v14 }
0x14fc   :  { %22762 = vmatprep.subr.bf16.mxu1 %v24882_v3 }
0x14ff   :  { %22764 = vmatpush3.bf16.msra.mxu1 %v25023_v17 }
0x1500   :  { %22765 = vmatprep.subr.bf16.mxu1 %v24882_v3 }
0x1503   :  { %22767 = vmatpush3.bf16.msra.mxu1 %v25032_v20 }
0x1504   :  { %22786 = vmatprep.subr.bf16.mxu1 %v24882_v3 }
0x15c9   :  { %v1968_v42 = vpop.f32.mrb[20].mxu1 }
0x15ca   :  { %v1969_v43 = vadd.f32 %v25040_v21, %v1968_v42  ;;  %v19496_v44 = vpop.f32.mrb[21].mxu1 }
0x15cc   :  { %24606 = vtanh.f32 %v1969_v43 }
0x15d6   :  { %v24607_v45 = vpop.eup %24606 }
0x15d7   :  { %19514 = vmatmul.mubr.msk.f32.vlgmr.msra.gmra.mrb[22].mxu1 %vm169_vm2, %v24607_v45 }
0x15d8   :  { %22788 = vmatpush3.bf16.msra.mxu1 %v24966_v4  ;;  %19554 = vmatprep.mubr.msk.f32.mxu1 %vm24883_vm0, %v24884_v6 }
0x15d9   :  { %22789 = vmatprep.subr.bf16.mxu1 %v24882_v3 }
0x15dc   :  { %22791 = vmatpush3.bf16.msra.mxu1 %v24990_v10 }
0x15dd   :  { %22792 = vmatprep.subr.bf16.mxu1 %v24882_v3 }
0x16aa   :  { %v2042_v46 = vpop.f32.mrb[22].mxu1 }
0x16ab   :  { %v25347_v48 = vadd.f32 %v25057_v26, %v2042_v46  ;;  %v19515_v49 = vpop.f32.mrb[23].mxu1 }
0x16ad   :  { %v2046_v50 = vmul.f32 %v25347_v48, %v25059_v28 }
0x16af   :  { %v2047_v51 = vadd.f32 %v2046_v50, %v25324_v41 }
0x16b1   :  { %19525 = vmatmul.mubr.msk.f32.vlgmr.msra.gmra.mrb[28].mxu0 %vm90_vm1, %v2047_v51 }
0x16b2   :  { %22776 = vmatpush3.bf16.msra.mxu0 %v24992_v11  ;;  %19543 = vmatprep.mubr.msk.f32.mxu0 %vm24883_vm0, %v24884_v6 }
0x16b3   :  { %22777 = vmatprep.subr.bf16.mxu0 %v24882_v3 }
0x16b6   :  { %22779 = vmatpush3.bf16.msra.mxu0 %v25013_v14 }
0x16b7   :  { %22780 = vmatprep.subr.bf16.mxu0 %v24882_v3 }
0x16ba   :  { %22782 = vmatpush3.bf16.msra.mxu0 %v25023_v17 }
0x16bb   :  { %22783 = vmatprep.subr.bf16.mxu0 %v24882_v3 }
0x16be   :  { %22785 = vmatpush3.bf16.msra.mxu0 %v25032_v20 }
0x16bf   :  { %22804 = vmatprep.subr.bf16.mxu0 %v24882_v3 }
0x1784   :  { %v2117_v52 = vpop.f32.mrb[28].mxu0 }
0x1785   :  { %v2118_v53 = vadd.f32 %v25040_v21, %v2117_v52  ;;  %v19526_v54 = vpop.f32.mrb[29].mxu0 }
0x1787   :  { %24608 = vtanh.f32 %v2118_v53  ;;  %v25492_v53 = vstv %s17302_s19 }
0x1791   :  { %v24609_v55 = vpop.eup %24608 }
0x1792   :  { %19544 = vmatmul.mubr.msk.f32.vlgmr.msra.gmra.mrb[30].mxu0 %vm169_vm2, %v24609_v55 }
0x1793   :  { %22806 = vmatpush3.bf16.msra.mxu0 %v24966_v4  ;;  %19584 = vmatprep.mubr.msk.f32.mxu0 %vm24883_vm0, %v24884_v6 }
0x1794   :  { %22807 = vmatprep.subr.bf16.mxu0 %v24882_v3 }
0x1797   :  { %22809 = vmatpush3.bf16.msra.mxu0 %v24990_v10 }
0x1798   :  { %22810 = vmatprep.subr.bf16.mxu0 %v24882_v3 }
0x1865   :  { %v2191_v56 = vpop.f32.mrb[30].mxu0 }
0x1866   :  { %v2192_v57 = vadd.f32 %v25057_v26, %v2191_v56  ;;  %v19545_v58 = vpop.f32.mrb[31].mxu0 }
0x1868   :  { %v2195_v59 = vmul.f32 %v2192_v57, %v25059_v28 }
0x186a   :  { %v2196_v60 = vadd.f32 %v2195_v59, %v25324_v41 }
0x186c   :  { %19555 = vmatmul.mubr.msk.f32.vlgmr.msra.gmra.mrb[24].mxu1 %vm90_vm1, %v2196_v60 }
0x186d   :  { %22794 = vmatpush3.bf16.msra.mxu1 %v24992_v11  ;;  %19573 = vmatprep.mubr.msk.f32.mxu1 %vm24883_vm0, %v24884_v6 }
0x186e   :  { %22795 = vmatprep.subr.bf16.mxu1 %v24882_v3 }
0x1871   :  { %22797 = vmatpush3.bf16.msra.mxu1 %v25013_v14 }
0x1872   :  { %22798 = vmatprep.subr.bf16.mxu1 %v24882_v3 }
0x1875   :  { %22800 = vmatpush3.bf16.msra.mxu1 %v25023_v17 }
0x1876   :  { %22801 = vmatprep.subr.bf16.mxu1 %v24882_v3 }
0x1879   :  { %22803 = vmatpush3.bf16.msra.mxu1 %v25032_v20 }
0x187a   :  { %22822 = vmatprep.subr.bf16.mxu1 %v24882_v3 }
0x193f   :  { %v2266_v28 = vpop.f32.mrb[24].mxu1 }
0x1940   :  { %v2267_v61 = vadd.f32 %v25040_v21, %v2266_v28  ;;  %v19556_v63 = vpop.f32.mrb[25].mxu1 }
0x1942   :  { %24610 = vtanh.f32 %v2267_v61 }
0x194c   :  { %v24611_v0 = vpop.eup %24610 }
0x194d   :  { %19574 = vmatmul.mubr.msk.f32.vlgmr.msra.gmra.mrb[26].mxu1 %vm169_vm2, %v24611_v0  ;;  %v25524_v0 = vld [vmem:[%s27851_s5] ss:$0 sm:$0xff] }
0x194e   :  { %22824 = vmatpush3.bf16.msra.mxu1 %v24966_v4  ;;  %19614 = vmatprep.mubr.msk.f32.mxu1 %vm24883_vm0, %v24884_v6 }
0x194f   :  { %22825 = vmatprep.subr.bf16.mxu1 %v24882_v3 }
0x1952   :  { %22827 = vmatpush3.bf16.msra.mxu1 %v24990_v10 }
0x1953   :  { %22828 = vmatprep.subr.bf16.mxu1 %v24882_v3 }
0x1a20   :  { %v2340_v1 = vpop.f32.mrb[26].mxu1 }
0x1a21   :  { %v2341_v2 = vadd.f32 %v25057_v26, %v2340_v1  ;;  %v19575_v5 = vpop.f32.mrb[27].mxu1 }
0x1a23   :  { %v2344_v7 = vmul.f32 %v2341_v2, %v25104_v47  ;;  %v2493_v15 = vadd.f32 %v2341_v2, %v2192_v57  ;;  %v25511_v57 = vld [vmem:[%s27849_s3] ss:$0 sm:$0xff] }
0x1a25   :  { %v2345_v8 = vadd.f32 %v2344_v7, %v25324_v41  ;;  %v2494_v16 = vmul.f32 2.0, %v2493_v15  ;;  %v25528_v7 = vstv %s17304_s2  ;;  %s17442_s2 = sld [smem:[#allocation3 + $0xf]] }
0x1a27   :  { %19585 = vmatmul.mubr.msk.f32.vlgmr.msra.gmra.mrb[32].mxu0 %vm90_vm1, %v2345_v8  ;;  %v2495_v22 = vadd.f32 %v2494_v16, %v25347_v48 }
0x1a28   :  { %22812 = vmatpush3.bf16.msra.mxu0 %v24992_v11  ;;  %19603 = vmatprep.mubr.msk.f32.mxu0 %vm24883_vm0, %v24884_v6 }
0x1a29   :  { %22813 = vmatprep.subr.bf16.mxu0 %v24882_v3 }
0x1a2c   :  { %22815 = vmatpush3.bf16.msra.mxu0 %v25013_v14 }
0x1a2d   :  { %22816 = vmatprep.subr.bf16.mxu0 %v24882_v3 }
0x1a30   :  { %22818 = vmatpush3.bf16.msra.mxu0 %v25023_v17 }
0x1a31   :  { %22819 = vmatprep.subr.bf16.mxu0 %v24882_v3 }
0x1a34   :  { %22821 = vmatpush3.bf16.msra.mxu0 %v25032_v20 }
0x1a35   :  { %22840 = vmatprep.subr.bf16.mxu0 %v24882_v3 }
0x1afa   :  { %v2415_v47 = vpop.f32.mrb[32].mxu0 }
0x1afb   :  { %v2416_v9 = vadd.f32 %v25040_v21, %v2415_v47  ;;  %v19586_v12 = vpop.f32.mrb[33].mxu0 }
0x1afd   :  { %24612 = vtanh.f32 %v2416_v9 }
0x1b07   :  { %v24613_v13 = vpop.eup %24612 }
0x1b08   :  { %19604 = vmatmul.mubr.msk.f32.vlgmr.msra.gmra.mrb[34].mxu0 %vm169_vm2, %v24613_v13 }
0x1b09   :  { %22842 = vmatpush3.bf16.msra.mxu0 %v24966_v4  ;;  %19644 = vmatprep.mubr.msk.f32.mxu0 %vm24883_vm0, %v24884_v6 }
0x1b0a   :  { %22843 = vmatprep.subr.bf16.mxu0 %v24882_v3 }
0x1b0d   :  { %22845 = vmatpush3.bf16.msra.mxu0 %v24990_v10 }
0x1b0e   :  { %22846 = vmatprep.subr.bf16.mxu0 %v24882_v3 }
0x1bdb   :  { %v2489_v18 = vpop.f32.mrb[34].mxu0 }
0x1bdc   :  { %v2490_v19 = vadd.f32 %v25057_v26, %v2489_v18  ;;  %v19605_v23 = vpop.f32.mrb[35].mxu0 }
0x1bde   :  { %v2496_v24 = vadd.f32 %v2495_v22, %v2490_v19 }
0x1be0   :  { %v2497_v25 = vmul.f32 %v2496_v24, %v25130_v62 }
0x1be2   :  { %v25419_v27 = vadd.f32 %v2497_v25, %v25324_v41 }
0x1be4   :  { %2499 = vst.msk [vmem:[#allocation2 + $0x8] sm:$0xff] %vm90_vm1, %v25419_v27  ;;  %19615 = vmatmul.mubr.msk.f32.vlgmr.msra.gmra.mrb[28].mxu1 %vm90_vm1, %v25419_v27 }
0x1be5   :  { %22830 = vmatpush3.bf16.msra.mxu1 %v24992_v11  ;;  %19633 = vmatprep.mubr.msk.f32.mxu1 %vm24883_vm0, %v24884_v6 }
0x1be6   :  { %22831 = vmatprep.subr.bf16.mxu1 %v24882_v3 }
0x1be9   :  { %22833 = vmatpush3.bf16.msra.mxu1 %v25013_v14 }
0x1bea   :  { %22834 = vmatprep.subr.bf16.mxu1 %v24882_v3 }
0x1bed   :  { %22836 = vmatpush3.bf16.msra.mxu1 %v25023_v17 }
0x1bee   :  { %22837 = vmatprep.subr.bf16.mxu1 %v24882_v3 }
0x1bf1   :  { %22839 = vmatpush3.bf16.msra.mxu1 %v25032_v20 }
0x1bf2   :  { %22858 = vmatprep.subr.bf16.mxu1 %v24882_v3 }
0x1cb7   :  { %v2572_v62 = vpop.f32.mrb[28].mxu1 }
0x1cb8   :  { %v2573_v29 = vadd.f32 %v25040_v21, %v2572_v62  ;;  %v19616_v30 = vpop.f32.mrb[29].mxu1 }
0x1cba   :  { %24614 = vtanh.f32 %v2573_v29 }
0x1cc4   :  { %v24615_v31 = vpop.eup %24614 }
0x1cc5   :  { %19634 = vmatmul.mubr.msk.f32.vlgmr.msra.gmra.mrb[30].mxu1 %vm169_vm2, %v24615_v31 }
0x1cc6   :  { %22860 = vmatpush3.bf16.msra.mxu1 %v24966_v4  ;;  %19674 = vmatprep.mubr.msk.f32.mxu1 %vm24883_vm0, %v24884_v6 }
0x1cc7   :  { %22861 = vmatprep.subr.bf16.mxu1 %v24882_v3 }
0x1cca   :  { %22863 = vmatpush3.bf16.msra.mxu1 %v24990_v10 }
0x1ccb   :  { %22864 = vmatprep.subr.bf16.mxu1 %v24882_v3 }
0x1d98   :  { %v2646_v32 = vpop.f32.mrb[30].mxu1 }
0x1d99   :  { %v25446_v34 = vadd.f32 %v25057_v26, %v2646_v32  ;;  %v19635_v35 = vpop.f32.mrb[31].mxu1 }
0x1d9b   :  { %v2651_v36 = vmul.f32 %v25443_v33, %v25446_v34 }
0x1d9d   :  { %v2652_v37 = vadd.f32 %v2651_v36, %v25419_v27 }
0x1d9f   :  { %19645 = vmatmul.mubr.msk.f32.vlgmr.msra.gmra.mrb[36].mxu0 %vm90_vm1, %v2652_v37 }
0x1da0   :  { %22848 = vmatpush3.bf16.msra.mxu0 %v24992_v11  ;;  %19663 = vmatprep.mubr.msk.f32.mxu0 %vm24883_vm0, %v24884_v6 }
0x1da1   :  { %22849 = vmatprep.subr.bf16.mxu0 %v24882_v3 }
0x1da4   :  { %22851 = vmatpush3.bf16.msra.mxu0 %v25013_v14 }
0x1da5   :  { %22852 = vmatprep.subr.bf16.mxu0 %v24882_v3 }
0x1da8   :  { %22854 = vmatpush3.bf16.msra.mxu0 %v25023_v17 }
0x1da9   :  { %22855 = vmatprep.subr.bf16.mxu0 %v24882_v3 }
0x1dac   :  { %22857 = vmatpush3.bf16.msra.mxu0 %v25032_v20 }
0x1dad   :  { %22876 = vmatprep.subr.bf16.mxu0 %v24882_v3 }
0x1e72   :  { %v2722_v38 = vpop.f32.mrb[36].mxu0 }
0x1e73   :  { %v2723_v39 = vadd.f32 %v25040_v21, %v2722_v38  ;;  %v19646_v40 = vpop.f32.mrb[37].mxu0 }
0x1e75   :  { %24616 = vtanh.f32 %v2723_v39 }
0x1e7f   :  { %v24617_v41 = vpop.eup %24616 }
0x1e80   :  { %19664 = vmatmul.mubr.msk.f32.vlgmr.msra.gmra.mrb[38].mxu0 %vm169_vm2, %v24617_v41 }
0x1e81   :  { %22878 = vmatpush3.bf16.msra.mxu0 %v24966_v4  ;;  %19704 = vmatprep.mubr.msk.f32.mxu0 %vm24883_vm0, %v24884_v6 }
0x1e82   :  { %22879 = vmatprep.subr.bf16.mxu0 %v24882_v3 }
0x1e85   :  { %22881 = vmatpush3.bf16.msra.mxu0 %v24990_v10 }
0x1e86   :  { %22882 = vmatprep.subr.bf16.mxu0 %v24882_v3 }
0x1f53   :  { %v2796_v42 = vpop.f32.mrb[38].mxu0 }
0x1f54   :  { %v2797_v43 = vadd.f32 %v25057_v26, %v2796_v42  ;;  %v19665_v44 = vpop.f32.mrb[39].mxu0 }
0x1f56   :  { %v2800_v45 = vmul.f32 %v2797_v43, %v25443_v33 }
0x1f58   :  { %v2801_v46 = vadd.f32 %v2800_v45, %v25419_v27 }
0x1f5a   :  { %19675 = vmatmul.mubr.msk.f32.vlgmr.msra.gmra.mrb[32].mxu1 %vm90_vm1, %v2801_v46 }
0x1f5b   :  { %22866 = vmatpush3.bf16.msra.mxu1 %v24992_v11  ;;  %19693 = vmatprep.mubr.msk.f32.mxu1 %vm24883_vm0, %v24884_v6 }
0x1f5c   :  { %22867 = vmatprep.subr.bf16.mxu1 %v24882_v3 }
0x1f5f   :  { %22869 = vmatpush3.bf16.msra.mxu1 %v25013_v14 }
0x1f60   :  { %22870 = vmatprep.subr.bf16.mxu1 %v24882_v3 }
0x1f63   :  { %22872 = vmatpush3.bf16.msra.mxu1 %v25023_v17 }
0x1f64   :  { %22873 = vmatprep.subr.bf16.mxu1 %v24882_v3 }
0x1f67   :  { %22875 = vmatpush3.bf16.msra.mxu1 %v25032_v20 }
0x1f68   :  { %22894 = vmatprep.subr.bf16.mxu1 %v24882_v3 }
0x202d   :  { %v2871_v48 = vpop.f32.mrb[32].mxu1 }
0x202e   :  { %v2872_v49 = vadd.f32 %v25040_v21, %v2871_v48  ;;  %v19676_v50 = vpop.f32.mrb[33].mxu1 }
0x2030   :  { %24618 = vtanh.f32 %v2872_v49 }
0x203a   :  { %v24619_v51 = vpop.eup %24618 }
0x203b   :  { %19694 = vmatmul.mubr.msk.f32.vlgmr.msra.gmra.mrb[34].mxu1 %vm169_vm2, %v24619_v51 }
0x203c   :  { %22896 = vmatpush3.bf16.msra.mxu1 %v24966_v4  ;;  %19734 = vmatprep.mubr.msk.f32.mxu1 %vm24883_vm0, %v24884_v6 }
0x203d   :  { %22897 = vmatprep.subr.bf16.mxu1 %v24882_v3 }
0x2040   :  { %22899 = vmatpush3.bf16.msra.mxu1 %v24990_v10 }
0x2041   :  { %22900 = vmatprep.subr.bf16.mxu1 %v24882_v3 }
0x210e   :  { %v2945_v52 = vpop.f32.mrb[34].mxu1 }
0x210f   :  { %v2946_v21 = vadd.f32 %v25057_v26, %v2945_v52  ;;  %v19695_v54 = vpop.f32.mrb[35].mxu1 }
0x2111   :  { %v2950_v55 = vmul.f32 %v25492_v53, %v2946_v21  ;;  %v3099_v28 = vadd.f32 %v2946_v21, %v2797_v43 }
0x2113   :  { %v2951_v56 = vadd.f32 %v2950_v55, %v25419_v27  ;;  %v3100_v61 = vmul.f32 2.0, %v3099_v28 }
0x2115   :  { %19705 = vmatmul.mubr.msk.f32.vlgmr.msra.gmra.mrb[40].mxu0 %vm90_vm1, %v2951_v56  ;;  %v3101_v2 = vadd.f32 %v3100_v61, %v25446_v34 }
0x2116   :  { %22884 = vmatpush3.bf16.msra.mxu0 %v24992_v11  ;;  %19723 = vmatprep.mubr.msk.f32.mxu0 %vm24883_vm0, %v24884_v6 }
0x2117   :  { %22885 = vmatprep.subr.bf16.mxu0 %v24882_v3 }
0x211a   :  { %22887 = vmatpush3.bf16.msra.mxu0 %v25013_v14 }
0x211b   :  { %22888 = vmatprep.subr.bf16.mxu0 %v24882_v3 }
0x211e   :  { %22890 = vmatpush3.bf16.msra.mxu0 %v25023_v17 }
0x211f   :  { %22891 = vmatprep.subr.bf16.mxu0 %v24882_v3 }
0x2122   :  { %22893 = vmatpush3.bf16.msra.mxu0 %v25032_v20 }
0x2123   :  { %22912 = vmatprep.subr.bf16.mxu0 %v24882_v3 }
0x21e8   :  { %v3021_v26 = vpop.f32.mrb[40].mxu0 }
0x21e9   :  { %v3022_v58 = vadd.f32 %v25511_v57, %v3021_v26  ;;  %v19706_v59 = vpop.f32.mrb[41].mxu0 }
0x21eb   :  { %24620 = vtanh.f32 %v3022_v58 }
0x21f5   :  { %v24621_v60 = vpop.eup %24620 }
0x21f6   :  { %19724 = vmatmul.mubr.msk.f32.vlgmr.msra.gmra.mrb[42].mxu0 %vm169_vm2, %v24621_v60 }
0x21f7   :  { %22914 = vmatpush3.bf16.msra.mxu0 %v24966_v4  ;;  %19764 = vmatprep.mubr.msk.f32.mxu0 %vm24883_vm0, %v24884_v6 }
0x21f8   :  { %22915 = vmatprep.subr.bf16.mxu0 %v24882_v3 }
0x21fb   :  { %22917 = vmatpush3.bf16.msra.mxu0 %v24990_v10 }
0x21fc   :  { %22918 = vmatprep.subr.bf16.mxu0 %v24882_v3 }
0x22c9   :  { %v3095_v63 = vpop.f32.mrb[42].mxu0 }
0x22ca   :  { %v3096_v1 = vadd.f32 %v25524_v0, %v3095_v63  ;;  %v19725_v5 = vpop.f32.mrb[43].mxu0 }
0x22cc   :  { %v3102_v8 = vadd.f32 %v3101_v2, %v3096_v1 }
0x22ce   :  { %v3104_v47 = vmul.f32 %v25528_v7, %v3102_v8 }
0x22d0   :  { %v25532_v9 = vadd.f32 %v3104_v47, %v25419_v27 }
0x22d2   :  { %19735 = vmatmul.mubr.msk.f32.vlgmr.msra.gmra.mrb[36].mxu1 %vm90_vm1, %v25532_v9 }
0x22d3   :  { %22902 = vmatpush3.bf16.msra.mxu1 %v24992_v11  ;;  %19753 = vmatprep.mubr.msk.f32.mxu1 %vm24883_vm0, %v24884_v6 }
0x22d4   :  { %22903 = vmatprep.subr.bf16.mxu1 %v24882_v3 }
0x22d7   :  { %22905 = vmatpush3.bf16.msra.mxu1 %v25013_v14 }
0x22d8   :  { %22906 = vmatprep.subr.bf16.mxu1 %v24882_v3 }
0x22db   :  { %22908 = vmatpush3.bf16.msra.mxu1 %v25023_v17 }
0x22dc   :  { %22909 = vmatprep.subr.bf16.mxu1 %v24882_v3 }
0x22df   :  { %22911 = vmatpush3.bf16.msra.mxu1 %v25032_v20 }
0x22e0   :  { %22930 = vmatprep.subr.bf16.mxu1 %v24882_v3 }
0x23a5   :  { %v3175_v12 = vpop.f32.mrb[36].mxu1 }
0x23a6   :  { %v3176_v13 = vadd.f32 %v25511_v57, %v3175_v12  ;;  %v19736_v15 = vpop.f32.mrb[37].mxu1 }
0x23a8   :  { %24622 = vtanh.f32 %v3176_v13 }
0x23b2   :  { %v24623_v16 = vpop.eup %24622 }
0x23b3   :  { %19754 = vmatmul.mubr.msk.f32.vlgmr.msra.gmra.mrb[38].mxu1 %vm169_vm2, %v24623_v16 }
0x23b4   :  { %22932 = vmatpush3.bf16.msra.mxu1 %v24966_v4  ;;  %19794 = vmatprep.mubr.msk.f32.mxu1 %vm24883_vm0, %v24884_v6 }
0x23b5   :  { %22933 = vmatprep.subr.bf16.mxu1 %v24882_v3 }
0x23b8   :  { %22935 = vmatpush3.bf16.msra.mxu1 %v24990_v10 }
0x23b9   :  { %22936 = vmatprep.subr.bf16.mxu1 %v24882_v3 }
0x2486   :  { %v3249_v18 = vpop.f32.mrb[38].mxu1 }
0x2487   :  { %v25555_v19 = vadd.f32 %v25524_v0, %v3249_v18  ;;  %v19755_v22 = vpop.f32.mrb[39].mxu1 }
0x2489   :  { %v3253_v23 = vmul.f32 %v25555_v19, %v25443_v33 }
0x248b   :  { %v3254_v24 = vadd.f32 %v3253_v23, %v25532_v9 }
0x248d   :  { %19765 = vmatmul.mubr.msk.f32.vlgmr.msra.gmra.mrb[44].mxu0 %vm90_vm1, %v3254_v24 }
0x248e   :  { %22920 = vmatpush3.bf16.msra.mxu0 %v24992_v11  ;;  %19783 = vmatprep.mubr.msk.f32.mxu0 %vm24883_vm0, %v24884_v6 }
0x248f   :  { %22921 = vmatprep.subr.bf16.mxu0 %v24882_v3 }
0x2492   :  { %22923 = vmatpush3.bf16.msra.mxu0 %v25013_v14 }
0x2493   :  { %22924 = vmatprep.subr.bf16.mxu0 %v24882_v3 }
0x2496   :  { %22926 = vmatpush3.bf16.msra.mxu0 %v25023_v17 }
0x2497   :  { %22927 = vmatprep.subr.bf16.mxu0 %v24882_v3 }
0x249a   :  { %22929 = vmatpush3.bf16.msra.mxu0 %v25032_v20 }
0x249b   :  { %22948 = vmatprep.subr.bf16.mxu0 %v24882_v3 }
0x2560   :  { %v3324_v25 = vpop.f32.mrb[44].mxu0 }
0x2561   :  { %v3325_v27 = vadd.f32 %v25511_v57, %v3324_v25  ;;  %v19766_v62 = vpop.f32.mrb[45].mxu0 }
0x2563   :  { %24624 = vtanh.f32 %v3325_v27 }
0x256d   :  { %v24625_v29 = vpop.eup %24624 }
0x256e   :  { %19784 = vmatmul.mubr.msk.f32.vlgmr.msra.gmra.mrb[46].mxu0 %vm169_vm2, %v24625_v29 }
0x256f   :  { %22950 = vmatpush3.bf16.msra.mxu0 %v24966_v4  ;;  %19824 = vmatprep.mubr.msk.f32.mxu0 %vm24883_vm0, %v24884_v6 }
0x2570   :  { %22951 = vmatprep.subr.bf16.mxu0 %v24882_v3 }
0x2573   :  { %22953 = vmatpush3.bf16.msra.mxu0 %v24990_v10 }
0x2574   :  { %22954 = vmatprep.subr.bf16.mxu0 %v24882_v3 }
0x2641   :  { %v3398_v30 = vpop.f32.mrb[46].mxu0 }
0x2642   :  { %v3399_v31 = vadd.f32 %v25524_v0, %v3398_v30  ;;  %v19785_v32 = vpop.f32.mrb[47].mxu0 }
0x2644   :  { %v3402_v34 = vmul.f32 %v3399_v31, %v25443_v33 }
0x2646   :  { %v3403_v35 = vadd.f32 %v3402_v34, %v25532_v9 }
0x2648   :  { %19795 = vmatmul.mubr.msk.f32.vlgmr.msra.gmra.mrb[40].mxu1 %vm90_vm1, %v3403_v35 }
0x2649   :  { %22938 = vmatpush3.bf16.msra.mxu1 %v24992_v11  ;;  %19813 = vmatprep.mubr.msk.f32.mxu1 %vm24883_vm0, %v24884_v6 }
0x264a   :  { %22939 = vmatprep.subr.bf16.mxu1 %v24882_v3 }
0x264d   :  { %22941 = vmatpush3.bf16.msra.mxu1 %v25013_v14 }
0x264e   :  { %22942 = vmatprep.subr.bf16.mxu1 %v24882_v3 }
0x2651   :  { %22944 = vmatpush3.bf16.msra.mxu1 %v25023_v17 }
0x2652   :  { %22945 = vmatprep.subr.bf16.mxu1 %v24882_v3 }
0x2655   :  { %22947 = vmatpush3.bf16.msra.mxu1 %v25032_v20 }
0x2656   :  { %22966 = vmatprep.subr.bf16.mxu1 %v24882_v3 }
0x271b   :  { %v3473_v36 = vpop.f32.mrb[40].mxu1 }
0x271c   :  { %v3474_v37 = vadd.f32 %v25511_v57, %v3473_v36  ;;  %v19796_v38 = vpop.f32.mrb[41].mxu1 }
0x271e   :  { %24626 = vtanh.f32 %v3474_v37 }
0x2728   :  { %v24627_v39 = vpop.eup %24626 }
0x2729   :  { %19814 = vmatmul.mubr.msk.f32.vlgmr.msra.gmra.mrb[42].mxu1 %vm169_vm2, %v24627_v39 }
0x272a   :  { %22968 = vmatpush3.bf16.msra.mxu1 %v24966_v4  ;;  %19854 = vmatprep.mubr.msk.f32.mxu1 %vm24883_vm0, %v24884_v6 }
0x272b   :  { %22969 = vmatprep.subr.bf16.mxu1 %v24882_v3 }
0x272e   :  { %22971 = vmatpush3.bf16.msra.mxu1 %v24990_v10 }
0x272f   :  { %22972 = vmatprep.subr.bf16.mxu1 %v24882_v3 }
0x27fc   :  { %v3547_v40 = vpop.f32.mrb[42].mxu1 }
0x27fd   :  { %v3548_v41 = vadd.f32 %v25524_v0, %v3547_v40  ;;  %v19815_v42 = vpop.f32.mrb[43].mxu1 }
0x27ff   :  { %v3551_v43 = vmul.f32 %v3548_v41, %v25492_v53  ;;  %v3700_v50 = vadd.f32 %v3548_v41, %v3399_v31 }
0x2801   :  { %v3552_v44 = vadd.f32 %v3551_v43, %v25532_v9  ;;  %v3701_v51 = vmul.f32 2.0, %v3700_v50 }
0x2803   :  { %19825 = vmatmul.mubr.msk.f32.vlgmr.msra.gmra.mrb[48].mxu0 %vm90_vm1, %v3552_v44  ;;  %v3702_v54 = vadd.f32 %v3701_v51, %v25555_v19 }
0x2804   :  { %22956 = vmatpush3.bf16.msra.mxu0 %v24992_v11  ;;  %19843 = vmatprep.mubr.msk.f32.mxu0 %vm24883_vm0, %v24884_v6 }
0x2805   :  { %22957 = vmatprep.subr.bf16.mxu0 %v24882_v3 }
0x2808   :  { %22959 = vmatpush3.bf16.msra.mxu0 %v25013_v14 }
0x2809   :  { %22960 = vmatprep.subr.bf16.mxu0 %v24882_v3 }
0x280c   :  { %22962 = vmatpush3.bf16.msra.mxu0 %v25023_v17 }
0x280d   :  { %22963 = vmatprep.subr.bf16.mxu0 %v24882_v3 }
0x2810   :  { %22965 = vmatpush3.bf16.msra.mxu0 %v25032_v20 }
0x2811   :  { %22984 = vmatprep.subr.bf16.mxu0 %v24882_v3 }
0x28d6   :  { %v3622_v45 = vpop.f32.mrb[48].mxu0 }
0x28d7   :  { %v3623_v46 = vadd.f32 %v25511_v57, %v3622_v45  ;;  %v19826_v48 = vpop.f32.mrb[49].mxu0 }
0x28d9   :  { %24628 = vtanh.f32 %v3623_v46 }
0x28e3   :  { %v24629_v49 = vpop.eup %24628 }
0x28e4   :  { %19844 = vmatmul.mubr.msk.f32.vlgmr.msra.gmra.mrb[50].mxu0 %vm169_vm2, %v24629_v49 }
0x28e5   :  { %22986 = vmatpush3.bf16.msra.mxu0 %v24966_v4  ;;  %19884 = vmatprep.mubr.msk.f32.mxu0 %vm24883_vm0, %v24884_v6 }
0x28e6   :  { %22987 = vmatprep.subr.bf16.mxu0 %v24882_v3 }
0x28e9   :  { %22989 = vmatpush3.bf16.msra.mxu0 %v24990_v10 }
0x28ea   :  { %22990 = vmatprep.subr.bf16.mxu0 %v24882_v3 }
0x29b7   :  { %v3696_v52 = vpop.f32.mrb[50].mxu0 }
0x29b8   :  { %v3697_v21 = vadd.f32 %v25524_v0, %v3696_v52  ;;  %v19845_v55 = vpop.f32.mrb[51].mxu0 }
0x29ba   :  { %v3703_v56 = vadd.f32 %v3702_v54, %v3697_v21 }
0x29bc   :  { %v3704_v26 = vmul.f32 %v3703_v56, %v25528_v7 }
0x29be   :  { %v25627_v58 = vadd.f32 %v3704_v26, %v25532_v9 }
0x29c0   :  { %19855 = vmatmul.mubr.msk.f32.vlgmr.msra.gmra.mrb[44].mxu1 %vm90_vm1, %v25627_v58 }
0x29c1   :  { %22974 = vmatpush3.bf16.msra.mxu1 %v24992_v11  ;;  %19873 = vmatprep.mubr.msk.f32.mxu1 %vm24883_vm0, %v24884_v6 }
0x29c2   :  { %22975 = vmatprep.subr.bf16.mxu1 %v24882_v3 }
0x29c5   :  { %22977 = vmatpush3.bf16.msra.mxu1 %v25013_v14 }
0x29c6   :  { %22978 = vmatprep.subr.bf16.mxu1 %v24882_v3 }
0x29c9   :  { %22980 = vmatpush3.bf16.msra.mxu1 %v25023_v17 }
0x29ca   :  { %22981 = vmatprep.subr.bf16.mxu1 %v24882_v3 }
0x29cd   :  { %22983 = vmatpush3.bf16.msra.mxu1 %v25032_v20 }
0x29ce   :  { %23002 = vmatprep.subr.bf16.mxu1 %v24882_v3 }
0x2a93   :  { %v3775_v59 = vpop.f32.mrb[44].mxu1 }
0x2a94   :  { %v3776_v60 = vadd.f32 %v25511_v57, %v3775_v59  ;;  %v19856_v28 = vpop.f32.mrb[45].mxu1 }
0x2a96   :  { %24630 = vtanh.f32 %v3776_v60 }
0x2aa0   :  { %v24631_v61 = vpop.eup %24630 }
0x2aa1   :  { %19874 = vmatmul.mubr.msk.f32.vlgmr.msra.gmra.mrb[46].mxu1 %vm169_vm2, %v24631_v61 }
0x2aa2   :  { %23004 = vmatpush3.bf16.msra.mxu1 %v24966_v4  ;;  %19914 = vmatprep.mubr.msk.f32.mxu1 %vm24883_vm0, %v24884_v6 }
0x2aa3   :  { %23005 = vmatprep.subr.bf16.mxu1 %v24882_v3 }
0x2aa6   :  { %23007 = vmatpush3.bf16.msra.mxu1 %v24990_v10 }
0x2aa7   :  { %23008 = vmatprep.subr.bf16.mxu1 %v24882_v3 }
0x2b74   :  { %v3849_v63 = vpop.f32.mrb[46].mxu1 }
0x2b75   :  { %v25650_v1 = vadd.f32 %v25524_v0, %v3849_v63  ;;  %v19875_v2 = vpop.f32.mrb[47].mxu1 }
0x2b77   :  { %v3853_v5 = vmul.f32 %v25650_v1, %v25443_v33 }
0x2b79   :  { %v3854_v8 = vadd.f32 %v3853_v5, %v25627_v58 }
0x2b7b   :  { %19885 = vmatmul.mubr.msk.f32.vlgmr.msra.gmra.mrb[52].mxu0 %vm90_vm1, %v3854_v8 }
0x2b7c   :  { %22992 = vmatpush3.bf16.msra.mxu0 %v24992_v11  ;;  %19903 = vmatprep.mubr.msk.f32.mxu0 %vm24883_vm0, %v24884_v6 }
0x2b7d   :  { %22993 = vmatprep.subr.bf16.mxu0 %v24882_v3 }
0x2b80   :  { %22995 = vmatpush3.bf16.msra.mxu0 %v25013_v14 }
0x2b81   :  { %22996 = vmatprep.subr.bf16.mxu0 %v24882_v3 }
0x2b84   :  { %22998 = vmatpush3.bf16.msra.mxu0 %v25023_v17 }
0x2b85   :  { %22999 = vmatprep.subr.bf16.mxu0 %v24882_v3 }
0x2b88   :  { %23001 = vmatpush3.bf16.msra.mxu0 %v25032_v20 }
0x2b89   :  { %23020 = vmatprep.subr.bf16.mxu0 %v24882_v3 }
0x2c4e   :  { %v3924_v47 = vpop.f32.mrb[52].mxu0 }
0x2c4f   :  { %v3925_v9 = vadd.f32 %v25511_v57, %v3924_v47  ;;  %v19886_v12 = vpop.f32.mrb[53].mxu0 }
0x2c51   :  { %24632 = vtanh.f32 %v3925_v9 }
0x2c5b   :  { %v24633_v13 = vpop.eup %24632 }
0x2c5c   :  { %19904 = vmatmul.mubr.msk.f32.vlgmr.msra.gmra.mrb[54].mxu0 %vm169_vm2, %v24633_v13 }
0x2c5d   :  { %23022 = vmatpush3.bf16.msra.mxu0 %v24966_v4  ;;  %19944 = vmatprep.mubr.msk.f32.mxu0 %vm24883_vm0, %v24884_v6 }
0x2c5e   :  { %23023 = vmatprep.subr.bf16.mxu0 %v24882_v3 }
0x2c61   :  { %23025 = vmatpush3.bf16.msra.mxu0 %v24990_v10 }
0x2c62   :  { %23026 = vmatprep.subr.bf16.mxu0 %v24882_v3 }
0x2d2f   :  { %v3998_v15 = vpop.f32.mrb[54].mxu0 }
0x2d30   :  { %v3999_v16 = vadd.f32 %v25524_v0, %v3998_v15  ;;  %v19905_v18 = vpop.f32.mrb[55].mxu0 }
0x2d32   :  { %v4002_v19 = vmul.f32 %v3999_v16, %v25443_v33 }
0x2d34   :  { %v4003_v22 = vadd.f32 %v4002_v19, %v25627_v58 }
0x2d36   :  { %19915 = vmatmul.mubr.msk.f32.vlgmr.msra.gmra.mrb[48].mxu1 %vm90_vm1, %v4003_v22 }
0x2d37   :  { %23010 = vmatpush3.bf16.msra.mxu1 %v24992_v11  ;;  %19933 = vmatprep.mubr.msk.f32.mxu1 %vm24883_vm0, %v24884_v6 }
0x2d38   :  { %23011 = vmatprep.subr.bf16.mxu1 %v24882_v3 }
0x2d3b   :  { %23013 = vmatpush3.bf16.msra.mxu1 %v25013_v14 }
0x2d3c   :  { %23014 = vmatprep.subr.bf16.mxu1 %v24882_v3 }
0x2d3f   :  { %23016 = vmatpush3.bf16.msra.mxu1 %v25023_v17 }
0x2d40   :  { %23017 = vmatprep.subr.bf16.mxu1 %v24882_v3 }
0x2d43   :  { %23019 = vmatpush3.bf16.msra.mxu1 %v25032_v20 }
0x2d44   :  { %23038 = vmatprep.subr.bf16.mxu1 %v24882_v3 }
0x2e09   :  { %v4073_v23 = vpop.f32.mrb[48].mxu1 }
0x2e0a   :  { %v4074_v24 = vadd.f32 %v25511_v57, %v4073_v23  ;;  %v19916_v25 = vpop.f32.mrb[49].mxu1 }
0x2e0c   :  { %24634 = vtanh.f32 %v4074_v24 }
0x2e16   :  { %v24635_v27 = vpop.eup %24634 }
0x2e17   :  { %19934 = vmatmul.mubr.msk.f32.vlgmr.msra.gmra.mrb[50].mxu1 %vm169_vm2, %v24635_v27 }
0x2e18   :  { %23040 = vmatpush3.bf16.msra.mxu1 %v24966_v4  ;;  %19974 = vmatprep.mubr.msk.f32.mxu1 %vm24883_vm0, %v24884_v6 }
0x2e19   :  { %23041 = vmatprep.subr.bf16.mxu1 %v24882_v3 }
0x2e1c   :  { %23043 = vmatpush3.bf16.msra.mxu1 %v24990_v10 }
0x2e1d   :  { %23044 = vmatprep.subr.bf16.mxu1 %v24882_v3 }
0x2eea   :  { %v4147_v62 = vpop.f32.mrb[50].mxu1 }
0x2eeb   :  { %v4148_v29 = vadd.f32 %v25524_v0, %v4147_v62  ;;  %v19935_v30 = vpop.f32.mrb[51].mxu1 }
0x2eed   :  { %v4151_v31 = vmul.f32 %v4148_v29, %v25492_v53  ;;  %v4300_v38 = vadd.f32 %v4148_v29, %v3999_v16 }
0x2eef   :  { %v4152_v32 = vadd.f32 %v4151_v31, %v25627_v58  ;;  %v4301_v39 = vmul.f32 2.0, %v4300_v38  ;;  %v25841_v38 = vstv %s17338_s23 }
0x2ef1   :  { %19945 = vmatmul.mubr.msk.f32.vlgmr.msra.gmra.mrb[56].mxu0 %vm90_vm1, %v4152_v32  ;;  %v4302_v42 = vadd.f32 %v4301_v39, %v25650_v1 }
0x2ef2   :  { %23028 = vmatpush3.bf16.msra.mxu0 %v24992_v11  ;;  %19963 = vmatprep.mubr.msk.f32.mxu0 %vm24883_vm0, %v24884_v6 }
0x2ef3   :  { %23029 = vmatprep.subr.bf16.mxu0 %v24882_v3 }
0x2ef6   :  { %23031 = vmatpush3.bf16.msra.mxu0 %v25013_v14 }
0x2ef7   :  { %23032 = vmatprep.subr.bf16.mxu0 %v24882_v3 }
0x2efa   :  { %23034 = vmatpush3.bf16.msra.mxu0 %v25023_v17 }
0x2efb   :  { %23035 = vmatprep.subr.bf16.mxu0 %v24882_v3 }
0x2efe   :  { %23037 = vmatpush3.bf16.msra.mxu0 %v25032_v20 }
0x2eff   :  { %23056 = vmatprep.subr.bf16.mxu0 %v24882_v3 }
0x2fc4   :  { %v4222_v34 = vpop.f32.mrb[56].mxu0 }
0x2fc5   :  { %v4223_v35 = vadd.f32 %v25511_v57, %v4222_v34  ;;  %v19946_v36 = vpop.f32.mrb[57].mxu0 }
0x2fc7   :  { %24636 = vtanh.f32 %v4223_v35 }
0x2fd1   :  { %v24637_v37 = vpop.eup %24636 }
0x2fd2   :  { %19964 = vmatmul.mubr.msk.f32.vlgmr.msra.gmra.mrb[58].mxu0 %vm169_vm2, %v24637_v37 }
0x2fd3   :  { %23058 = vmatpush3.bf16.msra.mxu0 %v24966_v4  ;;  %20004 = vmatprep.mubr.msk.f32.mxu0 %vm24883_vm0, %v24884_v6 }
0x2fd4   :  { %23059 = vmatprep.subr.bf16.mxu0 %v24882_v3 }
0x2fd7   :  { %23061 = vmatpush3.bf16.msra.mxu0 %v24990_v10 }
0x2fd8   :  { %23062 = vmatprep.subr.bf16.mxu0 %v24882_v3 }
0x30a5   :  { %v4296_v40 = vpop.f32.mrb[58].mxu0 }
0x30a6   :  { %v4297_v41 = vadd.f32 %v25524_v0, %v4296_v40  ;;  %v19965_v43 = vpop.f32.mrb[59].mxu0 }
0x30a8   :  { %v4303_v44 = vadd.f32 %v4302_v42, %v4297_v41 }
0x30aa   :  { %v4304_v45 = vmul.f32 %v4303_v44, %v25528_v7 }
0x30ac   :  { %v25722_v46 = vadd.f32 %v4304_v45, %v25627_v58 }
0x30ae   :  { %19975 = vmatmul.mubr.msk.f32.vlgmr.msra.gmra.mrb[52].mxu1 %vm90_vm1, %v25722_v46 }
0x30af   :  { %23046 = vmatpush3.bf16.msra.mxu1 %v24992_v11  ;;  %19993 = vmatprep.mubr.msk.f32.mxu1 %vm24883_vm0, %v24884_v6 }
0x30b0   :  { %23047 = vmatprep.subr.bf16.mxu1 %v24882_v3 }
0x30b3   :  { %23049 = vmatpush3.bf16.msra.mxu1 %v25013_v14 }
0x30b4   :  { %23050 = vmatprep.subr.bf16.mxu1 %v24882_v3 }
0x30b7   :  { %23052 = vmatpush3.bf16.msra.mxu1 %v25023_v17 }
0x30b8   :  { %23053 = vmatprep.subr.bf16.mxu1 %v24882_v3 }
0x30bb   :  { %23055 = vmatpush3.bf16.msra.mxu1 %v25032_v20 }
0x30bc   :  { %23074 = vmatprep.subr.bf16.mxu1 %v24882_v3 }
0x3181   :  { %v4375_v48 = vpop.f32.mrb[52].mxu1 }
0x3182   :  { %v4376_v49 = vadd.f32 %v25511_v57, %v4375_v48  ;;  %v19976_v50 = vpop.f32.mrb[53].mxu1 }
0x3184   :  { %24638 = vtanh.f32 %v4376_v49 }
0x318e   :  { %v24639_v51 = vpop.eup %24638 }
0x318f   :  { %19994 = vmatmul.mubr.msk.f32.vlgmr.msra.gmra.mrb[54].mxu1 %vm169_vm2, %v24639_v51 }
0x3190   :  { %23076 = vmatpush3.bf16.msra.mxu1 %v24966_v4  ;;  %20034 = vmatprep.mubr.msk.f32.mxu1 %vm24883_vm0, %v24884_v6 }
0x3191   :  { %23077 = vmatprep.subr.bf16.mxu1 %v24882_v3 }
0x3194   :  { %23079 = vmatpush3.bf16.msra.mxu1 %v24990_v10 }
0x3195   :  { %23080 = vmatprep.subr.bf16.mxu1 %v24882_v3 }
0x3262   :  { %v4449_v52 = vpop.f32.mrb[54].mxu1 }
0x3263   :  { %v25745_v21 = vadd.f32 %v25524_v0, %v4449_v52  ;;  %v19995_v54 = vpop.f32.mrb[55].mxu1 }
0x3265   :  { %v4453_v55 = vmul.f32 %v25745_v21, %v25443_v33 }
0x3267   :  { %v4454_v56 = vadd.f32 %v4453_v55, %v25722_v46 }
0x3269   :  { %20005 = vmatmul.mubr.msk.f32.vlgmr.msra.gmra.mrb[60].mxu0 %vm90_vm1, %v4454_v56 }
0x326a   :  { %23064 = vmatpush3.bf16.msra.mxu0 %v24992_v11  ;;  %20023 = vmatprep.mubr.msk.f32.mxu0 %vm24883_vm0, %v24884_v6 }
0x326b   :  { %23065 = vmatprep.subr.bf16.mxu0 %v24882_v3 }
0x326e   :  { %23067 = vmatpush3.bf16.msra.mxu0 %v25013_v14 }
0x326f   :  { %23068 = vmatprep.subr.bf16.mxu0 %v24882_v3 }
0x3272   :  { %23070 = vmatpush3.bf16.msra.mxu0 %v25023_v17 }
0x3273   :  { %23071 = vmatprep.subr.bf16.mxu0 %v24882_v3 }
0x3276   :  { %23073 = vmatpush3.bf16.msra.mxu0 %v25032_v20 }
0x3277   :  { %23092 = vmatprep.subr.bf16.mxu0 %v24882_v3 }
0x333c   :  { %v4524_v26 = vpop.f32.mrb[60].mxu0 }
0x333d   :  { %v4525_v58 = vadd.f32 %v25511_v57, %v4524_v26  ;;  %v20006_v59 = vpop.f32.mrb[61].mxu0 }
0x333f   :  { %24640 = vtanh.f32 %v4525_v58  ;;  %v25890_v58 = vstv %s17337_s24 }
0x3349   :  { %v24641_v60 = vpop.eup %24640 }
0x334a   :  { %20024 = vmatmul.mubr.msk.f32.vlgmr.msra.gmra.mrb[62].mxu0 %vm169_vm2, %v24641_v60 }
0x334b   :  { %23094 = vmatpush3.bf16.msra.mxu0 %v24966_v4  ;;  %20064 = vmatprep.mubr.msk.f32.mxu0 %vm24883_vm0, %v24884_v6 }
0x334c   :  { %23095 = vmatprep.subr.bf16.mxu0 %v24882_v3 }
0x334f   :  { %23097 = vmatpush3.bf16.msra.mxu0 %v24990_v10 }
0x3350   :  { %23098 = vmatprep.subr.bf16.mxu0 %v24882_v3 }
0x341d   :  { %v4598_v28 = vpop.f32.mrb[62].mxu0 }
0x341e   :  { %v4599_v61 = vadd.f32 %v25524_v0, %v4598_v28  ;;  %v20025_v63 = vpop.f32.mrb[63].mxu0 }
0x3420   :  { %v4602_v1 = vmul.f32 %v4599_v61, %v25443_v33 }
0x3422   :  { %v4603_v2 = vadd.f32 %v4602_v1, %v25722_v46 }
0x3424   :  { %20035 = vmatmul.mubr.msk.f32.vlgmr.msra.gmra.mrb[56].mxu1 %vm90_vm1, %v4603_v2 }
0x3425   :  { %23082 = vmatpush3.bf16.msra.mxu1 %v24992_v11  ;;  %20053 = vmatprep.mubr.msk.f32.mxu1 %vm24883_vm0, %v24884_v6 }
0x3426   :  { %23083 = vmatprep.subr.bf16.mxu1 %v24882_v3 }
0x3429   :  { %23085 = vmatpush3.bf16.msra.mxu1 %v25013_v14 }
0x342a   :  { %23086 = vmatprep.subr.bf16.mxu1 %v24882_v3 }
0x342d   :  { %23088 = vmatpush3.bf16.msra.mxu1 %v25023_v17 }
0x342e   :  { %23089 = vmatprep.subr.bf16.mxu1 %v24882_v3 }
0x3431   :  { %23091 = vmatpush3.bf16.msra.mxu1 %v25032_v20 }
0x3432   :  { %23110 = vmatprep.subr.bf16.mxu1 %v24882_v3 }
0x34f7   :  { %v4673_v33 = vpop.f32.mrb[56].mxu1 }
0x34f8   :  { %v4674_v5 = vadd.f32 %v25511_v57, %v4673_v33  ;;  %v20036_v8 = vpop.f32.mrb[57].mxu1 }
0x34fa   :  { %24642 = vtanh.f32 %v4674_v5 }
0x3504   :  { %v24643_v47 = vpop.eup %24642 }
0x3505   :  { %20054 = vmatmul.mubr.msk.f32.vlgmr.msra.gmra.mrb[58].mxu1 %vm169_vm2, %v24643_v47 }
0x3506   :  { %23112 = vmatpush3.bf16.msra.mxu1 %v24966_v4  ;;  %20094 = vmatprep.mubr.msk.f32.mxu1 %vm24883_vm0, %v24884_v6 }
0x3507   :  { %23113 = vmatprep.subr.bf16.mxu1 %v24882_v3 }
0x350a   :  { %23115 = vmatpush3.bf16.msra.mxu1 %v24990_v10 }
0x350b   :  { %23116 = vmatprep.subr.bf16.mxu1 %v24882_v3 }
0x35d8   :  { %v4747_v9 = vpop.f32.mrb[58].mxu1 }
0x35d9   :  { %v4748_v12 = vadd.f32 %v25524_v0, %v4747_v9  ;;  %v20055_v13 = vpop.f32.mrb[59].mxu1 }
0x35db   :  { %v4751_v15 = vmul.f32 %v4748_v12, %v25492_v53  ;;  %v4900_v23 = vadd.f32 %v4748_v12, %v4599_v61 }
0x35dd   :  { %v4752_v16 = vadd.f32 %v4751_v15, %v25722_v46  ;;  %v4901_v24 = vmul.f32 2.0, %v4900_v23  ;;  %v25916_v15 = vstv %s17339_s0  ;;  %s17477_s0 = sld [smem:[#allocation3 + $0x12]] }
0x35df   :  { %20065 = vmatmul.mubr.msk.f32.vlgmr.msra.gmra.mrb[64].mxu0 %vm90_vm1, %v4752_v16  ;;  %v4902_v62 = vadd.f32 %v4901_v24, %v25745_v21 }
0x35e0   :  { %23100 = vmatpush3.bf16.msra.mxu0 %v24992_v11  ;;  %20083 = vmatprep.mubr.msk.f32.mxu0 %vm24883_vm0, %v24884_v6 }
0x35e1   :  { %23101 = vmatprep.subr.bf16.mxu0 %v24882_v3 }
0x35e4   :  { %23103 = vmatpush3.bf16.msra.mxu0 %v25013_v14 }
0x35e5   :  { %23104 = vmatprep.subr.bf16.mxu0 %v24882_v3 }
0x35e8   :  { %23106 = vmatpush3.bf16.msra.mxu0 %v25023_v17 }
0x35e9   :  { %23107 = vmatprep.subr.bf16.mxu0 %v24882_v3 }
0x35ec   :  { %23109 = vmatpush3.bf16.msra.mxu0 %v25032_v20 }
0x35ed   :  { %23128 = vmatprep.subr.bf16.mxu0 %v24882_v3 }
0x36b2   :  { %v4822_v53 = vpop.f32.mrb[64].mxu0 }
0x36b3   :  { %v4823_v18 = vadd.f32 %v25511_v57, %v4822_v53  ;;  %v20066_v19 = vpop.f32.mrb[65].mxu0 }
0x36b5   :  { %24644 = vtanh.f32 %v4823_v18 }
0x36bf   :  { %v24645_v22 = vpop.eup %24644 }
0x36c0   :  { %20084 = vmatmul.mubr.msk.f32.vlgmr.msra.gmra.mrb[66].mxu0 %vm169_vm2, %v24645_v22 }
0x36c1   :  { %23130 = vmatpush3.bf16.msra.mxu0 %v24966_v4  ;;  %20124 = vmatprep.mubr.msk.f32.mxu0 %vm24883_vm0, %v24884_v6 }
0x36c2   :  { %23131 = vmatprep.subr.bf16.mxu0 %v24882_v3 }
0x36c5   :  { %23133 = vmatpush3.bf16.msra.mxu0 %v24990_v10 }
0x36c6   :  { %23134 = vmatprep.subr.bf16.mxu0 %v24882_v3 }
0x3793   :  { %v4896_v25 = vpop.f32.mrb[66].mxu0 }
0x3794   :  { %v4897_v27 = vadd.f32 %v25524_v0, %v4896_v25  ;;  %v20085_v29 = vpop.f32.mrb[67].mxu0 }
0x3796   :  { %v4903_v30 = vadd.f32 %v4902_v62, %v4897_v27 }
0x3798   :  { %v4904_v31 = vmul.f32 %v4903_v30, %v25528_v7 }
0x379a   :  { %v25817_v32 = vadd.f32 %v4904_v31, %v25722_v46 }
0x379c   :  { %4906 = vst.msk [vmem:[#allocation2 + $0x10] sm:$0xff] %vm90_vm1, %v25817_v32  ;;  %20095 = vmatmul.mubr.msk.f32.vlgmr.msra.gmra.mrb[60].mxu1 %vm90_vm1, %v25817_v32 }
0x379d   :  { %23118 = vmatpush3.bf16.msra.mxu1 %v24992_v11  ;;  %20113 = vmatprep.mubr.msk.f32.mxu1 %vm24883_vm0, %v24884_v6 }
0x379e   :  { %23119 = vmatprep.subr.bf16.mxu1 %v24882_v3 }
0x37a1   :  { %23121 = vmatpush3.bf16.msra.mxu1 %v25013_v14 }
0x37a2   :  { %23122 = vmatprep.subr.bf16.mxu1 %v24882_v3 }
0x37a5   :  { %23124 = vmatpush3.bf16.msra.mxu1 %v25023_v17 }
0x37a6   :  { %23125 = vmatprep.subr.bf16.mxu1 %v24882_v3 }
0x37a9   :  { %23127 = vmatpush3.bf16.msra.mxu1 %v25032_v20 }
0x37aa   :  { %23146 = vmatprep.subr.bf16.mxu1 %v24882_v3 }
0x386f   :  { %v4979_v7 = vpop.f32.mrb[60].mxu1 }
0x3870   :  { %v4980_v34 = vadd.f32 %v25511_v57, %v4979_v7  ;;  %v20096_v35 = vpop.f32.mrb[61].mxu1 }
0x3872   :  { %24646 = vtanh.f32 %v4980_v34 }
0x387c   :  { %v24647_v36 = vpop.eup %24646 }
0x387d   :  { %20114 = vmatmul.mubr.msk.f32.vlgmr.msra.gmra.mrb[62].mxu1 %vm169_vm2, %v24647_v36 }
0x387e   :  { %23148 = vmatpush3.bf16.msra.mxu1 %v24966_v4  ;;  %20154 = vmatprep.mubr.msk.f32.mxu1 %vm24883_vm0, %v24884_v6 }
0x387f   :  { %23149 = vmatprep.subr.bf16.mxu1 %v24882_v3 }
0x3882   :  { %23151 = vmatpush3.bf16.msra.mxu1 %v24990_v10 }
0x3883   :  { %23152 = vmatprep.subr.bf16.mxu1 %v24882_v3 }
0x3950   :  { %v5053_v37 = vpop.f32.mrb[62].mxu1 }
0x3951   :  { %v25844_v39 = vadd.f32 %v25524_v0, %v5053_v37  ;;  %v20115_v40 = vpop.f32.mrb[63].mxu1 }
0x3952   :  { %v25984_v40 = vld [vmem:[%s27849_s3] ss:$0 sm:$0xff] }
0x3953   :  { %v5058_v41 = vmul.f32 %v25841_v38, %v25844_v39 }
0x3955   :  { %v5059_v42 = vadd.f32 %v5058_v41, %v25817_v32 }
0x3957   :  { %20125 = vmatmul.mubr.msk.f32.vlgmr.msra.gmra.mrb[68].mxu0 %vm90_vm1, %v5059_v42 }
0x3958   :  { %23136 = vmatpush3.bf16.msra.mxu0 %v24992_v11  ;;  %20143 = vmatprep.mubr.msk.f32.mxu0 %vm24883_vm0, %v24884_v6 }
0x3959   :  { %23137 = vmatprep.subr.bf16.mxu0 %v24882_v3 }
0x395c   :  { %23139 = vmatpush3.bf16.msra.mxu0 %v25013_v14 }
0x395d   :  { %23140 = vmatprep.subr.bf16.mxu0 %v24882_v3 }
0x3960   :  { %23142 = vmatpush3.bf16.msra.mxu0 %v25023_v17 }
0x3961   :  { %23143 = vmatprep.subr.bf16.mxu0 %v24882_v3 }
0x3964   :  { %23145 = vmatpush3.bf16.msra.mxu0 %v25032_v20 }
0x3965   :  { %23164 = vmatprep.subr.bf16.mxu0 %v24882_v3 }
0x3a2a   :  { %v5129_v43 = vpop.f32.mrb[68].mxu0 }
0x3a2b   :  { %v5130_v44 = vadd.f32 %v25511_v57, %v5129_v43  ;;  %v20126_v45 = vpop.f32.mrb[69].mxu0 }
0x3a2c   :  { %v25997_v45 = vld [vmem:[%s27851_s5] ss:$0 sm:$0xff] }
0x3a2d   :  { %24648 = vtanh.f32 %v5130_v44 }
0x3a37   :  { %v24649_v46 = vpop.eup %24648 }
0x3a38   :  { %20144 = vmatmul.mubr.msk.f32.vlgmr.msra.gmra.mrb[70].mxu0 %vm169_vm2, %v24649_v46 }
0x3a39   :  { %23166 = vmatpush3.bf16.msra.mxu0 %v24966_v4  ;;  %20184 = vmatprep.mubr.msk.f32.mxu0 %vm24883_vm0, %v24884_v6 }
0x3a3a   :  { %23167 = vmatprep.subr.bf16.mxu0 %v24882_v3 }
0x3a3d   :  { %23169 = vmatpush3.bf16.msra.mxu0 %v24990_v10 }
0x3a3e   :  { %23170 = vmatprep.subr.bf16.mxu0 %v24882_v3 }
0x3b0b   :  { %v5203_v48 = vpop.f32.mrb[70].mxu0 }
0x3b0c   :  { %v5204_v49 = vadd.f32 %v25524_v0, %v5203_v48  ;;  %v20145_v50 = vpop.f32.mrb[71].mxu0 }
0x3b0e   :  { %v5207_v51 = vmul.f32 %v5204_v49, %v25841_v38 }
0x3b10   :  { %v5208_v52 = vadd.f32 %v5207_v51, %v25817_v32 }
0x3b12   :  { %20155 = vmatmul.mubr.msk.f32.vlgmr.msra.gmra.mrb[64].mxu1 %vm90_vm1, %v5208_v52 }
0x3b13   :  { %23154 = vmatpush3.bf16.msra.mxu1 %v24992_v11  ;;  %20173 = vmatprep.mubr.msk.f32.mxu1 %vm24883_vm0, %v24884_v6 }
0x3b14   :  { %23155 = vmatprep.subr.bf16.mxu1 %v24882_v3 }
0x3b17   :  { %23157 = vmatpush3.bf16.msra.mxu1 %v25013_v14 }
0x3b18   :  { %23158 = vmatprep.subr.bf16.mxu1 %v24882_v3 }
0x3b1b   :  { %23160 = vmatpush3.bf16.msra.mxu1 %v25023_v17 }
0x3b1c   :  { %23161 = vmatprep.subr.bf16.mxu1 %v24882_v3 }
0x3b1f   :  { %23163 = vmatpush3.bf16.msra.mxu1 %v25032_v20 }
0x3b20   :  { %23182 = vmatprep.subr.bf16.mxu1 %v24882_v3 }
0x3be5   :  { %v5278_v21 = vpop.f32.mrb[64].mxu1 }
0x3be6   :  { %v5279_v54 = vadd.f32 %v25511_v57, %v5278_v21  ;;  %v20156_v55 = vpop.f32.mrb[65].mxu1 }
0x3be8   :  { %24650 = vtanh.f32 %v5279_v54 }
0x3bf2   :  { %v24651_v56 = vpop.eup %24650 }
0x3bf3   :  { %20174 = vmatmul.mubr.msk.f32.vlgmr.msra.gmra.mrb[66].mxu1 %vm169_vm2, %v24651_v56 }
0x3bf4   :  { %23184 = vmatpush3.bf16.msra.mxu1 %v24966_v4  ;;  %20214 = vmatprep.mubr.msk.f32.mxu1 %vm24883_vm0, %v24884_v6 }
0x3bf5   :  { %23185 = vmatprep.subr.bf16.mxu1 %v24882_v3 }
0x3bf8   :  { %23187 = vmatpush3.bf16.msra.mxu1 %v24990_v10 }
0x3bf9   :  { %23188 = vmatprep.subr.bf16.mxu1 %v24882_v3 }
0x3cc6   :  { %v5352_v26 = vpop.f32.mrb[66].mxu1 }
0x3cc7   :  { %v5353_v59 = vadd.f32 %v25524_v0, %v5352_v26  ;;  %v20175_v60 = vpop.f32.mrb[67].mxu1 }
0x3cc9   :  { %v5357_v28 = vmul.f32 %v25890_v58, %v5353_v59  ;;  %v5506_v5 = vadd.f32 %v5353_v59, %v5204_v49 }
0x3ccb   :  { %v5358_v61 = vadd.f32 %v5357_v28, %v25817_v32  ;;  %v5507_v8 = vmul.f32 2.0, %v5506_v5 }
0x3ccd   :  { %20185 = vmatmul.mubr.msk.f32.vlgmr.msra.gmra.mrb[72].mxu0 %vm90_vm1, %v5358_v61  ;;  %v5508_v12 = vadd.f32 %v5507_v8, %v25844_v39 }
0x3cce   :  { %23172 = vmatpush3.bf16.msra.mxu0 %v24992_v11  ;;  %20203 = vmatprep.mubr.msk.f32.mxu0 %vm24883_vm0, %v24884_v6 }
0x3ccf   :  { %23173 = vmatprep.subr.bf16.mxu0 %v24882_v3 }
0x3cd2   :  { %23175 = vmatpush3.bf16.msra.mxu0 %v25013_v14 }
0x3cd3   :  { %23176 = vmatprep.subr.bf16.mxu0 %v24882_v3 }
0x3cd6   :  { %23178 = vmatpush3.bf16.msra.mxu0 %v25023_v17 }
0x3cd7   :  { %23179 = vmatprep.subr.bf16.mxu0 %v24882_v3 }
0x3cda   :  { %23181 = vmatpush3.bf16.msra.mxu0 %v25032_v20 }
0x3cdb   :  { %23200 = vmatprep.subr.bf16.mxu0 %v24882_v3 }
0x3da0   :  { %v5428_v63 = vpop.f32.mrb[72].mxu0 }
0x3da1   :  { %v5429_v1 = vadd.f32 %v25511_v57, %v5428_v63  ;;  %v20186_v2 = vpop.f32.mrb[73].mxu0 }
0x3da3   :  { %24652 = vtanh.f32 %v5429_v1 }
0x3dad   :  { %v24653_v33 = vpop.eup %24652 }
0x3dae   :  { %20204 = vmatmul.mubr.msk.f32.vlgmr.msra.gmra.mrb[74].mxu0 %vm169_vm2, %v24653_v33 }
0x3daf   :  { %23202 = vmatpush3.bf16.msra.mxu0 %v24966_v4  ;;  %20244 = vmatprep.mubr.msk.f32.mxu0 %vm24883_vm0, %v24884_v6 }
0x3db0   :  { %23203 = vmatprep.subr.bf16.mxu0 %v24882_v3 }
0x3db3   :  { %23205 = vmatpush3.bf16.msra.mxu0 %v24990_v10 }
0x3db4   :  { %23206 = vmatprep.subr.bf16.mxu0 %v24882_v3 }
0x3e81   :  { %v5502_v47 = vpop.f32.mrb[74].mxu0 }
0x3e82   :  { %v5503_v9 = vadd.f32 %v25524_v0, %v5502_v47  ;;  %v20205_v13 = vpop.f32.mrb[75].mxu0 }
0x3e84   :  { %v5509_v16 = vadd.f32 %v5508_v12, %v5503_v9 }
0x3e86   :  { %v5511_v53 = vmul.f32 %v25916_v15, %v5509_v16 }
0x3e88   :  { %v25920_v18 = vadd.f32 %v5511_v53, %v25817_v32 }
0x3e8a   :  { %20215 = vmatmul.mubr.msk.f32.vlgmr.msra.gmra.mrb[68].mxu1 %vm90_vm1, %v25920_v18 }
0x3e8b   :  { %23190 = vmatpush3.bf16.msra.mxu1 %v24992_v11  ;;  %20233 = vmatprep.mubr.msk.f32.mxu1 %vm24883_vm0, %v24884_v6 }
0x3e8c   :  { %23191 = vmatprep.subr.bf16.mxu1 %v24882_v3 }
0x3e8f   :  { %23193 = vmatpush3.bf16.msra.mxu1 %v25013_v14 }
0x3e90   :  { %23194 = vmatprep.subr.bf16.mxu1 %v24882_v3 }
0x3e93   :  { %23196 = vmatpush3.bf16.msra.mxu1 %v25023_v17 }
0x3e94   :  { %23197 = vmatprep.subr.bf16.mxu1 %v24882_v3 }
0x3e97   :  { %23199 = vmatpush3.bf16.msra.mxu1 %v25032_v20 }
0x3e98   :  { %23218 = vmatprep.subr.bf16.mxu1 %v24882_v3 }
0x3f5d   :  { %v5582_v19 = vpop.f32.mrb[68].mxu1 }
0x3f5e   :  { %v5583_v22 = vadd.f32 %v25511_v57, %v5582_v19  ;;  %v20216_v23 = vpop.f32.mrb[69].mxu1 }
0x3f60   :  { %24654 = vtanh.f32 %v5583_v22 }
0x3f6a   :  { %v24655_v24 = vpop.eup %24654 }
0x3f6b   :  { %20234 = vmatmul.mubr.msk.f32.vlgmr.msra.gmra.mrb[70].mxu1 %vm169_vm2, %v24655_v24 }
0x3f6c   :  { %23220 = vmatpush3.bf16.msra.mxu1 %v24966_v4  ;;  %20274 = vmatprep.mubr.msk.f32.mxu1 %vm24883_vm0, %v24884_v6 }
0x3f6d   :  { %23221 = vmatprep.subr.bf16.mxu1 %v24882_v3 }
0x3f70   :  { %23223 = vmatpush3.bf16.msra.mxu1 %v24990_v10 }
0x3f71   :  { %23224 = vmatprep.subr.bf16.mxu1 %v24882_v3 }
0x403e   :  { %v5656_v25 = vpop.f32.mrb[70].mxu1 }
0x403f   :  { %v25943_v27 = vadd.f32 %v25524_v0, %v5656_v25  ;;  %v20235_v62 = vpop.f32.mrb[71].mxu1 }
0x4041   :  { %v5660_v29 = vmul.f32 %v25943_v27, %v25841_v38 }
0x4043   :  { %v5661_v30 = vadd.f32 %v5660_v29, %v25920_v18 }
0x4045   :  { %20245 = vmatmul.mubr.msk.f32.vlgmr.msra.gmra.mrb[76].mxu0 %vm90_vm1, %v5661_v30 }
0x4046   :  { %23208 = vmatpush3.bf16.msra.mxu0 %v24992_v11  ;;  %20263 = vmatprep.mubr.msk.f32.mxu0 %vm24883_vm0, %v24884_v6 }
0x4047   :  { %23209 = vmatprep.subr.bf16.mxu0 %v24882_v3 }
0x404a   :  { %23211 = vmatpush3.bf16.msra.mxu0 %v25013_v14 }
0x404b   :  { %23212 = vmatprep.subr.bf16.mxu0 %v24882_v3 }
0x404e   :  { %23214 = vmatpush3.bf16.msra.mxu0 %v25023_v17 }
0x404f   :  { %23215 = vmatprep.subr.bf16.mxu0 %v24882_v3 }
0x4052   :  { %23217 = vmatpush3.bf16.msra.mxu0 %v25032_v20 }
0x4053   :  { %23236 = vmatprep.subr.bf16.mxu0 %v24882_v3 }
0x4118   :  { %v5731_v31 = vpop.f32.mrb[76].mxu0 }
0x4119   :  { %v5732_v32 = vadd.f32 %v25511_v57, %v5731_v31  ;;  %v20246_v7 = vpop.f32.mrb[77].mxu0 }
0x411b   :  { %24656 = vtanh.f32 %v5732_v32 }
0x4125   :  { %v24657_v34 = vpop.eup %24656 }
0x4126   :  { %20264 = vmatmul.mubr.msk.f32.vlgmr.msra.gmra.mrb[78].mxu0 %vm169_vm2, %v24657_v34 }
0x4127   :  { %23238 = vmatpush3.bf16.msra.mxu0 %v24966_v4  ;;  %20304 = vmatprep.mubr.msk.f32.mxu0 %vm24883_vm0, %v24884_v6 }
0x4128   :  { %23239 = vmatprep.subr.bf16.mxu0 %v24882_v3 }
0x412b   :  { %23241 = vmatpush3.bf16.msra.mxu0 %v24990_v10 }
0x412c   :  { %23242 = vmatprep.subr.bf16.mxu0 %v24882_v3 }
0x41f9   :  { %v5805_v35 = vpop.f32.mrb[78].mxu0 }
0x41fa   :  { %v5806_v36 = vadd.f32 %v25524_v0, %v5805_v35  ;;  %v20265_v57 = vpop.f32.mrb[79].mxu0 }
0x41fc   :  { %v5809_v37 = vmul.f32 %v5806_v36, %v25841_v38 }
0x41fe   :  { %v5810_v39 = vadd.f32 %v5809_v37, %v25920_v18 }
0x4200   :  { %20275 = vmatmul.mubr.msk.f32.vlgmr.msra.gmra.mrb[72].mxu1 %vm90_vm1, %v5810_v39 }
0x4201   :  { %23226 = vmatpush3.bf16.msra.mxu1 %v24992_v11  ;;  %20293 = vmatprep.mubr.msk.f32.mxu1 %vm24883_vm0, %v24884_v6 }
0x4202   :  { %23227 = vmatprep.subr.bf16.mxu1 %v24882_v3 }
0x4205   :  { %23229 = vmatpush3.bf16.msra.mxu1 %v25013_v14 }
0x4206   :  { %23230 = vmatprep.subr.bf16.mxu1 %v24882_v3 }
0x4209   :  { %23232 = vmatpush3.bf16.msra.mxu1 %v25023_v17 }
0x420a   :  { %23233 = vmatprep.subr.bf16.mxu1 %v24882_v3 }
0x420d   :  { %23235 = vmatpush3.bf16.msra.mxu1 %v25032_v20 }
0x420e   :  { %23254 = vmatprep.subr.bf16.mxu1 %v24882_v3 }
0x42d3   :  { %v5880_v0 = vpop.f32.mrb[72].mxu1 }
0x42d4   :  { %v5881_v41 = vadd.f32 %v25984_v40, %v5880_v0  ;;  %v20276_v42 = vpop.f32.mrb[73].mxu1 }
0x42d6   :  { %24658 = vtanh.f32 %v5881_v41 }
0x42e0   :  { %v24659_v43 = vpop.eup %24658 }
0x42e1   :  { %20294 = vmatmul.mubr.msk.f32.vlgmr.msra.gmra.mrb[74].mxu1 %vm169_vm2, %v24659_v43 }
0x42e2   :  { %23256 = vmatpush3.bf16.msra.mxu1 %v24966_v4  ;;  %20334 = vmatprep.mubr.msk.f32.mxu1 %vm24883_vm0, %v24884_v6 }
0x42e3   :  { %23257 = vmatprep.subr.bf16.mxu1 %v24882_v3 }
0x42e6   :  { %23259 = vmatpush3.bf16.msra.mxu1 %v24990_v10 }
0x42e7   :  { %23260 = vmatprep.subr.bf16.mxu1 %v24882_v3 }
0x43b4   :  { %v5954_v44 = vpop.f32.mrb[74].mxu1 }
0x43b5   :  { %v5955_v46 = vadd.f32 %v25997_v45, %v5954_v44  ;;  %v20295_v48 = vpop.f32.mrb[75].mxu1 }
0x43b7   :  { %v5958_v49 = vmul.f32 %v5955_v46, %v25890_v58  ;;  %v6107_v55 = vadd.f32 %v5955_v46, %v5806_v36 }
0x43b9   :  { %v5959_v50 = vadd.f32 %v5958_v49, %v25920_v18  ;;  %v6108_v56 = vmul.f32 2.0, %v6107_v55 }
0x43bb   :  { %20305 = vmatmul.mubr.msk.f32.vlgmr.msra.gmra.mrb[80].mxu0 %vm90_vm1, %v5959_v50  ;;  %v6109_v60 = vadd.f32 %v6108_v56, %v25943_v27 }
0x43bc   :  { %23244 = vmatpush3.bf16.msra.mxu0 %v24992_v11  ;;  %20323 = vmatprep.mubr.msk.f32.mxu0 %vm24883_vm0, %v24884_v6 }
0x43bd   :  { %23245 = vmatprep.subr.bf16.mxu0 %v24882_v3 }
0x43c0   :  { %23247 = vmatpush3.bf16.msra.mxu0 %v25013_v14 }
0x43c1   :  { %23248 = vmatprep.subr.bf16.mxu0 %v24882_v3 }
0x43c4   :  { %23250 = vmatpush3.bf16.msra.mxu0 %v25023_v17 }
0x43c5   :  { %23251 = vmatprep.subr.bf16.mxu0 %v24882_v3 }
0x43c8   :  { %23253 = vmatpush3.bf16.msra.mxu0 %v25032_v20 }
0x43c9   :  { %23272 = vmatprep.subr.bf16.mxu0 %v24882_v3 }
0x448e   :  { %v6029_v51 = vpop.f32.mrb[80].mxu0 }
0x448f   :  { %v6030_v52 = vadd.f32 %v25984_v40, %v6029_v51  ;;  %v20306_v21 = vpop.f32.mrb[81].mxu0 }
0x4491   :  { %24660 = vtanh.f32 %v6030_v52 }
0x449b   :  { %v24661_v54 = vpop.eup %24660 }
0x449c   :  { %20324 = vmatmul.mubr.msk.f32.vlgmr.msra.gmra.mrb[82].mxu0 %vm169_vm2, %v24661_v54 }
0x449d   :  { %23274 = vmatpush3.bf16.msra.mxu0 %v24966_v4  ;;  %20364 = vmatprep.mubr.msk.f32.mxu0 %vm24883_vm0, %v24884_v6 }
0x449e   :  { %23275 = vmatprep.subr.bf16.mxu0 %v24882_v3 }
0x44a1   :  { %23277 = vmatpush3.bf16.msra.mxu0 %v24990_v10 }
0x44a2   :  { %23278 = vmatprep.subr.bf16.mxu0 %v24882_v3 }
0x456f   :  { %v6103_v26 = vpop.f32.mrb[82].mxu0 }
0x4570   :  { %v6104_v59 = vadd.f32 %v25997_v45, %v6103_v26  ;;  %v20325_v28 = vpop.f32.mrb[83].mxu0 }
0x4572   :  { %v6110_v61 = vadd.f32 %v6109_v60, %v6104_v59 }
0x4574   :  { %v6111_v63 = vmul.f32 %v6110_v61, %v25916_v15 }
0x4576   :  { %v26025_v1 = vadd.f32 %v6111_v63, %v25920_v18 }
0x4578   :  { %20335 = vmatmul.mubr.msk.f32.vlgmr.msra.gmra.mrb[76].mxu1 %vm90_vm1, %v26025_v1 }
0x4579   :  { %23262 = vmatpush3.bf16.msra.mxu1 %v24992_v11  ;;  %20353 = vmatprep.mubr.msk.f32.mxu1 %vm24883_vm0, %v24884_v6 }
0x457a   :  { %23263 = vmatprep.subr.bf16.mxu1 %v24882_v3 }
0x457d   :  { %23265 = vmatpush3.bf16.msra.mxu1 %v25013_v14 }
0x457e   :  { %23266 = vmatprep.subr.bf16.mxu1 %v24882_v3 }
0x4581   :  { %23268 = vmatpush3.bf16.msra.mxu1 %v25023_v17 }
0x4582   :  { %23269 = vmatprep.subr.bf16.mxu1 %v24882_v3 }
0x4585   :  { %23271 = vmatpush3.bf16.msra.mxu1 %v25032_v20 }
0x4586   :  { %23290 = vmatprep.subr.bf16.mxu1 %v24882_v3 }
0x464b   :  { %v6182_v2 = vpop.f32.mrb[76].mxu1 }
0x464c   :  { %v6183_v33 = vadd.f32 %v25984_v40, %v6182_v2  ;;  %v20336_v5 = vpop.f32.mrb[77].mxu1 }
0x464e   :  { %24662 = vtanh.f32 %v6183_v33 }
0x4658   :  { %v24663_v8 = vpop.eup %24662 }
0x4659   :  { %20354 = vmatmul.mubr.msk.f32.vlgmr.msra.gmra.mrb[78].mxu1 %vm169_vm2, %v24663_v8 }
0x465a   :  { %23292 = vmatpush3.bf16.msra.mxu1 %v24966_v4  ;;  %20394 = vmatprep.mubr.msk.f32.mxu1 %vm24883_vm0, %v24884_v6 }
0x465b   :  { %23293 = vmatprep.subr.bf16.mxu1 %v24882_v3 }
0x465e   :  { %23295 = vmatpush3.bf16.msra.mxu1 %v24990_v10 }
0x465f   :  { %23296 = vmatprep.subr.bf16.mxu1 %v24882_v3 }
0x472c   :  { %v6256_v47 = vpop.f32.mrb[78].mxu1 }
0x472d   :  { %v26048_v9 = vadd.f32 %v25997_v45, %v6256_v47  ;;  %v20355_v12 = vpop.f32.mrb[79].mxu1 }
0x472f   :  { %v6260_v13 = vmul.f32 %v26048_v9, %v25841_v38 }
0x4731   :  { %v6261_v16 = vadd.f32 %v6260_v13, %v26025_v1 }
0x4733   :  { %20365 = vmatmul.mubr.msk.f32.vlgmr.msra.gmra.mrb[84].mxu0 %vm90_vm1, %v6261_v16 }
0x4734   :  { %23280 = vmatpush3.bf16.msra.mxu0 %v24992_v11  ;;  %20383 = vmatprep.mubr.msk.f32.mxu0 %vm24883_vm0, %v24884_v6 }
0x4735   :  { %23281 = vmatprep.subr.bf16.mxu0 %v24882_v3 }
0x4738   :  { %23283 = vmatpush3.bf16.msra.mxu0 %v25013_v14 }
0x4739   :  { %23284 = vmatprep.subr.bf16.mxu0 %v24882_v3 }
0x473c   :  { %23286 = vmatpush3.bf16.msra.mxu0 %v25023_v17 }
0x473d   :  { %23287 = vmatprep.subr.bf16.mxu0 %v24882_v3 }
0x4740   :  { %23289 = vmatpush3.bf16.msra.mxu0 %v25032_v20 }
0x4741   :  { %23308 = vmatprep.subr.bf16.mxu0 %v24882_v3 }
0x4806   :  { %v6331_v53 = vpop.f32.mrb[84].mxu0 }
0x4807   :  { %v6332_v18 = vadd.f32 %v25984_v40, %v6331_v53  ;;  %v20366_v19 = vpop.f32.mrb[85].mxu0 }
0x4809   :  { %24664 = vtanh.f32 %v6332_v18 }
0x4813   :  { %v24665_v22 = vpop.eup %24664 }
0x4814   :  { %20384 = vmatmul.mubr.msk.f32.vlgmr.msra.gmra.mrb[86].mxu0 %vm169_vm2, %v24665_v22 }
0x4815   :  { %23310 = vmatpush3.bf16.msra.mxu0 %v24966_v4  ;;  %20424 = vmatprep.mubr.msk.f32.mxu0 %vm24883_vm0, %v24884_v6 }
0x4816   :  { %23311 = vmatprep.subr.bf16.mxu0 %v24882_v3 }
0x4819   :  { %23313 = vmatpush3.bf16.msra.mxu0 %v24990_v10 }
0x481a   :  { %23314 = vmatprep.subr.bf16.mxu0 %v24882_v3 }
0x48e7   :  { %v6405_v23 = vpop.f32.mrb[86].mxu0 }
0x48e8   :  { %v6406_v24 = vadd.f32 %v25997_v45, %v6405_v23  ;;  %v20385_v25 = vpop.f32.mrb[87].mxu0 }
0x48ea   :  { %v6409_v27 = vmul.f32 %v6406_v24, %v25841_v38 }
0x48ec   :  { %v6410_v62 = vadd.f32 %v6409_v27, %v26025_v1 }
0x48ee   :  { %20395 = vmatmul.mubr.msk.f32.vlgmr.msra.gmra.mrb[80].mxu1 %vm90_vm1, %v6410_v62 }
0x48ef   :  { %23298 = vmatpush3.bf16.msra.mxu1 %v24992_v11  ;;  %20413 = vmatprep.mubr.msk.f32.mxu1 %vm24883_vm0, %v24884_v6 }
0x48f0   :  { %23299 = vmatprep.subr.bf16.mxu1 %v24882_v3 }
0x48f3   :  { %23301 = vmatpush3.bf16.msra.mxu1 %v25013_v14 }
0x48f4   :  { %23302 = vmatprep.subr.bf16.mxu1 %v24882_v3 }
0x48f7   :  { %23304 = vmatpush3.bf16.msra.mxu1 %v25023_v17 }
0x48f8   :  { %23305 = vmatprep.subr.bf16.mxu1 %v24882_v3 }
0x48fb   :  { %23307 = vmatpush3.bf16.msra.mxu1 %v25032_v20 }
0x48fc   :  { %23326 = vmatprep.subr.bf16.mxu1 %v24882_v3 }
0x49c1   :  { %v6480_v29 = vpop.f32.mrb[80].mxu1 }
0x49c2   :  { %v6481_v30 = vadd.f32 %v25984_v40, %v6480_v29  ;;  %v20396_v31 = vpop.f32.mrb[81].mxu1 }
0x49c4   :  { %24666 = vtanh.f32 %v6481_v30 }
0x49ce   :  { %v24667_v32 = vpop.eup %24666 }
0x49cf   :  { %20414 = vmatmul.mubr.msk.f32.vlgmr.msra.gmra.mrb[82].mxu1 %vm169_vm2, %v24667_v32 }
0x49d0   :  { %23328 = vmatpush3.bf16.msra.mxu1 %v24966_v4  ;;  %20454 = vmatprep.mubr.msk.f32.mxu1 %vm24883_vm0, %v24884_v6 }
0x49d1   :  { %23329 = vmatprep.subr.bf16.mxu1 %v24882_v3 }
0x49d4   :  { %23331 = vmatpush3.bf16.msra.mxu1 %v24990_v10 }
0x49d5   :  { %23332 = vmatprep.subr.bf16.mxu1 %v24882_v3 }
0x4aa2   :  { %v6554_v7 = vpop.f32.mrb[82].mxu1 }
0x4aa3   :  { %v6555_v34 = vadd.f32 %v25997_v45, %v6554_v7  ;;  %v20415_v35 = vpop.f32.mrb[83].mxu1 }
0x4aa5   :  { %v6558_v36 = vmul.f32 %v6555_v34, %v25890_v58  ;;  %v6707_v42 = vadd.f32 %v6555_v34, %v6406_v24 }
0x4aa7   :  { %v6559_v57 = vadd.f32 %v6558_v36, %v26025_v1  ;;  %v6708_v43 = vmul.f32 2.0, %v6707_v42  ;;  %v26239_v42 = vstv %s17373_s29 }
0x4aa9   :  { %20425 = vmatmul.mubr.msk.f32.vlgmr.msra.gmra.mrb[88].mxu0 %vm90_vm1, %v6559_v57  ;;  %v6709_v48 = vadd.f32 %v6708_v43, %v26048_v9 }
0x4aaa   :  { %23316 = vmatpush3.bf16.msra.mxu0 %v24992_v11  ;;  %20443 = vmatprep.mubr.msk.f32.mxu0 %vm24883_vm0, %v24884_v6 }
0x4aab   :  { %23317 = vmatprep.subr.bf16.mxu0 %v24882_v3 }
0x4aae   :  { %23319 = vmatpush3.bf16.msra.mxu0 %v25013_v14 }
0x4aaf   :  { %23320 = vmatprep.subr.bf16.mxu0 %v24882_v3 }
0x4ab2   :  { %23322 = vmatpush3.bf16.msra.mxu0 %v25023_v17 }
0x4ab3   :  { %23323 = vmatprep.subr.bf16.mxu0 %v24882_v3 }
0x4ab6   :  { %23325 = vmatpush3.bf16.msra.mxu0 %v25032_v20 }
0x4ab7   :  { %23344 = vmatprep.subr.bf16.mxu0 %v24882_v3 }
0x4b7c   :  { %v6629_v37 = vpop.f32.mrb[88].mxu0 }
0x4b7d   :  { %v6630_v39 = vadd.f32 %v25984_v40, %v6629_v37  ;;  %v20426_v0 = vpop.f32.mrb[89].mxu0 }
0x4b7f   :  { %24668 = vtanh.f32 %v6630_v39 }
0x4b89   :  { %v24669_v41 = vpop.eup %24668 }
0x4b8a   :  { %20444 = vmatmul.mubr.msk.f32.vlgmr.msra.gmra.mrb[90].mxu0 %vm169_vm2, %v24669_v41 }
0x4b8b   :  { %23346 = vmatpush3.bf16.msra.mxu0 %v24966_v4  ;;  %20484 = vmatprep.mubr.msk.f32.mxu0 %vm24883_vm0, %v24884_v6 }
0x4b8c   :  { %23347 = vmatprep.subr.bf16.mxu0 %v24882_v3 }
0x4b8f   :  { %23349 = vmatpush3.bf16.msra.mxu0 %v24990_v10 }
0x4b90   :  { %23350 = vmatprep.subr.bf16.mxu0 %v24882_v3 }
0x4c5d   :  { %v6703_v44 = vpop.f32.mrb[90].mxu0 }
0x4c5e   :  { %v6704_v46 = vadd.f32 %v25997_v45, %v6703_v44  ;;  %v20445_v49 = vpop.f32.mrb[91].mxu0 }
0x4c60   :  { %v6710_v50 = vadd.f32 %v6709_v48, %v6704_v46 }
0x4c62   :  { %v6711_v51 = vmul.f32 %v6710_v50, %v25916_v15 }
0x4c64   :  { %v26120_v52 = vadd.f32 %v6711_v51, %v26025_v1 }
0x4c66   :  { %20455 = vmatmul.mubr.msk.f32.vlgmr.msra.gmra.mrb[84].mxu1 %vm90_vm1, %v26120_v52 }
0x4c67   :  { %23334 = vmatpush3.bf16.msra.mxu1 %v24992_v11  ;;  %20473 = vmatprep.mubr.msk.f32.mxu1 %vm24883_vm0, %v24884_v6 }
0x4c68   :  { %23335 = vmatprep.subr.bf16.mxu1 %v24882_v3 }
0x4c6b   :  { %23337 = vmatpush3.bf16.msra.mxu1 %v25013_v14 }
0x4c6c   :  { %23338 = vmatprep.subr.bf16.mxu1 %v24882_v3 }
0x4c6f   :  { %23340 = vmatpush3.bf16.msra.mxu1 %v25023_v17 }
0x4c70   :  { %23341 = vmatprep.subr.bf16.mxu1 %v24882_v3 }
0x4c73   :  { %23343 = vmatpush3.bf16.msra.mxu1 %v25032_v20 }
0x4c74   :  { %23362 = vmatprep.subr.bf16.mxu1 %v24882_v3 }
0x4d39   :  { %v6782_v21 = vpop.f32.mrb[84].mxu1 }
0x4d3a   :  { %v6783_v54 = vadd.f32 %v25984_v40, %v6782_v21  ;;  %v20456_v55 = vpop.f32.mrb[85].mxu1 }
0x4d3c   :  { %24670 = vtanh.f32 %v6783_v54 }
0x4d46   :  { %v24671_v56 = vpop.eup %24670 }
0x4d47   :  { %20474 = vmatmul.mubr.msk.f32.vlgmr.msra.gmra.mrb[86].mxu1 %vm169_vm2, %v24671_v56 }
0x4d48   :  { %23364 = vmatpush3.bf16.msra.mxu1 %v24966_v4  ;;  %20514 = vmatprep.mubr.msk.f32.mxu1 %vm24883_vm0, %v24884_v6 }
0x4d49   :  { %23365 = vmatprep.subr.bf16.mxu1 %v24882_v3 }
0x4d4c   :  { %23367 = vmatpush3.bf16.msra.mxu1 %v24990_v10 }
0x4d4d   :  { %23368 = vmatprep.subr.bf16.mxu1 %v24882_v3 }
0x4e1a   :  { %v6856_v26 = vpop.f32.mrb[86].mxu1 }
0x4e1b   :  { %v26143_v59 = vadd.f32 %v25997_v45, %v6856_v26  ;;  %v20475_v60 = vpop.f32.mrb[87].mxu1 }
0x4e1d   :  { %v6860_v28 = vmul.f32 %v26143_v59, %v25841_v38 }
0x4e1f   :  { %v6861_v61 = vadd.f32 %v6860_v28, %v26120_v52 }
0x4e21   :  { %20485 = vmatmul.mubr.msk.f32.vlgmr.msra.gmra.mrb[92].mxu0 %vm90_vm1, %v6861_v61 }
0x4e22   :  { %23352 = vmatpush3.bf16.msra.mxu0 %v24992_v11  ;;  %20503 = vmatprep.mubr.msk.f32.mxu0 %vm24883_vm0, %v24884_v6 }
0x4e23   :  { %23353 = vmatprep.subr.bf16.mxu0 %v24882_v3 }
0x4e26   :  { %23355 = vmatpush3.bf16.msra.mxu0 %v25013_v14 }
0x4e27   :  { %23356 = vmatprep.subr.bf16.mxu0 %v24882_v3 }
0x4e2a   :  { %23358 = vmatpush3.bf16.msra.mxu0 %v25023_v17 }
0x4e2b   :  { %23359 = vmatprep.subr.bf16.mxu0 %v24882_v3 }
0x4e2e   :  { %23361 = vmatpush3.bf16.msra.mxu0 %v25032_v20 }
0x4e2f   :  { %23380 = vmatprep.subr.bf16.mxu0 %v24882_v3 }
0x4ef4   :  { %v6931_v63 = vpop.f32.mrb[92].mxu0 }
0x4ef5   :  { %v6932_v1 = vadd.f32 %v25984_v40, %v6931_v63  ;;  %v20486_v2 = vpop.f32.mrb[93].mxu0 }
0x4ef7   :  { %24672 = vtanh.f32 %v6932_v1  ;;  %v26288_v1 = vstv %s17372_s30 }
0x4f01   :  { %v24673_v33 = vpop.eup %24672 }
0x4f02   :  { %20504 = vmatmul.mubr.msk.f32.vlgmr.msra.gmra.mrb[94].mxu0 %vm169_vm2, %v24673_v33 }
0x4f03   :  { %23382 = vmatpush3.bf16.msra.mxu0 %v24966_v4  ;;  %20544 = vmatprep.mubr.msk.f32.mxu0 %vm24883_vm0, %v24884_v6 }
0x4f04   :  { %23383 = vmatprep.subr.bf16.mxu0 %v24882_v3 }
0x4f07   :  { %23385 = vmatpush3.bf16.msra.mxu0 %v24990_v10 }
0x4f08   :  { %23386 = vmatprep.subr.bf16.mxu0 %v24882_v3 }
0x4fd5   :  { %v7005_v5 = vpop.f32.mrb[94].mxu0 }
0x4fd6   :  { %v7006_v8 = vadd.f32 %v25997_v45, %v7005_v5  ;;  %v20505_v47 = vpop.f32.mrb[95].mxu0 }
0x4fd8   :  { %v7009_v9 = vmul.f32 %v7006_v8, %v25841_v38 }
0x4fda   :  { %v7010_v12 = vadd.f32 %v7009_v9, %v26120_v52 }
0x4fdc   :  { %20515 = vmatmul.mubr.msk.f32.vlgmr.msra.gmra.mrb[88].mxu1 %vm90_vm1, %v7010_v12 }
0x4fdd   :  { %23370 = vmatpush3.bf16.msra.mxu1 %v24992_v11  ;;  %20533 = vmatprep.mubr.msk.f32.mxu1 %vm24883_vm0, %v24884_v6 }
0x4fde   :  { %23371 = vmatprep.subr.bf16.mxu1 %v24882_v3 }
0x4fe1   :  { %23373 = vmatpush3.bf16.msra.mxu1 %v25013_v14 }
0x4fe2   :  { %23374 = vmatprep.subr.bf16.mxu1 %v24882_v3 }
0x4fe5   :  { %23376 = vmatpush3.bf16.msra.mxu1 %v25023_v17 }
0x4fe6   :  { %23377 = vmatprep.subr.bf16.mxu1 %v24882_v3 }
0x4fe9   :  { %23379 = vmatpush3.bf16.msra.mxu1 %v25032_v20 }
0x4fea   :  { %23398 = vmatprep.subr.bf16.mxu1 %v24882_v3 }
0x50af   :  { %v7080_v38 = vpop.f32.mrb[88].mxu1 }
0x50b0   :  { %v7081_v13 = vadd.f32 %v25984_v40, %v7080_v38  ;;  %v20516_v16 = vpop.f32.mrb[89].mxu1 }
0x50b2   :  { %24674 = vtanh.f32 %v7081_v13 }
0x50bc   :  { %v24675_v53 = vpop.eup %24674 }
0x50bd   :  { %20534 = vmatmul.mubr.msk.f32.vlgmr.msra.gmra.mrb[90].mxu1 %vm169_vm2, %v24675_v53 }
0x50be   :  { %23400 = vmatpush3.bf16.msra.mxu1 %v24966_v4  ;;  %20574 = vmatprep.mubr.msk.f32.mxu1 %vm24883_vm0, %v24884_v6 }
0x50bf   :  { %23401 = vmatprep.subr.bf16.mxu1 %v24882_v3 }
0x50c2   :  { %23403 = vmatpush3.bf16.msra.mxu1 %v24990_v10 }
0x50c3   :  { %23404 = vmatprep.subr.bf16.mxu1 %v24882_v3 }
0x5190   :  { %v7154_v18 = vpop.f32.mrb[90].mxu1 }
0x5191   :  { %v7155_v19 = vadd.f32 %v25997_v45, %v7154_v18  ;;  %v20535_v22 = vpop.f32.mrb[91].mxu1 }
0x5193   :  { %v7158_v23 = vmul.f32 %v7155_v19, %v25890_v58  ;;  %v7307_v29 = vadd.f32 %v7155_v19, %v7006_v8 }
0x5195   :  { %v7159_v24 = vadd.f32 %v7158_v23, %v26120_v52  ;;  %v7308_v30 = vmul.f32 2.0, %v7307_v29  ;;  %v26314_v23 = vstv %s17374_s11 }
0x5197   :  { %20545 = vmatmul.mubr.msk.f32.vlgmr.msra.gmra.mrb[96].mxu0 %vm90_vm1, %v7159_v24  ;;  %v7309_v7 = vadd.f32 %v7308_v30, %v26143_v59 }
0x5198   :  { %23388 = vmatpush3.bf16.msra.mxu0 %v24992_v11  ;;  %20563 = vmatprep.mubr.msk.f32.mxu0 %vm24883_vm0, %v24884_v6 }
0x5199   :  { %23389 = vmatprep.subr.bf16.mxu0 %v24882_v3 }
0x519c   :  { %23391 = vmatpush3.bf16.msra.mxu0 %v25013_v14 }
0x519d   :  { %23392 = vmatprep.subr.bf16.mxu0 %v24882_v3 }
0x51a0   :  { %23394 = vmatpush3.bf16.msra.mxu0 %v25023_v17 }
0x51a1   :  { %23395 = vmatprep.subr.bf16.mxu0 %v24882_v3 }
0x51a4   :  { %23397 = vmatpush3.bf16.msra.mxu0 %v25032_v20 }
0x51a5   :  { %23416 = vmatprep.subr.bf16.mxu0 %v24882_v3 }
0x526a   :  { %v7229_v58 = vpop.f32.mrb[96].mxu0 }
0x526b   :  { %v7230_v25 = vadd.f32 %v25984_v40, %v7229_v58  ;;  %v20546_v27 = vpop.f32.mrb[97].mxu0 }
0x526d   :  { %24676 = vtanh.f32 %v7230_v25 }
0x5277   :  { %v24677_v62 = vpop.eup %24676 }
0x5278   :  { %20564 = vmatmul.mubr.msk.f32.vlgmr.msra.gmra.mrb[98].mxu0 %vm169_vm2, %v24677_v62 }
0x5279   :  { %23418 = vmatpush3.bf16.msra.mxu0 %v24966_v4  ;;  %20604 = vmatprep.mubr.msk.f32.mxu0 %vm24883_vm0, %v24884_v6 }
0x527a   :  { %23419 = vmatprep.subr.bf16.mxu0 %v24882_v3 }
0x527d   :  { %23421 = vmatpush3.bf16.msra.mxu0 %v24990_v10 }
0x527e   :  { %23422 = vmatprep.subr.bf16.mxu0 %v24882_v3 }
0x534b   :  { %v7303_v31 = vpop.f32.mrb[98].mxu0 }
0x534c   :  { %v7304_v32 = vadd.f32 %v25997_v45, %v7303_v31  ;;  %v20565_v34 = vpop.f32.mrb[99].mxu0 }
0x534e   :  { %v7310_v35 = vadd.f32 %v7309_v7, %v7304_v32 }
0x5350   :  { %v7311_v36 = vmul.f32 %v7310_v35, %v25916_v15 }
0x5352   :  { %v26215_v57 = vadd.f32 %v7311_v36, %v26120_v52 }
0x5354   :  { %7313 = vst.msk [vmem:[#allocation2 + $0x18] sm:$0xff] %vm90_vm1, %v26215_v57  ;;  %20575 = vmatmul.mubr.msk.f32.vlgmr.msra.gmra.mrb[92].mxu1 %vm90_vm1, %v26215_v57 }
0x5355   :  { %23406 = vmatpush3.bf16.msra.mxu1 %v24992_v11  ;;  %20593 = vmatprep.mubr.msk.f32.mxu1 %vm24883_vm0, %v24884_v6 }
0x5356   :  { %23407 = vmatprep.subr.bf16.mxu1 %v24882_v3 }
0x5359   :  { %23409 = vmatpush3.bf16.msra.mxu1 %v25013_v14 }
0x535a   :  { %23410 = vmatprep.subr.bf16.mxu1 %v24882_v3 }
0x535d   :  { %23412 = vmatpush3.bf16.msra.mxu1 %v25023_v17 }
0x535e   :  { %23413 = vmatprep.subr.bf16.mxu1 %v24882_v3 }
0x5361   :  { %23415 = vmatpush3.bf16.msra.mxu1 %v25032_v20 }
0x5362   :  { %23434 = vmatprep.subr.bf16.mxu1 %v24882_v3 }
0x5427   :  { %v7386_v15 = vpop.f32.mrb[92].mxu1 }
0x5428   :  { %v7387_v37 = vadd.f32 %v25984_v40, %v7386_v15  ;;  %v20576_v39 = vpop.f32.mrb[93].mxu1 }
0x542a   :  { %24678 = vtanh.f32 %v7387_v37 }
0x5434   :  { %v24679_v0 = vpop.eup %24678 }
0x5435   :  { %20594 = vmatmul.mubr.msk.f32.vlgmr.msra.gmra.mrb[94].mxu1 %vm169_vm2, %v24679_v0 }
0x5436   :  { %23436 = vmatpush3.bf16.msra.mxu1 %v24966_v4  ;;  %20634 = vmatprep.mubr.msk.f32.mxu1 %vm24883_vm0, %v24884_v6 }
0x5437   :  { %23437 = vmatprep.subr.bf16.mxu1 %v24882_v3 }
0x543a   :  { %23439 = vmatpush3.bf16.msra.mxu1 %v24990_v10 }
0x543b   :  { %23440 = vmatprep.subr.bf16.mxu1 %v24882_v3 }
0x5508   :  { %v7460_v41 = vpop.f32.mrb[94].mxu1 }
0x5509   :  { %v26242_v43 = vadd.f32 %v25997_v45, %v7460_v41  ;;  %v20595_v44 = vpop.f32.mrb[95].mxu1 }
0x550b   :  { %v7465_v46 = vmul.f32 %v26239_v42, %v26242_v43 }
0x550d   :  { %v7466_v48 = vadd.f32 %v7465_v46, %v26215_v57 }
0x550f   :  { %20605 = vmatmul.mubr.msk.f32.vlgmr.msra.gmra.mrb[100].mxu0 %vm90_vm1, %v7466_v48 }
0x5510   :  { %23424 = vmatpush3.bf16.msra.mxu0 %v24992_v11  ;;  %20623 = vmatprep.mubr.msk.f32.mxu0 %vm24883_vm0, %v24884_v6 }
0x5511   :  { %23425 = vmatprep.subr.bf16.mxu0 %v24882_v3 }
0x5514   :  { %23427 = vmatpush3.bf16.msra.mxu0 %v25013_v14 }
0x5515   :  { %23428 = vmatprep.subr.bf16.mxu0 %v24882_v3 }
0x5518   :  { %23430 = vmatpush3.bf16.msra.mxu0 %v25023_v17 }
0x5519   :  { %23431 = vmatprep.subr.bf16.mxu0 %v24882_v3 }
0x551c   :  { %23433 = vmatpush3.bf16.msra.mxu0 %v25032_v20 }
0x551d   :  { %23452 = vmatprep.subr.bf16.mxu0 %v24882_v3 }
0x55e2   :  { %v7536_v49 = vpop.f32.mrb[100].mxu0 }
0x55e3   :  { %v7537_v50 = vadd.f32 %v25984_v40, %v7536_v49  ;;  %v20606_v51 = vpop.f32.mrb[101].mxu0 }
0x55e5   :  { %24680 = vtanh.f32 %v7537_v50 }
0x55ef   :  { %v24681_v52 = vpop.eup %24680 }
0x55f0   :  { %20624 = vmatmul.mubr.msk.f32.vlgmr.msra.gmra.mrb[102].mxu0 %vm169_vm2, %v24681_v52 }
0x55f1   :  { %23454 = vmatpush3.bf16.msra.mxu0 %v24966_v4  ;;  %20664 = vmatprep.mubr.msk.f32.mxu0 %vm24883_vm0, %v24884_v6 }
0x55f2   :  { %23455 = vmatprep.subr.bf16.mxu0 %v24882_v3 }
0x55f5   :  { %23457 = vmatpush3.bf16.msra.mxu0 %v24990_v10 }
0x55f6   :  { %23458 = vmatprep.subr.bf16.mxu0 %v24882_v3 }
0x56c3   :  { %v7610_v21 = vpop.f32.mrb[102].mxu0 }
0x56c4   :  { %v7611_v54 = vadd.f32 %v25997_v45, %v7610_v21  ;;  %v20625_v55 = vpop.f32.mrb[103].mxu0 }
0x56c6   :  { %v7614_v56 = vmul.f32 %v7611_v54, %v26239_v42 }
0x56c8   :  { %v7615_v26 = vadd.f32 %v7614_v56, %v26215_v57 }
0x56ca   :  { %20635 = vmatmul.mubr.msk.f32.vlgmr.msra.gmra.mrb[96].mxu1 %vm90_vm1, %v7615_v26 }
0x56cb   :  { %23442 = vmatpush3.bf16.msra.mxu1 %v24992_v11  ;;  %20653 = vmatprep.mubr.msk.f32.mxu1 %vm24883_vm0, %v24884_v6 }
0x56cc   :  { %23443 = vmatprep.subr.bf16.mxu1 %v24882_v3 }
0x56cf   :  { %23445 = vmatpush3.bf16.msra.mxu1 %v25013_v14 }
0x56d0   :  { %23446 = vmatprep.subr.bf16.mxu1 %v24882_v3 }
0x56d3   :  { %23448 = vmatpush3.bf16.msra.mxu1 %v25023_v17 }
0x56d4   :  { %23449 = vmatprep.subr.bf16.mxu1 %v24882_v3 }
0x56d7   :  { %23451 = vmatpush3.bf16.msra.mxu1 %v25032_v20 }
0x56d8   :  { %23470 = vmatprep.subr.bf16.mxu1 %v24882_v3 }
0x579d   :  { %v7685_v59 = vpop.f32.mrb[96].mxu1 }
0x579e   :  { %v7686_v60 = vadd.f32 %v25984_v40, %v7685_v59  ;;  %v20636_v28 = vpop.f32.mrb[97].mxu1 }
0x57a0   :  { %24682 = vtanh.f32 %v7686_v60 }
0x57aa   :  { %v24683_v61 = vpop.eup %24682 }
0x57ab   :  { %20654 = vmatmul.mubr.msk.f32.vlgmr.msra.gmra.mrb[98].mxu1 %vm169_vm2, %v24683_v61 }
0x57ac   :  { %23472 = vmatpush3.bf16.msra.mxu1 %v24966_v4  ;;  %20694 = vmatprep.mubr.msk.f32.mxu1 %vm24883_vm0, %v24884_v6 }
0x57ad   :  { %23473 = vmatprep.subr.bf16.mxu1 %v24882_v3 }
0x57b0   :  { %23475 = vmatpush3.bf16.msra.mxu1 %v24990_v10 }
0x57b1   :  { %23476 = vmatprep.subr.bf16.mxu1 %v24882_v3 }
0x587e   :  { %v7759_v63 = vpop.f32.mrb[98].mxu1 }
0x587f   :  { %v7760_v2 = vadd.f32 %v25997_v45, %v7759_v63  ;;  %v20655_v33 = vpop.f32.mrb[99].mxu1 }
0x5881   :  { %v7764_v5 = vmul.f32 %v26288_v1, %v7760_v2  ;;  %v7913_v13 = vadd.f32 %v7760_v2, %v7611_v54 }
0x5883   :  { %v7765_v8 = vadd.f32 %v7764_v5, %v26215_v57  ;;  %v7914_v16 = vmul.f32 2.0, %v7913_v13 }
0x5885   :  { %20665 = vmatmul.mubr.msk.f32.vlgmr.msra.gmra.mrb[104].mxu0 %vm90_vm1, %v7765_v8  ;;  %v7915_v19 = vadd.f32 %v7914_v16, %v26242_v43 }
0x5886   :  { %23460 = vmatpush3.bf16.msra.mxu0 %v24992_v11  ;;  %20683 = vmatprep.mubr.msk.f32.mxu0 %vm24883_vm0, %v24884_v6 }
0x5887   :  { %23461 = vmatprep.subr.bf16.mxu0 %v24882_v3 }
0x588a   :  { %23463 = vmatpush3.bf16.msra.mxu0 %v25013_v14 }
0x588b   :  { %23464 = vmatprep.subr.bf16.mxu0 %v24882_v3 }
0x588e   :  { %23466 = vmatpush3.bf16.msra.mxu0 %v25023_v17 }
0x588f   :  { %23467 = vmatprep.subr.bf16.mxu0 %v24882_v3 }
0x5892   :  { %23469 = vmatpush3.bf16.msra.mxu0 %v25032_v20 }
0x5893   :  { %23488 = vmatprep.subr.bf16.mxu0 %v24882_v3 }
0x5958   :  { %v7835_v47 = vpop.f32.mrb[104].mxu0 }
0x5959   :  { %v7836_v9 = vadd.f32 %v25984_v40, %v7835_v47  ;;  %v20666_v12 = vpop.f32.mrb[105].mxu0 }
0x595b   :  { %24684 = vtanh.f32 %v7836_v9 }
0x5965   :  { %v24685_v38 = vpop.eup %24684 }
0x5966   :  { %20684 = vmatmul.mubr.msk.f32.vlgmr.msra.gmra.mrb[106].mxu0 %vm169_vm2, %v24685_v38 }
0x5967   :  { %23490 = vmatpush3.bf16.msra.mxu0 %v24966_v4  ;;  %20724 = vmatprep.mubr.msk.f32.mxu0 %vm24883_vm0, %v24884_v6 }
0x5968   :  { %23491 = vmatprep.subr.bf16.mxu0 %v24882_v3 }
0x596b   :  { %23493 = vmatpush3.bf16.msra.mxu0 %v24990_v10 }
0x596c   :  { %23494 = vmatprep.subr.bf16.mxu0 %v24882_v3 }
0x5a39   :  { %v7909_v53 = vpop.f32.mrb[106].mxu0 }
0x5a3a   :  { %v7910_v18 = vadd.f32 %v25997_v45, %v7909_v53  ;;  %v20685_v22 = vpop.f32.mrb[107].mxu0 }
0x5a3c   :  { %v7916_v24 = vadd.f32 %v7915_v19, %v7910_v18 }
0x5a3e   :  { %v7918_v58 = vmul.f32 %v26314_v23, %v7916_v24  ;;  %v26455_v24 = vld [vmem:[%s27849_s3] ss:$0 sm:$0xff] }
0x5a40   :  { %v26318_v25 = vadd.f32 %v7918_v58, %v26215_v57 }
0x5a42   :  { %20695 = vmatmul.mubr.msk.f32.vlgmr.msra.gmra.mrb[100].mxu1 %vm90_vm1, %v26318_v25 }
0x5a43   :  { %23478 = vmatpush3.bf16.msra.mxu1 %v24992_v11  ;;  %20713 = vmatprep.mubr.msk.f32.mxu1 %vm24883_vm0, %v24884_v6 }
0x5a44   :  { %23479 = vmatprep.subr.bf16.mxu1 %v24882_v3 }
0x5a47   :  { %23481 = vmatpush3.bf16.msra.mxu1 %v25013_v14 }
0x5a48   :  { %23482 = vmatprep.subr.bf16.mxu1 %v24882_v3 }
0x5a4b   :  { %23484 = vmatpush3.bf16.msra.mxu1 %v25023_v17 }
0x5a4c   :  { %23485 = vmatprep.subr.bf16.mxu1 %v24882_v3 }
0x5a4f   :  { %23487 = vmatpush3.bf16.msra.mxu1 %v25032_v20 }
0x5a50   :  { %23506 = vmatprep.subr.bf16.mxu1 %v24882_v3 }
0x5b15   :  { %v7989_v27 = vpop.f32.mrb[100].mxu1 }
0x5b16   :  { %v7990_v62 = vadd.f32 %v25984_v40, %v7989_v27  ;;  %v20696_v29 = vpop.f32.mrb[101].mxu1 }
0x5b17   :  { %v26468_v29 = vld [vmem:[%s27851_s5] ss:$0 sm:$0xff] }
0x5b18   :  { %24686 = vtanh.f32 %v7990_v62 }
0x5b22   :  { %v24687_v30 = vpop.eup %24686 }
0x5b23   :  { %20714 = vmatmul.mubr.msk.f32.vlgmr.msra.gmra.mrb[102].mxu1 %vm169_vm2, %v24687_v30 }
0x5b24   :  { %23508 = vmatpush3.bf16.msra.mxu1 %v24966_v4  ;;  %20754 = vmatprep.mubr.msk.f32.mxu1 %vm24883_vm0, %v24884_v6 }
0x5b25   :  { %23509 = vmatprep.subr.bf16.mxu1 %v24882_v3 }
0x5b28   :  { %23511 = vmatpush3.bf16.msra.mxu1 %v24990_v10 }
0x5b29   :  { %23512 = vmatprep.subr.bf16.mxu1 %v24882_v3 }
0x5bf6   :  { %v8063_v31 = vpop.f32.mrb[102].mxu1 }
0x5bf7   :  { %v26341_v32 = vadd.f32 %v25997_v45, %v8063_v31  ;;  %v20715_v7 = vpop.f32.mrb[103].mxu1 }
0x5bf9   :  { %v8067_v34 = vmul.f32 %v26341_v32, %v26239_v42 }
0x5bfb   :  { %v8068_v35 = vadd.f32 %v8067_v34, %v26318_v25 }
0x5bfd   :  { %20725 = vmatmul.mubr.msk.f32.vlgmr.msra.gmra.mrb[108].mxu0 %vm90_vm1, %v8068_v35 }
0x5bfe   :  { %23496 = vmatpush3.bf16.msra.mxu0 %v24992_v11  ;;  %20743 = vmatprep.mubr.msk.f32.mxu0 %vm24883_vm0, %v24884_v6 }
0x5bff   :  { %23497 = vmatprep.subr.bf16.mxu0 %v24882_v3 }
0x5c02   :  { %23499 = vmatpush3.bf16.msra.mxu0 %v25013_v14 }
0x5c03   :  { %23500 = vmatprep.subr.bf16.mxu0 %v24882_v3 }
0x5c06   :  { %23502 = vmatpush3.bf16.msra.mxu0 %v25023_v17 }
0x5c07   :  { %23503 = vmatprep.subr.bf16.mxu0 %v24882_v3 }
0x5c0a   :  { %23505 = vmatpush3.bf16.msra.mxu0 %v25032_v20 }
0x5c0b   :  { %23524 = vmatprep.subr.bf16.mxu0 %v24882_v3 }
0x5cd0   :  { %v8138_v36 = vpop.f32.mrb[108].mxu0 }
0x5cd1   :  { %v8139_v57 = vadd.f32 %v25984_v40, %v8138_v36  ;;  %v20726_v15 = vpop.f32.mrb[109].mxu0 }
0x5cd3   :  { %24688 = vtanh.f32 %v8139_v57 }
0x5cdd   :  { %v24689_v37 = vpop.eup %24688 }
0x5cde   :  { %20744 = vmatmul.mubr.msk.f32.vlgmr.msra.gmra.mrb[110].mxu0 %vm169_vm2, %v24689_v37 }
0x5cdf   :  { %23526 = vmatpush3.bf16.msra.mxu0 %v24966_v4  ;;  %20784 = vmatprep.mubr.msk.f32.mxu0 %vm24883_vm0, %v24884_v6 }
0x5ce0   :  { %23527 = vmatprep.subr.bf16.mxu0 %v24882_v3 }
0x5ce3   :  { %23529 = vmatpush3.bf16.msra.mxu0 %v24990_v10 }
0x5ce4   :  { %23530 = vmatprep.subr.bf16.mxu0 %v24882_v3 }
0x5db1   :  { %v8212_v39 = vpop.f32.mrb[110].mxu0 }
0x5db2   :  { %v8213_v0 = vadd.f32 %v25997_v45, %v8212_v39  ;;  %v20745_v41 = vpop.f32.mrb[111].mxu0 }
0x5db4   :  { %v8216_v43 = vmul.f32 %v8213_v0, %v26239_v42 }
0x5db6   :  { %v8217_v44 = vadd.f32 %v8216_v43, %v26318_v25 }
0x5db8   :  { %20755 = vmatmul.mubr.msk.f32.vlgmr.msra.gmra.mrb[104].mxu1 %vm90_vm1, %v8217_v44 }
0x5db9   :  { %23514 = vmatpush3.bf16.msra.mxu1 %v24992_v11  ;;  %20773 = vmatprep.mubr.msk.f32.mxu1 %vm24883_vm0, %v24884_v6 }
0x5dba   :  { %23515 = vmatprep.subr.bf16.mxu1 %v24882_v3 }
0x5dbd   :  { %23517 = vmatpush3.bf16.msra.mxu1 %v25013_v14 }
0x5dbe   :  { %23518 = vmatprep.subr.bf16.mxu1 %v24882_v3 }
0x5dc1   :  { %23520 = vmatpush3.bf16.msra.mxu1 %v25023_v17 }
0x5dc2   :  { %23521 = vmatprep.subr.bf16.mxu1 %v24882_v3 }
0x5dc5   :  { %23523 = vmatpush3.bf16.msra.mxu1 %v25032_v20 }
0x5dc6   :  { %23542 = vmatprep.subr.bf16.mxu1 %v24882_v3 }
0x5e8b   :  { %v8287_v46 = vpop.f32.mrb[104].mxu1 }
0x5e8c   :  { %v8288_v48 = vadd.f32 %v25984_v40, %v8287_v46  ;;  %v20756_v49 = vpop.f32.mrb[105].mxu1 }
0x5e8e   :  { %24690 = vtanh.f32 %v8288_v48 }
0x5e98   :  { %v24691_v50 = vpop.eup %24690 }
0x5e99   :  { %20774 = vmatmul.mubr.msk.f32.vlgmr.msra.gmra.mrb[106].mxu1 %vm169_vm2, %v24691_v50 }
0x5e9a   :  { %23544 = vmatpush3.bf16.msra.mxu1 %v24966_v4  ;;  %20814 = vmatprep.mubr.msk.f32.mxu1 %vm24883_vm0, %v24884_v6 }
0x5e9b   :  { %23545 = vmatprep.subr.bf16.mxu1 %v24882_v3 }
0x5e9e   :  { %23547 = vmatpush3.bf16.msra.mxu1 %v24990_v10 }
0x5e9f   :  { %23548 = vmatprep.subr.bf16.mxu1 %v24882_v3 }
0x5f6c   :  { %v8361_v51 = vpop.f32.mrb[106].mxu1 }
0x5f6d   :  { %v8362_v52 = vadd.f32 %v25997_v45, %v8361_v51  ;;  %v20775_v21 = vpop.f32.mrb[107].mxu1 }
0x5f6f   :  { %v8365_v54 = vmul.f32 %v8362_v52, %v26288_v1  ;;  %v8514_v28 = vadd.f32 %v8362_v52, %v8213_v0 }
0x5f71   :  { %v8366_v55 = vadd.f32 %v8365_v54, %v26318_v25  ;;  %v8515_v61 = vmul.f32 2.0, %v8514_v28 }
0x5f73   :  { %20785 = vmatmul.mubr.msk.f32.vlgmr.msra.gmra.mrb[112].mxu0 %vm90_vm1, %v8366_v55  ;;  %v8516_v33 = vadd.f32 %v8515_v61, %v26341_v32 }
0x5f74   :  { %23532 = vmatpush3.bf16.msra.mxu0 %v24992_v11  ;;  %20803 = vmatprep.mubr.msk.f32.mxu0 %vm24883_vm0, %v24884_v6 }
0x5f75   :  { %23533 = vmatprep.subr.bf16.mxu0 %v24882_v3 }
0x5f78   :  { %23535 = vmatpush3.bf16.msra.mxu0 %v25013_v14 }
0x5f79   :  { %23536 = vmatprep.subr.bf16.mxu0 %v24882_v3 }
0x5f7c   :  { %23538 = vmatpush3.bf16.msra.mxu0 %v25023_v17 }
0x5f7d   :  { %23539 = vmatprep.subr.bf16.mxu0 %v24882_v3 }
0x5f80   :  { %23541 = vmatpush3.bf16.msra.mxu0 %v25032_v20 }
0x5f81   :  { %23560 = vmatprep.subr.bf16.mxu0 %v24882_v3 }
0x6046   :  { %v8436_v56 = vpop.f32.mrb[112].mxu0 }
0x6047   :  { %v8437_v26 = vadd.f32 %v25984_v40, %v8436_v56  ;;  %v20786_v59 = vpop.f32.mrb[113].mxu0 }
0x6049   :  { %24692 = vtanh.f32 %v8437_v26 }
0x6053   :  { %v24693_v60 = vpop.eup %24692 }
0x6054   :  { %20804 = vmatmul.mubr.msk.f32.vlgmr.msra.gmra.mrb[114].mxu0 %vm169_vm2, %v24693_v60 }
0x6055   :  { %23562 = vmatpush3.bf16.msra.mxu0 %v24966_v4  ;;  %20844 = vmatprep.mubr.msk.f32.mxu0 %vm24883_vm0, %v24884_v6 }
0x6056   :  { %23563 = vmatprep.subr.bf16.mxu0 %v24882_v3 }
0x6059   :  { %23565 = vmatpush3.bf16.msra.mxu0 %v24990_v10 }
0x605a   :  { %23566 = vmatprep.subr.bf16.mxu0 %v24882_v3 }
0x6127   :  { %v8510_v63 = vpop.f32.mrb[114].mxu0 }
0x6128   :  { %v8511_v2 = vadd.f32 %v25997_v45, %v8510_v63  ;;  %v20805_v5 = vpop.f32.mrb[115].mxu0 }
0x612a   :  { %v8517_v8 = vadd.f32 %v8516_v33, %v8511_v2 }
0x612c   :  { %v8518_v47 = vmul.f32 %v8517_v8, %v26314_v23 }
0x612e   :  { %v26413_v9 = vadd.f32 %v8518_v47, %v26318_v25 }
0x6130   :  { %20815 = vmatmul.mubr.msk.f32.vlgmr.msra.gmra.mrb[108].mxu1 %vm90_vm1, %v26413_v9 }
0x6131   :  { %23550 = vmatpush3.bf16.msra.mxu1 %v24992_v11  ;;  %20833 = vmatprep.mubr.msk.f32.mxu1 %vm24883_vm0, %v24884_v6 }
0x6132   :  { %23551 = vmatprep.subr.bf16.mxu1 %v24882_v3 }
0x6135   :  { %23553 = vmatpush3.bf16.msra.mxu1 %v25013_v14 }
0x6136   :  { %23554 = vmatprep.subr.bf16.mxu1 %v24882_v3 }
0x6139   :  { %23556 = vmatpush3.bf16.msra.mxu1 %v25023_v17 }
0x613a   :  { %23557 = vmatprep.subr.bf16.mxu1 %v24882_v3 }
0x613d   :  { %23559 = vmatpush3.bf16.msra.mxu1 %v25032_v20 }
0x613e   :  { %23578 = vmatprep.subr.bf16.mxu1 %v24882_v3 }
0x6203   :  { %v8589_v12 = vpop.f32.mrb[108].mxu1 }
0x6204   :  { %v8590_v38 = vadd.f32 %v25984_v40, %v8589_v12  ;;  %v20816_v13 = vpop.f32.mrb[109].mxu1 }
0x6206   :  { %24694 = vtanh.f32 %v8590_v38 }
0x6210   :  { %v24695_v16 = vpop.eup %24694 }
0x6211   :  { %20834 = vmatmul.mubr.msk.f32.vlgmr.msra.gmra.mrb[110].mxu1 %vm169_vm2, %v24695_v16 }
0x6212   :  { %23580 = vmatpush3.bf16.msra.mxu1 %v24966_v4  ;;  %20874 = vmatprep.mubr.msk.f32.mxu1 %vm24883_vm0, %v24884_v6 }
0x6213   :  { %23581 = vmatprep.subr.bf16.mxu1 %v24882_v3 }
0x6216   :  { %23583 = vmatpush3.bf16.msra.mxu1 %v24990_v10 }
0x6217   :  { %23584 = vmatprep.subr.bf16.mxu1 %v24882_v3 }
0x62e4   :  { %v8663_v53 = vpop.f32.mrb[110].mxu1 }
0x62e5   :  { %v26436_v18 = vadd.f32 %v25997_v45, %v8663_v53  ;;  %v20835_v40 = vpop.f32.mrb[111].mxu1 }
0x62e7   :  { %v8667_v19 = vmul.f32 %v26436_v18, %v26239_v42 }
0x62e9   :  { %v8668_v22 = vadd.f32 %v8667_v19, %v26413_v9 }
0x62eb   :  { %20845 = vmatmul.mubr.msk.f32.vlgmr.msra.gmra.mrb[116].mxu0 %vm90_vm1, %v8668_v22 }
0x62ec   :  { %23568 = vmatpush3.bf16.msra.mxu0 %v24992_v11  ;;  %20863 = vmatprep.mubr.msk.f32.mxu0 %vm24883_vm0, %v24884_v6 }
0x62ed   :  { %23569 = vmatprep.subr.bf16.mxu0 %v24882_v3 }
0x62f0   :  { %23571 = vmatpush3.bf16.msra.mxu0 %v25013_v14 }
0x62f1   :  { %23572 = vmatprep.subr.bf16.mxu0 %v24882_v3 }
0x62f4   :  { %23574 = vmatpush3.bf16.msra.mxu0 %v25023_v17 }
0x62f5   :  { %23575 = vmatprep.subr.bf16.mxu0 %v24882_v3 }
0x62f8   :  { %23577 = vmatpush3.bf16.msra.mxu0 %v25032_v20 }
0x62f9   :  { %23596 = vmatprep.subr.bf16.mxu0 %v24882_v3 }
0x63be   :  { %v8738_v45 = vpop.f32.mrb[116].mxu0 }
0x63bf   :  { %v8739_v58 = vadd.f32 %v26455_v24, %v8738_v45  ;;  %v20846_v25 = vpop.f32.mrb[117].mxu0 }
0x63c1   :  { %24696 = vtanh.f32 %v8739_v58 }
0x63cb   :  { %v24697_v27 = vpop.eup %24696 }
0x63cc   :  { %20864 = vmatmul.mubr.msk.f32.vlgmr.msra.gmra.mrb[118].mxu0 %vm169_vm2, %v24697_v27 }
0x63cd   :  { %23598 = vmatpush3.bf16.msra.mxu0 %v24966_v4  ;;  %20904 = vmatprep.mubr.msk.f32.mxu0 %vm24883_vm0, %v24884_v6 }
0x63ce   :  { %23599 = vmatprep.subr.bf16.mxu0 %v24882_v3 }
0x63d1   :  { %23601 = vmatpush3.bf16.msra.mxu0 %v24990_v10 }
0x63d2   :  { %23602 = vmatprep.subr.bf16.mxu0 %v24882_v3 }
0x649f   :  { %v8812_v62 = vpop.f32.mrb[118].mxu0 }
0x64a0   :  { %v8813_v30 = vadd.f32 %v26468_v29, %v8812_v62  ;;  %v20865_v31 = vpop.f32.mrb[119].mxu0 }
0x64a2   :  { %v8816_v32 = vmul.f32 %v8813_v30, %v26239_v42 }
0x64a4   :  { %v8817_v7 = vadd.f32 %v8816_v32, %v26413_v9 }
0x64a6   :  { %20875 = vmatmul.mubr.msk.f32.vlgmr.msra.gmra.mrb[112].mxu1 %vm90_vm1, %v8817_v7 }
0x64a7   :  { %23586 = vmatpush3.bf16.msra.mxu1 %v24992_v11  ;;  %20893 = vmatprep.mubr.msk.f32.mxu1 %vm24883_vm0, %v24884_v6 }
0x64a8   :  { %23587 = vmatprep.subr.bf16.mxu1 %v24882_v3 }
0x64ab   :  { %23589 = vmatpush3.bf16.msra.mxu1 %v25013_v14 }
0x64ac   :  { %23590 = vmatprep.subr.bf16.mxu1 %v24882_v3 }
0x64af   :  { %23592 = vmatpush3.bf16.msra.mxu1 %v25023_v17 }
0x64b0   :  { %23593 = vmatprep.subr.bf16.mxu1 %v24882_v3 }
0x64b3   :  { %23595 = vmatpush3.bf16.msra.mxu1 %v25032_v20 }
0x64b4   :  { %23614 = vmatprep.subr.bf16.mxu1 %v24882_v3 }
0x6579   :  { %v8887_v34 = vpop.f32.mrb[112].mxu1 }
0x657a   :  { %v8888_v35 = vadd.f32 %v26455_v24, %v8887_v34  ;;  %v20876_v36 = vpop.f32.mrb[113].mxu1 }
0x657c   :  { %24698 = vtanh.f32 %v8888_v35 }
0x6586   :  { %v24699_v57 = vpop.eup %24698 }
0x6587   :  { %20894 = vmatmul.mubr.msk.f32.vlgmr.msra.gmra.mrb[114].mxu1 %vm169_vm2, %v24699_v57 }
0x6588   :  { %23616 = vmatpush3.bf16.msra.mxu1 %v24966_v4  ;;  %20934 = vmatprep.mubr.msk.f32.mxu1 %vm24883_vm0, %v24884_v6 }
0x6589   :  { %23617 = vmatprep.subr.bf16.mxu1 %v24882_v3 }
0x658c   :  { %23619 = vmatpush3.bf16.msra.mxu1 %v24990_v10 }
0x658d   :  { %23620 = vmatprep.subr.bf16.mxu1 %v24882_v3 }
0x665a   :  { %v8961_v15 = vpop.f32.mrb[114].mxu1 }
0x665b   :  { %v8962_v37 = vadd.f32 %v26468_v29, %v8961_v15  ;;  %v20895_v39 = vpop.f32.mrb[115].mxu1 }
0x665d   :  { %v8965_v0 = vmul.f32 %v8962_v37, %v26288_v1  ;;  %v9114_v49 = vadd.f32 %v8962_v37, %v8813_v30 }
0x665f   :  { %v8966_v41 = vadd.f32 %v8965_v0, %v26413_v9  ;;  %v9115_v50 = vmul.f32 2.0, %v9114_v49  ;;  %v26637_v49 = vstv %s17408_s15 }
0x6661   :  { %20905 = vmatmul.mubr.msk.f32.vlgmr.msra.gmra.mrb[120].mxu0 %vm90_vm1, %v8966_v41  ;;  %v9116_v21 = vadd.f32 %v9115_v50, %v26436_v18 }
0x6662   :  { %23604 = vmatpush3.bf16.msra.mxu0 %v24992_v11  ;;  %20923 = vmatprep.mubr.msk.f32.mxu0 %vm24883_vm0, %v24884_v6 }
0x6663   :  { %23605 = vmatprep.subr.bf16.mxu0 %v24882_v3 }
0x6666   :  { %23607 = vmatpush3.bf16.msra.mxu0 %v25013_v14 }
0x6667   :  { %23608 = vmatprep.subr.bf16.mxu0 %v24882_v3 }
0x666a   :  { %23610 = vmatpush3.bf16.msra.mxu0 %v25023_v17 }
0x666b   :  { %23611 = vmatprep.subr.bf16.mxu0 %v24882_v3 }
0x666e   :  { %23613 = vmatpush3.bf16.msra.mxu0 %v25032_v20 }
0x666f   :  { %23632 = vmatprep.subr.bf16.mxu0 %v24882_v3 }
0x6734   :  { %v9036_v43 = vpop.f32.mrb[120].mxu0 }
0x6735   :  { %v9037_v44 = vadd.f32 %v26455_v24, %v9036_v43  ;;  %v20906_v46 = vpop.f32.mrb[121].mxu0 }
0x6737   :  { %24700 = vtanh.f32 %v9037_v44 }
0x6741   :  { %v24701_v48 = vpop.eup %24700 }
0x6742   :  { %20924 = vmatmul.mubr.msk.f32.vlgmr.msra.gmra.mrb[122].mxu0 %vm169_vm2, %v24701_v48 }
0x6743   :  { %23634 = vmatpush3.bf16.msra.mxu0 %v24966_v4  ;;  %20964 = vmatprep.mubr.msk.f32.mxu0 %vm24883_vm0, %v24884_v6 }
0x6744   :  { %23635 = vmatprep.subr.bf16.mxu0 %v24882_v3 }
0x6747   :  { %23637 = vmatpush3.bf16.msra.mxu0 %v24990_v10 }
0x6748   :  { %23638 = vmatprep.subr.bf16.mxu0 %v24882_v3 }
0x6815   :  { %v9110_v51 = vpop.f32.mrb[122].mxu0 }
0x6816   :  { %v9111_v52 = vadd.f32 %v26468_v29, %v9110_v51  ;;  %v20925_v54 = vpop.f32.mrb[123].mxu0 }
0x6818   :  { %v9117_v55 = vadd.f32 %v9116_v21, %v9111_v52 }
0x681a   :  { %v9118_v56 = vmul.f32 %v9117_v55, %v26314_v23 }
0x681c   :  { %v26518_v26 = vadd.f32 %v9118_v56, %v26413_v9 }
0x681e   :  { %20935 = vmatmul.mubr.msk.f32.vlgmr.msra.gmra.mrb[116].mxu1 %vm90_vm1, %v26518_v26 }
0x681f   :  { %23622 = vmatpush3.bf16.msra.mxu1 %v24992_v11  ;;  %20953 = vmatprep.mubr.msk.f32.mxu1 %vm24883_vm0, %v24884_v6 }
0x6820   :  { %23623 = vmatprep.subr.bf16.mxu1 %v24882_v3 }
0x6823   :  { %23625 = vmatpush3.bf16.msra.mxu1 %v25013_v14 }
0x6824   :  { %23626 = vmatprep.subr.bf16.mxu1 %v24882_v3 }
0x6827   :  { %23628 = vmatpush3.bf16.msra.mxu1 %v25023_v17 }
0x6828   :  { %23629 = vmatprep.subr.bf16.mxu1 %v24882_v3 }
0x682b   :  { %23631 = vmatpush3.bf16.msra.mxu1 %v25032_v20 }
0x682c   :  { %23650 = vmatprep.subr.bf16.mxu1 %v24882_v3 }
0x68f1   :  { %v9189_v59 = vpop.f32.mrb[116].mxu1 }
0x68f2   :  { %v9190_v60 = vadd.f32 %v26455_v24, %v9189_v59  ;;  %v20936_v28 = vpop.f32.mrb[117].mxu1 }
0x68f4   :  { %24702 = vtanh.f32 %v9190_v60 }
0x68fe   :  { %v24703_v61 = vpop.eup %24702 }
0x68ff   :  { %20954 = vmatmul.mubr.msk.f32.vlgmr.msra.gmra.mrb[118].mxu1 %vm169_vm2, %v24703_v61 }
0x6900   :  { %23652 = vmatpush3.bf16.msra.mxu1 %v24966_v4  ;;  %20994 = vmatprep.mubr.msk.f32.mxu1 %vm24883_vm0, %v24884_v6 }
0x6901   :  { %23653 = vmatprep.subr.bf16.mxu1 %v24882_v3 }
0x6904   :  { %23655 = vmatpush3.bf16.msra.mxu1 %v24990_v10 }
0x6905   :  { %23656 = vmatprep.subr.bf16.mxu1 %v24882_v3 }
0x69d2   :  { %v9263_v63 = vpop.f32.mrb[118].mxu1 }
0x69d3   :  { %v26541_v2 = vadd.f32 %v26468_v29, %v9263_v63  ;;  %v20955_v33 = vpop.f32.mrb[119].mxu1 }
0x69d5   :  { %v9267_v5 = vmul.f32 %v26541_v2, %v26239_v42 }
0x69d7   :  { %v9268_v8 = vadd.f32 %v9267_v5, %v26518_v26 }
0x69d9   :  { %20965 = vmatmul.mubr.msk.f32.vlgmr.msra.gmra.mrb[124].mxu0 %vm90_vm1, %v9268_v8 }
0x69da   :  { %23640 = vmatpush3.bf16.msra.mxu0 %v24992_v11  ;;  %20983 = vmatprep.mubr.msk.f32.mxu0 %vm24883_vm0, %v24884_v6 }
0x69db   :  { %23641 = vmatprep.subr.bf16.mxu0 %v24882_v3 }
0x69de   :  { %23643 = vmatpush3.bf16.msra.mxu0 %v25013_v14 }
0x69df   :  { %23644 = vmatprep.subr.bf16.mxu0 %v24882_v3 }
0x69e2   :  { %23646 = vmatpush3.bf16.msra.mxu0 %v25023_v17 }
0x69e3   :  { %23647 = vmatprep.subr.bf16.mxu0 %v24882_v3 }
0x69e6   :  { %23649 = vmatpush3.bf16.msra.mxu0 %v25032_v20 }
0x69e7   :  { %23668 = vmatprep.subr.bf16.mxu0 %v24882_v3 }
0x6aac   :  { %v9338_v47 = vpop.f32.mrb[124].mxu0 }
0x6aad   :  { %v9339_v9 = vadd.f32 %v26455_v24, %v9338_v47  ;;  %v20966_v12 = vpop.f32.mrb[125].mxu0 }
0x6aaf   :  { %24704 = vtanh.f32 %v9339_v9  ;;  %v26686_v9 = vstv %s17407_s16 }
0x6ab9   :  { %v24705_v38 = vpop.eup %24704 }
0x6aba   :  { %20984 = vmatmul.mubr.msk.f32.vlgmr.msra.gmra.mrb[126].mxu0 %vm169_vm2, %v24705_v38 }
0x6abb   :  { %23670 = vmatpush3.bf16.msra.mxu0 %v24966_v4  ;;  %21024 = vmatprep.mubr.msk.f32.mxu0 %vm24883_vm0, %v24884_v6 }
0x6abc   :  { %23671 = vmatprep.subr.bf16.mxu0 %v24882_v3 }
0x6abf   :  { %23673 = vmatpush3.bf16.msra.mxu0 %v24990_v10 }
0x6ac0   :  { %23674 = vmatprep.subr.bf16.mxu0 %v24882_v3 }
0x6b8d   :  { %v9412_v13 = vpop.f32.mrb[126].mxu0 }
0x6b8e   :  { %v9413_v16 = vadd.f32 %v26468_v29, %v9412_v13  ;;  %v20985_v53 = vpop.f32.mrb[127].mxu0 }
0x6b90   :  { %v9416_v18 = vmul.f32 %v9413_v16, %v26239_v42 }
0x6b92   :  { %v9417_v40 = vadd.f32 %v9416_v18, %v26518_v26 }
0x6b94   :  { %20995 = vmatmul.mubr.msk.f32.vlgmr.msra.gmra.mrb[120].mxu1 %vm90_vm1, %v9417_v40 }
0x6b95   :  { %23658 = vmatpush3.bf16.msra.mxu1 %v24992_v11  ;;  %21013 = vmatprep.mubr.msk.f32.mxu1 %vm24883_vm0, %v24884_v6 }
0x6b96   :  { %23659 = vmatprep.subr.bf16.mxu1 %v24882_v3 }
0x6b99   :  { %23661 = vmatpush3.bf16.msra.mxu1 %v25013_v14 }
0x6b9a   :  { %23662 = vmatprep.subr.bf16.mxu1 %v24882_v3 }
0x6b9d   :  { %23664 = vmatpush3.bf16.msra.mxu1 %v25023_v17 }
0x6b9e   :  { %23665 = vmatprep.subr.bf16.mxu1 %v24882_v3 }
0x6ba1   :  { %23667 = vmatpush3.bf16.msra.mxu1 %v25032_v20 }
0x6ba2   :  { %23686 = vmatprep.subr.bf16.mxu1 %v24882_v3 }
0x6c67   :  { %v9487_v42 = vpop.f32.mrb[120].mxu1 }
0x6c68   :  { %v9488_v19 = vadd.f32 %v26455_v24, %v9487_v42  ;;  %v20996_v22 = vpop.f32.mrb[121].mxu1 }
0x6c6a   :  { %24706 = vtanh.f32 %v9488_v19 }
0x6c74   :  { %v24707_v45 = vpop.eup %24706 }
0x6c75   :  { %21014 = vmatmul.mubr.msk.f32.vlgmr.msra.gmra.mrb[122].mxu1 %vm169_vm2, %v24707_v45 }
0x6c76   :  { %23688 = vmatpush3.bf16.msra.mxu1 %v24966_v4  ;;  %21054 = vmatprep.mubr.msk.f32.mxu1 %vm24883_vm0, %v24884_v6 }
0x6c77   :  { %23689 = vmatprep.subr.bf16.mxu1 %v24882_v3 }
0x6c7a   :  { %23691 = vmatpush3.bf16.msra.mxu1 %v24990_v10 }
0x6c7b   :  { %23692 = vmatprep.subr.bf16.mxu1 %v24882_v3 }
0x6d48   :  { %v9561_v58 = vpop.f32.mrb[122].mxu1 }
0x6d49   :  { %v9562_v25 = vadd.f32 %v26468_v29, %v9561_v58  ;;  %v21015_v27 = vpop.f32.mrb[123].mxu1 }
0x6d4b   :  { %v9565_v62 = vmul.f32 %v9562_v25, %v26288_v1  ;;  %v9714_v34 = vadd.f32 %v9562_v25, %v9413_v16 }
0x6d4d   :  { %v9566_v30 = vadd.f32 %v9565_v62, %v26518_v26  ;;  %v9715_v35 = vmul.f32 2.0, %v9714_v34  ;;  %v26712_v62 = vstv %s17409_s6 }
0x6d4f   :  { %21025 = vmatmul.mubr.msk.f32.vlgmr.msra.gmra.mrb[128].mxu0 %vm90_vm1, %v9566_v30  ;;  %v9716_v15 = vadd.f32 %v9715_v35, %v26541_v2 }
0x6d50   :  { %23676 = vmatpush3.bf16.msra.mxu0 %v24992_v11  ;;  %21043 = vmatprep.mubr.msk.f32.mxu0 %vm24883_vm0, %v24884_v6 }
0x6d51   :  { %23677 = vmatprep.subr.bf16.mxu0 %v24882_v3 }
0x6d54   :  { %23679 = vmatpush3.bf16.msra.mxu0 %v25013_v14 }
0x6d55   :  { %23680 = vmatprep.subr.bf16.mxu0 %v24882_v3 }
0x6d58   :  { %23682 = vmatpush3.bf16.msra.mxu0 %v25023_v17 }
0x6d59   :  { %23683 = vmatprep.subr.bf16.mxu0 %v24882_v3 }
0x6d5c   :  { %23685 = vmatpush3.bf16.msra.mxu0 %v25032_v20 }
0x6d5d   :  { %23704 = vmatprep.subr.bf16.mxu0 %v24882_v3 }
0x6e22   :  { %v9636_v1 = vpop.f32.mrb[128].mxu0 }
0x6e23   :  { %v9637_v31 = vadd.f32 %v26455_v24, %v9636_v1  ;;  %v21026_v32 = vpop.f32.mrb[129].mxu0 }
0x6e25   :  { %24708 = vtanh.f32 %v9637_v31 }
0x6e2f   :  { %v24709_v7 = vpop.eup %24708 }
0x6e30   :  { %21044 = vmatmul.mubr.msk.f32.vlgmr.msra.gmra.mrb[130].mxu0 %vm169_vm2, %v24709_v7 }
0x6e31   :  { %23706 = vmatpush3.bf16.msra.mxu0 %v24966_v4  ;;  %21084 = vmatprep.mubr.msk.f32.mxu0 %vm24883_vm0, %v24884_v6 }
0x6e32   :  { %23707 = vmatprep.subr.bf16.mxu0 %v24882_v3 }
0x6e35   :  { %23709 = vmatpush3.bf16.msra.mxu0 %v24990_v10 }
0x6e36   :  { %23710 = vmatprep.subr.bf16.mxu0 %v24882_v3 }
0x6f03   :  { %v9710_v36 = vpop.f32.mrb[130].mxu0 }
0x6f04   :  { %v9711_v57 = vadd.f32 %v26468_v29, %v9710_v36  ;;  %v21045_v37 = vpop.f32.mrb[131].mxu0 }
0x6f06   :  { %v9717_v39 = vadd.f32 %v9716_v15, %v9711_v57 }
0x6f08   :  { %v9718_v0 = vmul.f32 %v9717_v39, %v26314_v23 }
0x6f0a   :  { %v26613_v41 = vadd.f32 %v9718_v0, %v26518_v26 }
0x6f0c   :  { %9720 = vst.msk [vmem:[#allocation2 + $0x20] sm:$0xff] %vm90_vm1, %v26613_v41  ;;  %21055 = vmatmul.mubr.msk.f32.vlgmr.msra.gmra.mrb[124].mxu1 %vm90_vm1, %v26613_v41 }
0x6f0d   :  { %23694 = vmatpush3.bf16.msra.mxu1 %v24992_v11  ;;  %21073 = vmatprep.mubr.msk.f32.mxu1 %vm24883_vm0, %v24884_v6 }
0x6f0e   :  { %23695 = vmatprep.subr.bf16.mxu1 %v24882_v3 }
0x6f11   :  { %23697 = vmatpush3.bf16.msra.mxu1 %v25013_v14 }
0x6f12   :  { %23698 = vmatprep.subr.bf16.mxu1 %v24882_v3 }
0x6f15   :  { %23700 = vmatpush3.bf16.msra.mxu1 %v25023_v17 }
0x6f16   :  { %23701 = vmatprep.subr.bf16.mxu1 %v24882_v3 }
0x6f19   :  { %23703 = vmatpush3.bf16.msra.mxu1 %v25032_v20 }
0x6f1a   :  { %23722 = vmatprep.subr.bf16.mxu1 %v24882_v3 }
0x6fdf   :  { %v9793_v23 = vpop.f32.mrb[124].mxu1 }
0x6fe0   :  { %v9794_v43 = vadd.f32 %v26455_v24, %v9793_v23  ;;  %v21056_v44 = vpop.f32.mrb[125].mxu1 }
0x6fe2   :  { %24710 = vtanh.f32 %v9794_v43 }
0x6fec   :  { %v24711_v46 = vpop.eup %24710 }
0x6fed   :  { %21074 = vmatmul.mubr.msk.f32.vlgmr.msra.gmra.mrb[126].mxu1 %vm169_vm2, %v24711_v46 }
0x6fee   :  { %23724 = vmatpush3.bf16.msra.mxu1 %v24966_v4  ;;  %21114 = vmatprep.mubr.msk.f32.mxu1 %vm24883_vm0, %v24884_v6 }
0x6fef   :  { %23725 = vmatprep.subr.bf16.mxu1 %v24882_v3 }
0x6ff2   :  { %23727 = vmatpush3.bf16.msra.mxu1 %v24990_v10 }
0x6ff3   :  { %23728 = vmatprep.subr.bf16.mxu1 %v24882_v3 }
0x70c0   :  { %v9867_v48 = vpop.f32.mrb[126].mxu1 }
0x70c1   :  { %v26640_v50 = vadd.f32 %v26468_v29, %v9867_v48  ;;  %v21075_v51 = vpop.f32.mrb[127].mxu1 }
0x70c3   :  { %v9872_v52 = vmul.f32 %v26637_v49, %v26640_v50 }
0x70c5   :  { %v9873_v21 = vadd.f32 %v9872_v52, %v26613_v41 }
0x70c7   :  { %21085 = vmatmul.mubr.msk.f32.vlgmr.msra.gmra.mrb[132].mxu0 %vm90_vm1, %v9873_v21 }
0x70c8   :  { %23712 = vmatpush3.bf16.msra.mxu0 %v24992_v11  ;;  %21103 = vmatprep.mubr.msk.f32.mxu0 %vm24883_vm0, %v24884_v6 }
0x70c9   :  { %23713 = vmatprep.subr.bf16.mxu0 %v24882_v3 }
0x70cc   :  { %23715 = vmatpush3.bf16.msra.mxu0 %v25013_v14 }
0x70cd   :  { %23716 = vmatprep.subr.bf16.mxu0 %v24882_v3 }
0x70d0   :  { %23718 = vmatpush3.bf16.msra.mxu0 %v25023_v17 }
0x70d1   :  { %23719 = vmatprep.subr.bf16.mxu0 %v24882_v3 }
0x70d4   :  { %23721 = vmatpush3.bf16.msra.mxu0 %v25032_v20 }
0x70d5   :  { %23740 = vmatprep.subr.bf16.mxu0 %v24882_v3 }
0x719a   :  { %v9943_v54 = vpop.f32.mrb[132].mxu0 }
0x719b   :  { %v9944_v55 = vadd.f32 %v26455_v24, %v9943_v54  ;;  %v21086_v56 = vpop.f32.mrb[133].mxu0 }
0x719d   :  { %24712 = vtanh.f32 %v9944_v55 }
0x71a7   :  { %v24713_v26 = vpop.eup %24712 }
0x71a8   :  { %21104 = vmatmul.mubr.msk.f32.vlgmr.msra.gmra.mrb[134].mxu0 %vm169_vm2, %v24713_v26 }
0x71a9   :  { %23742 = vmatpush3.bf16.msra.mxu0 %v24966_v4  ;;  %21144 = vmatprep.mubr.msk.f32.mxu0 %vm24883_vm0, %v24884_v6 }
0x71aa   :  { %23743 = vmatprep.subr.bf16.mxu0 %v24882_v3 }
0x71ad   :  { %23745 = vmatpush3.bf16.msra.mxu0 %v24990_v10 }
0x71ae   :  { %23746 = vmatprep.subr.bf16.mxu0 %v24882_v3 }
0x727b   :  { %v10017_v59 = vpop.f32.mrb[134].mxu0 }
0x727c   :  { %v10018_v60 = vadd.f32 %v26468_v29, %v10017_v59  ;;  %v21105_v28 = vpop.f32.mrb[135].mxu0 }
0x727e   :  { %v10021_v61 = vmul.f32 %v10018_v60, %v26637_v49 }
0x7280   :  { %v10022_v63 = vadd.f32 %v10021_v61, %v26613_v41 }
0x7282   :  { %21115 = vmatmul.mubr.msk.f32.vlgmr.msra.gmra.mrb[128].mxu1 %vm90_vm1, %v10022_v63 }
0x7283   :  { %23730 = vmatpush3.bf16.msra.mxu1 %v24992_v11  ;;  %21133 = vmatprep.mubr.msk.f32.mxu1 %vm24883_vm0, %v24884_v6 }
0x7284   :  { %23731 = vmatprep.subr.bf16.mxu1 %v24882_v3 }
0x7287   :  { %23733 = vmatpush3.bf16.msra.mxu1 %v25013_v14 }
0x7288   :  { %23734 = vmatprep.subr.bf16.mxu1 %v24882_v3 }
0x728b   :  { %23736 = vmatpush3.bf16.msra.mxu1 %v25023_v17 }
0x728c   :  { %23737 = vmatprep.subr.bf16.mxu1 %v24882_v3 }
0x728f   :  { %23739 = vmatpush3.bf16.msra.mxu1 %v25032_v20 }
0x7290   :  { %23758 = vmatprep.subr.bf16.mxu1 %v24882_v3 }
0x7355   :  { %v10092_v2 = vpop.f32.mrb[128].mxu1 }
0x7356   :  { %v10093_v33 = vadd.f32 %v26455_v24, %v10092_v2  ;;  %v21116_v5 = vpop.f32.mrb[129].mxu1 }
0x7358   :  { %24714 = vtanh.f32 %v10093_v33 }
0x7362   :  { %v24715_v8 = vpop.eup %24714 }
0x7363   :  { %21134 = vmatmul.mubr.msk.f32.vlgmr.msra.gmra.mrb[130].mxu1 %vm169_vm2, %v24715_v8 }
0x7364   :  { %23760 = vmatpush3.bf16.msra.mxu1 %v24966_v4  ;;  %21174 = vmatprep.mubr.msk.f32.mxu1 %vm24883_vm0, %v24884_v6 }
0x7365   :  { %23761 = vmatprep.subr.bf16.mxu1 %v24882_v3 }
0x7368   :  { %23763 = vmatpush3.bf16.msra.mxu1 %v24990_v10 }
0x7369   :  { %23764 = vmatprep.subr.bf16.mxu1 %v24882_v3 }
0x7436   :  { %v10166_v47 = vpop.f32.mrb[130].mxu1 }
0x7437   :  { %v10167_v12 = vadd.f32 %v26468_v29, %v10166_v47  ;;  %v21135_v38 = vpop.f32.mrb[131].mxu1 }
0x7439   :  { %v10171_v13 = vmul.f32 %v26686_v9, %v10167_v12  ;;  %v10320_v19 = vadd.f32 %v10167_v12, %v10018_v60 }
0x743b   :  { %v10172_v16 = vadd.f32 %v10171_v13, %v26613_v41  ;;  %v10321_v22 = vmul.f32 2.0, %v10320_v19 }
0x743d   :  { %21145 = vmatmul.mubr.msk.f32.vlgmr.msra.gmra.mrb[136].mxu0 %vm90_vm1, %v10172_v16  ;;  %v10322_v25 = vadd.f32 %v10321_v22, %v26640_v50 }
0x743e   :  { %23748 = vmatpush3.bf16.msra.mxu0 %v24992_v11  ;;  %21163 = vmatprep.mubr.msk.f32.mxu0 %vm24883_vm0, %v24884_v6 }
0x743f   :  { %23749 = vmatprep.subr.bf16.mxu0 %v24882_v3 }
0x7442   :  { %23751 = vmatpush3.bf16.msra.mxu0 %v25013_v14 }
0x7443   :  { %23752 = vmatprep.subr.bf16.mxu0 %v24882_v3 }
0x7446   :  { %23754 = vmatpush3.bf16.msra.mxu0 %v25023_v17 }
0x7447   :  { %23755 = vmatprep.subr.bf16.mxu0 %v24882_v3 }
0x744a   :  { %23757 = vmatpush3.bf16.msra.mxu0 %v25032_v20 }
0x744b   :  { %23776 = vmatprep.subr.bf16.mxu0 %v24882_v3 }
0x7510   :  { %v10242_v53 = vpop.f32.mrb[136].mxu0 }
0x7511   :  { %v10243_v18 = vadd.f32 %v26455_v24, %v10242_v53  ;;  %v21146_v40 = vpop.f32.mrb[137].mxu0 }
0x7513   :  { %24716 = vtanh.f32 %v10243_v18 }
0x751d   :  { %v24717_v42 = vpop.eup %24716 }
0x751e   :  { %21164 = vmatmul.mubr.msk.f32.vlgmr.msra.gmra.mrb[138].mxu0 %vm169_vm2, %v24717_v42 }
0x751f   :  { %23778 = vmatpush3.bf16.msra.mxu0 %v24966_v4  ;;  %21204 = vmatprep.mubr.msk.f32.mxu0 %vm24883_vm0, %v24884_v6 }
0x7520   :  { %23779 = vmatprep.subr.bf16.mxu0 %v24882_v3 }
0x7523   :  { %23781 = vmatpush3.bf16.msra.mxu0 %v24990_v10 }
0x7524   :  { %23782 = vmatprep.subr.bf16.mxu0 %v24882_v3 }
0x75f1   :  { %v10316_v45 = vpop.f32.mrb[138].mxu0 }
0x75f2   :  { %v10317_v58 = vadd.f32 %v26468_v29, %v10316_v45  ;;  %v21165_v27 = vpop.f32.mrb[139].mxu0 }
0x75f4   :  { %v10323_v30 = vadd.f32 %v10322_v25, %v10317_v58 }
0x75f6   :  { %v10325_v1 = vmul.f32 %v26712_v62, %v10323_v30 }
0x75f8   :  { %v26716_v31 = vadd.f32 %v10325_v1, %v26613_v41 }
0x75fa   :  { %21175 = vmatmul.mubr.msk.f32.vlgmr.msra.gmra.mrb[132].mxu1 %vm90_vm1, %v26716_v31 }
0x75fb   :  { %23766 = vmatpush3.bf16.msra.mxu1 %v24992_v11  ;;  %21193 = vmatprep.mubr.msk.f32.mxu1 %vm24883_vm0, %v24884_v6 }
0x75fc   :  { %23767 = vmatprep.subr.bf16.mxu1 %v24882_v3 }
0x75ff   :  { %23769 = vmatpush3.bf16.msra.mxu1 %v25013_v14 }
0x7600   :  { %23770 = vmatprep.subr.bf16.mxu1 %v24882_v3 }
0x7603   :  { %23772 = vmatpush3.bf16.msra.mxu1 %v25023_v17 }
0x7604   :  { %23773 = vmatprep.subr.bf16.mxu1 %v24882_v3 }
0x7607   :  { %23775 = vmatpush3.bf16.msra.mxu1 %v25032_v20 }
0x7608   :  { %23794 = vmatprep.subr.bf16.mxu1 %v24882_v3 }
0x76cd   :  { %v10396_v32 = vpop.f32.mrb[132].mxu1 }
0x76ce   :  { %v10397_v7 = vadd.f32 %v26455_v24, %v10396_v32  ;;  %v21176_v34 = vpop.f32.mrb[133].mxu1 }
0x76d0   :  { %24718 = vtanh.f32 %v10397_v7 }
0x76da   :  { %v24719_v35 = vpop.eup %24718 }
0x76db   :  { %21194 = vmatmul.mubr.msk.f32.vlgmr.msra.gmra.mrb[134].mxu1 %vm169_vm2, %v24719_v35 }
0x76dc   :  { %23796 = vmatpush3.bf16.msra.mxu1 %v24966_v4  ;;  %21234 = vmatprep.mubr.msk.f32.mxu1 %vm24883_vm0, %v24884_v6 }
0x76dd   :  { %23797 = vmatprep.subr.bf16.mxu1 %v24882_v3 }
0x76e0   :  { %23799 = vmatpush3.bf16.msra.mxu1 %v24990_v10 }
0x76e1   :  { %23800 = vmatprep.subr.bf16.mxu1 %v24882_v3 }
0x77ae   :  { %v10470_v36 = vpop.f32.mrb[134].mxu1 }
0x77af   :  { %v26739_v57 = vadd.f32 %v26468_v29, %v10470_v36  ;;  %v21195_v15 = vpop.f32.mrb[135].mxu1 }
0x77b1   :  { %v10474_v37 = vmul.f32 %v26739_v57, %v26637_v49 }
0x77b3   :  { %v10475_v39 = vadd.f32 %v10474_v37, %v26716_v31 }
0x77b5   :  { %21205 = vmatmul.mubr.msk.f32.vlgmr.msra.gmra.mrb[140].mxu0 %vm90_vm1, %v10475_v39 }
0x77b6   :  { %23784 = vmatpush3.bf16.msra.mxu0 %v24992_v11  ;;  %21223 = vmatprep.mubr.msk.f32.mxu0 %vm24883_vm0, %v24884_v6 }
0x77b7   :  { %23785 = vmatprep.subr.bf16.mxu0 %v24882_v3 }
0x77ba   :  { %23787 = vmatpush3.bf16.msra.mxu0 %v25013_v14 }
0x77bb   :  { %23788 = vmatprep.subr.bf16.mxu0 %v24882_v3 }
0x77be   :  { %23790 = vmatpush3.bf16.msra.mxu0 %v25023_v17 }
0x77bf   :  { %23791 = vmatprep.subr.bf16.mxu0 %v24882_v3 }
0x77c2   :  { %23793 = vmatpush3.bf16.msra.mxu0 %v25032_v20 }
0x77c3   :  { %23812 = vmatprep.subr.bf16.mxu0 %v24882_v3 }
0x7888   :  { %v10545_v0 = vpop.f32.mrb[140].mxu0 }
0x7889   :  { %v10546_v41 = vadd.f32 %v26455_v24, %v10545_v0  ;;  %v21206_v23 = vpop.f32.mrb[141].mxu0 }
0x788b   :  { %24720 = vtanh.f32 %v10546_v41 }
0x7895   :  { %v24721_v43 = vpop.eup %24720 }
0x7896   :  { %21224 = vmatmul.mubr.msk.f32.vlgmr.msra.gmra.mrb[142].mxu0 %vm169_vm2, %v24721_v43 }
0x7897   :  { %23814 = vmatpush3.bf16.msra.mxu0 %v24966_v4  ;;  %21264 = vmatprep.mubr.msk.f32.mxu0 %vm24883_vm0, %v24884_v6 }
0x7898   :  { %23815 = vmatprep.subr.bf16.mxu0 %v24882_v3 }
0x789b   :  { %23817 = vmatpush3.bf16.msra.mxu0 %v24990_v10 }
0x789c   :  { %23818 = vmatprep.subr.bf16.mxu0 %v24882_v3 }
0x7969   :  { %v10619_v44 = vpop.f32.mrb[142].mxu0 }
0x796a   :  { %v10620_v46 = vadd.f32 %v26468_v29, %v10619_v44  ;;  %v21225_v48 = vpop.f32.mrb[143].mxu0 }
0x796c   :  { %v10623_v50 = vmul.f32 %v10620_v46, %v26637_v49 }
0x796e   :  { %v10624_v51 = vadd.f32 %v10623_v50, %v26716_v31 }
0x7970   :  { %21235 = vmatmul.mubr.msk.f32.vlgmr.msra.gmra.mrb[136].mxu1 %vm90_vm1, %v10624_v51 }
0x7971   :  { %23802 = vmatpush3.bf16.msra.mxu1 %v24992_v11  ;;  %21253 = vmatprep.mubr.msk.f32.mxu1 %vm24883_vm0, %v24884_v6 }
0x7972   :  { %23803 = vmatprep.subr.bf16.mxu1 %v24882_v3 }
0x7975   :  { %23805 = vmatpush3.bf16.msra.mxu1 %v25013_v14 }
0x7976   :  { %23806 = vmatprep.subr.bf16.mxu1 %v24882_v3 }
0x7979   :  { %23808 = vmatpush3.bf16.msra.mxu1 %v25023_v17 }
0x797a   :  { %23809 = vmatprep.subr.bf16.mxu1 %v24882_v3 }
0x797d   :  { %23811 = vmatpush3.bf16.msra.mxu1 %v25032_v20 }
0x797e   :  { %23830 = vmatprep.subr.bf16.mxu1 %v24882_v3 }
0x7a43   :  { %v10694_v52 = vpop.f32.mrb[136].mxu1 }
0x7a44   :  { %v10695_v21 = vadd.f32 %v26455_v24, %v10694_v52  ;;  %v21236_v54 = vpop.f32.mrb[137].mxu1 }
0x7a46   :  { %24722 = vtanh.f32 %v10695_v21 }
0x7a50   :  { %v24723_v55 = vpop.eup %24722 }
0x7a51   :  { %21254 = vmatmul.mubr.msk.f32.vlgmr.msra.gmra.mrb[138].mxu1 %vm169_vm2, %v24723_v55 }
0x7a52   :  { %23832 = vmatpush3.bf16.msra.mxu1 %v24966_v4  ;;  %21294 = vmatprep.mubr.msk.f32.mxu1 %vm24883_vm0, %v24884_v6 }
0x7a53   :  { %23833 = vmatprep.subr.bf16.mxu1 %v24882_v3 }
0x7a56   :  { %23835 = vmatpush3.bf16.msra.mxu1 %v24990_v10 }
0x7a57   :  { %23836 = vmatprep.subr.bf16.mxu1 %v24882_v3 }
0x7b24   :  { %v10768_v56 = vpop.f32.mrb[138].mxu1 }
0x7b25   :  { %v10769_v26 = vadd.f32 %v26468_v29, %v10768_v56  ;;  %v21255_v59 = vpop.f32.mrb[139].mxu1 }
0x7b27   :  { %v10772_v60 = vmul.f32 %v10769_v26, %v26686_v9  ;;  %v10921_v5 = vadd.f32 %v10769_v26, %v10620_v46 }
0x7b29   :  { %v10773_v28 = vadd.f32 %v10772_v60, %v26716_v31  ;;  %v10922_v8 = vmul.f32 2.0, %v10921_v5 }
0x7b2b   :  { %21265 = vmatmul.mubr.msk.f32.vlgmr.msra.gmra.mrb[144].mxu0 %vm90_vm1, %v10773_v28  ;;  %v10923_v38 = vadd.f32 %v10922_v8, %v26739_v57 }
0x7b2c   :  { %23820 = vmatpush3.bf16.msra.mxu0 %v24992_v11  ;;  %21283 = vmatprep.mubr.msk.f32.mxu0 %vm24883_vm0, %v24884_v6 }
0x7b2d   :  { %23821 = vmatprep.subr.bf16.mxu0 %v24882_v3 }
0x7b30   :  { %23823 = vmatpush3.bf16.msra.mxu0 %v25013_v14 }
0x7b31   :  { %23824 = vmatprep.subr.bf16.mxu0 %v24882_v3 }
0x7b34   :  { %23826 = vmatpush3.bf16.msra.mxu0 %v25023_v17 }
0x7b35   :  { %23827 = vmatprep.subr.bf16.mxu0 %v24882_v3 }
0x7b38   :  { %23829 = vmatpush3.bf16.msra.mxu0 %v25032_v20 }
0x7b39   :  { %23848 = vmatprep.subr.bf16.mxu0 %v24882_v3 }
0x7bfe   :  { %v10843_v61 = vpop.f32.mrb[144].mxu0 }
0x7bff   :  { %v10844_v63 = vadd.f32 %v26455_v24, %v10843_v61  ;;  %v21266_v2 = vpop.f32.mrb[145].mxu0 }
0x7c01   :  { %24724 = vtanh.f32 %v10844_v63  ;;  %v26923_v63 = vld [vmem:[%s27849_s3] ss:$0 sm:$0xff] }
0x7c0b   :  { %v24725_v33 = vpop.eup %24724 }
0x7c0c   :  { %21284 = vmatmul.mubr.msk.f32.vlgmr.msra.gmra.mrb[146].mxu0 %vm169_vm2, %v24725_v33 }
0x7c0d   :  { %23850 = vmatpush3.bf16.msra.mxu0 %v24966_v4  ;;  %21324 = vmatprep.mubr.msk.f32.mxu0 %vm24883_vm0, %v24884_v6 }
0x7c0e   :  { %23851 = vmatprep.subr.bf16.mxu0 %v24882_v3 }
0x7c11   :  { %23853 = vmatpush3.bf16.msra.mxu0 %v24990_v10 }
0x7c12   :  { %23854 = vmatprep.subr.bf16.mxu0 %v24882_v3 }
0x7cdf   :  { %v10917_v47 = vpop.f32.mrb[146].mxu0 }
0x7ce0   :  { %v10918_v12 = vadd.f32 %v26468_v29, %v10917_v47  ;;  %v21285_v13 = vpop.f32.mrb[147].mxu0  ;;  %v26936_v47 = vld [vmem:[%s27851_s5] ss:$0 sm:$0xff] }
0x7ce2   :  { %v10924_v16 = vadd.f32 %v10923_v38, %v10918_v12 }
0x7ce4   :  { %v10925_v53 = vmul.f32 %v10924_v16, %v26712_v62 }
0x7ce6   :  { %v26811_v18 = vadd.f32 %v10925_v53, %v26716_v31 }
0x7ce8   :  { %21295 = vmatmul.mubr.msk.f32.vlgmr.msra.gmra.mrb[140].mxu1 %vm90_vm1, %v26811_v18 }
0x7ce9   :  { %23838 = vmatpush3.bf16.msra.mxu1 %v24992_v11  ;;  %21313 = vmatprep.mubr.msk.f32.mxu1 %vm24883_vm0, %v24884_v6 }
0x7cea   :  { %23839 = vmatprep.subr.bf16.mxu1 %v24882_v3 }
0x7ced   :  { %23841 = vmatpush3.bf16.msra.mxu1 %v25013_v14 }
0x7cee   :  { %23842 = vmatprep.subr.bf16.mxu1 %v24882_v3 }
0x7cf1   :  { %23844 = vmatpush3.bf16.msra.mxu1 %v25023_v17 }
0x7cf2   :  { %23845 = vmatprep.subr.bf16.mxu1 %v24882_v3 }
0x7cf5   :  { %23847 = vmatpush3.bf16.msra.mxu1 %v25032_v20 }
0x7cf6   :  { %23866 = vmatprep.subr.bf16.mxu1 %v24882_v3 }
0x7dbb   :  { %v10996_v40 = vpop.f32.mrb[140].mxu1 }
0x7dbc   :  { %v10997_v42 = vadd.f32 %v26455_v24, %v10996_v40  ;;  %v21296_v19 = vpop.f32.mrb[141].mxu1 }
0x7dbe   :  { %24726 = vtanh.f32 %v10997_v42 }
0x7dc8   :  { %v24727_v22 = vpop.eup %24726 }
0x7dc9   :  { %21314 = vmatmul.mubr.msk.f32.vlgmr.msra.gmra.mrb[142].mxu1 %vm169_vm2, %v24727_v22 }
0x7dca   :  { %23868 = vmatpush3.bf16.msra.mxu1 %v24966_v4  ;;  %21354 = vmatprep.mubr.msk.f32.mxu1 %vm24883_vm0, %v24884_v6 }
0x7dcb   :  { %23869 = vmatprep.subr.bf16.mxu1 %v24882_v3 }
0x7dce   :  { %23871 = vmatpush3.bf16.msra.mxu1 %v24990_v10 }
0x7dcf   :  { %23872 = vmatprep.subr.bf16.mxu1 %v24882_v3 }
0x7e9c   :  { %v11070_v45 = vpop.f32.mrb[142].mxu1 }
0x7e9d   :  { %v26834_v58 = vadd.f32 %v26468_v29, %v11070_v45  ;;  %v21315_v25 = vpop.f32.mrb[143].mxu1 }
0x7e9f   :  { %v11074_v27 = vmul.f32 %v26834_v58, %v26637_v49 }
0x7ea1   :  { %v11075_v30 = vadd.f32 %v11074_v27, %v26811_v18 }
0x7ea3   :  { %21325 = vmatmul.mubr.msk.f32.vlgmr.msra.gmra.mrb[148].mxu0 %vm90_vm1, %v11075_v30 }
0x7ea4   :  { %23856 = vmatpush3.bf16.msra.mxu0 %v24992_v11  ;;  %21343 = vmatprep.mubr.msk.f32.mxu0 %vm24883_vm0, %v24884_v6 }
0x7ea5   :  { %23857 = vmatprep.subr.bf16.mxu0 %v24882_v3 }
0x7ea8   :  { %23859 = vmatpush3.bf16.msra.mxu0 %v25013_v14 }
0x7ea9   :  { %23860 = vmatprep.subr.bf16.mxu0 %v24882_v3 }
0x7eac   :  { %23862 = vmatpush3.bf16.msra.mxu0 %v25023_v17 }
0x7ead   :  { %23863 = vmatprep.subr.bf16.mxu0 %v24882_v3 }
0x7eb0   :  { %23865 = vmatpush3.bf16.msra.mxu0 %v25032_v20 }
0x7eb1   :  { %23884 = vmatprep.subr.bf16.mxu0 %v24882_v3 }
0x7f76   :  { %v11145_v1 = vpop.f32.mrb[148].mxu0 }
0x7f77   :  { %v11146_v31 = vadd.f32 %v26455_v24, %v11145_v1  ;;  %v21326_v32 = vpop.f32.mrb[149].mxu0 }
0x7f79   :  { %24728 = vtanh.f32 %v11146_v31 }
0x7f83   :  { %v24729_v7 = vpop.eup %24728 }
0x7f84   :  { %21344 = vmatmul.mubr.msk.f32.vlgmr.msra.gmra.mrb[150].mxu0 %vm169_vm2, %v24729_v7 }
0x7f85   :  { %23886 = vmatpush3.bf16.msra.mxu0 %v24966_v4  ;;  %21384 = vmatprep.mubr.msk.f32.mxu0 %vm24883_vm0, %v24884_v6 }
0x7f86   :  { %23887 = vmatprep.subr.bf16.mxu0 %v24882_v3 }
0x7f89   :  { %23889 = vmatpush3.bf16.msra.mxu0 %v24990_v10 }
0x7f8a   :  { %23890 = vmatprep.subr.bf16.mxu0 %v24882_v3 }
0x8057   :  { %v11219_v34 = vpop.f32.mrb[150].mxu0 }
0x8058   :  { %v11220_v35 = vadd.f32 %v26468_v29, %v11219_v34  ;;  %v21345_v36 = vpop.f32.mrb[151].mxu0 }
0x805a   :  { %v11223_v57 = vmul.f32 %v11220_v35, %v26637_v49 }
0x805c   :  { %v11224_v15 = vadd.f32 %v11223_v57, %v26811_v18 }
0x805e   :  { %21355 = vmatmul.mubr.msk.f32.vlgmr.msra.gmra.mrb[144].mxu1 %vm90_vm1, %v11224_v15 }
0x805f   :  { %23874 = vmatpush3.bf16.msra.mxu1 %v24992_v11  ;;  %21373 = vmatprep.mubr.msk.f32.mxu1 %vm24883_vm0, %v24884_v6 }
0x8060   :  { %23875 = vmatprep.subr.bf16.mxu1 %v24882_v3 }
0x8063   :  { %23877 = vmatpush3.bf16.msra.mxu1 %v25013_v14 }
0x8064   :  { %23878 = vmatprep.subr.bf16.mxu1 %v24882_v3 }
0x8067   :  { %23880 = vmatpush3.bf16.msra.mxu1 %v25023_v17 }
0x8068   :  { %23881 = vmatprep.subr.bf16.mxu1 %v24882_v3 }
0x806b   :  { %23883 = vmatpush3.bf16.msra.mxu1 %v25032_v20 }
0x806c   :  { %23902 = vmatprep.subr.bf16.mxu1 %v24882_v3 }
0x8131   :  { %v11294_v37 = vpop.f32.mrb[144].mxu1 }
0x8132   :  { %v11295_v39 = vadd.f32 %v26455_v24, %v11294_v37  ;;  %v21356_v0 = vpop.f32.mrb[145].mxu1 }
0x8134   :  { %24730 = vtanh.f32 %v11295_v39 }
0x813e   :  { %v24731_v41 = vpop.eup %24730 }
0x813f   :  { %21374 = vmatmul.mubr.msk.f32.vlgmr.msra.gmra.mrb[146].mxu1 %vm169_vm2, %v24731_v41 }
0x8140   :  { %23904 = vmatpush3.bf16.msra.mxu1 %v24966_v4  ;;  %21414 = vmatprep.mubr.msk.f32.mxu1 %vm24883_vm0, %v24884_v6 }
0x8141   :  { %23905 = vmatprep.subr.bf16.mxu1 %v24882_v3 }
0x8144   :  { %23907 = vmatpush3.bf16.msra.mxu1 %v24990_v10 }
0x8145   :  { %23908 = vmatprep.subr.bf16.mxu1 %v24882_v3 }
0x8212   :  { %v11368_v23 = vpop.f32.mrb[146].mxu1 }
0x8213   :  { %v11369_v43 = vadd.f32 %v26468_v29, %v11368_v23  ;;  %v21375_v44 = vpop.f32.mrb[147].mxu1 }
0x8215   :  { %v11372_v46 = vmul.f32 %v11369_v43, %v26686_v9  ;;  %v11521_v54 = vadd.f32 %v11369_v43, %v11220_v35 }
0x8217   :  { %v11373_v48 = vadd.f32 %v11372_v46, %v26811_v18  ;;  %v11522_v55 = vmul.f32 2.0, %v11521_v54  ;;  %v27035_v54 = vstv %s17443_s21 }
0x8219   :  { %21385 = vmatmul.mubr.msk.f32.vlgmr.msra.gmra.mrb[152].mxu0 %vm90_vm1, %v11373_v48  ;;  %v11523_v26 = vadd.f32 %v11522_v55, %v26834_v58 }
0x821a   :  { %23892 = vmatpush3.bf16.msra.mxu0 %v24992_v11  ;;  %21403 = vmatprep.mubr.msk.f32.mxu0 %vm24883_vm0, %v24884_v6 }
0x821b   :  { %23893 = vmatprep.subr.bf16.mxu0 %v24882_v3 }
0x821e   :  { %23895 = vmatpush3.bf16.msra.mxu0 %v25013_v14 }
0x821f   :  { %23896 = vmatprep.subr.bf16.mxu0 %v24882_v3 }
0x8222   :  { %23898 = vmatpush3.bf16.msra.mxu0 %v25023_v17 }
0x8223   :  { %23899 = vmatprep.subr.bf16.mxu0 %v24882_v3 }
0x8226   :  { %23901 = vmatpush3.bf16.msra.mxu0 %v25032_v20 }
0x8227   :  { %23920 = vmatprep.subr.bf16.mxu0 %v24882_v3 }
0x82ec   :  { %v11443_v50 = vpop.f32.mrb[152].mxu0 }
0x82ed   :  { %v11444_v51 = vadd.f32 %v26455_v24, %v11443_v50  ;;  %v21386_v52 = vpop.f32.mrb[153].mxu0 }
0x82ef   :  { %24732 = vtanh.f32 %v11444_v51 }
0x82f9   :  { %v24733_v21 = vpop.eup %24732 }
0x82fa   :  { %21404 = vmatmul.mubr.msk.f32.vlgmr.msra.gmra.mrb[154].mxu0 %vm169_vm2, %v24733_v21 }
0x82fb   :  { %23922 = vmatpush3.bf16.msra.mxu0 %v24966_v4  ;;  %21444 = vmatprep.mubr.msk.f32.mxu0 %vm24883_vm0, %v24884_v6 }
0x82fc   :  { %23923 = vmatprep.subr.bf16.mxu0 %v24882_v3 }
0x82ff   :  { %23925 = vmatpush3.bf16.msra.mxu0 %v24990_v10 }
0x8300   :  { %23926 = vmatprep.subr.bf16.mxu0 %v24882_v3 }
0x83cd   :  { %v11517_v56 = vpop.f32.mrb[154].mxu0 }
0x83ce   :  { %v11518_v24 = vadd.f32 %v26468_v29, %v11517_v56  ;;  %v21405_v59 = vpop.f32.mrb[155].mxu0 }
0x83d0   :  { %v11524_v60 = vadd.f32 %v11523_v26, %v11518_v24 }
0x83d2   :  { %v11525_v28 = vmul.f32 %v11524_v60, %v26712_v62 }
0x83d4   :  { %v26906_v61 = vadd.f32 %v11525_v28, %v26811_v18 }
0x83d6   :  { %21415 = vmatmul.mubr.msk.f32.vlgmr.msra.gmra.mrb[148].mxu1 %vm90_vm1, %v26906_v61 }
0x83d7   :  { %23910 = vmatpush3.bf16.msra.mxu1 %v24992_v11  ;;  %21433 = vmatprep.mubr.msk.f32.mxu1 %vm24883_vm0, %v24884_v6 }
0x83d8   :  { %23911 = vmatprep.subr.bf16.mxu1 %v24882_v3 }
0x83db   :  { %23913 = vmatpush3.bf16.msra.mxu1 %v25013_v14 }
0x83dc   :  { %23914 = vmatprep.subr.bf16.mxu1 %v24882_v3 }
0x83df   :  { %23916 = vmatpush3.bf16.msra.mxu1 %v25023_v17 }
0x83e0   :  { %23917 = vmatprep.subr.bf16.mxu1 %v24882_v3 }
0x83e3   :  { %23919 = vmatpush3.bf16.msra.mxu1 %v25032_v20 }
0x83e4   :  { %23938 = vmatprep.subr.bf16.mxu1 %v24882_v3 }
0x84a9   :  { %v11596_v29 = vpop.f32.mrb[148].mxu1 }
0x84aa   :  { %v11597_v2 = vadd.f32 %v26923_v63, %v11596_v29  ;;  %v21416_v33 = vpop.f32.mrb[149].mxu1 }
0x84ac   :  { %24734 = vtanh.f32 %v11597_v2 }
0x84b6   :  { %v24735_v5 = vpop.eup %24734 }
0x84b7   :  { %21434 = vmatmul.mubr.msk.f32.vlgmr.msra.gmra.mrb[150].mxu1 %vm169_vm2, %v24735_v5 }
0x84b8   :  { %23940 = vmatpush3.bf16.msra.mxu1 %v24966_v4  ;;  %21474 = vmatprep.mubr.msk.f32.mxu1 %vm24883_vm0, %v24884_v6 }
0x84b9   :  { %23941 = vmatprep.subr.bf16.mxu1 %v24882_v3 }
0x84bc   :  { %23943 = vmatpush3.bf16.msra.mxu1 %v24990_v10 }
0x84bd   :  { %23944 = vmatprep.subr.bf16.mxu1 %v24882_v3 }
0x858a   :  { %v11670_v8 = vpop.f32.mrb[150].mxu1 }
0x858b   :  { %v26939_v12 = vadd.f32 %v26936_v47, %v11670_v8  ;;  %v21435_v38 = vpop.f32.mrb[151].mxu1 }
0x858d   :  { %v11674_v13 = vmul.f32 %v26939_v12, %v26637_v49 }
0x858f   :  { %v11675_v16 = vadd.f32 %v11674_v13, %v26906_v61 }
0x8591   :  { %21445 = vmatmul.mubr.msk.f32.vlgmr.msra.gmra.mrb[156].mxu0 %vm90_vm1, %v11675_v16 }
0x8592   :  { %23928 = vmatpush3.bf16.msra.mxu0 %v24992_v11  ;;  %21463 = vmatprep.mubr.msk.f32.mxu0 %vm24883_vm0, %v24884_v6 }
0x8593   :  { %23929 = vmatprep.subr.bf16.mxu0 %v24882_v3 }
0x8596   :  { %23931 = vmatpush3.bf16.msra.mxu0 %v25013_v14 }
0x8597   :  { %23932 = vmatprep.subr.bf16.mxu0 %v24882_v3 }
0x859a   :  { %23934 = vmatpush3.bf16.msra.mxu0 %v25023_v17 }
0x859b   :  { %23935 = vmatprep.subr.bf16.mxu0 %v24882_v3 }
0x859e   :  { %23937 = vmatpush3.bf16.msra.mxu0 %v25032_v20 }
0x859f   :  { %23956 = vmatprep.subr.bf16.mxu0 %v24882_v3 }
0x8664   :  { %v11745_v53 = vpop.f32.mrb[156].mxu0 }
0x8665   :  { %v11746_v18 = vadd.f32 %v26923_v63, %v11745_v53  ;;  %v21446_v40 = vpop.f32.mrb[157].mxu0 }
0x8667   :  { %24736 = vtanh.f32 %v11746_v18  ;;  %v27084_v18 = vstv %s17442_s2 }
0x8671   :  { %v24737_v42 = vpop.eup %24736 }
0x8672   :  { %21464 = vmatmul.mubr.msk.f32.vlgmr.msra.gmra.mrb[158].mxu0 %vm169_vm2, %v24737_v42 }
0x8673   :  { %23958 = vmatpush3.bf16.msra.mxu0 %v24966_v4  ;;  %21504 = vmatprep.mubr.msk.f32.mxu0 %vm24883_vm0, %v24884_v6 }
0x8674   :  { %23959 = vmatprep.subr.bf16.mxu0 %v24882_v3 }
0x8677   :  { %23961 = vmatpush3.bf16.msra.mxu0 %v24990_v10 }
0x8678   :  { %23962 = vmatprep.subr.bf16.mxu0 %v24882_v3 }
0x8745   :  { %v11819_v19 = vpop.f32.mrb[158].mxu0 }
0x8746   :  { %v11820_v22 = vadd.f32 %v26936_v47, %v11819_v19  ;;  %v21465_v45 = vpop.f32.mrb[159].mxu0 }
0x8748   :  { %v11823_v58 = vmul.f32 %v11820_v22, %v26637_v49 }
0x874a   :  { %v11824_v25 = vadd.f32 %v11823_v58, %v26906_v61 }
0x874c   :  { %21475 = vmatmul.mubr.msk.f32.vlgmr.msra.gmra.mrb[152].mxu1 %vm90_vm1, %v11824_v25 }
0x874d   :  { %23946 = vmatpush3.bf16.msra.mxu1 %v24992_v11  ;;  %21493 = vmatprep.mubr.msk.f32.mxu1 %vm24883_vm0, %v24884_v6 }
0x874e   :  { %23947 = vmatprep.subr.bf16.mxu1 %v24882_v3 }
0x8751   :  { %23949 = vmatpush3.bf16.msra.mxu1 %v25013_v14 }
0x8752   :  { %23950 = vmatprep.subr.bf16.mxu1 %v24882_v3 }
0x8755   :  { %23952 = vmatpush3.bf16.msra.mxu1 %v25023_v17 }
0x8756   :  { %23953 = vmatprep.subr.bf16.mxu1 %v24882_v3 }
0x8759   :  { %23955 = vmatpush3.bf16.msra.mxu1 %v25032_v20 }
0x875a   :  { %23974 = vmatprep.subr.bf16.mxu1 %v24882_v3 }
0x881f   :  { %v11894_v49 = vpop.f32.mrb[152].mxu1 }
0x8820   :  { %v11895_v27 = vadd.f32 %v26923_v63, %v11894_v49  ;;  %v21476_v30 = vpop.f32.mrb[153].mxu1 }
0x8822   :  { %24738 = vtanh.f32 %v11895_v27 }
0x882c   :  { %v24739_v1 = vpop.eup %24738 }
0x882d   :  { %21494 = vmatmul.mubr.msk.f32.vlgmr.msra.gmra.mrb[154].mxu1 %vm169_vm2, %v24739_v1 }
0x882e   :  { %23976 = vmatpush3.bf16.msra.mxu1 %v24966_v4  ;;  %21534 = vmatprep.mubr.msk.f32.mxu1 %vm24883_vm0, %v24884_v6 }
0x882f   :  { %23977 = vmatprep.subr.bf16.mxu1 %v24882_v3 }
0x8832   :  { %23979 = vmatpush3.bf16.msra.mxu1 %v24990_v10 }
0x8833   :  { %23980 = vmatprep.subr.bf16.mxu1 %v24882_v3 }
0x8900   :  { %v11968_v31 = vpop.f32.mrb[154].mxu1 }
0x8901   :  { %v11969_v32 = vadd.f32 %v26936_v47, %v11968_v31  ;;  %v21495_v7 = vpop.f32.mrb[155].mxu1 }
0x8903   :  { %v11972_v34 = vmul.f32 %v11969_v32, %v26686_v9  ;;  %v12121_v37 = vadd.f32 %v11969_v32, %v11820_v22 }
0x8905   :  { %v11973_v35 = vadd.f32 %v11972_v34, %v26906_v61  ;;  %v12122_v39 = vmul.f32 2.0, %v12121_v37  ;;  %v27110_v34 = vstv %s17444_s22 }
0x8907   :  { %21505 = vmatmul.mubr.msk.f32.vlgmr.msra.gmra.mrb[160].mxu0 %vm90_vm1, %v11973_v35  ;;  %v12123_v23 = vadd.f32 %v12122_v39, %v26939_v12 }
0x8908   :  { %23964 = vmatpush3.bf16.msra.mxu0 %v24992_v11  ;;  %21523 = vmatprep.mubr.msk.f32.mxu0 %vm24883_vm0, %v24884_v6 }
0x8909   :  { %23965 = vmatprep.subr.bf16.mxu0 %v24882_v3 }
0x890c   :  { %23967 = vmatpush3.bf16.msra.mxu0 %v25013_v14 }
0x890d   :  { %23968 = vmatprep.subr.bf16.mxu0 %v24882_v3 }
0x8910   :  { %23970 = vmatpush3.bf16.msra.mxu0 %v25023_v17 }
0x8911   :  { %23971 = vmatprep.subr.bf16.mxu0 %v24882_v3 }
0x8914   :  { %23973 = vmatpush3.bf16.msra.mxu0 %v25032_v20 }
0x8915   :  { %23992 = vmatprep.subr.bf16.mxu0 %v24882_v3 }
0x89da   :  { %v12043_v9 = vpop.f32.mrb[160].mxu0 }
0x89db   :  { %v12044_v36 = vadd.f32 %v26923_v63, %v12043_v9  ;;  %v21506_v57 = vpop.f32.mrb[161].mxu0 }
0x89dd   :  { %24740 = vtanh.f32 %v12044_v36 }
0x89e7   :  { %v24741_v15 = vpop.eup %24740 }
0x89e8   :  { %21524 = vmatmul.mubr.msk.f32.vlgmr.msra.gmra.mrb[162].mxu0 %vm169_vm2, %v24741_v15 }
0x89e9   :  { %23994 = vmatpush3.bf16.msra.mxu0 %v24966_v4  ;;  %21564 = vmatprep.mubr.msk.f32.mxu0 %vm24883_vm0, %v24884_v6 }
0x89ea   :  { %23995 = vmatprep.subr.bf16.mxu0 %v24882_v3 }
0x89ed   :  { %23997 = vmatpush3.bf16.msra.mxu0 %v24990_v10 }
0x89ee   :  { %23998 = vmatprep.subr.bf16.mxu0 %v24882_v3 }
0x8abb   :  { %v12117_v0 = vpop.f32.mrb[162].mxu0 }
0x8abc   :  { %v12118_v41 = vadd.f32 %v26936_v47, %v12117_v0  ;;  %v21525_v43 = vpop.f32.mrb[163].mxu0 }
0x8abe   :  { %v12124_v44 = vadd.f32 %v12123_v23, %v12118_v41 }
0x8ac0   :  { %v12125_v46 = vmul.f32 %v12124_v44, %v26712_v62 }
0x8ac2   :  { %v27011_v48 = vadd.f32 %v12125_v46, %v26906_v61 }
0x8ac4   :  { %12127 = vst.msk [vmem:[#allocation2 + $0x28] sm:$0xff] %vm90_vm1, %v27011_v48  ;;  %21535 = vmatmul.mubr.msk.f32.vlgmr.msra.gmra.mrb[156].mxu1 %vm90_vm1, %v27011_v48 }
0x8ac5   :  { %23982 = vmatpush3.bf16.msra.mxu1 %v24992_v11  ;;  %21553 = vmatprep.mubr.msk.f32.mxu1 %vm24883_vm0, %v24884_v6 }
0x8ac6   :  { %23983 = vmatprep.subr.bf16.mxu1 %v24882_v3 }
0x8ac9   :  { %23985 = vmatpush3.bf16.msra.mxu1 %v25013_v14 }
0x8aca   :  { %23986 = vmatprep.subr.bf16.mxu1 %v24882_v3 }
0x8acd   :  { %23988 = vmatpush3.bf16.msra.mxu1 %v25023_v17 }
0x8ace   :  { %23989 = vmatprep.subr.bf16.mxu1 %v24882_v3 }
0x8ad1   :  { %23991 = vmatpush3.bf16.msra.mxu1 %v25032_v20 }
0x8ad2   :  { %24010 = vmatprep.subr.bf16.mxu1 %v24882_v3 }
0x8b97   :  { %v12200_v62 = vpop.f32.mrb[156].mxu1 }
0x8b98   :  { %v12201_v50 = vadd.f32 %v26923_v63, %v12200_v62  ;;  %v21536_v51 = vpop.f32.mrb[157].mxu1 }
0x8b9a   :  { %24742 = vtanh.f32 %v12201_v50 }
0x8ba4   :  { %v24743_v52 = vpop.eup %24742 }
0x8ba5   :  { %21554 = vmatmul.mubr.msk.f32.vlgmr.msra.gmra.mrb[158].mxu1 %vm169_vm2, %v24743_v52 }
0x8ba6   :  { %24012 = vmatpush3.bf16.msra.mxu1 %v24966_v4  ;;  %21594 = vmatprep.mubr.msk.f32.mxu1 %vm24883_vm0, %v24884_v6 }
0x8ba7   :  { %24013 = vmatprep.subr.bf16.mxu1 %v24882_v3 }
0x8baa   :  { %24015 = vmatpush3.bf16.msra.mxu1 %v24990_v10 }
0x8bab   :  { %24016 = vmatprep.subr.bf16.mxu1 %v24882_v3 }
0x8c78   :  { %v12274_v21 = vpop.f32.mrb[158].mxu1 }
0x8c79   :  { %v27038_v55 = vadd.f32 %v26936_v47, %v12274_v21  ;;  %v21555_v56 = vpop.f32.mrb[159].mxu1 }
0x8c7b   :  { %v12279_v24 = vmul.f32 %v27035_v54, %v27038_v55 }
0x8c7d   :  { %v12280_v26 = vadd.f32 %v12279_v24, %v27011_v48 }
0x8c7f   :  { %21565 = vmatmul.mubr.msk.f32.vlgmr.msra.gmra.mrb[164].mxu0 %vm90_vm1, %v12280_v26 }
0x8c80   :  { %24000 = vmatpush3.bf16.msra.mxu0 %v24992_v11  ;;  %21583 = vmatprep.mubr.msk.f32.mxu0 %vm24883_vm0, %v24884_v6 }
0x8c81   :  { %24001 = vmatprep.subr.bf16.mxu0 %v24882_v3 }
0x8c84   :  { %24003 = vmatpush3.bf16.msra.mxu0 %v25013_v14 }
0x8c85   :  { %24004 = vmatprep.subr.bf16.mxu0 %v24882_v3 }
0x8c88   :  { %24006 = vmatpush3.bf16.msra.mxu0 %v25023_v17 }
0x8c89   :  { %24007 = vmatprep.subr.bf16.mxu0 %v24882_v3 }
0x8c8c   :  { %24009 = vmatpush3.bf16.msra.mxu0 %v25032_v20 }
0x8c8d   :  { %24028 = vmatprep.subr.bf16.mxu0 %v24882_v3 }
0x8d52   :  { %v12350_v59 = vpop.f32.mrb[164].mxu0 }
0x8d53   :  { %v12351_v60 = vadd.f32 %v26923_v63, %v12350_v59  ;;  %v21566_v28 = vpop.f32.mrb[165].mxu0 }
0x8d55   :  { %24744 = vtanh.f32 %v12351_v60 }
0x8d5f   :  { %v24745_v61 = vpop.eup %24744 }
0x8d60   :  { %21584 = vmatmul.mubr.msk.f32.vlgmr.msra.gmra.mrb[166].mxu0 %vm169_vm2, %v24745_v61 }
0x8d61   :  { %24030 = vmatpush3.bf16.msra.mxu0 %v24966_v4  ;;  %21624 = vmatprep.mubr.msk.f32.mxu0 %vm24883_vm0, %v24884_v6 }
0x8d62   :  { %24031 = vmatprep.subr.bf16.mxu0 %v24882_v3 }
0x8d65   :  { %24033 = vmatpush3.bf16.msra.mxu0 %v24990_v10 }
0x8d66   :  { %24034 = vmatprep.subr.bf16.mxu0 %v24882_v3 }
0x8e33   :  { %v12424_v29 = vpop.f32.mrb[166].mxu0 }
0x8e34   :  { %v12425_v2 = vadd.f32 %v26936_v47, %v12424_v29  ;;  %v21585_v33 = vpop.f32.mrb[167].mxu0 }
0x8e36   :  { %v12428_v5 = vmul.f32 %v12425_v2, %v27035_v54 }
0x8e38   :  { %v12429_v8 = vadd.f32 %v12428_v5, %v27011_v48 }
0x8e3a   :  { %21595 = vmatmul.mubr.msk.f32.vlgmr.msra.gmra.mrb[160].mxu1 %vm90_vm1, %v12429_v8 }
0x8e3b   :  { %24018 = vmatpush3.bf16.msra.mxu1 %v24992_v11  ;;  %21613 = vmatprep.mubr.msk.f32.mxu1 %vm24883_vm0, %v24884_v6 }
0x8e3c   :  { %24019 = vmatprep.subr.bf16.mxu1 %v24882_v3 }
0x8e3f   :  { %24021 = vmatpush3.bf16.msra.mxu1 %v25013_v14 }
0x8e40   :  { %24022 = vmatprep.subr.bf16.mxu1 %v24882_v3 }
0x8e43   :  { %24024 = vmatpush3.bf16.msra.mxu1 %v25023_v17 }
0x8e44   :  { %24025 = vmatprep.subr.bf16.mxu1 %v24882_v3 }
0x8e47   :  { %24027 = vmatpush3.bf16.msra.mxu1 %v25032_v20 }
0x8e48   :  { %24046 = vmatprep.subr.bf16.mxu1 %v24882_v3 }
0x8f0d   :  { %v12499_v12 = vpop.f32.mrb[160].mxu1 }
0x8f0e   :  { %v12500_v38 = vadd.f32 %v26923_v63, %v12499_v12  ;;  %v21596_v13 = vpop.f32.mrb[161].mxu1 }
0x8f10   :  { %24746 = vtanh.f32 %v12500_v38 }
0x8f1a   :  { %v24747_v16 = vpop.eup %24746 }
0x8f1b   :  { %21614 = vmatmul.mubr.msk.f32.vlgmr.msra.gmra.mrb[162].mxu1 %vm169_vm2, %v24747_v16 }
0x8f1c   :  { %24048 = vmatpush3.bf16.msra.mxu1 %v24966_v4  ;;  %21654 = vmatprep.mubr.msk.f32.mxu1 %vm24883_vm0, %v24884_v6 }
0x8f1d   :  { %24049 = vmatprep.subr.bf16.mxu1 %v24882_v3 }
0x8f20   :  { %24051 = vmatpush3.bf16.msra.mxu1 %v24990_v10 }
0x8f21   :  { %24052 = vmatprep.subr.bf16.mxu1 %v24882_v3 }
0x8fee   :  { %v12573_v53 = vpop.f32.mrb[162].mxu1 }
0x8fef   :  { %v12574_v40 = vadd.f32 %v26936_v47, %v12573_v53  ;;  %v21615_v42 = vpop.f32.mrb[163].mxu1 }
0x8ff1   :  { %v12578_v19 = vmul.f32 %v27084_v18, %v12574_v40  ;;  %v12727_v27 = vadd.f32 %v12574_v40, %v12425_v2 }
0x8ff3   :  { %v12579_v22 = vadd.f32 %v12578_v19, %v27011_v48  ;;  %v12728_v30 = vmul.f32 2.0, %v12727_v27 }
0x8ff5   :  { %21625 = vmatmul.mubr.msk.f32.vlgmr.msra.gmra.mrb[168].mxu0 %vm90_vm1, %v12579_v22  ;;  %v12729_v32 = vadd.f32 %v12728_v30, %v27038_v55 }
0x8ff6   :  { %24036 = vmatpush3.bf16.msra.mxu0 %v24992_v11  ;;  %21643 = vmatprep.mubr.msk.f32.mxu0 %vm24883_vm0, %v24884_v6 }
0x8ff7   :  { %24037 = vmatprep.subr.bf16.mxu0 %v24882_v3 }
0x8ffa   :  { %24039 = vmatpush3.bf16.msra.mxu0 %v25013_v14 }
0x8ffb   :  { %24040 = vmatprep.subr.bf16.mxu0 %v24882_v3 }
0x8ffe   :  { %24042 = vmatpush3.bf16.msra.mxu0 %v25023_v17 }
0x8fff   :  { %24043 = vmatprep.subr.bf16.mxu0 %v24882_v3 }
0x9002   :  { %24045 = vmatpush3.bf16.msra.mxu0 %v25032_v20 }
0x9003   :  { %24064 = vmatprep.subr.bf16.mxu0 %v24882_v3 }
0x90c8   :  { %v12649_v45 = vpop.f32.mrb[168].mxu0 }
0x90c9   :  { %v12650_v58 = vadd.f32 %v26923_v63, %v12649_v45  ;;  %v21626_v25 = vpop.f32.mrb[169].mxu0 }
0x90cb   :  { %24748 = vtanh.f32 %v12650_v58 }
0x90d5   :  { %v24749_v49 = vpop.eup %24748 }
0x90d6   :  { %21644 = vmatmul.mubr.msk.f32.vlgmr.msra.gmra.mrb[170].mxu0 %vm169_vm2, %v24749_v49 }
0x90d7   :  { %24066 = vmatpush3.bf16.msra.mxu0 %v24966_v4  ;;  %21684 = vmatprep.mubr.msk.f32.mxu0 %vm24883_vm0, %v24884_v6 }
0x90d8   :  { %24067 = vmatprep.subr.bf16.mxu0 %v24882_v3 }
0x90db   :  { %24069 = vmatpush3.bf16.msra.mxu0 %v24990_v10 }
0x90dc   :  { %24070 = vmatprep.subr.bf16.mxu0 %v24882_v3 }
0x91a9   :  { %v12723_v1 = vpop.f32.mrb[170].mxu0 }
0x91aa   :  { %v12724_v31 = vadd.f32 %v26936_v47, %v12723_v1  ;;  %v21645_v7 = vpop.f32.mrb[171].mxu0 }
0x91ac   :  { %v12730_v35 = vadd.f32 %v12729_v32, %v12724_v31 }
0x91ae   :  { %v12732_v9 = vmul.f32 %v27110_v34, %v12730_v35 }
0x91b0   :  { %v27114_v36 = vadd.f32 %v12732_v9, %v27011_v48 }
0x91b2   :  { %21655 = vmatmul.mubr.msk.f32.vlgmr.msra.gmra.mrb[164].mxu1 %vm90_vm1, %v27114_v36 }
0x91b3   :  { %24054 = vmatpush3.bf16.msra.mxu1 %v24992_v11  ;;  %21673 = vmatprep.mubr.msk.f32.mxu1 %vm24883_vm0, %v24884_v6 }
0x91b4   :  { %24055 = vmatprep.subr.bf16.mxu1 %v24882_v3 }
0x91b7   :  { %24057 = vmatpush3.bf16.msra.mxu1 %v25013_v14 }
0x91b8   :  { %24058 = vmatprep.subr.bf16.mxu1 %v24882_v3 }
0x91bb   :  { %24060 = vmatpush3.bf16.msra.mxu1 %v25023_v17 }
0x91bc   :  { %24061 = vmatprep.subr.bf16.mxu1 %v24882_v3 }
0x91bf   :  { %24063 = vmatpush3.bf16.msra.mxu1 %v25032_v20 }
0x91c0   :  { %24082 = vmatprep.subr.bf16.mxu1 %v24882_v3 }
0x9285   :  { %v12803_v57 = vpop.f32.mrb[164].mxu1 }
0x9286   :  { %v12804_v15 = vadd.f32 %v26923_v63, %v12803_v57  ;;  %v21656_v37 = vpop.f32.mrb[165].mxu1 }
0x9288   :  { %24750 = vtanh.f32 %v12804_v15 }
0x9292   :  { %v24751_v39 = vpop.eup %24750 }
0x9293   :  { %21674 = vmatmul.mubr.msk.f32.vlgmr.msra.gmra.mrb[166].mxu1 %vm169_vm2, %v24751_v39 }
0x9294   :  { %24084 = vmatpush3.bf16.msra.mxu1 %v24966_v4  ;;  %21714 = vmatprep.mubr.msk.f32.mxu1 %vm24883_vm0, %v24884_v6 }
0x9295   :  { %24085 = vmatprep.subr.bf16.mxu1 %v24882_v3 }
0x9298   :  { %24087 = vmatpush3.bf16.msra.mxu1 %v24990_v10 }
0x9299   :  { %24088 = vmatprep.subr.bf16.mxu1 %v24882_v3 }
0x9366   :  { %v12877_v0 = vpop.f32.mrb[166].mxu1 }
0x9367   :  { %v27137_v41 = vadd.f32 %v26936_v47, %v12877_v0  ;;  %v21675_v23 = vpop.f32.mrb[167].mxu1 }
0x9369   :  { %v12881_v43 = vmul.f32 %v27137_v41, %v27035_v54 }
0x936b   :  { %v12882_v44 = vadd.f32 %v12881_v43, %v27114_v36 }
0x936d   :  { %21685 = vmatmul.mubr.msk.f32.vlgmr.msra.gmra.mrb[172].mxu0 %vm90_vm1, %v12882_v44 }
0x936e   :  { %24072 = vmatpush3.bf16.msra.mxu0 %v24992_v11  ;;  %21703 = vmatprep.mubr.msk.f32.mxu0 %vm24883_vm0, %v24884_v6 }
0x936f   :  { %24073 = vmatprep.subr.bf16.mxu0 %v24882_v3 }
0x9372   :  { %24075 = vmatpush3.bf16.msra.mxu0 %v25013_v14 }
0x9373   :  { %24076 = vmatprep.subr.bf16.mxu0 %v24882_v3 }
0x9376   :  { %24078 = vmatpush3.bf16.msra.mxu0 %v25023_v17 }
0x9377   :  { %24079 = vmatprep.subr.bf16.mxu0 %v24882_v3 }
0x937a   :  { %24081 = vmatpush3.bf16.msra.mxu0 %v25032_v20 }
0x937b   :  { %24100 = vmatprep.subr.bf16.mxu0 %v24882_v3 }
0x9440   :  { %v12952_v46 = vpop.f32.mrb[172].mxu0 }
0x9441   :  { %v12953_v48 = vadd.f32 %v26923_v63, %v12952_v46  ;;  %v21686_v62 = vpop.f32.mrb[173].mxu0 }
0x9443   :  { %24752 = vtanh.f32 %v12953_v48 }
0x944d   :  { %v24753_v50 = vpop.eup %24752 }
0x944e   :  { %21704 = vmatmul.mubr.msk.f32.vlgmr.msra.gmra.mrb[174].mxu0 %vm169_vm2, %v24753_v50 }
0x944f   :  { %24102 = vmatpush3.bf16.msra.mxu0 %v24966_v4  ;;  %21744 = vmatprep.mubr.msk.f32.mxu0 %vm24883_vm0, %v24884_v6 }
0x9450   :  { %24103 = vmatprep.subr.bf16.mxu0 %v24882_v3 }
0x9453   :  { %24105 = vmatpush3.bf16.msra.mxu0 %v24990_v10 }
0x9454   :  { %24106 = vmatprep.subr.bf16.mxu0 %v24882_v3 }
0x9521   :  { %v13026_v51 = vpop.f32.mrb[174].mxu0 }
0x9522   :  { %v13027_v52 = vadd.f32 %v26936_v47, %v13026_v51  ;;  %v21705_v21 = vpop.f32.mrb[175].mxu0 }
0x9524   :  { %v13030_v55 = vmul.f32 %v13027_v52, %v27035_v54 }
0x9526   :  { %v13031_v56 = vadd.f32 %v13030_v55, %v27114_v36 }
0x9528   :  { %21715 = vmatmul.mubr.msk.f32.vlgmr.msra.gmra.mrb[168].mxu1 %vm90_vm1, %v13031_v56 }
0x9529   :  { %24090 = vmatpush3.bf16.msra.mxu1 %v24992_v11  ;;  %21733 = vmatprep.mubr.msk.f32.mxu1 %vm24883_vm0, %v24884_v6 }
0x952a   :  { %24091 = vmatprep.subr.bf16.mxu1 %v24882_v3 }
0x952d   :  { %24093 = vmatpush3.bf16.msra.mxu1 %v25013_v14 }
0x952e   :  { %24094 = vmatprep.subr.bf16.mxu1 %v24882_v3 }
0x9531   :  { %24096 = vmatpush3.bf16.msra.mxu1 %v25023_v17 }
0x9532   :  { %24097 = vmatprep.subr.bf16.mxu1 %v24882_v3 }
0x9535   :  { %24099 = vmatpush3.bf16.msra.mxu1 %v25032_v20 }
0x9536   :  { %24118 = vmatprep.subr.bf16.mxu1 %v24882_v3 }
0x95fb   :  { %v13101_v24 = vpop.f32.mrb[168].mxu1 }
0x95fc   :  { %v13102_v26 = vadd.f32 %v26923_v63, %v13101_v24  ;;  %v21716_v59 = vpop.f32.mrb[169].mxu1 }
0x95fe   :  { %24754 = vtanh.f32 %v13102_v26 }
0x9608   :  { %v24755_v60 = vpop.eup %24754 }
0x9609   :  { %21734 = vmatmul.mubr.msk.f32.vlgmr.msra.gmra.mrb[170].mxu1 %vm169_vm2, %v24755_v60 }
0x960a   :  { %24120 = vmatpush3.bf16.msra.mxu1 %v24966_v4  ;;  %21774 = vmatprep.mubr.msk.f32.mxu1 %vm24883_vm0, %v24884_v6 }
0x960b   :  { %24121 = vmatprep.subr.bf16.mxu1 %v24882_v3 }
0x960e   :  { %24123 = vmatpush3.bf16.msra.mxu1 %v24990_v10 }
0x960f   :  { %24124 = vmatprep.subr.bf16.mxu1 %v24882_v3 }
0x96dc   :  { %v13175_v28 = vpop.f32.mrb[170].mxu1 }
0x96dd   :  { %v13176_v61 = vadd.f32 %v26936_v47, %v13175_v28  ;;  %v21735_v29 = vpop.f32.mrb[171].mxu1 }
0x96df   :  { %v13179_v2 = vmul.f32 %v13176_v61, %v27084_v18  ;;  %v13328_v13 = vadd.f32 %v13176_v61, %v13027_v52 }
0x96e1   :  { %v13180_v33 = vadd.f32 %v13179_v2, %v27114_v36  ;;  %v13329_v16 = vmul.f32 2.0, %v13328_v13 }
0x96e3   :  { %21745 = vmatmul.mubr.msk.f32.vlgmr.msra.gmra.mrb[176].mxu0 %vm90_vm1, %v13180_v33  ;;  %v13330_v42 = vadd.f32 %v13329_v16, %v27137_v41 }
0x96e4   :  { %24108 = vmatpush3.bf16.msra.mxu0 %v24992_v11  ;;  %21763 = vmatprep.mubr.msk.f32.mxu0 %vm24883_vm0, %v24884_v6 }
0x96e5   :  { %24109 = vmatprep.subr.bf16.mxu0 %v24882_v3 }
0x96e8   :  { %24111 = vmatpush3.bf16.msra.mxu0 %v25013_v14 }
0x96e9   :  { %24112 = vmatprep.subr.bf16.mxu0 %v24882_v3 }
0x96ec   :  { %24114 = vmatpush3.bf16.msra.mxu0 %v25023_v17 }
0x96ed   :  { %24115 = vmatprep.subr.bf16.mxu0 %v24882_v3 }
0x96f0   :  { %24117 = vmatpush3.bf16.msra.mxu0 %v25032_v20 }
0x96f1   :  { %24136 = vmatprep.subr.bf16.mxu0 %v24882_v3 }
0x97b6   :  { %v13250_v5 = vpop.f32.mrb[176].mxu0 }
0x97b7   :  { %v13251_v8 = vadd.f32 %v26923_v63, %v13250_v5  ;;  %v21746_v12 = vpop.f32.mrb[177].mxu0 }
0x97b9   :  { %24756 = vtanh.f32 %v13251_v8 }
0x97c3   :  { %v24757_v38 = vpop.eup %24756 }
0x97c4   :  { %21764 = vmatmul.mubr.msk.f32.vlgmr.msra.gmra.mrb[178].mxu0 %vm169_vm2, %v24757_v38 }
0x97c5   :  { %24138 = vmatpush3.bf16.msra.mxu0 %v24966_v4  ;;  %21804 = vmatprep.mubr.msk.f32.mxu0 %vm24883_vm0, %v24884_v6 }
0x97c6   :  { %24139 = vmatprep.subr.bf16.mxu0 %v24882_v3 }
0x97c9   :  { %24141 = vmatpush3.bf16.msra.mxu0 %v24990_v10 }
0x97ca   :  { %24142 = vmatprep.subr.bf16.mxu0 %v24882_v3 }
0x9897   :  { %v13324_v53 = vpop.f32.mrb[178].mxu0 }
0x9898   :  { %v13325_v40 = vadd.f32 %v26936_v47, %v13324_v53  ;;  %v21765_v19 = vpop.f32.mrb[179].mxu0 }
0x989a   :  { %v13331_v22 = vadd.f32 %v13330_v42, %v13325_v40 }
0x989c   :  { %v13332_v45 = vmul.f32 %v13331_v22, %v27110_v34 }
0x989e   :  { %v27209_v58 = vadd.f32 %v13332_v45, %v27114_v36 }
0x98a0   :  { %21775 = vmatmul.mubr.msk.f32.vlgmr.msra.gmra.mrb[172].mxu1 %vm90_vm1, %v27209_v58 }
0x98a1   :  { %24126 = vmatpush3.bf16.msra.mxu1 %v24992_v11  ;;  %21793 = vmatprep.mubr.msk.f32.mxu1 %vm24883_vm0, %v24884_v6 }
0x98a2   :  { %24127 = vmatprep.subr.bf16.mxu1 %v24882_v3 }
0x98a5   :  { %24129 = vmatpush3.bf16.msra.mxu1 %v25013_v14 }
0x98a6   :  { %24130 = vmatprep.subr.bf16.mxu1 %v24882_v3 }
0x98a9   :  { %24132 = vmatpush3.bf16.msra.mxu1 %v25023_v17 }
0x98aa   :  { %24133 = vmatprep.subr.bf16.mxu1 %v24882_v3 }
0x98ad   :  { %24135 = vmatpush3.bf16.msra.mxu1 %v25032_v20 }
0x98ae   :  { %24154 = vmatprep.subr.bf16.mxu1 %v24882_v3 }
0x9973   :  { %v13403_v25 = vpop.f32.mrb[172].mxu1 }
0x9974   :  { %v13404_v49 = vadd.f32 %v26923_v63, %v13403_v25  ;;  %v21776_v27 = vpop.f32.mrb[173].mxu1 }
0x9976   :  { %24758 = vtanh.f32 %v13404_v49 }
0x9980   :  { %v24759_v30 = vpop.eup %24758 }
0x9981   :  { %21794 = vmatmul.mubr.msk.f32.vlgmr.msra.gmra.mrb[174].mxu1 %vm169_vm2, %v24759_v30 }
0x9982   :  { %24156 = vmatpush3.bf16.msra.mxu1 %v24966_v4  ;;  %21834 = vmatprep.mubr.msk.f32.mxu1 %vm24883_vm0, %v24884_v6 }
0x9983   :  { %24157 = vmatprep.subr.bf16.mxu1 %v24882_v3 }
0x9986   :  { %24159 = vmatpush3.bf16.msra.mxu1 %v24990_v10 }
0x9987   :  { %24160 = vmatprep.subr.bf16.mxu1 %v24882_v3 }
0x9a54   :  { %v13477_v1 = vpop.f32.mrb[174].mxu1 }
0x9a55   :  { %v27232_v31 = vadd.f32 %v26936_v47, %v13477_v1  ;;  %v21795_v32 = vpop.f32.mrb[175].mxu1 }
0x9a57   :  { %v13481_v7 = vmul.f32 %v27232_v31, %v27035_v54 }
0x9a59   :  { %v13482_v35 = vadd.f32 %v13481_v7, %v27209_v58 }
0x9a5b   :  { %21805 = vmatmul.mubr.msk.f32.vlgmr.msra.gmra.mrb[180].mxu0 %vm90_vm1, %v13482_v35 }
0x9a5c   :  { %24144 = vmatpush3.bf16.msra.mxu0 %v24992_v11  ;;  %21823 = vmatprep.mubr.msk.f32.mxu0 %vm24883_vm0, %v24884_v6 }
0x9a5d   :  { %24145 = vmatprep.subr.bf16.mxu0 %v24882_v3 }
0x9a60   :  { %24147 = vmatpush3.bf16.msra.mxu0 %v25013_v14 }
0x9a61   :  { %24148 = vmatprep.subr.bf16.mxu0 %v24882_v3 }
0x9a64   :  { %24150 = vmatpush3.bf16.msra.mxu0 %v25023_v17 }
0x9a65   :  { %24151 = vmatprep.subr.bf16.mxu0 %v24882_v3 }
0x9a68   :  { %24153 = vmatpush3.bf16.msra.mxu0 %v25032_v20 }
0x9a69   :  { %24172 = vmatprep.subr.bf16.mxu0 %v24882_v3 }
0x9b2e   :  { %v13552_v9 = vpop.f32.mrb[180].mxu0 }
0x9b2f   :  { %v13553_v36 = vadd.f32 %v26923_v63, %v13552_v9  ;;  %v21806_v57 = vpop.f32.mrb[181].mxu0 }
0x9b31   :  { %24760 = vtanh.f32 %v13553_v36 }
0x9b3b   :  { %v24761_v15 = vpop.eup %24760 }
0x9b3c   :  { %21824 = vmatmul.mubr.msk.f32.vlgmr.msra.gmra.mrb[182].mxu0 %vm169_vm2, %v24761_v15 }
0x9b3d   :  { %24174 = vmatpush3.bf16.msra.mxu0 %v24966_v4  ;;  %21864 = vmatprep.mubr.msk.f32.mxu0 %vm24883_vm0, %v24884_v6 }
0x9b3e   :  { %24175 = vmatprep.subr.bf16.mxu0 %v24882_v3 }
0x9b41   :  { %24177 = vmatpush3.bf16.msra.mxu0 %v24990_v10 }
0x9b42   :  { %24178 = vmatprep.subr.bf16.mxu0 %v24882_v3 }
0x9c0f   :  { %v13626_v37 = vpop.f32.mrb[182].mxu0 }
0x9c10   :  { %v13627_v39 = vadd.f32 %v26936_v47, %v13626_v37  ;;  %v21825_v0 = vpop.f32.mrb[183].mxu0 }
0x9c12   :  { %v13630_v41 = vmul.f32 %v13627_v39, %v27035_v54 }
0x9c14   :  { %v13631_v23 = vadd.f32 %v13630_v41, %v27209_v58 }
0x9c16   :  { %21835 = vmatmul.mubr.msk.f32.vlgmr.msra.gmra.mrb[176].mxu1 %vm90_vm1, %v13631_v23 }
0x9c17   :  { %24162 = vmatpush3.bf16.msra.mxu1 %v24992_v11  ;;  %21853 = vmatprep.mubr.msk.f32.mxu1 %vm24883_vm0, %v24884_v6 }
0x9c18   :  { %24163 = vmatprep.subr.bf16.mxu1 %v24882_v3 }
0x9c1b   :  { %24165 = vmatpush3.bf16.msra.mxu1 %v25013_v14 }
0x9c1c   :  { %24166 = vmatprep.subr.bf16.mxu1 %v24882_v3 }
0x9c1f   :  { %24168 = vmatpush3.bf16.msra.mxu1 %v25023_v17 }
0x9c20   :  { %24169 = vmatprep.subr.bf16.mxu1 %v24882_v3 }
0x9c23   :  { %24171 = vmatpush3.bf16.msra.mxu1 %v25032_v20 }
0x9c24   :  { %24190 = vmatprep.subr.bf16.mxu1 %v24882_v3 }
0x9ce9   :  { %v13701_v43 = vpop.f32.mrb[176].mxu1 }
0x9cea   :  { %v13702_v44 = vadd.f32 %v26923_v63, %v13701_v43  ;;  %v21836_v46 = vpop.f32.mrb[177].mxu1 }
0x9ceb   :  { %v27403_v46 = vld [vmem:[%s27851_s5] ss:$0 sm:$0xff]  ;;  %s17478_s5 = sld [smem:[#allocation3 + $0x13]] }
0x9cec   :  { %24762 = vtanh.f32 %v13702_v44 }
0x9cf6   :  { %v24763_v48 = vpop.eup %24762 }
0x9cf7   :  { %21854 = vmatmul.mubr.msk.f32.vlgmr.msra.gmra.mrb[178].mxu1 %vm169_vm2, %v24763_v48 }
0x9cf8   :  { %24192 = vmatpush3.bf16.msra.mxu1 %v24966_v4  ;;  %21894 = vmatprep.mubr.msk.f32.mxu1 %vm24883_vm0, %v24884_v6 }
0x9cf9   :  { %24193 = vmatprep.subr.bf16.mxu1 %v24882_v3 }
0x9cfc   :  { %24195 = vmatpush3.bf16.msra.mxu1 %v24990_v10 }
0x9cfd   :  { %24196 = vmatprep.subr.bf16.mxu1 %v24882_v3 }
0x9dca   :  { %v13775_v62 = vpop.f32.mrb[178].mxu1 }
0x9dcb   :  { %v13776_v50 = vadd.f32 %v26936_v47, %v13775_v62  ;;  %v21855_v51 = vpop.f32.mrb[179].mxu1 }
0x9dcd   :  { %v13779_v52 = vmul.f32 %v13776_v50, %v27084_v18  ;;  %v13928_v59 = vadd.f32 %v13776_v50, %v13627_v39 }
0x9dcf   :  { %v13780_v21 = vadd.f32 %v13779_v52, %v27209_v58  ;;  %v13929_v60 = vmul.f32 2.0, %v13928_v59  ;;  %v27433_v59 = vstv %s17478_s5 }
0x9dd1   :  { %21865 = vmatmul.mubr.msk.f32.vlgmr.msra.gmra.mrb[184].mxu0 %vm90_vm1, %v13780_v21  ;;  %v13930_v29 = vadd.f32 %v13929_v60, %v27232_v31 }
0x9dd2   :  { %24180 = vmatpush3.bf16.msra.mxu0 %v24992_v11  ;;  %21883 = vmatprep.mubr.msk.f32.mxu0 %vm24883_vm0, %v24884_v6 }
0x9dd3   :  { %24181 = vmatprep.subr.bf16.mxu0 %v24882_v3 }
0x9dd6   :  { %24183 = vmatpush3.bf16.msra.mxu0 %v25013_v14 }
0x9dd7   :  { %24184 = vmatprep.subr.bf16.mxu0 %v24882_v3 }
0x9dda   :  { %24186 = vmatpush3.bf16.msra.mxu0 %v25023_v17 }
0x9ddb   :  { %24187 = vmatprep.subr.bf16.mxu0 %v24882_v3 }
0x9dde   :  { %24189 = vmatpush3.bf16.msra.mxu0 %v25032_v20 }
0x9ddf   :  { %24208 = vmatprep.subr.bf16.mxu0 %v24882_v3 }
0x9ea4   :  { %v13850_v55 = vpop.f32.mrb[184].mxu0 }
0x9ea5   :  { %v13851_v56 = vadd.f32 %v26923_v63, %v13850_v55  ;;  %v21866_v24 = vpop.f32.mrb[185].mxu0 }
0x9ea7   :  { %24764 = vtanh.f32 %v13851_v56 }
0x9eb1   :  { %v24765_v26 = vpop.eup %24764 }
0x9eb2   :  { %21884 = vmatmul.mubr.msk.f32.vlgmr.msra.gmra.mrb[186].mxu0 %vm169_vm2, %v24765_v26 }
0x9eb3   :  { %24210 = vmatpush3.bf16.msra.mxu0 %v24966_v4  ;;  %21924 = vmatprep.mubr.msk.f32.mxu0 %vm24883_vm0, %v24884_v6 }
0x9eb4   :  { %24211 = vmatprep.subr.bf16.mxu0 %v24882_v3 }
0x9eb7   :  { %24213 = vmatpush3.bf16.msra.mxu0 %v24990_v10 }
0x9eb8   :  { %24214 = vmatprep.subr.bf16.mxu0 %v24882_v3 }
0x9f85   :  { %v13924_v28 = vpop.f32.mrb[186].mxu0 }
0x9f86   :  { %v13925_v61 = vadd.f32 %v26936_v47, %v13924_v28  ;;  %v21885_v2 = vpop.f32.mrb[187].mxu0 }
0x9f88   :  { %v13931_v33 = vadd.f32 %v13930_v29, %v13925_v61 }
0x9f8a   :  { %v13932_v5 = vmul.f32 %v13931_v33, %v27110_v34 }
0x9f8c   :  { %v27304_v8 = vadd.f32 %v13932_v5, %v27209_v58 }
0x9f8e   :  { %21895 = vmatmul.mubr.msk.f32.vlgmr.msra.gmra.mrb[180].mxu1 %vm90_vm1, %v27304_v8 }
0x9f8f   :  { %24198 = vmatpush3.bf16.msra.mxu1 %v24992_v11  ;;  %21913 = vmatprep.mubr.msk.f32.mxu1 %vm24883_vm0, %v24884_v6 }
0x9f90   :  { %24199 = vmatprep.subr.bf16.mxu1 %v24882_v3 }
0x9f93   :  { %24201 = vmatpush3.bf16.msra.mxu1 %v25013_v14 }
0x9f94   :  { %24202 = vmatprep.subr.bf16.mxu1 %v24882_v3 }
0x9f97   :  { %24204 = vmatpush3.bf16.msra.mxu1 %v25023_v17 }
0x9f98   :  { %24205 = vmatprep.subr.bf16.mxu1 %v24882_v3 }
0x9f9b   :  { %24207 = vmatpush3.bf16.msra.mxu1 %v25032_v20 }
0x9f9c   :  { %24226 = vmatprep.subr.bf16.mxu1 %v24882_v3 }
0xa061   :  { %v14003_v12 = vpop.f32.mrb[180].mxu1 }
0xa062   :  { %v14004_v38 = vadd.f32 %v26923_v63, %v14003_v12  ;;  %v21896_v13 = vpop.f32.mrb[181].mxu1 }
0xa064   :  { %24766 = vtanh.f32 %v14004_v38 }
0xa06e   :  { %v24767_v16 = vpop.eup %24766 }
0xa06f   :  { %21914 = vmatmul.mubr.msk.f32.vlgmr.msra.gmra.mrb[182].mxu1 %vm169_vm2, %v24767_v16 }
0xa070   :  { %24228 = vmatpush3.bf16.msra.mxu1 %v24966_v4  ;;  %21954 = vmatprep.mubr.msk.f32.mxu1 %vm24883_vm0, %v24884_v6 }
0xa071   :  { %24229 = vmatprep.subr.bf16.mxu1 %v24882_v3 }
0xa074   :  { %24231 = vmatpush3.bf16.msra.mxu1 %v24990_v10 }
0xa075   :  { %24232 = vmatprep.subr.bf16.mxu1 %v24882_v3 }
0xa142   :  { %v14077_v53 = vpop.f32.mrb[182].mxu1 }
0xa143   :  { %v27327_v40 = vadd.f32 %v26936_v47, %v14077_v53  ;;  %v21915_v42 = vpop.f32.mrb[183].mxu1 }
0xa145   :  { %v14081_v19 = vmul.f32 %v27327_v40, %v27035_v54 }
0xa147   :  { %v14082_v22 = vadd.f32 %v14081_v19, %v27304_v8 }
0xa149   :  { %21925 = vmatmul.mubr.msk.f32.vlgmr.msra.gmra.mrb[188].mxu0 %vm90_vm1, %v14082_v22 }
0xa14a   :  { %24216 = vmatpush3.bf16.msra.mxu0 %v24992_v11  ;;  %21943 = vmatprep.mubr.msk.f32.mxu0 %vm24883_vm0, %v24884_v6 }
0xa14b   :  { %24217 = vmatprep.subr.bf16.mxu0 %v24882_v3 }
0xa14e   :  { %24219 = vmatpush3.bf16.msra.mxu0 %v25013_v14 }
0xa14f   :  { %24220 = vmatprep.subr.bf16.mxu0 %v24882_v3 }
0xa152   :  { %24222 = vmatpush3.bf16.msra.mxu0 %v25023_v17 }
0xa153   :  { %24223 = vmatprep.subr.bf16.mxu0 %v24882_v3 }
0xa156   :  { %24225 = vmatpush3.bf16.msra.mxu0 %v25032_v20 }
0xa157   :  { %24244 = vmatprep.subr.bf16.mxu0 %v24882_v3 }
0xa21c   :  { %v14152_v45 = vpop.f32.mrb[188].mxu0 }
0xa21d   :  { %v14153_v58 = vadd.f32 %v26923_v63, %v14152_v45  ;;  %v21926_v25 = vpop.f32.mrb[189].mxu0 }
0xa21f   :  { %24768 = vtanh.f32 %v14153_v58  ;;  %v27482_v58 = vstv %s17477_s0 }
0xa229   :  { %v24769_v49 = vpop.eup %24768 }
0xa22a   :  { %21944 = vmatmul.mubr.msk.f32.vlgmr.msra.gmra.mrb[190].mxu0 %vm169_vm2, %v24769_v49 }
0xa22b   :  { %24246 = vmatpush3.bf16.msra.mxu0 %v24966_v4  ;;  %21984 = vmatprep.mubr.msk.f32.mxu0 %vm24883_vm0, %v24884_v6 }
0xa22c   :  { %24247 = vmatprep.subr.bf16.mxu0 %v24882_v3 }
0xa22f   :  { %24249 = vmatpush3.bf16.msra.mxu0 %v24990_v10 }
0xa230   :  { %24250 = vmatprep.subr.bf16.mxu0 %v24882_v3 }
0xa2fd   :  { %v14226_v27 = vpop.f32.mrb[190].mxu0 }
0xa2fe   :  { %v14227_v30 = vadd.f32 %v26936_v47, %v14226_v27  ;;  %v21945_v1 = vpop.f32.mrb[191].mxu0 }
0xa300   :  { %v14230_v31 = vmul.f32 %v14227_v30, %v27035_v54 }
0xa302   :  { %v14231_v32 = vadd.f32 %v14230_v31, %v27304_v8 }
0xa304   :  { %21955 = vmatmul.mubr.msk.f32.vlgmr.msra.gmra.mrb[184].mxu1 %vm90_vm1, %v14231_v32 }
0xa305   :  { %24234 = vmatpush3.bf16.msra.mxu1 %v24992_v11  ;;  %21973 = vmatprep.mubr.msk.f32.mxu1 %vm24883_vm0, %v24884_v6 }
0xa306   :  { %24235 = vmatprep.subr.bf16.mxu1 %v24882_v3 }
0xa309   :  { %24237 = vmatpush3.bf16.msra.mxu1 %v25013_v14 }
0xa30a   :  { %24238 = vmatprep.subr.bf16.mxu1 %v24882_v3 }
0xa30d   :  { %24240 = vmatpush3.bf16.msra.mxu1 %v25023_v17 }
0xa30e   :  { %24241 = vmatprep.subr.bf16.mxu1 %v24882_v3 }
0xa311   :  { %24243 = vmatpush3.bf16.msra.mxu1 %v25032_v20 }
0xa312   :  { %24262 = vmatprep.subr.bf16.mxu1 %v24882_v3 }
0xa3d7   :  { %v14301_v54 = vpop.f32.mrb[184].mxu1 }
0xa3d8   :  { %v14302_v7 = vadd.f32 %v26923_v63, %v14301_v54  ;;  %v21956_v35 = vpop.f32.mrb[185].mxu1 }
0xa3da   :  { %24770 = vtanh.f32 %v14302_v7 }
0xa3e4   :  { %v24771_v9 = vpop.eup %24770 }
0xa3e5   :  { %21974 = vmatmul.mubr.msk.f32.vlgmr.msra.gmra.mrb[186].mxu1 %vm169_vm2, %v24771_v9 }
0xa3e6   :  { %24264 = vmatpush3.bf16.msra.mxu1 %v24966_v4  ;;  %22014 = vmatprep.mubr.msk.f32.mxu1 %vm24883_vm0, %v24884_v6 }
0xa3e7   :  { %24265 = vmatprep.subr.bf16.mxu1 %v24882_v3 }
0xa3ea   :  { %24267 = vmatpush3.bf16.msra.mxu1 %v24990_v10 }
0xa3eb   :  { %24268 = vmatprep.subr.bf16.mxu1 %v24882_v3 }
0xa4b8   :  { %v14375_v36 = vpop.f32.mrb[186].mxu1 }
0xa4b9   :  { %v14376_v57 = vadd.f32 %v26936_v47, %v14375_v36  ;;  %v21975_v63 = vpop.f32.mrb[187].mxu1 }
0xa4bb   :  { %v14379_v15 = vmul.f32 %v14376_v57, %v27084_v18  ;;  %v27390_v18 = vld [vmem:[%s27849_s3] ss:$0 sm:$0xff]  ;;  %v14528_v23 = vadd.f32 %v14376_v57, %v14227_v30 }
0xa4bd   :  { %v14380_v37 = vadd.f32 %v14379_v15, %v27304_v8  ;;  %v14529_v43 = vmul.f32 2.0, %v14528_v23  ;;  %v27508_v15 = vstv %s17479_s25 }
0xa4bf   :  { %21985 = vmatmul.mubr.msk.f32.vlgmr.msra.gmra.mrb[192].mxu0 %vm90_vm1, %v14380_v37  ;;  %v14530_v62 = vadd.f32 %v14529_v43, %v27327_v40 }
0xa4c0   :  { %24252 = vmatpush3.bf16.msra.mxu0 %v24992_v11  ;;  %22003 = vmatprep.mubr.msk.f32.mxu0 %vm24883_vm0, %v24884_v6 }
0xa4c1   :  { %24253 = vmatprep.subr.bf16.mxu0 %v24882_v3 }
0xa4c4   :  { %24255 = vmatpush3.bf16.msra.mxu0 %v25013_v14 }
0xa4c5   :  { %24256 = vmatprep.subr.bf16.mxu0 %v24882_v3 }
0xa4c8   :  { %24258 = vmatpush3.bf16.msra.mxu0 %v25023_v17 }
0xa4c9   :  { %24259 = vmatprep.subr.bf16.mxu0 %v24882_v3 }
0xa4cc   :  { %24261 = vmatpush3.bf16.msra.mxu0 %v25032_v20 }
0xa4cd   :  { %24280 = vmatprep.subr.bf16.mxu0 %v24882_v3 }
0xa592   :  { %v14450_v47 = vpop.f32.mrb[192].mxu0 }
0xa593   :  { %v14451_v39 = vadd.f32 %v27390_v18, %v14450_v47  ;;  %v21986_v0 = vpop.f32.mrb[193].mxu0 }
0xa595   :  { %24772 = vtanh.f32 %v14451_v39 }
0xa59f   :  { %v24773_v41 = vpop.eup %24772 }
0xa5a0   :  { %22004 = vmatmul.mubr.msk.f32.vlgmr.msra.gmra.mrb[194].mxu0 %vm169_vm2, %v24773_v41 }
0xa5a1   :  { %24282 = vmatpush3.bf16.msra.mxu0 %v24966_v4  ;;  %22044 = vmatprep.mubr.msk.f32.mxu0 %vm24883_vm0, %v24884_v6 }
0xa5a2   :  { %24283 = vmatprep.subr.bf16.mxu0 %v24882_v3 }
0xa5a5   :  { %24285 = vmatpush3.bf16.msra.mxu0 %v24990_v10 }
0xa5a6   :  { %24286 = vmatprep.subr.bf16.mxu0 %v24882_v3 }
0xa673   :  { %v14524_v44 = vpop.f32.mrb[194].mxu0 }
0xa674   :  { %v14525_v48 = vadd.f32 %v27403_v46, %v14524_v44  ;;  %v22005_v50 = vpop.f32.mrb[195].mxu0 }
0xa676   :  { %v14531_v51 = vadd.f32 %v14530_v62, %v14525_v48 }
0xa678   :  { %v14532_v52 = vmul.f32 %v14531_v51, %v27110_v34 }
0xa67a   :  { %v27409_v21 = vadd.f32 %v14532_v52, %v27304_v8 }
0xa67c   :  { %14534 = vst.msk [vmem:[#allocation2 + $0x30] sm:$0xff] %vm90_vm1, %v27409_v21  ;;  %22015 = vmatmul.mubr.msk.f32.vlgmr.msra.gmra.mrb[188].mxu1 %vm90_vm1, %v27409_v21 }
0xa67d   :  { %24270 = vmatpush3.bf16.msra.mxu1 %v24992_v11  ;;  %22033 = vmatprep.mubr.msk.f32.mxu1 %vm24883_vm0, %v24884_v6 }
0xa67e   :  { %24271 = vmatprep.subr.bf16.mxu1 %v24882_v3 }
0xa681   :  { %24273 = vmatpush3.bf16.msra.mxu1 %v25013_v14 }
0xa682   :  { %24274 = vmatprep.subr.bf16.mxu1 %v24882_v3 }
0xa685   :  { %24276 = vmatpush3.bf16.msra.mxu1 %v25023_v17 }
0xa686   :  { %24277 = vmatprep.subr.bf16.mxu1 %v24882_v3 }
0xa689   :  { %24279 = vmatpush3.bf16.msra.mxu1 %v25032_v20 }
0xa68a   :  { %24298 = vmatprep.subr.bf16.mxu1 %v24882_v3 }
0xa74f   :  { %v14607_v34 = vpop.f32.mrb[188].mxu1 }
0xa750   :  { %v14608_v55 = vadd.f32 %v27390_v18, %v14607_v34  ;;  %v22016_v56 = vpop.f32.mrb[189].mxu1 }
0xa752   :  { %24774 = vtanh.f32 %v14608_v55 }
0xa75c   :  { %v24775_v24 = vpop.eup %24774 }
0xa75d   :  { %22034 = vmatmul.mubr.msk.f32.vlgmr.msra.gmra.mrb[190].mxu1 %vm169_vm2, %v24775_v24 }
0xa75e   :  { %24300 = vmatpush3.bf16.msra.mxu1 %v24966_v4  ;;  %22074 = vmatprep.mubr.msk.f32.mxu1 %vm24883_vm0, %v24884_v6 }
0xa75f   :  { %24301 = vmatprep.subr.bf16.mxu1 %v24882_v3 }
0xa762   :  { %24303 = vmatpush3.bf16.msra.mxu1 %v24990_v10 }
0xa763   :  { %24304 = vmatprep.subr.bf16.mxu1 %v24882_v3 }
0xa830   :  { %v14681_v26 = vpop.f32.mrb[190].mxu1 }
0xa831   :  { %v27436_v60 = vadd.f32 %v27403_v46, %v14681_v26  ;;  %v22035_v28 = vpop.f32.mrb[191].mxu1 }
0xa833   :  { %v14686_v61 = vmul.f32 %v27433_v59, %v27436_v60 }
0xa835   :  { %v14687_v29 = vadd.f32 %v14686_v61, %v27409_v21 }
0xa837   :  { %22045 = vmatmul.mubr.msk.f32.vlgmr.msra.gmra.mrb[196].mxu0 %vm90_vm1, %v14687_v29 }
0xa838   :  { %24288 = vmatpush3.bf16.msra.mxu0 %v24992_v11  ;;  %22063 = vmatprep.mubr.msk.f32.mxu0 %vm24883_vm0, %v24884_v6 }
0xa839   :  { %24289 = vmatprep.subr.bf16.mxu0 %v24882_v3 }
0xa83c   :  { %24291 = vmatpush3.bf16.msra.mxu0 %v25013_v14 }
0xa83d   :  { %24292 = vmatprep.subr.bf16.mxu0 %v24882_v3 }
0xa840   :  { %24294 = vmatpush3.bf16.msra.mxu0 %v25023_v17 }
0xa841   :  { %24295 = vmatprep.subr.bf16.mxu0 %v24882_v3 }
0xa844   :  { %24297 = vmatpush3.bf16.msra.mxu0 %v25032_v20 }
0xa845   :  { %24316 = vmatprep.subr.bf16.mxu0 %v24882_v3 }
0xa90a   :  { %v14757_v2 = vpop.f32.mrb[196].mxu0 }
0xa90b   :  { %v14758_v33 = vadd.f32 %v27390_v18, %v14757_v2  ;;  %v22046_v5 = vpop.f32.mrb[197].mxu0 }
0xa90d   :  { %24776 = vtanh.f32 %v14758_v33 }
0xa917   :  { %v24777_v8 = vpop.eup %24776 }
0xa918   :  { %22064 = vmatmul.mubr.msk.f32.vlgmr.msra.gmra.mrb[198].mxu0 %vm169_vm2, %v24777_v8 }
0xa919   :  { %24318 = vmatpush3.bf16.msra.mxu0 %v24966_v4  ;;  %22104 = vmatprep.mubr.msk.f32.mxu0 %vm24883_vm0, %v24884_v6 }
0xa91a   :  { %24319 = vmatprep.subr.bf16.mxu0 %v24882_v3 }
0xa91d   :  { %24321 = vmatpush3.bf16.msra.mxu0 %v24990_v10 }
0xa91e   :  { %24322 = vmatprep.subr.bf16.mxu0 %v24882_v3 }
0xa9eb   :  { %v14831_v12 = vpop.f32.mrb[198].mxu0 }
0xa9ec   :  { %v14832_v38 = vadd.f32 %v27403_v46, %v14831_v12  ;;  %v22065_v13 = vpop.f32.mrb[199].mxu0 }
0xa9ee   :  { %v14835_v16 = vmul.f32 %v14832_v38, %v27433_v59 }
0xa9f0   :  { %v14836_v53 = vadd.f32 %v14835_v16, %v27409_v21 }
0xa9f2   :  { %22075 = vmatmul.mubr.msk.f32.vlgmr.msra.gmra.mrb[192].mxu1 %vm90_vm1, %v14836_v53 }
0xa9f3   :  { %24306 = vmatpush3.bf16.msra.mxu1 %v24992_v11  ;;  %22093 = vmatprep.mubr.msk.f32.mxu1 %vm24883_vm0, %v24884_v6 }
0xa9f4   :  { %24307 = vmatprep.subr.bf16.mxu1 %v24882_v3 }
0xa9f7   :  { %24309 = vmatpush3.bf16.msra.mxu1 %v25013_v14 }
0xa9f8   :  { %24310 = vmatprep.subr.bf16.mxu1 %v24882_v3 }
0xa9fb   :  { %24312 = vmatpush3.bf16.msra.mxu1 %v25023_v17 }
0xa9fc   :  { %24313 = vmatprep.subr.bf16.mxu1 %v24882_v3 }
0xa9ff   :  { %24315 = vmatpush3.bf16.msra.mxu1 %v25032_v20 }
0xaa00   :  { %24334 = vmatprep.subr.bf16.mxu1 %v24882_v3 }
0xaac5   :  { %v14906_v40 = vpop.f32.mrb[192].mxu1 }
0xaac6   :  { %v14907_v42 = vadd.f32 %v27390_v18, %v14906_v40  ;;  %v22076_v19 = vpop.f32.mrb[193].mxu1 }
0xaac8   :  { %24778 = vtanh.f32 %v14907_v42 }
0xaad2   :  { %v24779_v22 = vpop.eup %24778 }
0xaad3   :  { %22094 = vmatmul.mubr.msk.f32.vlgmr.msra.gmra.mrb[194].mxu1 %vm169_vm2, %v24779_v22 }
0xaad4   :  { %24336 = vmatpush3.bf16.msra.mxu1 %v24966_v4  ;;  %22134 = vmatprep.mubr.msk.f32.mxu1 %vm24883_vm0, %v24884_v6 }
0xaad5   :  { %24337 = vmatprep.subr.bf16.mxu1 %v24882_v3 }
0xaad8   :  { %24339 = vmatpush3.bf16.msra.mxu1 %v24990_v10 }
0xaad9   :  { %24340 = vmatprep.subr.bf16.mxu1 %v24882_v3 }
0xaba6   :  { %v14980_v45 = vpop.f32.mrb[194].mxu1 }
0xaba7   :  { %v14981_v25 = vadd.f32 %v27403_v46, %v14980_v45  ;;  %v22095_v49 = vpop.f32.mrb[195].mxu1 }
0xaba9   :  { %v14985_v27 = vmul.f32 %v27482_v58, %v14981_v25  ;;  %v15134_v7 = vadd.f32 %v14981_v25, %v14832_v38 }
0xabab   :  { %v14986_v30 = vadd.f32 %v14985_v27, %v27409_v21  ;;  %v15135_v35 = vmul.f32 2.0, %v15134_v7 }
0xabad   :  { %22105 = vmatmul.mubr.msk.f32.vlgmr.msra.gmra.mrb[200].mxu0 %vm90_vm1, %v14986_v30  ;;  %v15136_v57 = vadd.f32 %v15135_v35, %v27436_v60 }
0xabae   :  { %24324 = vmatpush3.bf16.msra.mxu0 %v24992_v11  ;;  %22123 = vmatprep.mubr.msk.f32.mxu0 %vm24883_vm0, %v24884_v6 }
0xabaf   :  { %24325 = vmatprep.subr.bf16.mxu0 %v24882_v3 }
0xabb2   :  { %24327 = vmatpush3.bf16.msra.mxu0 %v25013_v14 }
0xabb3   :  { %24328 = vmatprep.subr.bf16.mxu0 %v24882_v3 }
0xabb6   :  { %24330 = vmatpush3.bf16.msra.mxu0 %v25023_v17 }
0xabb7   :  { %24331 = vmatprep.subr.bf16.mxu0 %v24882_v3 }
0xabba   :  { %24333 = vmatpush3.bf16.msra.mxu0 %v25032_v20 }
0xabbb   :  { %24352 = vmatprep.subr.bf16.mxu0 %v24882_v3 }
0xac80   :  { %v15056_v1 = vpop.f32.mrb[200].mxu0 }
0xac81   :  { %v15057_v31 = vadd.f32 %v27390_v18, %v15056_v1  ;;  %v22106_v32 = vpop.f32.mrb[201].mxu0 }
0xac83   :  { %24780 = vtanh.f32 %v15057_v31 }
0xac8d   :  { %v24781_v54 = vpop.eup %24780 }
0xac8e   :  { %22124 = vmatmul.mubr.msk.f32.vlgmr.msra.gmra.mrb[202].mxu0 %vm169_vm2, %v24781_v54 }
0xac8f   :  { %24354 = vmatpush3.bf16.msra.mxu0 %v24966_v4  ;;  %22164 = vmatprep.mubr.msk.f32.mxu0 %vm24883_vm0, %v24884_v6 }
0xac90   :  { %24355 = vmatprep.subr.bf16.mxu0 %v24882_v3 }
0xac93   :  { %24357 = vmatpush3.bf16.msra.mxu0 %v24990_v10 }
0xac94   :  { %24358 = vmatprep.subr.bf16.mxu0 %v24882_v3 }
0xad61   :  { %v15130_v9 = vpop.f32.mrb[202].mxu0 }
0xad62   :  { %v15131_v36 = vadd.f32 %v27403_v46, %v15130_v9  ;;  %v22125_v63 = vpop.f32.mrb[203].mxu0 }
0xad64   :  { %v15137_v37 = vadd.f32 %v15136_v57, %v15131_v36 }
0xad66   :  { %v15139_v47 = vmul.f32 %v27508_v15, %v15137_v37 }
0xad68   :  { %v27512_v39 = vadd.f32 %v15139_v47, %v27409_v21 }
0xad6a   :  { %22135 = vmatmul.mubr.msk.f32.vlgmr.msra.gmra.mrb[196].mxu1 %vm90_vm1, %v27512_v39 }
0xad6b   :  { %24342 = vmatpush3.bf16.msra.mxu1 %v24992_v11  ;;  %22153 = vmatprep.mubr.msk.f32.mxu1 %vm24883_vm0, %v24884_v6 }
0xad6c   :  { %24343 = vmatprep.subr.bf16.mxu1 %v24882_v3 }
0xad6f   :  { %24345 = vmatpush3.bf16.msra.mxu1 %v25013_v14 }
0xad70   :  { %24346 = vmatprep.subr.bf16.mxu1 %v24882_v3 }
0xad73   :  { %24348 = vmatpush3.bf16.msra.mxu1 %v25023_v17 }
0xad74   :  { %24349 = vmatprep.subr.bf16.mxu1 %v24882_v3 }
0xad77   :  { %24351 = vmatpush3.bf16.msra.mxu1 %v25032_v20 }
0xad78   :  { %24370 = vmatprep.subr.bf16.mxu1 %v24882_v3 }
0xae3d   :  { %v15210_v0 = vpop.f32.mrb[196].mxu1 }
0xae3e   :  { %v15211_v41 = vadd.f32 %v27390_v18, %v15210_v0  ;;  %v22136_v23 = vpop.f32.mrb[197].mxu1 }
0xae40   :  { %24782 = vtanh.f32 %v15211_v41 }
0xae4a   :  { %v24783_v43 = vpop.eup %24782 }
0xae4b   :  { %22154 = vmatmul.mubr.msk.f32.vlgmr.msra.gmra.mrb[198].mxu1 %vm169_vm2, %v24783_v43 }
0xae4c   :  { %24372 = vmatpush3.bf16.msra.mxu1 %v24966_v4  ;;  %22194 = vmatprep.mubr.msk.f32.mxu1 %vm24883_vm0, %v24884_v6 }
0xae4d   :  { %24373 = vmatprep.subr.bf16.mxu1 %v24882_v3 }
0xae50   :  { %24375 = vmatpush3.bf16.msra.mxu1 %v24990_v10 }
0xae51   :  { %24376 = vmatprep.subr.bf16.mxu1 %v24882_v3 }
0xaf1e   :  { %v15284_v44 = vpop.f32.mrb[198].mxu1 }
0xaf1f   :  { %v27535_v48 = vadd.f32 %v27403_v46, %v15284_v44  ;;  %v22155_v62 = vpop.f32.mrb[199].mxu1 }
0xaf21   :  { %v15288_v50 = vmul.f32 %v27535_v48, %v27433_v59 }
0xaf23   :  { %v15289_v51 = vadd.f32 %v15288_v50, %v27512_v39 }
0xaf25   :  { %22165 = vmatmul.mubr.msk.f32.vlgmr.msra.gmra.mrb[204].mxu0 %vm90_vm1, %v15289_v51 }
0xaf26   :  { %24360 = vmatpush3.bf16.msra.mxu0 %v24992_v11  ;;  %22183 = vmatprep.mubr.msk.f32.mxu0 %vm24883_vm0, %v24884_v6 }
0xaf27   :  { %24361 = vmatprep.subr.bf16.mxu0 %v24882_v3 }
0xaf2a   :  { %24363 = vmatpush3.bf16.msra.mxu0 %v25013_v14 }
0xaf2b   :  { %24364 = vmatprep.subr.bf16.mxu0 %v24882_v3 }
0xaf2e   :  { %24366 = vmatpush3.bf16.msra.mxu0 %v25023_v17 }
0xaf2f   :  { %24367 = vmatprep.subr.bf16.mxu0 %v24882_v3 }
0xaf32   :  { %24369 = vmatpush3.bf16.msra.mxu0 %v25032_v20 }
0xaf33   :  { %24388 = vmatprep.subr.bf16.mxu0 %v24882_v3 }
0xaff8   :  { %v15359_v52 = vpop.f32.mrb[204].mxu0 }
0xaff9   :  { %v15360_v21 = vadd.f32 %v27390_v18, %v15359_v52  ;;  %v22166_v34 = vpop.f32.mrb[205].mxu0 }
0xaffb   :  { %24784 = vtanh.f32 %v15360_v21 }
0xb005   :  { %v24785_v55 = vpop.eup %24784 }
0xb006   :  { %22184 = vmatmul.mubr.msk.f32.vlgmr.msra.gmra.mrb[206].mxu0 %vm169_vm2, %v24785_v55 }
0xb007   :  { %24390 = vmatpush3.bf16.msra.mxu0 %v24966_v4  ;;  %22224 = vmatprep.mubr.msk.f32.mxu0 %vm24883_vm0, %v24884_v6 }
0xb008   :  { %24391 = vmatprep.subr.bf16.mxu0 %v24882_v3 }
0xb00b   :  { %24393 = vmatpush3.bf16.msra.mxu0 %v24990_v10 }
0xb00c   :  { %24394 = vmatprep.subr.bf16.mxu0 %v24882_v3 }
0xb0d9   :  { %v15433_v56 = vpop.f32.mrb[206].mxu0 }
0xb0da   :  { %v15434_v24 = vadd.f32 %v27403_v46, %v15433_v56  ;;  %v22185_v26 = vpop.f32.mrb[207].mxu0 }
0xb0dc   :  { %v15437_v60 = vmul.f32 %v15434_v24, %v27433_v59 }
0xb0de   :  { %v15438_v28 = vadd.f32 %v15437_v60, %v27512_v39 }
0xb0e0   :  { %22195 = vmatmul.mubr.msk.f32.vlgmr.msra.gmra.mrb[200].mxu1 %vm90_vm1, %v15438_v28 }
0xb0e1   :  { %24378 = vmatpush3.bf16.msra.mxu1 %v24992_v11  ;;  %22213 = vmatprep.mubr.msk.f32.mxu1 %vm24883_vm0, %v24884_v6 }
0xb0e2   :  { %24379 = vmatprep.subr.bf16.mxu1 %v24882_v3 }
0xb0e5   :  { %24381 = vmatpush3.bf16.msra.mxu1 %v25013_v14 }
0xb0e6   :  { %24382 = vmatprep.subr.bf16.mxu1 %v24882_v3 }
0xb0e9   :  { %24384 = vmatpush3.bf16.msra.mxu1 %v25023_v17 }
0xb0ea   :  { %24385 = vmatprep.subr.bf16.mxu1 %v24882_v3 }
0xb0ed   :  { %24387 = vmatpush3.bf16.msra.mxu1 %v25032_v20 }
0xb0ee   :  { %24406 = vmatprep.subr.bf16.mxu1 %v24882_v3 }
0xb1b3   :  { %v15508_v61 = vpop.f32.mrb[200].mxu1 }
0xb1b4   :  { %v15509_v29 = vadd.f32 %v27390_v18, %v15508_v61  ;;  %v22196_v2 = vpop.f32.mrb[201].mxu1 }
0xb1b6   :  { %24786 = vtanh.f32 %v15509_v29 }
0xb1c0   :  { %v24787_v33 = vpop.eup %24786 }
0xb1c1   :  { %22214 = vmatmul.mubr.msk.f32.vlgmr.msra.gmra.mrb[202].mxu1 %vm169_vm2, %v24787_v33 }
0xb1c2   :  { %24408 = vmatpush3.bf16.msra.mxu1 %v24966_v4  ;;  %22254 = vmatprep.mubr.msk.f32.mxu1 %vm24883_vm0, %v24884_v6 }
0xb1c3   :  { %24409 = vmatprep.subr.bf16.mxu1 %v24882_v3 }
0xb1c6   :  { %24411 = vmatpush3.bf16.msra.mxu1 %v24990_v10 }
0xb1c7   :  { %24412 = vmatprep.subr.bf16.mxu1 %v24882_v3 }
0xb294   :  { %v15582_v5 = vpop.f32.mrb[202].mxu1 }
0xb295   :  { %v15583_v8 = vadd.f32 %v27403_v46, %v15582_v5  ;;  %v22215_v12 = vpop.f32.mrb[203].mxu1 }
0xb297   :  { %v15586_v38 = vmul.f32 %v15583_v8, %v27482_v58  ;;  %v15735_v19 = vadd.f32 %v15583_v8, %v15434_v24 }
0xb299   :  { %v15587_v13 = vadd.f32 %v15586_v38, %v27512_v39  ;;  %v15736_v22 = vmul.f32 2.0, %v15735_v19 }
0xb29b   :  { %22225 = vmatmul.mubr.msk.f32.vlgmr.msra.gmra.mrb[208].mxu0 %vm90_vm1, %v15587_v13  ;;  %v15737_v49 = vadd.f32 %v15736_v22, %v27535_v48 }
0xb29c   :  { %24396 = vmatpush3.bf16.msra.mxu0 %v24992_v11  ;;  %22243 = vmatprep.mubr.msk.f32.mxu0 %vm24883_vm0, %v24884_v6 }
0xb29d   :  { %24397 = vmatprep.subr.bf16.mxu0 %v24882_v3 }
0xb2a0   :  { %24399 = vmatpush3.bf16.msra.mxu0 %v25013_v14 }
0xb2a1   :  { %24400 = vmatprep.subr.bf16.mxu0 %v24882_v3 }
0xb2a4   :  { %24402 = vmatpush3.bf16.msra.mxu0 %v25023_v17 }
0xb2a5   :  { %24403 = vmatprep.subr.bf16.mxu0 %v24882_v3 }
0xb2a8   :  { %24405 = vmatpush3.bf16.msra.mxu0 %v25032_v20 }
0xb2a9   :  { %24424 = vmatprep.subr.bf16.mxu0 %v24882_v3 }
0xb36e   :  { %v15657_v16 = vpop.f32.mrb[208].mxu0 }
0xb36f   :  { %v15658_v53 = vadd.f32 %v27390_v18, %v15657_v16  ;;  %v22226_v40 = vpop.f32.mrb[209].mxu0 }
0xb371   :  { %24788 = vtanh.f32 %v15658_v53 }
0xb37b   :  { %v24789_v42 = vpop.eup %24788 }
0xb37c   :  { %22244 = vmatmul.mubr.msk.f32.vlgmr.msra.gmra.mrb[210].mxu0 %vm169_vm2, %v24789_v42 }
0xb37d   :  { %24426 = vmatpush3.bf16.msra.mxu0 %v24966_v4  ;;  %22284 = vmatprep.mubr.msk.f32.mxu0 %vm24883_vm0, %v24884_v6 }
0xb37e   :  { %24427 = vmatprep.subr.bf16.mxu0 %v24882_v3 }
0xb381   :  { %24429 = vmatpush3.bf16.msra.mxu0 %v24990_v10 }
0xb382   :  { %24430 = vmatprep.subr.bf16.mxu0 %v24882_v3 }
0xb44f   :  { %v15731_v45 = vpop.f32.mrb[210].mxu0 }
0xb450   :  { %v15732_v25 = vadd.f32 %v27403_v46, %v15731_v45  ;;  %v22245_v27 = vpop.f32.mrb[211].mxu0 }
0xb452   :  { %v15738_v30 = vadd.f32 %v15737_v49, %v15732_v25 }
0xb454   :  { %v15739_v1 = vmul.f32 %v15738_v30, %v27508_v15 }
0xb456   :  { %v27607_v31 = vadd.f32 %v15739_v1, %v27512_v39 }
0xb458   :  { %22255 = vmatmul.mubr.msk.f32.vlgmr.msra.gmra.mrb[204].mxu1 %vm90_vm1, %v27607_v31 }
0xb459   :  { %24414 = vmatpush3.bf16.msra.mxu1 %v24992_v11  ;;  %22273 = vmatprep.mubr.msk.f32.mxu1 %vm24883_vm0, %v24884_v6 }
0xb45a   :  { %24415 = vmatprep.subr.bf16.mxu1 %v24882_v3 }
0xb45d   :  { %24417 = vmatpush3.bf16.msra.mxu1 %v25013_v14 }
0xb45e   :  { %24418 = vmatprep.subr.bf16.mxu1 %v24882_v3 }
0xb461   :  { %24420 = vmatpush3.bf16.msra.mxu1 %v25023_v17 }
0xb462   :  { %24421 = vmatprep.subr.bf16.mxu1 %v24882_v3 }
0xb465   :  { %24423 = vmatpush3.bf16.msra.mxu1 %v25032_v20 }
0xb466   :  { %24442 = vmatprep.subr.bf16.mxu1 %v24882_v3 }
0xb52b   :  { %v15810_v32 = vpop.f32.mrb[204].mxu1 }
0xb52c   :  { %v15811_v54 = vadd.f32 %v27390_v18, %v15810_v32  ;;  %v22256_v7 = vpop.f32.mrb[205].mxu1 }
0xb52e   :  { %24790 = vtanh.f32 %v15811_v54 }
0xb538   :  { %v24791_v35 = vpop.eup %24790 }
0xb539   :  { %22274 = vmatmul.mubr.msk.f32.vlgmr.msra.gmra.mrb[206].mxu1 %vm169_vm2, %v24791_v35 }
0xb53a   :  { %24444 = vmatpush3.bf16.msra.mxu1 %v24966_v4  ;;  %22314 = vmatprep.mubr.msk.f32.mxu1 %vm24883_vm0, %v24884_v6 }
0xb53b   :  { %24445 = vmatprep.subr.bf16.mxu1 %v24882_v3 }
0xb53e   :  { %24447 = vmatpush3.bf16.msra.mxu1 %v24990_v10 }
0xb53f   :  { %24448 = vmatprep.subr.bf16.mxu1 %v24882_v3 }
0xb60c   :  { %v15884_v9 = vpop.f32.mrb[206].mxu1 }
0xb60d   :  { %v27630_v36 = vadd.f32 %v27403_v46, %v15884_v9  ;;  %v22275_v57 = vpop.f32.mrb[207].mxu1 }
0xb60f   :  { %v15888_v63 = vmul.f32 %v27630_v36, %v27433_v59 }
0xb611   :  { %v15889_v37 = vadd.f32 %v15888_v63, %v27607_v31 }
0xb613   :  { %22285 = vmatmul.mubr.msk.f32.vlgmr.msra.gmra.mrb[212].mxu0 %vm90_vm1, %v15889_v37 }
0xb614   :  { %24432 = vmatpush3.bf16.msra.mxu0 %v24992_v11  ;;  %22303 = vmatprep.mubr.msk.f32.mxu0 %vm24883_vm0, %v24884_v6 }
0xb615   :  { %24433 = vmatprep.subr.bf16.mxu0 %v24882_v3 }
0xb618   :  { %24435 = vmatpush3.bf16.msra.mxu0 %v25013_v14 }
0xb619   :  { %24436 = vmatprep.subr.bf16.mxu0 %v24882_v3 }
0xb61c   :  { %24438 = vmatpush3.bf16.msra.mxu0 %v25023_v17 }
0xb61d   :  { %24439 = vmatprep.subr.bf16.mxu0 %v24882_v3 }
0xb620   :  { %24441 = vmatpush3.bf16.msra.mxu0 %v25032_v20 }
0xb621   :  { %24460 = vmatprep.subr.bf16.mxu0 %v24882_v3 }
0xb6e6   :  { %v15959_v47 = vpop.f32.mrb[212].mxu0 }
0xb6e7   :  { %v15960_v39 = vadd.f32 %v27390_v18, %v15959_v47  ;;  %v22286_v0 = vpop.f32.mrb[213].mxu0 }
0xb6e8   :  { %v16953_v0 = vld [vmem:[#allocation7 + $0x18] sm:$0xff] }
0xb6e9   :  { %24792 = vtanh.f32 %v15960_v39  ;;  %v16952_v39 = vld [vmem:[#allocation7 + $0x10] sm:$0xff] }
0xb6f3   :  { %v24793_v41 = vpop.eup %24792 }
0xb6f4   :  { %22304 = vmatmul.mubr.msk.f32.vlgmr.msra.gmra.mrb[214].mxu0 %vm169_vm2, %v24793_v41  ;;  %v24554_v41 = vpack.c.bf16 %v16953_v0, %v16952_v39  ;;  %v17521_v0 = vld [vmem:[%s27855_s9] ss:$0 sm:$0xff]  ;;  %s24885_s9 = smov [#allocation8]  }
0xb6f5   :  { %24462 = vmatpush3.bf16.msra.mxu0 %v24966_v4  ;;  %22344 = vmatprep.mubr.msk.f32.mxu0 %vm24883_vm0, %v24884_v6  ;;  %s17256_s2 = sshll.u32 %s24885_s9, 4  ;;  %s17257_s2 = int_to_ptr.vmem [resolvable:$true] %s17256_s2 }
0xb6f6   :  { %24463 = vmatprep.subr.bf16.mxu0 %v24882_v3  ;;  %s24850_s22 = scalar_lea.vmem %s17257_s2, 1024  ;;  %p24855_p0 = scmp.lt.s32.totalorder %s17257_s2, %s17257_s2 }
0xb6f7   :  { %p24851_p13 = scmp.ne.s32.totalorder %s17257_s2, %s24850_s22  ;;  %p24856_p1 = scmp.lt.s32.totalorder %s24850_s22, %s24850_s22 }
0xb6f9   :  { %24465 = vmatpush3.bf16.msra.mxu0 %v24990_v10  ;;  %p24857_p2 = por %p24856_p1, %p24855_p0 }
0xb6fa   :  { %24466 = vmatprep.subr.bf16.mxu0 %v24882_v3 }
0xb6fb   :  { %p24858_p3 = pnand %p24857_p2, %p24851_p13 }
0xb7c7   :  { %v16033_v23 = vpop.f32.mrb[214].mxu0 }
0xb7c8   :  { %v16034_v43 = vadd.f32 %v27403_v46, %v16033_v23  ;;  %v22305_v44 = vpop.f32.mrb[215].mxu0  ;;  %v16942_v23 = vld [vmem:[#allocation2] sm:$0xff] }
0xb7c9   :  { %v16943_v44 = vld [vmem:[#allocation2 + $0x8] sm:$0xff] }
0xb7ca   :  { %v16037_v48 = vmul.f32 %v16034_v43, %v27433_v59 }
0xb7cc   :  { %v16038_v62 = vadd.f32 %v16037_v48, %v27607_v31  ;;  %v16944_v48 = vld [vmem:[#allocation2 + $0x10] sm:$0xff] }
0xb7ce   :  { %22315 = vmatmul.mubr.msk.f32.vlgmr.msra.gmra.mrb[208].mxu1 %vm90_vm1, %v16038_v62  ;;  %v16945_v62 = vld [vmem:[#allocation2 + $0x18] sm:$0xff] }
0xb7cf   :  { %24450 = vmatpush3.bf16.msra.mxu1 %v24992_v11  ;;  %22333 = vmatprep.mubr.msk.f32.mxu1 %vm24883_vm0, %v24884_v6 }
0xb7d0   :  { %24451 = vmatprep.subr.bf16.mxu1 %v24882_v3 }
0xb7d3   :  { %24453 = vmatpush3.bf16.msra.mxu1 %v25013_v14 }
0xb7d4   :  { %24454 = vmatprep.subr.bf16.mxu1 %v24882_v3 }
0xb7d7   :  { %24456 = vmatpush3.bf16.msra.mxu1 %v25023_v17 }
0xb7d8   :  { %24457 = vmatprep.subr.bf16.mxu1 %v24882_v3 }
0xb7db   :  { %24459 = vmatpush3.bf16.msra.mxu1 %v25032_v20 }
0xb7dc   :  { %24478 = vmatprep.subr.bf16.mxu1 %v24882_v3 }
0xb8a1   :  { %v16108_v50 = vpop.f32.mrb[208].mxu1 }
0xb8a2   :  { %v16109_v51 = vadd.f32 %v27390_v18, %v16108_v50  ;;  %v22316_v52 = vpop.f32.mrb[209].mxu1  ;;  %v16946_v50 = vld [vmem:[#allocation2 + $0x20] sm:$0xff] }
0xb8a3   :  { %v16948_v52 = vld [vmem:[#allocation2 + $0x30] sm:$0xff] }
0xb8a4   :  { %24794 = vtanh.f32 %v16109_v51  ;;  %v16947_v51 = vld [vmem:[#allocation2 + $0x28] sm:$0xff] }
0xb8ae   :  { %v24795_v21 = vpop.eup %24794 }
0xb8af   :  { %22334 = vmatmul.mubr.msk.f32.vlgmr.msra.gmra.mrb[210].mxu1 %vm169_vm2, %v24795_v21 }
0xb8b0   :  { %24480 = vmatpush3.bf16.msra.mxu1 %v24966_v4  ;;  %22374 = vmatprep.mubr.msk.f32.mxu1 %vm24883_vm0, %v24884_v6 }
0xb8b1   :  { %24481 = vmatprep.subr.bf16.mxu1 %v24882_v3 }
0xb8b4   :  { %24483 = vmatpush3.bf16.msra.mxu1 %v24990_v10 }
0xb8b5   :  { %24484 = vmatprep.subr.bf16.mxu1 %v24882_v3 }
0xb982   :  { %v16182_v34 = vpop.f32.mrb[210].mxu1 }
0xb983   :  { %v16183_v55 = vadd.f32 %v27403_v46, %v16182_v34  ;;  %v22335_v56 = vpop.f32.mrb[211].mxu1 }
0xb985   :  { %v16186_v24 = vmul.f32 %v16183_v55, %v27482_v58  ;;  %v16335_v2 = vadd.f32 %v16183_v55, %v16034_v43 }
0xb987   :  { %v16187_v26 = vadd.f32 %v16186_v24, %v27607_v31  ;;  %v16336_v33 = vmul.f32 2.0, %v16335_v2 }
0xb989   :  { %22345 = vmatmul.mubr.msk.f32.vlgmr.msra.gmra.mrb[216].mxu0 %vm90_vm1, %v16187_v26  ;;  %v16337_v12 = vadd.f32 %v16336_v33, %v27630_v36 }
0xb98a   :  { %24468 = vmatpush3.bf16.msra.mxu0 %v24992_v11  ;;  %22363 = vmatprep.mubr.msk.f32.mxu0 %vm24883_vm0, %v24884_v6 }
0xb98b   :  { %24469 = vmatprep.subr.bf16.mxu0 %v24882_v3 }
0xb98e   :  { %24471 = vmatpush3.bf16.msra.mxu0 %v25013_v14 }
0xb98f   :  { %24472 = vmatprep.subr.bf16.mxu0 %v24882_v3 }
0xb992   :  { %24474 = vmatpush3.bf16.msra.mxu0 %v25023_v17 }
0xb993   :  { %24475 = vmatprep.subr.bf16.mxu0 %v24882_v3 }
0xb996   :  { %24477 = vmatpush3.bf16.msra.mxu0 %v25032_v20 }
0xb997   :  { %24496 = vmatprep.subr.bf16.mxu0 %v24882_v3 }
0xba5c   :  { %v16257_v60 = vpop.f32.mrb[216].mxu0 }
0xba5d   :  { %v16258_v28 = vadd.f32 %v27390_v18, %v16257_v60  ;;  %v22346_v61 = vpop.f32.mrb[217].mxu0 }
0xba5f   :  { %24796 = vtanh.f32 %v16258_v28 }
0xba69   :  { %v24797_v29 = vpop.eup %24796 }
0xba6a   :  { %22364 = vmatmul.mubr.msk.f32.vlgmr.msra.gmra.mrb[218].mxu0 %vm169_vm2, %v24797_v29 }
0xba6b   :  { %24498 = vmatpush3.bf16.msra.mxu0 %v24966_v4  ;;  %22404 = vmatprep.mubr.msk.f32.mxu0 %vm24883_vm0, %v24884_v6 }
0xba6c   :  { %24499 = vmatprep.subr.bf16.mxu0 %v24882_v3 }
0xba6f   :  { %24501 = vmatpush3.bf16.msra.mxu0 %v24990_v10 }
0xba70   :  { %24502 = vmatprep.subr.bf16.mxu0 %v24882_v3 }
0xbb3d   :  { %v16331_v5 = vpop.f32.mrb[218].mxu0 }
0xbb3e   :  { %v16332_v8 = vadd.f32 %v27403_v46, %v16331_v5  ;;  %v22365_v38 = vpop.f32.mrb[219].mxu0 }
0xbb40   :  { %v16338_v13 = vadd.f32 %v16337_v12, %v16332_v8  ;;  %v17102_v8 = vld [vmem:[%s27854_s8 + $0x20] sm:$0xff]  ;;  %v17103_v12 = vld [vmem:[%s27854_s8 + $0x28] sm:$0xff] }
0xbb41   :  { %v24566_v38 = vpack.c.bf16 %v17103_v12, %v17102_v8 }
0xbb42   :  { %v16339_v16 = vmul.f32 %v16338_v13, %v27508_v15  ;;  %v17104_v13 = vld [vmem:[%s27854_s8 + $0x30] sm:$0xff] }
0xbb44   :  { %v27702_v53 = vadd.f32 %v16339_v16, %v27607_v31  ;;  %v17105_v16 = vld [vmem:[%s27854_s8 + $0x38] sm:$0xff] }
0xbb46   :  { %22375 = vmatmul.mubr.msk.f32.vlgmr.msra.gmra.mrb[212].mxu1 %vm90_vm1, %v27702_v53 }
0xbb47   :  { %24486 = vmatpush3.bf16.msra.mxu1 %v24992_v11  ;;  %22393 = vmatprep.mubr.msk.f32.mxu1 %vm24883_vm0, %v24884_v6 }
0xbb48   :  { %24487 = vmatprep.subr.bf16.mxu1 %v24882_v3 }
0xbb4b   :  { %24489 = vmatpush3.bf16.msra.mxu1 %v25013_v14 }
0xbb4c   :  { %24490 = vmatprep.subr.bf16.mxu1 %v24882_v3 }
0xbb4f   :  { %24492 = vmatpush3.bf16.msra.mxu1 %v25023_v17 }
0xbb50   :  { %24493 = vmatprep.subr.bf16.mxu1 %v24882_v3 }
0xbb53   :  { %24495 = vmatpush3.bf16.msra.mxu1 %v25032_v20 }
0xbb54   :  { %24514 = vmatprep.subr.bf16.mxu1 %v24882_v3 }
0xbc19   :  { %v16410_v40 = vpop.f32.mrb[212].mxu1 }
0xbc1a   :  { %v16411_v42 = vadd.f32 %v27390_v18, %v16410_v40  ;;  %v22376_v19 = vpop.f32.mrb[213].mxu1  ;;  %v24570_v40 = vpack.c.bf16 %v17105_v16, %v17104_v13 }
0xbc1c   :  { %24798 = vtanh.f32 %v16411_v42 }
0xbc26   :  { %v24799_v22 = vpop.eup %24798 }
0xbc27   :  { %22394 = vmatmul.mubr.msk.f32.vlgmr.msra.gmra.mrb[214].mxu1 %vm169_vm2, %v24799_v22 }
0xbc28   :  { %24516 = vmatpush3.bf16.msra.mxu1 %v24966_v4  ;;  %22434 = vmatprep.mubr.msk.f32.mxu1 %vm24883_vm0, %v24884_v6 }
0xbc29   :  { %24517 = vmatprep.subr.bf16.mxu1 %v24882_v3 }
0xbc2c   :  { %24519 = vmatpush3.bf16.msra.mxu1 %v24990_v10 }
0xbc2d   :  { %24520 = vmatprep.subr.bf16.mxu1 %v24882_v3 }
0xbcfa   :  { %v16484_v45 = vpop.f32.mrb[214].mxu1 }
0xbcfb   :  { %v27725_v25 = vadd.f32 %v27403_v46, %v16484_v45  ;;  %v22395_v49 = vpop.f32.mrb[215].mxu1 }
0xbcfd   :  { %v16488_v27 = vmul.f32 %v27725_v25, %v27433_v59 }
0xbcff   :  { %v16489_v30 = vadd.f32 %v16488_v27, %v27702_v53 }
0xbd01   :  { %22405 = vmatmul.mubr.msk.f32.vlgmr.msra.gmra.mrb[220].mxu0 %vm90_vm1, %v16489_v30 }
0xbd02   :  { %24504 = vmatpush3.bf16.msra.mxu0 %v24992_v11  ;;  %22423 = vmatprep.mubr.msk.f32.mxu0 %vm24883_vm0, %v24884_v6 }
0xbd03   :  { %24505 = vmatprep.subr.bf16.mxu0 %v24882_v3 }
0xbd06   :  { %24507 = vmatpush3.bf16.msra.mxu0 %v25013_v14 }
0xbd07   :  { %24508 = vmatprep.subr.bf16.mxu0 %v24882_v3 }
0xbd0a   :  { %24510 = vmatpush3.bf16.msra.mxu0 %v25023_v17 }
0xbd0b   :  { %24511 = vmatprep.subr.bf16.mxu0 %v24882_v3 }
0xbd0e   :  { %24513 = vmatpush3.bf16.msra.mxu0 %v25032_v20 }
0xbd0f   :  { %24532 = vmatprep.subr.bf16.mxu0 %v24882_v3 }
0xbdd4   :  { %v16559_v1 = vpop.f32.mrb[220].mxu0 }
0xbdd5   :  { %v16560_v31 = vadd.f32 %v27390_v18, %v16559_v1  ;;  %v22406_v32 = vpop.f32.mrb[221].mxu0 }
0xbdd6   :  { %v17512_v32 = vld [vmem:[%s27853_s7] ss:$0 sm:$0xff] }
0xbdd7   :  { %24800 = vtanh.f32 %v16560_v31 }
0xbde1   :  { %v24801_v54 = vpop.eup %24800 }
0xbde2   :  { %22424 = vmatmul.mubr.msk.f32.vlgmr.msra.gmra.mrb[222].mxu0 %vm169_vm2, %v24801_v54 }
0xbde3   :  { %24534 = vmatpush3.bf16.msra.mxu0 %v24966_v4  ;;  %22464 = vmatprep.mubr.msk.f32.mxu0 %vm24883_vm0, %v24884_v6  ;;  %v16950_v4 = vld [vmem:[#allocation7] sm:$0xff] }
0xbde4   :  { %24535 = vmatprep.subr.bf16.mxu0 %v24882_v3 }
0xbde7   :  { %24537 = vmatpush3.bf16.msra.mxu0 %v24990_v10  ;;  %v16951_v10 = vld [vmem:[#allocation7 + $0x8] sm:$0xff] }
0xbde8   :  { %24538 = vmatprep.subr.bf16.mxu0 %v24882_v3 }
0xbeb5   :  { %v16633_v7 = vpop.f32.mrb[222].mxu0 }
0xbeb6   :  { %v27750_v35 = vadd.f32 %v27403_v46, %v16633_v7  ;;  %v22425_v9 = vpop.f32.mrb[223].mxu0 }
0xbeb8   :  { %v16637_v36 = vmul.f32 %v27750_v35, %v27433_v59  ;;  %v24550_v59 = vpack.c.bf16 %v16951_v10, %v16950_v4 }
0xbeba   :  { %v16638_v57 = vadd.f32 %v16637_v36, %v27702_v53 }
0xbebc   :  { %22435 = vmatmul.mubr.msk.f32.vlgmr.msra.gmra.mrb[216].mxu1 %vm90_vm1, %v16638_v57 }
0xbebd   :  { %24522 = vmatpush3.bf16.msra.mxu1 %v24992_v11  ;;  %22453 = vmatprep.mubr.msk.f32.mxu1 %vm24883_vm0, %v24884_v6 }
0xbebe   :  { %24523 = vmatprep.subr.bf16.mxu1 %v24882_v3 }
0xbec1   :  { %24525 = vmatpush3.bf16.msra.mxu1 %v25013_v14 }
0xbec2   :  { %24526 = vmatprep.subr.bf16.mxu1 %v24882_v3 }
0xbec5   :  { %24528 = vmatpush3.bf16.msra.mxu1 %v25023_v17 }
0xbec6   :  { %24529 = vmatprep.subr.bf16.mxu1 %v24882_v3 }
0xbec9   :  { %24531 = vmatpush3.bf16.msra.mxu1 %v25032_v20 }
0xbeca   :  { %24551 = vmatprep.subr.bf16.mxu1 %v24550_v59 }
0xbf8f   :  { %v16708_v63 = vpop.f32.mrb[216].mxu1 }
0xbf90   :  { %v16709_v37 = vadd.f32 %v27390_v18, %v16708_v63  ;;  %v22436_v47 = vpop.f32.mrb[217].mxu1 }
0xbf92   :  { %24802 = vtanh.f32 %v16709_v37 }
0xbf9c   :  { %v24803_v43 = vpop.eup %24802 }
0xbf9d   :  { %22454 = vmatmul.mubr.msk.f32.vlgmr.msra.gmra.mrb[218].mxu1 %vm169_vm2, %v24803_v43 }
0xbf9e   :  { %24553 = vmatpush3.bf16.msra.mxu1 %v24550_v59  ;;  %22494 = vmatprep.mubr.msk.f32.mxu1 %vm90_vm1, %v16942_v23 }
0xbf9f   :  { %24555 = vmatprep.subr.bf16.mxu1 %v24554_v41 }
0xbfa2   :  { %24557 = vmatpush3.bf16.msra.mxu1 %v24554_v41 }
0xbfa5   :  { %22495 = vmatmul.mubr.msk.f32.vlgmr.msra.gmra.mrb[220].mxu1 %vm90_vm1, %v16943_v44 }
0xbfa6   :  { %22497 = vmatprep.mubr.msk.f32.mxu1 %vm90_vm1, %v16944_v48 }
0xbfa9   :  { %22498 = vmatmul.mubr.msk.f32.gmra.mrb[222].mxu1 %vm90_vm1, %v16945_v62 }
0xbfaa   :  { %22500 = vmatprep.mubr.msk.f32.mxu1 %vm90_vm1, %v16946_v50 }
0xbfad   :  { %22501 = vmatmul.mubr.msk.f32.gmra.mrb[224].mxu1 %vm90_vm1, %v16947_v51 }
0xbfae   :  { %22503 = vmatprep.mubr.msk.f32.mxu1 %vm90_vm1, %v16948_v52 }
0xc070   :  { %v16782_v21 = vpop.f32.mrb[218].mxu1 }
0xc071   :  { %v16783_v34 = vadd.f32 %v27403_v46, %v16782_v21  ;;  %v22455_v55 = vpop.f32.mrb[219].mxu1 }
0xc073   :  { %v16786_v56 = vmul.f32 %v16783_v34, %v27482_v58  ;;  %v16935_v42 = vadd.f32 %v16783_v34, %v27750_v35 }
0xc075   :  { %v16787_v24 = vadd.f32 %v16786_v56, %v27702_v53  ;;  %v16936_v19 = vmul.f32 2.0, %v16935_v42 }
0xc077   :  { %22465 = vmatmul.mubr.msk.f32.vlgmr.msra.gmra.mrb[224].mxu0 %vm90_vm1, %v16787_v24  ;;  %v16937_v49 = vadd.f32 %v16936_v19, %v27725_v25 }
0xc078   :  { %v22496_v26 = vpop.f32.mrb[220].mxu1  ;;  %24540 = vmatpush3.bf16.msra.mxu0 %v24992_v11  ;;  %22483 = vmatprep.mubr.msk.f32.mxu0 %vm24883_vm0, %v24884_v6 }
0xc079   :  { %v17051_v60 = vpop.f32.mrb[221].mxu1  ;;  %24541 = vmatprep.subr.bf16.mxu0 %v24882_v3  ;;  %v17057_v7 = vadd.f32 %v22496_v26, %v17512_v32 }
0xc07a   :  { %v17052_v54 = vadd.f32 %v17512_v32, %v17051_v60 }
0xc07c   :  { %v22499_v28 = vpop.f32.mrb[222].mxu1  ;;  %24543 = vmatpush3.bf16.msra.mxu0 %v25013_v14  ;;  %v17098_v14 = vld [vmem:[%s27854_s8] sm:$0xff]  ;;  %v17090_v35 = vmax.f32 %v17052_v54, 0.0 }
0xc07d   :  { %v17061_v61 = vpop.f32.mrb[223].mxu1  ;;  %24544 = vmatprep.subr.bf16.mxu0 %v24882_v3  ;;  %v17067_v25 = vadd.f32 %v22499_v28, %v17512_v32 }
0xc07e   :  { %v17062_v9 = vadd.f32 %v17512_v32, %v17061_v61 }
0xc080   :  { %v22502_v58 = vpop.f32.mrb[224].mxu1  ;;  %24546 = vmatpush3.bf16.msra.mxu0 %v25023_v17  ;;  %v17099_v17 = vld [vmem:[%s27854_s8 + $0x8] sm:$0xff] }
0xc081   :  { %v17071_v29 = vpop.f32.mrb[225].mxu1  ;;  %24547 = vmatprep.subr.bf16.mxu0 %v24882_v3  ;;  %v24558_v5 = vpack.c.bf16 %v17099_v17, %v17098_v14  ;;  %v17100_v3 = vld [vmem:[%s27854_s8 + $0x10] sm:$0xff]  ;;  %v17077_v4 = vadd.f32 %v22502_v58, %v17512_v32 }
0xc082   :  { %v17072_v57 = vadd.f32 %v17512_v32, %v17071_v29 }
0xc083   :  { %24559 = vmatprep.subr.bf16.mxu1 %v24558_v5  ;;  %v17095_v59 = vmax.f32 %v17077_v4, 0.0 }
0xc084   :  { %24549 = vmatpush3.bf16.msra.mxu0 %v25032_v20  ;;  %24561 = vmatpush3.bf16.msra.mxu1 %v24558_v5  ;;  %v17101_v20 = vld [vmem:[%s27854_s8 + $0x18] sm:$0xff]  ;;  %v17094_v10 = vmax.f32 %v17072_v57, 0.0 }
0xc14a   :  { %v16857_v11 = vpop.f32.mrb[224].mxu0 }
0xc14b   :  { %v16858_v6 = vadd.f32 %v27390_v18, %v16857_v11  ;;  %v22466_v2 = vpop.f32.mrb[225].mxu0  ;;  %v24562_v18 = vpack.c.bf16 %v17101_v20, %v17100_v3 }
0xc14d   :  { %24804 = vtanh.f32 %v16858_v6  ;;  %24563 = vmatprep.subr.bf16.mxu1 %v24562_v18 }
0xc14e   :  { %24565 = vmatpush3.bf16.msra.mxu1 %v24562_v18 }
0xc14f   :  { %24567 = vmatprep.subr.bf16.mxu1 %v24566_v38 }
0xc152   :  { %24569 = vmatpush3.bf16.msra.mxu1 %v24566_v38 }
0xc153   :  { %24571 = vmatprep.subr.bf16.mxu1 %v24570_v40 }
0xc156   :  { %24573 = vmatpush3.bf16.msra.mxu1 %v24570_v40 }
0xc157   :  { %v24805_v33 = vpop.eup %24804 }
0xc158   :  { %22484 = vmatmul.mubr.msk.f32.vlgmr.msra.gmra.mrb[226].mxu0 %vm169_vm2, %v24805_v33 }
0xc22b   :  { %v16931_v22 = vpop.f32.mrb[226].mxu0 }
0xc22c   :  { %v16932_v45 = vadd.f32 %v27403_v46, %v16931_v22  ;;  %v22485_v27 = vpop.f32.mrb[227].mxu0  ;;  %v17091_v46 = vmax.f32 %v17057_v7, 0.0 }
0xc22e   :  { %v16938_v30 = vadd.f32 %v16937_v49, %v16932_v45 }
0xc230   :  { %v16939_v1 = vmul.f32 %v16938_v30, %v27508_v15  ;;  %v17092_v15 = vmax.f32 %v17062_v9, 0.0 }
0xc232   :  { %v16940_v31 = vadd.f32 %v16939_v1, %v27702_v53  ;;  %v17093_v53 = vmax.f32 %v17067_v25, 0.0 }
0xc234   :  { %16941 = vst.msk [vmem:[#allocation2 + $0x38] sm:$0xff] %vm90_vm1, %v16940_v31 }
0xc23b   :  { %v16949_v36 = vld [vmem:[#allocation2 + $0x38] sm:$0xff] }
0xc23c   :  { %22504 = vmatmul.mubr.msk.f32.gmra.mrb[226].mxu1 %vm90_vm1, %v16949_v36 }
0xc23d   :  { %22522 = vmatprep.mubr.msk.f32.mxu1 %vm169_vm2, %v17090_v35 }
0xc240   :  { %22523 = vmatmul.mubr.msk.f32.vlgmr.msra.gmra.mrb[228].mxu1 %vm169_vm2, %v17091_v46 }
0xc241   :  { %22525 = vmatprep.mubr.msk.f32.mxu1 %vm169_vm2, %v17092_v15 }
0xc244   :  { %22526 = vmatmul.mubr.msk.f32.gmra.mrb[230].mxu1 %vm169_vm2, %v17093_v53 }
0xc245   :  { %22528 = vmatprep.mubr.msk.f32.mxu1 %vm169_vm2, %v17094_v10 }
0xc248   :  { %22529 = vmatmul.mubr.msk.f32.gmra.mrb[232].mxu1 %vm169_vm2, %v17095_v59 }
0xc30f   :  { %v22505_v63 = vpop.f32.mrb[226].mxu1 }
0xc310   :  { %v17087_v37 = vadd.f32 %v22505_v63, %v17512_v32  ;;  %v17081_v47 = vpop.f32.mrb[227].mxu1 }
0xc311   :  { %v17082_v39 = vadd.f32 %v17512_v32, %v17081_v47 }
0xc312   :  { %v17097_v43 = vmax.f32 %v17087_v37, 0.0 }
0xc313   :  { %v17096_v41 = vmax.f32 %v17082_v39, 0.0  ;;  %v22524_v23 = vpop.f32.mrb[228].mxu1 }
0xc314   :  { %v17209_v44 = vadd.f32 %v22524_v23, %v17521_v0  ;;  %v17203_v48 = vpop.f32.mrb[229].mxu1 }
0xc315   :  { %v17204_v62 = vadd.f32 %v17521_v0, %v17203_v48  ;;  %22531 = vmatprep.mubr.msk.f32.mxu1 %vm169_vm2, %v17096_v41 }
0xc316   :  { %17243 = vst [vmem:[#allocation8 + $0x8] sm:$0xff] %v17209_v44  ;;  %22532 = vmatmul.mubr.msk.f32.gmra.mrb[234].mxu1 %vm169_vm2, %v17097_v43 }
0xc317   :  { %17242 = vst [vmem:[#allocation8] sm:$0xff] %v17204_v62  ;;  %v22527_v50 = vpop.f32.mrb[230].mxu1 }
0xc318   :  { %v17219_v51 = vadd.f32 %v22527_v50, %v17521_v0  ;;  %v17213_v52 = vpop.f32.mrb[231].mxu1 }
0xc319   :  { %v17214_v21 = vadd.f32 %v17521_v0, %v17213_v52 }
0xc31a   :  { %17245 = vst [vmem:[#allocation8 + $0x18] sm:$0xff] %v17219_v51 }
0xc31b   :  { %17244 = vst [vmem:[#allocation8 + $0x10] sm:$0xff] %v17214_v21  ;;  %v22530_v34 = vpop.f32.mrb[232].mxu1 }
0xc31c   :  { %v17229_v55 = vadd.f32 %v22530_v34, %v17521_v0  ;;  %v17223_v56 = vpop.f32.mrb[233].mxu1 }
0xc31d   :  { %v17224_v24 = vadd.f32 %v17521_v0, %v17223_v56 }
0xc31e   :  { %17247 = vst [vmem:[#allocation8 + $0x28] sm:$0xff] %v17229_v55 }
0xc31f   :  { %17246 = vst [vmem:[#allocation8 + $0x20] sm:$0xff] %v17224_v24 }
0xc3e9   :  { %v22533_v26 = vpop.f32.mrb[234].mxu1 }
0xc3ea   :  { %v17239_v60 = vadd.f32 %v22533_v26, %v17521_v0  ;;  %v17233_v28 = vpop.f32.mrb[235].mxu1 }
0xc3eb   :  { %v17234_v61 = vadd.f32 %v17521_v0, %v17233_v28 }
0xc3ec   :  { %17249 = vst [vmem:[#allocation8 + $0x38] sm:$0xff] %v17239_v60 }
0xc3ed   :  { %17248 = vst [vmem:[#allocation8 + $0x30] sm:$0xff] %v17234_v61 }
0xc3ee   :  { %24861 = shalt.err (!%p24858_p3)
}
0xc3ef   :  { %s24862_s3 = scalar_lea.hbm %s27856_s10, 1024 }
0xc3f0   :  { %p24863_p4 = scmp.ne.s32.totalorder %s27856_s10, %s24862_s3  ;;  %p24866_p5 = scmp.lt.u32.totalorder %s24862_s3, %s27856_s10 }
0xc3f2   :  { %p24868_p6 = pnand %p24866_p5, %p24863_p4 }
0xc3f4   :  { %24871 = shalt.err (!%p24868_p6)
}
0xc3f5   :  { %17259 = dma.vmem_to_hbm [thread:$0]  %s17257_s2, 1024, %s27856_s10, [#allocation5]  }
0xc3f6   :  { %24876 = dma.done.wait [#allocation5], 1024  }
0xc3f7   :  { %24877 = vsyncadd [#allocation5], 4294966272 }
0xc3f8   :  { %17263 = vsyncpa [#allocation4], 1 }
0xc3f9   :  { %17264 = vsyncpa [#allocation5], 1 }
0xc3fa   :  { %17265 = vsyncpa [#allocation6], 1 }

</bundles_post_ra>
